<compile_context>
chip_gen: v7x
topology: tpu7x:2x2x1
jax: 0.10.0
libtpu: 0.0.40
codegen_flags: <defaults>
</compile_context>

<pallas_src>
import jax
import jax.numpy as jnp
from jax.experimental import pallas as pl
from jax.experimental.pallas import tpu as pltpu

# ----------------------- FFC configuration -----------------------
IN_CHANNELS  = 4
OUT_CHANNELS = 8
KERNEL_SIZE  = 3
RATIO_GIN    = 0.5
RATIO_GOUT   = 0.0
STRIDE       = 1
PADDING      = 1
GATED        = False  # gate = Identity, g2l_gate = l2g_gate = 1

IN_CG  = int(IN_CHANNELS * RATIO_GIN)     # 2
IN_CL  = IN_CHANNELS - IN_CG              # 2
OUT_CG = int(OUT_CHANNELS * RATIO_GOUT)   # 0
OUT_CL = OUT_CHANNELS - OUT_CG            # 8


# ----------------------- fused Pallas kernel -----------------------
def _make_conv_kernel(n, cin, cout, h, w, ksize):
    """Build the fused reflect-padded 3x3 conv kernel body for fixed shapes."""

    def kernel(xp_ref, w_ref, o_ref):
        # xp_ref: (n, cin, h+2, w+2) f32 VMEM  -- reflect-padded (x_l + x_g)
        # w_ref : (cout, cin*ksize*ksize) f32 SMEM -- Conv2d weight, (c, kh, kw) minor
        # o_ref : (n, cout, h, w) f32 VMEM     -- final NCHW output, written directly
        xp = xp_ref[...]
        accs = [None] * cout
        for c in range(cin):
            for kh in range(ksize):
                for kw in range(ksize):
                    # Shifted window of the padded image (value slice, static offsets).
                    tap = xp[:, c, kh:kh + h, kw:kw + w]          # (n, h, w)
                    k = (c * ksize + kh) * ksize + kw
                    for o in range(cout):
                        term = w_ref[o, k] * tap                  # SMEM scalar * VPU vregs
                        accs[o] = term if accs[o] is None else accs[o] + term
        for o in range(cout):
            o_ref[:, o, :, :] = accs[o]                           # aligned per-channel store

    return kernel


def _conv2d_reflect_pallas(x_nchw, w_oihw):
    """3x3, stride-1, reflect-padded, bias-free Conv2d as ONE fused Pallas call."""
    n, cin, h, w = x_nchw.shape
    cout, cin_w, kh_, kw_ = w_oihw.shape
    assert cin_w == cin and kh_ == KERNEL_SIZE and kw_ == KERNEL_SIZE

    # Tiny wrapper-side prologue (one XLA fusion under jit): 1-pixel reflect pad.
    xp = jnp.pad(x_nchw.astype(jnp.float32),
                 ((0, 0), (0, 0), (PADDING, PADDING), (PADDING, PADDING)),
                 mode="reflect")
    # OIHW -> (Cout, Cin*3*3); row-major reshape matches the (c, kh, kw) tap order.
    w2d = w_oihw.astype(jnp.float32).reshape(cout, cin * KERNEL_SIZE * KERNEL_SIZE)

    kernel = _make_conv_kernel(n, cin, cout, h, w, KERNEL_SIZE)
    return pl.pallas_call(
        kernel,
        out_shape=jax.ShapeDtypeStruct((n, cout, h, w), jnp.float32),
        grid=(1,),   # single step at this size (review: drop the 2-way M split)
        in_specs=[
            pl.BlockSpec((n, cin, h + 2 * PADDING, w + 2 * PADDING),
                         lambda g: (0, 0, 0, 0)),
            pl.BlockSpec(memory_space=pltpu.MemorySpace.SMEM),    # weights as scalars
        ],
        out_specs=pl.BlockSpec((n, cout, h, w), lambda g: (0, 0, 0, 0)),
        compiler_params=pltpu.CompilerParams(dimension_semantics=("arbitrary",)),
    )(xp, w2d)


# ----------------------- FFC forward (mirrors the PyTorch control flow) -----------------------
@jax.jit
def _out_xl_fused(x_l, x_g, w_g2l):
    # out_xl = convg2l(x_l) + convg2l(x_g) * 1  ==  convg2l(x_l + x_g)
    # (bias=False, gate==1, reflect pad is linear)
    return _conv2d_reflect_pallas(x_l + x_g, w_g2l)


def ffc_forward(x, w_g2l):
    x_l, x_g = x if isinstance(x, tuple) else (x, 0)
    out_xl, out_xg = 0, 0
    # gated=False -> g2l_gate = l2g_gate = 1
    if RATIO_GOUT != 1:
        out_xl = _out_xl_fused(x_l, x_g, w_g2l)
    if RATIO_GOUT != 0:
        # TODO(synk): out_xg = convl2l(x_l)*l2g_gate + convg2g(x_g) path: SpectralTransform
        # source not provided and never instantiated for this config (out_cg == 0).
        raise NotImplementedError("ratio_gout != 0 path not instantiated in this config")
    return out_xl, out_xg


# ----------------------- reference (plain JAX) -----------------------
def _ref_conv_reflect(x, w):
    xp = jnp.pad(x, ((0, 0), (0, 0), (PADDING, PADDING), (PADDING, PADDING)), mode="reflect")
    return jax.lax.conv_general_dilated(
        xp, w, (STRIDE, STRIDE), "VALID",
        dimension_numbers=("NCHW", "OIHW", "NCHW"),
        precision=jax.lax.Precision.HIGHEST)


if __name__ == "__main__":
    key = jax.random.PRNGKey(0)
    k1, k2, k3, k4 = jax.random.split(key, 4)

    N, H, W = 2, 16, 16
    x_l = jax.random.normal(k1, (N, IN_CL, H, W), jnp.float32)
    x_g = jax.random.normal(k2, (N, IN_CG, H, W), jnp.float32)

    # Deterministic parameter init (Conv2d weights, OIHW, bias=False).
    w_g2l = 0.1 * jax.random.normal(k3, (OUT_CL, IN_CG, KERNEL_SIZE, KERNEL_SIZE), jnp.float32)
    w_l2l = 0.1 * jax.random.normal(k4, (OUT_CL, IN_CL, KERNEL_SIZE, KERNEL_SIZE), jnp.float32)
    del w_l2l  # convl2l exists in __init__ but is unused in forward when ratio_gout == 0

    out_xl, out_xg = ffc_forward((x_l, x_g), w_g2l)
    out_xl = jax.block_until_ready(out_xl)

    # Validate against a pure-JAX reference of the exact forward semantics of the spec:
    #   out_xl = convg2l(x_l) + convg2l(x_g) * 1
    ref_xl = _ref_conv_reflect(x_l, w_g2l) + _ref_conv_reflect(x_g, w_g2l)
    assert out_xl.shape == (N, OUT_CL, H, W)
    assert out_xg == 0
    assert jnp.allclose(out_xl, ref_xl, atol=1e-4, rtol=1e-4), "Pallas FFC mismatch vs reference"

    print("KERNEL_OK")
</pallas_src>

<mosaic_0001>
module attributes {stable_mosaic.version = 11 : i64} {
  func.func @kernel(%arg0: i32, %arg1: memref<2x2x18x18xf32, #tpu.memory_space<vmem>>, %arg2: memref<8x18xf32, #tpu.memory_space<smem>>, %arg3: memref<2x8x16x16xf32, #tpu.memory_space<vmem>>) attributes {dimension_semantics = [#tpu.dimension_semantics<arbitrary>], iteration_bounds = array<i64: 1>, scalar_prefetch = 0 : i64, scratch_operands = 0 : i64, tpu.core_type = #tpu.core_type<tc>, window_params = [{pipeline_mode = #tpu.pipeline_mode<synchronous>, transform_indices = @transform_0, window_bounds = array<i64: 2, 2, 18, 18>}, {transform_indices = @transform_1, window_bounds = array<i64: 8, 18>}, {pipeline_mode = #tpu.pipeline_mode<synchronous>, transform_indices = @transform_2, window_bounds = array<i64: 2, 8, 16, 16>}]} {
    %c0 = arith.constant 0 : index
    %c0_0 = arith.constant 0 : index
    %c0_1 = arith.constant 0 : index
    %c0_2 = arith.constant 0 : index
    %0 = vector.load %arg1[%c0, %c0_0, %c0_1, %c0_2] : memref<2x2x18x18xf32, #tpu.memory_space<vmem>>, vector<2x2x18x18xf32>
    %1 = vector.extract_strided_slice %0 {offsets = [0, 0, 0, 0], sizes = [2, 1, 16, 16], strides = [1, 1, 1, 1]} : vector<2x2x18x18xf32> to vector<2x1x16x16xf32>
    %2 = vector.shape_cast %1 : vector<2x1x16x16xf32> to vector<2x16x16xf32>
    %c0_3 = arith.constant 0 : index
    %c0_4 = arith.constant 0 : index
    %3 = memref.load %arg2[%c0_3, %c0_4] : memref<8x18xf32, #tpu.memory_space<smem>>
    %4 = vector.broadcast %3 : f32 to vector<2x16x16xf32>
    %5 = arith.mulf %4, %2 : vector<2x16x16xf32>
    %c1 = arith.constant 1 : index
    %c0_5 = arith.constant 0 : index
    %6 = memref.load %arg2[%c1, %c0_5] : memref<8x18xf32, #tpu.memory_space<smem>>
    %7 = vector.broadcast %6 : f32 to vector<2x16x16xf32>
    %8 = arith.mulf %7, %2 : vector<2x16x16xf32>
    %c2 = arith.constant 2 : index
    %c0_6 = arith.constant 0 : index
    %9 = memref.load %arg2[%c2, %c0_6] : memref<8x18xf32, #tpu.memory_space<smem>>
    %10 = vector.broadcast %9 : f32 to vector<2x16x16xf32>
    %11 = arith.mulf %10, %2 : vector<2x16x16xf32>
    %c3 = arith.constant 3 : index
    %c0_7 = arith.constant 0 : index
    %12 = memref.load %arg2[%c3, %c0_7] : memref<8x18xf32, #tpu.memory_space<smem>>
    %13 = vector.broadcast %12 : f32 to vector<2x16x16xf32>
    %14 = arith.mulf %13, %2 : vector<2x16x16xf32>
    %c4 = arith.constant 4 : index
    %c0_8 = arith.constant 0 : index
    %15 = memref.load %arg2[%c4, %c0_8] : memref<8x18xf32, #tpu.memory_space<smem>>
    %16 = vector.broadcast %15 : f32 to vector<2x16x16xf32>
    %17 = arith.mulf %16, %2 : vector<2x16x16xf32>
    %c5 = arith.constant 5 : index
    %c0_9 = arith.constant 0 : index
    %18 = memref.load %arg2[%c5, %c0_9] : memref<8x18xf32, #tpu.memory_space<smem>>
    %19 = vector.broadcast %18 : f32 to vector<2x16x16xf32>
    %20 = arith.mulf %19, %2 : vector<2x16x16xf32>
    %c6 = arith.constant 6 : index
    %c0_10 = arith.constant 0 : index
    %21 = memref.load %arg2[%c6, %c0_10] : memref<8x18xf32, #tpu.memory_space<smem>>
    %22 = vector.broadcast %21 : f32 to vector<2x16x16xf32>
    %23 = arith.mulf %22, %2 : vector<2x16x16xf32>
    %c7 = arith.constant 7 : index
    %c0_11 = arith.constant 0 : index
    %24 = memref.load %arg2[%c7, %c0_11] : memref<8x18xf32, #tpu.memory_space<smem>>
    %25 = vector.broadcast %24 : f32 to vector<2x16x16xf32>
    %26 = arith.mulf %25, %2 : vector<2x16x16xf32>
    %27 = vector.extract_strided_slice %0 {offsets = [0, 0, 0, 1], sizes = [2, 1, 16, 16], strides = [1, 1, 1, 1]} : vector<2x2x18x18xf32> to vector<2x1x16x16xf32>
    %28 = vector.shape_cast %27 : vector<2x1x16x16xf32> to vector<2x16x16xf32>
    %c0_12 = arith.constant 0 : index
    %c1_13 = arith.constant 1 : index
    %29 = memref.load %arg2[%c0_12, %c1_13] : memref<8x18xf32, #tpu.memory_space<smem>>
    %30 = vector.broadcast %29 : f32 to vector<2x16x16xf32>
    %31 = arith.mulf %30, %28 : vector<2x16x16xf32>
    %32 = arith.addf %5, %31 : vector<2x16x16xf32>
    %c1_14 = arith.constant 1 : index
    %c1_15 = arith.constant 1 : index
    %33 = memref.load %arg2[%c1_14, %c1_15] : memref<8x18xf32, #tpu.memory_space<smem>>
    %34 = vector.broadcast %33 : f32 to vector<2x16x16xf32>
    %35 = arith.mulf %34, %28 : vector<2x16x16xf32>
    %36 = arith.addf %8, %35 : vector<2x16x16xf32>
    %c2_16 = arith.constant 2 : index
    %c1_17 = arith.constant 1 : index
    %37 = memref.load %arg2[%c2_16, %c1_17] : memref<8x18xf32, #tpu.memory_space<smem>>
    %38 = vector.broadcast %37 : f32 to vector<2x16x16xf32>
    %39 = arith.mulf %38, %28 : vector<2x16x16xf32>
    %40 = arith.addf %11, %39 : vector<2x16x16xf32>
    %c3_18 = arith.constant 3 : index
    %c1_19 = arith.constant 1 : index
    %41 = memref.load %arg2[%c3_18, %c1_19] : memref<8x18xf32, #tpu.memory_space<smem>>
    %42 = vector.broadcast %41 : f32 to vector<2x16x16xf32>
    %43 = arith.mulf %42, %28 : vector<2x16x16xf32>
    %44 = arith.addf %14, %43 : vector<2x16x16xf32>
    %c4_20 = arith.constant 4 : index
    %c1_21 = arith.constant 1 : index
    %45 = memref.load %arg2[%c4_20, %c1_21] : memref<8x18xf32, #tpu.memory_space<smem>>
    %46 = vector.broadcast %45 : f32 to vector<2x16x16xf32>
    %47 = arith.mulf %46, %28 : vector<2x16x16xf32>
    %48 = arith.addf %17, %47 : vector<2x16x16xf32>
    %c5_22 = arith.constant 5 : index
    %c1_23 = arith.constant 1 : index
    %49 = memref.load %arg2[%c5_22, %c1_23] : memref<8x18xf32, #tpu.memory_space<smem>>
    %50 = vector.broadcast %49 : f32 to vector<2x16x16xf32>
    %51 = arith.mulf %50, %28 : vector<2x16x16xf32>
    %52 = arith.addf %20, %51 : vector<2x16x16xf32>
    %c6_24 = arith.constant 6 : index
    %c1_25 = arith.constant 1 : index
    %53 = memref.load %arg2[%c6_24, %c1_25] : memref<8x18xf32, #tpu.memory_space<smem>>
    %54 = vector.broadcast %53 : f32 to vector<2x16x16xf32>
    %55 = arith.mulf %54, %28 : vector<2x16x16xf32>
    %56 = arith.addf %23, %55 : vector<2x16x16xf32>
    %c7_26 = arith.constant 7 : index
    %c1_27 = arith.constant 1 : index
    %57 = memref.load %arg2[%c7_26, %c1_27] : memref<8x18xf32, #tpu.memory_space<smem>>
    %58 = vector.broadcast %57 : f32 to vector<2x16x16xf32>
    %59 = arith.mulf %58, %28 : vector<2x16x16xf32>
    %60 = arith.addf %26, %59 : vector<2x16x16xf32>
    %61 = vector.extract_strided_slice %0 {offsets = [0, 0, 0, 2], sizes = [2, 1, 16, 16], strides = [1, 1, 1, 1]} : vector<2x2x18x18xf32> to vector<2x1x16x16xf32>
    %62 = vector.shape_cast %61 : vector<2x1x16x16xf32> to vector<2x16x16xf32>
    %c0_28 = arith.constant 0 : index
    %c2_29 = arith.constant 2 : index
    %63 = memref.load %arg2[%c0_28, %c2_29] : memref<8x18xf32, #tpu.memory_space<smem>>
    %64 = vector.broadcast %63 : f32 to vector<2x16x16xf32>
    %65 = arith.mulf %64, %62 : vector<2x16x16xf32>
    %66 = arith.addf %32, %65 : vector<2x16x16xf32>
    %c1_30 = arith.constant 1 : index
    %c2_31 = arith.constant 2 : index
    %67 = memref.load %arg2[%c1_30, %c2_31] : memref<8x18xf32, #tpu.memory_space<smem>>
    %68 = vector.broadcast %67 : f32 to vector<2x16x16xf32>
    %69 = arith.mulf %68, %62 : vector<2x16x16xf32>
    %70 = arith.addf %36, %69 : vector<2x16x16xf32>
    %c2_32 = arith.constant 2 : index
    %c2_33 = arith.constant 2 : index
    %71 = memref.load %arg2[%c2_32, %c2_33] : memref<8x18xf32, #tpu.memory_space<smem>>
    %72 = vector.broadcast %71 : f32 to vector<2x16x16xf32>
    %73 = arith.mulf %72, %62 : vector<2x16x16xf32>
    %74 = arith.addf %40, %73 : vector<2x16x16xf32>
    %c3_34 = arith.constant 3 : index
    %c2_35 = arith.constant 2 : index
    %75 = memref.load %arg2[%c3_34, %c2_35] : memref<8x18xf32, #tpu.memory_space<smem>>
    %76 = vector.broadcast %75 : f32 to vector<2x16x16xf32>
    %77 = arith.mulf %76, %62 : vector<2x16x16xf32>
    %78 = arith.addf %44, %77 : vector<2x16x16xf32>
    %c4_36 = arith.constant 4 : index
    %c2_37 = arith.constant 2 : index
    %79 = memref.load %arg2[%c4_36, %c2_37] : memref<8x18xf32, #tpu.memory_space<smem>>
    %80 = vector.broadcast %79 : f32 to vector<2x16x16xf32>
    %81 = arith.mulf %80, %62 : vector<2x16x16xf32>
    %82 = arith.addf %48, %81 : vector<2x16x16xf32>
    %c5_38 = arith.constant 5 : index
    %c2_39 = arith.constant 2 : index
    %83 = memref.load %arg2[%c5_38, %c2_39] : memref<8x18xf32, #tpu.memory_space<smem>>
    %84 = vector.broadcast %83 : f32 to vector<2x16x16xf32>
    %85 = arith.mulf %84, %62 : vector<2x16x16xf32>
    %86 = arith.addf %52, %85 : vector<2x16x16xf32>
    %c6_40 = arith.constant 6 : index
    %c2_41 = arith.constant 2 : index
    %87 = memref.load %arg2[%c6_40, %c2_41] : memref<8x18xf32, #tpu.memory_space<smem>>
    %88 = vector.broadcast %87 : f32 to vector<2x16x16xf32>
    %89 = arith.mulf %88, %62 : vector<2x16x16xf32>
    %90 = arith.addf %56, %89 : vector<2x16x16xf32>
    %c7_42 = arith.constant 7 : index
    %c2_43 = arith.constant 2 : index
    %91 = memref.load %arg2[%c7_42, %c2_43] : memref<8x18xf32, #tpu.memory_space<smem>>
    %92 = vector.broadcast %91 : f32 to vector<2x16x16xf32>
    %93 = arith.mulf %92, %62 : vector<2x16x16xf32>
    %94 = arith.addf %60, %93 : vector<2x16x16xf32>
    %95 = vector.extract_strided_slice %0 {offsets = [0, 0, 1, 0], sizes = [2, 1, 16, 16], strides = [1, 1, 1, 1]} : vector<2x2x18x18xf32> to vector<2x1x16x16xf32>
    %96 = vector.shape_cast %95 : vector<2x1x16x16xf32> to vector<2x16x16xf32>
    %c0_44 = arith.constant 0 : index
    %c3_45 = arith.constant 3 : index
    %97 = memref.load %arg2[%c0_44, %c3_45] : memref<8x18xf32, #tpu.memory_space<smem>>
    %98 = vector.broadcast %97 : f32 to vector<2x16x16xf32>
    %99 = arith.mulf %98, %96 : vector<2x16x16xf32>
    %100 = arith.addf %66, %99 : vector<2x16x16xf32>
    %c1_46 = arith.constant 1 : index
    %c3_47 = arith.constant 3 : index
    %101 = memref.load %arg2[%c1_46, %c3_47] : memref<8x18xf32, #tpu.memory_space<smem>>
    %102 = vector.broadcast %101 : f32 to vector<2x16x16xf32>
    %103 = arith.mulf %102, %96 : vector<2x16x16xf32>
    %104 = arith.addf %70, %103 : vector<2x16x16xf32>
    %c2_48 = arith.constant 2 : index
    %c3_49 = arith.constant 3 : index
    %105 = memref.load %arg2[%c2_48, %c3_49] : memref<8x18xf32, #tpu.memory_space<smem>>
    %106 = vector.broadcast %105 : f32 to vector<2x16x16xf32>
    %107 = arith.mulf %106, %96 : vector<2x16x16xf32>
    %108 = arith.addf %74, %107 : vector<2x16x16xf32>
    %c3_50 = arith.constant 3 : index
    %c3_51 = arith.constant 3 : index
    %109 = memref.load %arg2[%c3_50, %c3_51] : memref<8x18xf32, #tpu.memory_space<smem>>
    %110 = vector.broadcast %109 : f32 to vector<2x16x16xf32>
    %111 = arith.mulf %110, %96 : vector<2x16x16xf32>
    %112 = arith.addf %78, %111 : vector<2x16x16xf32>
    %c4_52 = arith.constant 4 : index
    %c3_53 = arith.constant 3 : index
    %113 = memref.load %arg2[%c4_52, %c3_53] : memref<8x18xf32, #tpu.memory_space<smem>>
    %114 = vector.broadcast %113 : f32 to vector<2x16x16xf32>
    %115 = arith.mulf %114, %96 : vector<2x16x16xf32>
    %116 = arith.addf %82, %115 : vector<2x16x16xf32>
    %c5_54 = arith.constant 5 : index
    %c3_55 = arith.constant 3 : index
    %117 = memref.load %arg2[%c5_54, %c3_55] : memref<8x18xf32, #tpu.memory_space<smem>>
    %118 = vector.broadcast %117 : f32 to vector<2x16x16xf32>
    %119 = arith.mulf %118, %96 : vector<2x16x16xf32>
    %120 = arith.addf %86, %119 : vector<2x16x16xf32>
    %c6_56 = arith.constant 6 : index
    %c3_57 = arith.constant 3 : index
    %121 = memref.load %arg2[%c6_56, %c3_57] : memref<8x18xf32, #tpu.memory_space<smem>>
    %122 = vector.broadcast %121 : f32 to vector<2x16x16xf32>
    %123 = arith.mulf %122, %96 : vector<2x16x16xf32>
    %124 = arith.addf %90, %123 : vector<2x16x16xf32>
    %c7_58 = arith.constant 7 : index
    %c3_59 = arith.constant 3 : index
    %125 = memref.load %arg2[%c7_58, %c3_59] : memref<8x18xf32, #tpu.memory_space<smem>>
    %126 = vector.broadcast %125 : f32 to vector<2x16x16xf32>
    %127 = arith.mulf %126, %96 : vector<2x16x16xf32>
    %128 = arith.addf %94, %127 : vector<2x16x16xf32>
    %129 = vector.extract_strided_slice %0 {offsets = [0, 0, 1, 1], sizes = [2, 1, 16, 16], strides = [1, 1, 1, 1]} : vector<2x2x18x18xf32> to vector<2x1x16x16xf32>
    %130 = vector.shape_cast %129 : vector<2x1x16x16xf32> to vector<2x16x16xf32>
    %c0_60 = arith.constant 0 : index
    %c4_61 = arith.constant 4 : index
    %131 = memref.load %arg2[%c0_60, %c4_61] : memref<8x18xf32, #tpu.memory_space<smem>>
    %132 = vector.broadcast %131 : f32 to vector<2x16x16xf32>
    %133 = arith.mulf %132, %130 : vector<2x16x16xf32>
    %134 = arith.addf %100, %133 : vector<2x16x16xf32>
    %c1_62 = arith.constant 1 : index
    %c4_63 = arith.constant 4 : index
    %135 = memref.load %arg2[%c1_62, %c4_63] : memref<8x18xf32, #tpu.memory_space<smem>>
    %136 = vector.broadcast %135 : f32 to vector<2x16x16xf32>
    %137 = arith.mulf %136, %130 : vector<2x16x16xf32>
    %138 = arith.addf %104, %137 : vector<2x16x16xf32>
    %c2_64 = arith.constant 2 : index
    %c4_65 = arith.constant 4 : index
    %139 = memref.load %arg2[%c2_64, %c4_65] : memref<8x18xf32, #tpu.memory_space<smem>>
    %140 = vector.broadcast %139 : f32 to vector<2x16x16xf32>
    %141 = arith.mulf %140, %130 : vector<2x16x16xf32>
    %142 = arith.addf %108, %141 : vector<2x16x16xf32>
    %c3_66 = arith.constant 3 : index
    %c4_67 = arith.constant 4 : index
    %143 = memref.load %arg2[%c3_66, %c4_67] : memref<8x18xf32, #tpu.memory_space<smem>>
    %144 = vector.broadcast %143 : f32 to vector<2x16x16xf32>
    %145 = arith.mulf %144, %130 : vector<2x16x16xf32>
    %146 = arith.addf %112, %145 : vector<2x16x16xf32>
    %c4_68 = arith.constant 4 : index
    %c4_69 = arith.constant 4 : index
    %147 = memref.load %arg2[%c4_68, %c4_69] : memref<8x18xf32, #tpu.memory_space<smem>>
    %148 = vector.broadcast %147 : f32 to vector<2x16x16xf32>
    %149 = arith.mulf %148, %130 : vector<2x16x16xf32>
    %150 = arith.addf %116, %149 : vector<2x16x16xf32>
    %c5_70 = arith.constant 5 : index
    %c4_71 = arith.constant 4 : index
    %151 = memref.load %arg2[%c5_70, %c4_71] : memref<8x18xf32, #tpu.memory_space<smem>>
    %152 = vector.broadcast %151 : f32 to vector<2x16x16xf32>
    %153 = arith.mulf %152, %130 : vector<2x16x16xf32>
    %154 = arith.addf %120, %153 : vector<2x16x16xf32>
    %c6_72 = arith.constant 6 : index
    %c4_73 = arith.constant 4 : index
    %155 = memref.load %arg2[%c6_72, %c4_73] : memref<8x18xf32, #tpu.memory_space<smem>>
    %156 = vector.broadcast %155 : f32 to vector<2x16x16xf32>
    %157 = arith.mulf %156, %130 : vector<2x16x16xf32>
    %158 = arith.addf %124, %157 : vector<2x16x16xf32>
    %c7_74 = arith.constant 7 : index
    %c4_75 = arith.constant 4 : index
    %159 = memref.load %arg2[%c7_74, %c4_75] : memref<8x18xf32, #tpu.memory_space<smem>>
    %160 = vector.broadcast %159 : f32 to vector<2x16x16xf32>
    %161 = arith.mulf %160, %130 : vector<2x16x16xf32>
    %162 = arith.addf %128, %161 : vector<2x16x16xf32>
    %163 = vector.extract_strided_slice %0 {offsets = [0, 0, 1, 2], sizes = [2, 1, 16, 16], strides = [1, 1, 1, 1]} : vector<2x2x18x18xf32> to vector<2x1x16x16xf32>
    %164 = vector.shape_cast %163 : vector<2x1x16x16xf32> to vector<2x16x16xf32>
    %c0_76 = arith.constant 0 : index
    %c5_77 = arith.constant 5 : index
    %165 = memref.load %arg2[%c0_76, %c5_77] : memref<8x18xf32, #tpu.memory_space<smem>>
    %166 = vector.broadcast %165 : f32 to vector<2x16x16xf32>
    %167 = arith.mulf %166, %164 : vector<2x16x16xf32>
    %168 = arith.addf %134, %167 : vector<2x16x16xf32>
    %c1_78 = arith.constant 1 : index
    %c5_79 = arith.constant 5 : index
    %169 = memref.load %arg2[%c1_78, %c5_79] : memref<8x18xf32, #tpu.memory_space<smem>>
    %170 = vector.broadcast %169 : f32 to vector<2x16x16xf32>
    %171 = arith.mulf %170, %164 : vector<2x16x16xf32>
    %172 = arith.addf %138, %171 : vector<2x16x16xf32>
    %c2_80 = arith.constant 2 : index
    %c5_81 = arith.constant 5 : index
    %173 = memref.load %arg2[%c2_80, %c5_81] : memref<8x18xf32, #tpu.memory_space<smem>>
    %174 = vector.broadcast %173 : f32 to vector<2x16x16xf32>
    %175 = arith.mulf %174, %164 : vector<2x16x16xf32>
    %176 = arith.addf %142, %175 : vector<2x16x16xf32>
    %c3_82 = arith.constant 3 : index
    %c5_83 = arith.constant 5 : index
    %177 = memref.load %arg2[%c3_82, %c5_83] : memref<8x18xf32, #tpu.memory_space<smem>>
    %178 = vector.broadcast %177 : f32 to vector<2x16x16xf32>
    %179 = arith.mulf %178, %164 : vector<2x16x16xf32>
    %180 = arith.addf %146, %179 : vector<2x16x16xf32>
    %c4_84 = arith.constant 4 : index
    %c5_85 = arith.constant 5 : index
    %181 = memref.load %arg2[%c4_84, %c5_85] : memref<8x18xf32, #tpu.memory_space<smem>>
    %182 = vector.broadcast %181 : f32 to vector<2x16x16xf32>
    %183 = arith.mulf %182, %164 : vector<2x16x16xf32>
    %184 = arith.addf %150, %183 : vector<2x16x16xf32>
    %c5_86 = arith.constant 5 : index
    %c5_87 = arith.constant 5 : index
    %185 = memref.load %arg2[%c5_86, %c5_87] : memref<8x18xf32, #tpu.memory_space<smem>>
    %186 = vector.broadcast %185 : f32 to vector<2x16x16xf32>
    %187 = arith.mulf %186, %164 : vector<2x16x16xf32>
    %188 = arith.addf %154, %187 : vector<2x16x16xf32>
    %c6_88 = arith.constant 6 : index
    %c5_89 = arith.constant 5 : index
    %189 = memref.load %arg2[%c6_88, %c5_89] : memref<8x18xf32, #tpu.memory_space<smem>>
    %190 = vector.broadcast %189 : f32 to vector<2x16x16xf32>
    %191 = arith.mulf %190, %164 : vector<2x16x16xf32>
    %192 = arith.addf %158, %191 : vector<2x16x16xf32>
    %c7_90 = arith.constant 7 : index
    %c5_91 = arith.constant 5 : index
    %193 = memref.load %arg2[%c7_90, %c5_91] : memref<8x18xf32, #tpu.memory_space<smem>>
    %194 = vector.broadcast %193 : f32 to vector<2x16x16xf32>
    %195 = arith.mulf %194, %164 : vector<2x16x16xf32>
    %196 = arith.addf %162, %195 : vector<2x16x16xf32>
    %197 = vector.extract_strided_slice %0 {offsets = [0, 0, 2, 0], sizes = [2, 1, 16, 16], strides = [1, 1, 1, 1]} : vector<2x2x18x18xf32> to vector<2x1x16x16xf32>
    %198 = vector.shape_cast %197 : vector<2x1x16x16xf32> to vector<2x16x16xf32>
    %c0_92 = arith.constant 0 : index
    %c6_93 = arith.constant 6 : index
    %199 = memref.load %arg2[%c0_92, %c6_93] : memref<8x18xf32, #tpu.memory_space<smem>>
    %200 = vector.broadcast %199 : f32 to vector<2x16x16xf32>
    %201 = arith.mulf %200, %198 : vector<2x16x16xf32>
    %202 = arith.addf %168, %201 : vector<2x16x16xf32>
    %c1_94 = arith.constant 1 : index
    %c6_95 = arith.constant 6 : index
    %203 = memref.load %arg2[%c1_94, %c6_95] : memref<8x18xf32, #tpu.memory_space<smem>>
    %204 = vector.broadcast %203 : f32 to vector<2x16x16xf32>
    %205 = arith.mulf %204, %198 : vector<2x16x16xf32>
    %206 = arith.addf %172, %205 : vector<2x16x16xf32>
    %c2_96 = arith.constant 2 : index
    %c6_97 = arith.constant 6 : index
    %207 = memref.load %arg2[%c2_96, %c6_97] : memref<8x18xf32, #tpu.memory_space<smem>>
    %208 = vector.broadcast %207 : f32 to vector<2x16x16xf32>
    %209 = arith.mulf %208, %198 : vector<2x16x16xf32>
    %210 = arith.addf %176, %209 : vector<2x16x16xf32>
    %c3_98 = arith.constant 3 : index
    %c6_99 = arith.constant 6 : index
    %211 = memref.load %arg2[%c3_98, %c6_99] : memref<8x18xf32, #tpu.memory_space<smem>>
    %212 = vector.broadcast %211 : f32 to vector<2x16x16xf32>
    %213 = arith.mulf %212, %198 : vector<2x16x16xf32>
    %214 = arith.addf %180, %213 : vector<2x16x16xf32>
    %c4_100 = arith.constant 4 : index
    %c6_101 = arith.constant 6 : index
    %215 = memref.load %arg2[%c4_100, %c6_101] : memref<8x18xf32, #tpu.memory_space<smem>>
    %216 = vector.broadcast %215 : f32 to vector<2x16x16xf32>
    %217 = arith.mulf %216, %198 : vector<2x16x16xf32>
    %218 = arith.addf %184, %217 : vector<2x16x16xf32>
    %c5_102 = arith.constant 5 : index
    %c6_103 = arith.constant 6 : index
    %219 = memref.load %arg2[%c5_102, %c6_103] : memref<8x18xf32, #tpu.memory_space<smem>>
    %220 = vector.broadcast %219 : f32 to vector<2x16x16xf32>
    %221 = arith.mulf %220, %198 : vector<2x16x16xf32>
    %222 = arith.addf %188, %221 : vector<2x16x16xf32>
    %c6_104 = arith.constant 6 : index
    %c6_105 = arith.constant 6 : index
    %223 = memref.load %arg2[%c6_104, %c6_105] : memref<8x18xf32, #tpu.memory_space<smem>>
    %224 = vector.broadcast %223 : f32 to vector<2x16x16xf32>
    %225 = arith.mulf %224, %198 : vector<2x16x16xf32>
    %226 = arith.addf %192, %225 : vector<2x16x16xf32>
    %c7_106 = arith.constant 7 : index
    %c6_107 = arith.constant 6 : index
    %227 = memref.load %arg2[%c7_106, %c6_107] : memref<8x18xf32, #tpu.memory_space<smem>>
    %228 = vector.broadcast %227 : f32 to vector<2x16x16xf32>
    %229 = arith.mulf %228, %198 : vector<2x16x16xf32>
    %230 = arith.addf %196, %229 : vector<2x16x16xf32>
    %231 = vector.extract_strided_slice %0 {offsets = [0, 0, 2, 1], sizes = [2, 1, 16, 16], strides = [1, 1, 1, 1]} : vector<2x2x18x18xf32> to vector<2x1x16x16xf32>
    %232 = vector.shape_cast %231 : vector<2x1x16x16xf32> to vector<2x16x16xf32>
    %c0_108 = arith.constant 0 : index
    %c7_109 = arith.constant 7 : index
    %233 = memref.load %arg2[%c0_108, %c7_109] : memref<8x18xf32, #tpu.memory_space<smem>>
    %234 = vector.broadcast %233 : f32 to vector<2x16x16xf32>
    %235 = arith.mulf %234, %232 : vector<2x16x16xf32>
    %236 = arith.addf %202, %235 : vector<2x16x16xf32>
    %c1_110 = arith.constant 1 : index
    %c7_111 = arith.constant 7 : index
    %237 = memref.load %arg2[%c1_110, %c7_111] : memref<8x18xf32, #tpu.memory_space<smem>>
    %238 = vector.broadcast %237 : f32 to vector<2x16x16xf32>
    %239 = arith.mulf %238, %232 : vector<2x16x16xf32>
    %240 = arith.addf %206, %239 : vector<2x16x16xf32>
    %c2_112 = arith.constant 2 : index
    %c7_113 = arith.constant 7 : index
    %241 = memref.load %arg2[%c2_112, %c7_113] : memref<8x18xf32, #tpu.memory_space<smem>>
    %242 = vector.broadcast %241 : f32 to vector<2x16x16xf32>
    %243 = arith.mulf %242, %232 : vector<2x16x16xf32>
    %244 = arith.addf %210, %243 : vector<2x16x16xf32>
    %c3_114 = arith.constant 3 : index
    %c7_115 = arith.constant 7 : index
    %245 = memref.load %arg2[%c3_114, %c7_115] : memref<8x18xf32, #tpu.memory_space<smem>>
    %246 = vector.broadcast %245 : f32 to vector<2x16x16xf32>
    %247 = arith.mulf %246, %232 : vector<2x16x16xf32>
    %248 = arith.addf %214, %247 : vector<2x16x16xf32>
    %c4_116 = arith.constant 4 : index
    %c7_117 = arith.constant 7 : index
    %249 = memref.load %arg2[%c4_116, %c7_117] : memref<8x18xf32, #tpu.memory_space<smem>>
    %250 = vector.broadcast %249 : f32 to vector<2x16x16xf32>
    %251 = arith.mulf %250, %232 : vector<2x16x16xf32>
    %252 = arith.addf %218, %251 : vector<2x16x16xf32>
    %c5_118 = arith.constant 5 : index
    %c7_119 = arith.constant 7 : index
    %253 = memref.load %arg2[%c5_118, %c7_119] : memref<8x18xf32, #tpu.memory_space<smem>>
    %254 = vector.broadcast %253 : f32 to vector<2x16x16xf32>
    %255 = arith.mulf %254, %232 : vector<2x16x16xf32>
    %256 = arith.addf %222, %255 : vector<2x16x16xf32>
    %c6_120 = arith.constant 6 : index
    %c7_121 = arith.constant 7 : index
    %257 = memref.load %arg2[%c6_120, %c7_121] : memref<8x18xf32, #tpu.memory_space<smem>>
    %258 = vector.broadcast %257 : f32 to vector<2x16x16xf32>
    %259 = arith.mulf %258, %232 : vector<2x16x16xf32>
    %260 = arith.addf %226, %259 : vector<2x16x16xf32>
    %c7_122 = arith.constant 7 : index
    %c7_123 = arith.constant 7 : index
    %261 = memref.load %arg2[%c7_122, %c7_123] : memref<8x18xf32, #tpu.memory_space<smem>>
    %262 = vector.broadcast %261 : f32 to vector<2x16x16xf32>
    %263 = arith.mulf %262, %232 : vector<2x16x16xf32>
    %264 = arith.addf %230, %263 : vector<2x16x16xf32>
    %265 = vector.extract_strided_slice %0 {offsets = [0, 0, 2, 2], sizes = [2, 1, 16, 16], strides = [1, 1, 1, 1]} : vector<2x2x18x18xf32> to vector<2x1x16x16xf32>
    %266 = vector.shape_cast %265 : vector<2x1x16x16xf32> to vector<2x16x16xf32>
    %c0_124 = arith.constant 0 : index
    %c8 = arith.constant 8 : index
    %267 = memref.load %arg2[%c0_124, %c8] : memref<8x18xf32, #tpu.memory_space<smem>>
    %268 = vector.broadcast %267 : f32 to vector<2x16x16xf32>
    %269 = arith.mulf %268, %266 : vector<2x16x16xf32>
    %270 = arith.addf %236, %269 : vector<2x16x16xf32>
    %c1_125 = arith.constant 1 : index
    %c8_126 = arith.constant 8 : index
    %271 = memref.load %arg2[%c1_125, %c8_126] : memref<8x18xf32, #tpu.memory_space<smem>>
    %272 = vector.broadcast %271 : f32 to vector<2x16x16xf32>
    %273 = arith.mulf %272, %266 : vector<2x16x16xf32>
    %274 = arith.addf %240, %273 : vector<2x16x16xf32>
    %c2_127 = arith.constant 2 : index
    %c8_128 = arith.constant 8 : index
    %275 = memref.load %arg2[%c2_127, %c8_128] : memref<8x18xf32, #tpu.memory_space<smem>>
    %276 = vector.broadcast %275 : f32 to vector<2x16x16xf32>
    %277 = arith.mulf %276, %266 : vector<2x16x16xf32>
    %278 = arith.addf %244, %277 : vector<2x16x16xf32>
    %c3_129 = arith.constant 3 : index
    %c8_130 = arith.constant 8 : index
    %279 = memref.load %arg2[%c3_129, %c8_130] : memref<8x18xf32, #tpu.memory_space<smem>>
    %280 = vector.broadcast %279 : f32 to vector<2x16x16xf32>
    %281 = arith.mulf %280, %266 : vector<2x16x16xf32>
    %282 = arith.addf %248, %281 : vector<2x16x16xf32>
    %c4_131 = arith.constant 4 : index
    %c8_132 = arith.constant 8 : index
    %283 = memref.load %arg2[%c4_131, %c8_132] : memref<8x18xf32, #tpu.memory_space<smem>>
    %284 = vector.broadcast %283 : f32 to vector<2x16x16xf32>
    %285 = arith.mulf %284, %266 : vector<2x16x16xf32>
    %286 = arith.addf %252, %285 : vector<2x16x16xf32>
    %c5_133 = arith.constant 5 : index
    %c8_134 = arith.constant 8 : index
    %287 = memref.load %arg2[%c5_133, %c8_134] : memref<8x18xf32, #tpu.memory_space<smem>>
    %288 = vector.broadcast %287 : f32 to vector<2x16x16xf32>
    %289 = arith.mulf %288, %266 : vector<2x16x16xf32>
    %290 = arith.addf %256, %289 : vector<2x16x16xf32>
    %c6_135 = arith.constant 6 : index
    %c8_136 = arith.constant 8 : index
    %291 = memref.load %arg2[%c6_135, %c8_136] : memref<8x18xf32, #tpu.memory_space<smem>>
    %292 = vector.broadcast %291 : f32 to vector<2x16x16xf32>
    %293 = arith.mulf %292, %266 : vector<2x16x16xf32>
    %294 = arith.addf %260, %293 : vector<2x16x16xf32>
    %c7_137 = arith.constant 7 : index
    %c8_138 = arith.constant 8 : index
    %295 = memref.load %arg2[%c7_137, %c8_138] : memref<8x18xf32, #tpu.memory_space<smem>>
    %296 = vector.broadcast %295 : f32 to vector<2x16x16xf32>
    %297 = arith.mulf %296, %266 : vector<2x16x16xf32>
    %298 = arith.addf %264, %297 : vector<2x16x16xf32>
    %299 = vector.extract_strided_slice %0 {offsets = [0, 1, 0, 0], sizes = [2, 1, 16, 16], strides = [1, 1, 1, 1]} : vector<2x2x18x18xf32> to vector<2x1x16x16xf32>
    %300 = vector.shape_cast %299 : vector<2x1x16x16xf32> to vector<2x16x16xf32>
    %c0_139 = arith.constant 0 : index
    %c9 = arith.constant 9 : index
    %301 = memref.load %arg2[%c0_139, %c9] : memref<8x18xf32, #tpu.memory_space<smem>>
    %302 = vector.broadcast %301 : f32 to vector<2x16x16xf32>
    %303 = arith.mulf %302, %300 : vector<2x16x16xf32>
    %304 = arith.addf %270, %303 : vector<2x16x16xf32>
    %c1_140 = arith.constant 1 : index
    %c9_141 = arith.constant 9 : index
    %305 = memref.load %arg2[%c1_140, %c9_141] : memref<8x18xf32, #tpu.memory_space<smem>>
    %306 = vector.broadcast %305 : f32 to vector<2x16x16xf32>
    %307 = arith.mulf %306, %300 : vector<2x16x16xf32>
    %308 = arith.addf %274, %307 : vector<2x16x16xf32>
    %c2_142 = arith.constant 2 : index
    %c9_143 = arith.constant 9 : index
    %309 = memref.load %arg2[%c2_142, %c9_143] : memref<8x18xf32, #tpu.memory_space<smem>>
    %310 = vector.broadcast %309 : f32 to vector<2x16x16xf32>
    %311 = arith.mulf %310, %300 : vector<2x16x16xf32>
    %312 = arith.addf %278, %311 : vector<2x16x16xf32>
    %c3_144 = arith.constant 3 : index
    %c9_145 = arith.constant 9 : index
    %313 = memref.load %arg2[%c3_144, %c9_145] : memref<8x18xf32, #tpu.memory_space<smem>>
    %314 = vector.broadcast %313 : f32 to vector<2x16x16xf32>
    %315 = arith.mulf %314, %300 : vector<2x16x16xf32>
    %316 = arith.addf %282, %315 : vector<2x16x16xf32>
    %c4_146 = arith.constant 4 : index
    %c9_147 = arith.constant 9 : index
    %317 = memref.load %arg2[%c4_146, %c9_147] : memref<8x18xf32, #tpu.memory_space<smem>>
    %318 = vector.broadcast %317 : f32 to vector<2x16x16xf32>
    %319 = arith.mulf %318, %300 : vector<2x16x16xf32>
    %320 = arith.addf %286, %319 : vector<2x16x16xf32>
    %c5_148 = arith.constant 5 : index
    %c9_149 = arith.constant 9 : index
    %321 = memref.load %arg2[%c5_148, %c9_149] : memref<8x18xf32, #tpu.memory_space<smem>>
    %322 = vector.broadcast %321 : f32 to vector<2x16x16xf32>
    %323 = arith.mulf %322, %300 : vector<2x16x16xf32>
    %324 = arith.addf %290, %323 : vector<2x16x16xf32>
    %c6_150 = arith.constant 6 : index
    %c9_151 = arith.constant 9 : index
    %325 = memref.load %arg2[%c6_150, %c9_151] : memref<8x18xf32, #tpu.memory_space<smem>>
    %326 = vector.broadcast %325 : f32 to vector<2x16x16xf32>
    %327 = arith.mulf %326, %300 : vector<2x16x16xf32>
    %328 = arith.addf %294, %327 : vector<2x16x16xf32>
    %c7_152 = arith.constant 7 : index
    %c9_153 = arith.constant 9 : index
    %329 = memref.load %arg2[%c7_152, %c9_153] : memref<8x18xf32, #tpu.memory_space<smem>>
    %330 = vector.broadcast %329 : f32 to vector<2x16x16xf32>
    %331 = arith.mulf %330, %300 : vector<2x16x16xf32>
    %332 = arith.addf %298, %331 : vector<2x16x16xf32>
    %333 = vector.extract_strided_slice %0 {offsets = [0, 1, 0, 1], sizes = [2, 1, 16, 16], strides = [1, 1, 1, 1]} : vector<2x2x18x18xf32> to vector<2x1x16x16xf32>
    %334 = vector.shape_cast %333 : vector<2x1x16x16xf32> to vector<2x16x16xf32>
    %c0_154 = arith.constant 0 : index
    %c10 = arith.constant 10 : index
    %335 = memref.load %arg2[%c0_154, %c10] : memref<8x18xf32, #tpu.memory_space<smem>>
    %336 = vector.broadcast %335 : f32 to vector<2x16x16xf32>
    %337 = arith.mulf %336, %334 : vector<2x16x16xf32>
    %338 = arith.addf %304, %337 : vector<2x16x16xf32>
    %c1_155 = arith.constant 1 : index
    %c10_156 = arith.constant 10 : index
    %339 = memref.load %arg2[%c1_155, %c10_156] : memref<8x18xf32, #tpu.memory_space<smem>>
    %340 = vector.broadcast %339 : f32 to vector<2x16x16xf32>
    %341 = arith.mulf %340, %334 : vector<2x16x16xf32>
    %342 = arith.addf %308, %341 : vector<2x16x16xf32>
    %c2_157 = arith.constant 2 : index
    %c10_158 = arith.constant 10 : index
    %343 = memref.load %arg2[%c2_157, %c10_158] : memref<8x18xf32, #tpu.memory_space<smem>>
    %344 = vector.broadcast %343 : f32 to vector<2x16x16xf32>
    %345 = arith.mulf %344, %334 : vector<2x16x16xf32>
    %346 = arith.addf %312, %345 : vector<2x16x16xf32>
    %c3_159 = arith.constant 3 : index
    %c10_160 = arith.constant 10 : index
    %347 = memref.load %arg2[%c3_159, %c10_160] : memref<8x18xf32, #tpu.memory_space<smem>>
    %348 = vector.broadcast %347 : f32 to vector<2x16x16xf32>
    %349 = arith.mulf %348, %334 : vector<2x16x16xf32>
    %350 = arith.addf %316, %349 : vector<2x16x16xf32>
    %c4_161 = arith.constant 4 : index
    %c10_162 = arith.constant 10 : index
    %351 = memref.load %arg2[%c4_161, %c10_162] : memref<8x18xf32, #tpu.memory_space<smem>>
    %352 = vector.broadcast %351 : f32 to vector<2x16x16xf32>
    %353 = arith.mulf %352, %334 : vector<2x16x16xf32>
    %354 = arith.addf %320, %353 : vector<2x16x16xf32>
    %c5_163 = arith.constant 5 : index
    %c10_164 = arith.constant 10 : index
    %355 = memref.load %arg2[%c5_163, %c10_164] : memref<8x18xf32, #tpu.memory_space<smem>>
    %356 = vector.broadcast %355 : f32 to vector<2x16x16xf32>
    %357 = arith.mulf %356, %334 : vector<2x16x16xf32>
    %358 = arith.addf %324, %357 : vector<2x16x16xf32>
    %c6_165 = arith.constant 6 : index
    %c10_166 = arith.constant 10 : index
    %359 = memref.load %arg2[%c6_165, %c10_166] : memref<8x18xf32, #tpu.memory_space<smem>>
    %360 = vector.broadcast %359 : f32 to vector<2x16x16xf32>
    %361 = arith.mulf %360, %334 : vector<2x16x16xf32>
    %362 = arith.addf %328, %361 : vector<2x16x16xf32>
    %c7_167 = arith.constant 7 : index
    %c10_168 = arith.constant 10 : index
    %363 = memref.load %arg2[%c7_167, %c10_168] : memref<8x18xf32, #tpu.memory_space<smem>>
    %364 = vector.broadcast %363 : f32 to vector<2x16x16xf32>
    %365 = arith.mulf %364, %334 : vector<2x16x16xf32>
    %366 = arith.addf %332, %365 : vector<2x16x16xf32>
    %367 = vector.extract_strided_slice %0 {offsets = [0, 1, 0, 2], sizes = [2, 1, 16, 16], strides = [1, 1, 1, 1]} : vector<2x2x18x18xf32> to vector<2x1x16x16xf32>
    %368 = vector.shape_cast %367 : vector<2x1x16x16xf32> to vector<2x16x16xf32>
    %c0_169 = arith.constant 0 : index
    %c11 = arith.constant 11 : index
    %369 = memref.load %arg2[%c0_169, %c11] : memref<8x18xf32, #tpu.memory_space<smem>>
    %370 = vector.broadcast %369 : f32 to vector<2x16x16xf32>
    %371 = arith.mulf %370, %368 : vector<2x16x16xf32>
    %372 = arith.addf %338, %371 : vector<2x16x16xf32>
    %c1_170 = arith.constant 1 : index
    %c11_171 = arith.constant 11 : index
    %373 = memref.load %arg2[%c1_170, %c11_171] : memref<8x18xf32, #tpu.memory_space<smem>>
    %374 = vector.broadcast %373 : f32 to vector<2x16x16xf32>
    %375 = arith.mulf %374, %368 : vector<2x16x16xf32>
    %376 = arith.addf %342, %375 : vector<2x16x16xf32>
    %c2_172 = arith.constant 2 : index
    %c11_173 = arith.constant 11 : index
    %377 = memref.load %arg2[%c2_172, %c11_173] : memref<8x18xf32, #tpu.memory_space<smem>>
    %378 = vector.broadcast %377 : f32 to vector<2x16x16xf32>
    %379 = arith.mulf %378, %368 : vector<2x16x16xf32>
    %380 = arith.addf %346, %379 : vector<2x16x16xf32>
    %c3_174 = arith.constant 3 : index
    %c11_175 = arith.constant 11 : index
    %381 = memref.load %arg2[%c3_174, %c11_175] : memref<8x18xf32, #tpu.memory_space<smem>>
    %382 = vector.broadcast %381 : f32 to vector<2x16x16xf32>
    %383 = arith.mulf %382, %368 : vector<2x16x16xf32>
    %384 = arith.addf %350, %383 : vector<2x16x16xf32>
    %c4_176 = arith.constant 4 : index
    %c11_177 = arith.constant 11 : index
    %385 = memref.load %arg2[%c4_176, %c11_177] : memref<8x18xf32, #tpu.memory_space<smem>>
    %386 = vector.broadcast %385 : f32 to vector<2x16x16xf32>
    %387 = arith.mulf %386, %368 : vector<2x16x16xf32>
    %388 = arith.addf %354, %387 : vector<2x16x16xf32>
    %c5_178 = arith.constant 5 : index
    %c11_179 = arith.constant 11 : index
    %389 = memref.load %arg2[%c5_178, %c11_179] : memref<8x18xf32, #tpu.memory_space<smem>>
    %390 = vector.broadcast %389 : f32 to vector<2x16x16xf32>
    %391 = arith.mulf %390, %368 : vector<2x16x16xf32>
    %392 = arith.addf %358, %391 : vector<2x16x16xf32>
    %c6_180 = arith.constant 6 : index
    %c11_181 = arith.constant 11 : index
    %393 = memref.load %arg2[%c6_180, %c11_181] : memref<8x18xf32, #tpu.memory_space<smem>>
    %394 = vector.broadcast %393 : f32 to vector<2x16x16xf32>
    %395 = arith.mulf %394, %368 : vector<2x16x16xf32>
    %396 = arith.addf %362, %395 : vector<2x16x16xf32>
    %c7_182 = arith.constant 7 : index
    %c11_183 = arith.constant 11 : index
    %397 = memref.load %arg2[%c7_182, %c11_183] : memref<8x18xf32, #tpu.memory_space<smem>>
    %398 = vector.broadcast %397 : f32 to vector<2x16x16xf32>
    %399 = arith.mulf %398, %368 : vector<2x16x16xf32>
    %400 = arith.addf %366, %399 : vector<2x16x16xf32>
    %401 = vector.extract_strided_slice %0 {offsets = [0, 1, 1, 0], sizes = [2, 1, 16, 16], strides = [1, 1, 1, 1]} : vector<2x2x18x18xf32> to vector<2x1x16x16xf32>
    %402 = vector.shape_cast %401 : vector<2x1x16x16xf32> to vector<2x16x16xf32>
    %c0_184 = arith.constant 0 : index
    %c12 = arith.constant 12 : index
    %403 = memref.load %arg2[%c0_184, %c12] : memref<8x18xf32, #tpu.memory_space<smem>>
    %404 = vector.broadcast %403 : f32 to vector<2x16x16xf32>
    %405 = arith.mulf %404, %402 : vector<2x16x16xf32>
    %406 = arith.addf %372, %405 : vector<2x16x16xf32>
    %c1_185 = arith.constant 1 : index
    %c12_186 = arith.constant 12 : index
    %407 = memref.load %arg2[%c1_185, %c12_186] : memref<8x18xf32, #tpu.memory_space<smem>>
    %408 = vector.broadcast %407 : f32 to vector<2x16x16xf32>
    %409 = arith.mulf %408, %402 : vector<2x16x16xf32>
    %410 = arith.addf %376, %409 : vector<2x16x16xf32>
    %c2_187 = arith.constant 2 : index
    %c12_188 = arith.constant 12 : index
    %411 = memref.load %arg2[%c2_187, %c12_188] : memref<8x18xf32, #tpu.memory_space<smem>>
    %412 = vector.broadcast %411 : f32 to vector<2x16x16xf32>
    %413 = arith.mulf %412, %402 : vector<2x16x16xf32>
    %414 = arith.addf %380, %413 : vector<2x16x16xf32>
    %c3_189 = arith.constant 3 : index
    %c12_190 = arith.constant 12 : index
    %415 = memref.load %arg2[%c3_189, %c12_190] : memref<8x18xf32, #tpu.memory_space<smem>>
    %416 = vector.broadcast %415 : f32 to vector<2x16x16xf32>
    %417 = arith.mulf %416, %402 : vector<2x16x16xf32>
    %418 = arith.addf %384, %417 : vector<2x16x16xf32>
    %c4_191 = arith.constant 4 : index
    %c12_192 = arith.constant 12 : index
    %419 = memref.load %arg2[%c4_191, %c12_192] : memref<8x18xf32, #tpu.memory_space<smem>>
    %420 = vector.broadcast %419 : f32 to vector<2x16x16xf32>
    %421 = arith.mulf %420, %402 : vector<2x16x16xf32>
    %422 = arith.addf %388, %421 : vector<2x16x16xf32>
    %c5_193 = arith.constant 5 : index
    %c12_194 = arith.constant 12 : index
    %423 = memref.load %arg2[%c5_193, %c12_194] : memref<8x18xf32, #tpu.memory_space<smem>>
    %424 = vector.broadcast %423 : f32 to vector<2x16x16xf32>
    %425 = arith.mulf %424, %402 : vector<2x16x16xf32>
    %426 = arith.addf %392, %425 : vector<2x16x16xf32>
    %c6_195 = arith.constant 6 : index
    %c12_196 = arith.constant 12 : index
    %427 = memref.load %arg2[%c6_195, %c12_196] : memref<8x18xf32, #tpu.memory_space<smem>>
    %428 = vector.broadcast %427 : f32 to vector<2x16x16xf32>
    %429 = arith.mulf %428, %402 : vector<2x16x16xf32>
    %430 = arith.addf %396, %429 : vector<2x16x16xf32>
    %c7_197 = arith.constant 7 : index
    %c12_198 = arith.constant 12 : index
    %431 = memref.load %arg2[%c7_197, %c12_198] : memref<8x18xf32, #tpu.memory_space<smem>>
    %432 = vector.broadcast %431 : f32 to vector<2x16x16xf32>
    %433 = arith.mulf %432, %402 : vector<2x16x16xf32>
    %434 = arith.addf %400, %433 : vector<2x16x16xf32>
    %435 = vector.extract_strided_slice %0 {offsets = [0, 1, 1, 1], sizes = [2, 1, 16, 16], strides = [1, 1, 1, 1]} : vector<2x2x18x18xf32> to vector<2x1x16x16xf32>
    %436 = vector.shape_cast %435 : vector<2x1x16x16xf32> to vector<2x16x16xf32>
    %c0_199 = arith.constant 0 : index
    %c13 = arith.constant 13 : index
    %437 = memref.load %arg2[%c0_199, %c13] : memref<8x18xf32, #tpu.memory_space<smem>>
    %438 = vector.broadcast %437 : f32 to vector<2x16x16xf32>
    %439 = arith.mulf %438, %436 : vector<2x16x16xf32>
    %440 = arith.addf %406, %439 : vector<2x16x16xf32>
    %c1_200 = arith.constant 1 : index
    %c13_201 = arith.constant 13 : index
    %441 = memref.load %arg2[%c1_200, %c13_201] : memref<8x18xf32, #tpu.memory_space<smem>>
    %442 = vector.broadcast %441 : f32 to vector<2x16x16xf32>
    %443 = arith.mulf %442, %436 : vector<2x16x16xf32>
    %444 = arith.addf %410, %443 : vector<2x16x16xf32>
    %c2_202 = arith.constant 2 : index
    %c13_203 = arith.constant 13 : index
    %445 = memref.load %arg2[%c2_202, %c13_203] : memref<8x18xf32, #tpu.memory_space<smem>>
    %446 = vector.broadcast %445 : f32 to vector<2x16x16xf32>
    %447 = arith.mulf %446, %436 : vector<2x16x16xf32>
    %448 = arith.addf %414, %447 : vector<2x16x16xf32>
    %c3_204 = arith.constant 3 : index
    %c13_205 = arith.constant 13 : index
    %449 = memref.load %arg2[%c3_204, %c13_205] : memref<8x18xf32, #tpu.memory_space<smem>>
    %450 = vector.broadcast %449 : f32 to vector<2x16x16xf32>
    %451 = arith.mulf %450, %436 : vector<2x16x16xf32>
    %452 = arith.addf %418, %451 : vector<2x16x16xf32>
    %c4_206 = arith.constant 4 : index
    %c13_207 = arith.constant 13 : index
    %453 = memref.load %arg2[%c4_206, %c13_207] : memref<8x18xf32, #tpu.memory_space<smem>>
    %454 = vector.broadcast %453 : f32 to vector<2x16x16xf32>
    %455 = arith.mulf %454, %436 : vector<2x16x16xf32>
    %456 = arith.addf %422, %455 : vector<2x16x16xf32>
    %c5_208 = arith.constant 5 : index
    %c13_209 = arith.constant 13 : index
    %457 = memref.load %arg2[%c5_208, %c13_209] : memref<8x18xf32, #tpu.memory_space<smem>>
    %458 = vector.broadcast %457 : f32 to vector<2x16x16xf32>
    %459 = arith.mulf %458, %436 : vector<2x16x16xf32>
    %460 = arith.addf %426, %459 : vector<2x16x16xf32>
    %c6_210 = arith.constant 6 : index
    %c13_211 = arith.constant 13 : index
    %461 = memref.load %arg2[%c6_210, %c13_211] : memref<8x18xf32, #tpu.memory_space<smem>>
    %462 = vector.broadcast %461 : f32 to vector<2x16x16xf32>
    %463 = arith.mulf %462, %436 : vector<2x16x16xf32>
    %464 = arith.addf %430, %463 : vector<2x16x16xf32>
    %c7_212 = arith.constant 7 : index
    %c13_213 = arith.constant 13 : index
    %465 = memref.load %arg2[%c7_212, %c13_213] : memref<8x18xf32, #tpu.memory_space<smem>>
    %466 = vector.broadcast %465 : f32 to vector<2x16x16xf32>
    %467 = arith.mulf %466, %436 : vector<2x16x16xf32>
    %468 = arith.addf %434, %467 : vector<2x16x16xf32>
    %469 = vector.extract_strided_slice %0 {offsets = [0, 1, 1, 2], sizes = [2, 1, 16, 16], strides = [1, 1, 1, 1]} : vector<2x2x18x18xf32> to vector<2x1x16x16xf32>
    %470 = vector.shape_cast %469 : vector<2x1x16x16xf32> to vector<2x16x16xf32>
    %c0_214 = arith.constant 0 : index
    %c14 = arith.constant 14 : index
    %471 = memref.load %arg2[%c0_214, %c14] : memref<8x18xf32, #tpu.memory_space<smem>>
    %472 = vector.broadcast %471 : f32 to vector<2x16x16xf32>
    %473 = arith.mulf %472, %470 : vector<2x16x16xf32>
    %474 = arith.addf %440, %473 : vector<2x16x16xf32>
    %c1_215 = arith.constant 1 : index
    %c14_216 = arith.constant 14 : index
    %475 = memref.load %arg2[%c1_215, %c14_216] : memref<8x18xf32, #tpu.memory_space<smem>>
    %476 = vector.broadcast %475 : f32 to vector<2x16x16xf32>
    %477 = arith.mulf %476, %470 : vector<2x16x16xf32>
    %478 = arith.addf %444, %477 : vector<2x16x16xf32>
    %c2_217 = arith.constant 2 : index
    %c14_218 = arith.constant 14 : index
    %479 = memref.load %arg2[%c2_217, %c14_218] : memref<8x18xf32, #tpu.memory_space<smem>>
    %480 = vector.broadcast %479 : f32 to vector<2x16x16xf32>
    %481 = arith.mulf %480, %470 : vector<2x16x16xf32>
    %482 = arith.addf %448, %481 : vector<2x16x16xf32>
    %c3_219 = arith.constant 3 : index
    %c14_220 = arith.constant 14 : index
    %483 = memref.load %arg2[%c3_219, %c14_220] : memref<8x18xf32, #tpu.memory_space<smem>>
    %484 = vector.broadcast %483 : f32 to vector<2x16x16xf32>
    %485 = arith.mulf %484, %470 : vector<2x16x16xf32>
    %486 = arith.addf %452, %485 : vector<2x16x16xf32>
    %c4_221 = arith.constant 4 : index
    %c14_222 = arith.constant 14 : index
    %487 = memref.load %arg2[%c4_221, %c14_222] : memref<8x18xf32, #tpu.memory_space<smem>>
    %488 = vector.broadcast %487 : f32 to vector<2x16x16xf32>
    %489 = arith.mulf %488, %470 : vector<2x16x16xf32>
    %490 = arith.addf %456, %489 : vector<2x16x16xf32>
    %c5_223 = arith.constant 5 : index
    %c14_224 = arith.constant 14 : index
    %491 = memref.load %arg2[%c5_223, %c14_224] : memref<8x18xf32, #tpu.memory_space<smem>>
    %492 = vector.broadcast %491 : f32 to vector<2x16x16xf32>
    %493 = arith.mulf %492, %470 : vector<2x16x16xf32>
    %494 = arith.addf %460, %493 : vector<2x16x16xf32>
    %c6_225 = arith.constant 6 : index
    %c14_226 = arith.constant 14 : index
    %495 = memref.load %arg2[%c6_225, %c14_226] : memref<8x18xf32, #tpu.memory_space<smem>>
    %496 = vector.broadcast %495 : f32 to vector<2x16x16xf32>
    %497 = arith.mulf %496, %470 : vector<2x16x16xf32>
    %498 = arith.addf %464, %497 : vector<2x16x16xf32>
    %c7_227 = arith.constant 7 : index
    %c14_228 = arith.constant 14 : index
    %499 = memref.load %arg2[%c7_227, %c14_228] : memref<8x18xf32, #tpu.memory_space<smem>>
    %500 = vector.broadcast %499 : f32 to vector<2x16x16xf32>
    %501 = arith.mulf %500, %470 : vector<2x16x16xf32>
    %502 = arith.addf %468, %501 : vector<2x16x16xf32>
    %503 = vector.extract_strided_slice %0 {offsets = [0, 1, 2, 0], sizes = [2, 1, 16, 16], strides = [1, 1, 1, 1]} : vector<2x2x18x18xf32> to vector<2x1x16x16xf32>
    %504 = vector.shape_cast %503 : vector<2x1x16x16xf32> to vector<2x16x16xf32>
    %c0_229 = arith.constant 0 : index
    %c15 = arith.constant 15 : index
    %505 = memref.load %arg2[%c0_229, %c15] : memref<8x18xf32, #tpu.memory_space<smem>>
    %506 = vector.broadcast %505 : f32 to vector<2x16x16xf32>
    %507 = arith.mulf %506, %504 : vector<2x16x16xf32>
    %508 = arith.addf %474, %507 : vector<2x16x16xf32>
    %c1_230 = arith.constant 1 : index
    %c15_231 = arith.constant 15 : index
    %509 = memref.load %arg2[%c1_230, %c15_231] : memref<8x18xf32, #tpu.memory_space<smem>>
    %510 = vector.broadcast %509 : f32 to vector<2x16x16xf32>
    %511 = arith.mulf %510, %504 : vector<2x16x16xf32>
    %512 = arith.addf %478, %511 : vector<2x16x16xf32>
    %c2_232 = arith.constant 2 : index
    %c15_233 = arith.constant 15 : index
    %513 = memref.load %arg2[%c2_232, %c15_233] : memref<8x18xf32, #tpu.memory_space<smem>>
    %514 = vector.broadcast %513 : f32 to vector<2x16x16xf32>
    %515 = arith.mulf %514, %504 : vector<2x16x16xf32>
    %516 = arith.addf %482, %515 : vector<2x16x16xf32>
    %c3_234 = arith.constant 3 : index
    %c15_235 = arith.constant 15 : index
    %517 = memref.load %arg2[%c3_234, %c15_235] : memref<8x18xf32, #tpu.memory_space<smem>>
    %518 = vector.broadcast %517 : f32 to vector<2x16x16xf32>
    %519 = arith.mulf %518, %504 : vector<2x16x16xf32>
    %520 = arith.addf %486, %519 : vector<2x16x16xf32>
    %c4_236 = arith.constant 4 : index
    %c15_237 = arith.constant 15 : index
    %521 = memref.load %arg2[%c4_236, %c15_237] : memref<8x18xf32, #tpu.memory_space<smem>>
    %522 = vector.broadcast %521 : f32 to vector<2x16x16xf32>
    %523 = arith.mulf %522, %504 : vector<2x16x16xf32>
    %524 = arith.addf %490, %523 : vector<2x16x16xf32>
    %c5_238 = arith.constant 5 : index
    %c15_239 = arith.constant 15 : index
    %525 = memref.load %arg2[%c5_238, %c15_239] : memref<8x18xf32, #tpu.memory_space<smem>>
    %526 = vector.broadcast %525 : f32 to vector<2x16x16xf32>
    %527 = arith.mulf %526, %504 : vector<2x16x16xf32>
    %528 = arith.addf %494, %527 : vector<2x16x16xf32>
    %c6_240 = arith.constant 6 : index
    %c15_241 = arith.constant 15 : index
    %529 = memref.load %arg2[%c6_240, %c15_241] : memref<8x18xf32, #tpu.memory_space<smem>>
    %530 = vector.broadcast %529 : f32 to vector<2x16x16xf32>
    %531 = arith.mulf %530, %504 : vector<2x16x16xf32>
    %532 = arith.addf %498, %531 : vector<2x16x16xf32>
    %c7_242 = arith.constant 7 : index
    %c15_243 = arith.constant 15 : index
    %533 = memref.load %arg2[%c7_242, %c15_243] : memref<8x18xf32, #tpu.memory_space<smem>>
    %534 = vector.broadcast %533 : f32 to vector<2x16x16xf32>
    %535 = arith.mulf %534, %504 : vector<2x16x16xf32>
    %536 = arith.addf %502, %535 : vector<2x16x16xf32>
    %537 = vector.extract_strided_slice %0 {offsets = [0, 1, 2, 1], sizes = [2, 1, 16, 16], strides = [1, 1, 1, 1]} : vector<2x2x18x18xf32> to vector<2x1x16x16xf32>
    %538 = vector.shape_cast %537 : vector<2x1x16x16xf32> to vector<2x16x16xf32>
    %c0_244 = arith.constant 0 : index
    %c16 = arith.constant 16 : index
    %539 = memref.load %arg2[%c0_244, %c16] : memref<8x18xf32, #tpu.memory_space<smem>>
    %540 = vector.broadcast %539 : f32 to vector<2x16x16xf32>
    %541 = arith.mulf %540, %538 : vector<2x16x16xf32>
    %542 = arith.addf %508, %541 : vector<2x16x16xf32>
    %c1_245 = arith.constant 1 : index
    %c16_246 = arith.constant 16 : index
    %543 = memref.load %arg2[%c1_245, %c16_246] : memref<8x18xf32, #tpu.memory_space<smem>>
    %544 = vector.broadcast %543 : f32 to vector<2x16x16xf32>
    %545 = arith.mulf %544, %538 : vector<2x16x16xf32>
    %546 = arith.addf %512, %545 : vector<2x16x16xf32>
    %c2_247 = arith.constant 2 : index
    %c16_248 = arith.constant 16 : index
    %547 = memref.load %arg2[%c2_247, %c16_248] : memref<8x18xf32, #tpu.memory_space<smem>>
    %548 = vector.broadcast %547 : f32 to vector<2x16x16xf32>
    %549 = arith.mulf %548, %538 : vector<2x16x16xf32>
    %550 = arith.addf %516, %549 : vector<2x16x16xf32>
    %c3_249 = arith.constant 3 : index
    %c16_250 = arith.constant 16 : index
    %551 = memref.load %arg2[%c3_249, %c16_250] : memref<8x18xf32, #tpu.memory_space<smem>>
    %552 = vector.broadcast %551 : f32 to vector<2x16x16xf32>
    %553 = arith.mulf %552, %538 : vector<2x16x16xf32>
    %554 = arith.addf %520, %553 : vector<2x16x16xf32>
    %c4_251 = arith.constant 4 : index
    %c16_252 = arith.constant 16 : index
    %555 = memref.load %arg2[%c4_251, %c16_252] : memref<8x18xf32, #tpu.memory_space<smem>>
    %556 = vector.broadcast %555 : f32 to vector<2x16x16xf32>
    %557 = arith.mulf %556, %538 : vector<2x16x16xf32>
    %558 = arith.addf %524, %557 : vector<2x16x16xf32>
    %c5_253 = arith.constant 5 : index
    %c16_254 = arith.constant 16 : index
    %559 = memref.load %arg2[%c5_253, %c16_254] : memref<8x18xf32, #tpu.memory_space<smem>>
    %560 = vector.broadcast %559 : f32 to vector<2x16x16xf32>
    %561 = arith.mulf %560, %538 : vector<2x16x16xf32>
    %562 = arith.addf %528, %561 : vector<2x16x16xf32>
    %c6_255 = arith.constant 6 : index
    %c16_256 = arith.constant 16 : index
    %563 = memref.load %arg2[%c6_255, %c16_256] : memref<8x18xf32, #tpu.memory_space<smem>>
    %564 = vector.broadcast %563 : f32 to vector<2x16x16xf32>
    %565 = arith.mulf %564, %538 : vector<2x16x16xf32>
    %566 = arith.addf %532, %565 : vector<2x16x16xf32>
    %c7_257 = arith.constant 7 : index
    %c16_258 = arith.constant 16 : index
    %567 = memref.load %arg2[%c7_257, %c16_258] : memref<8x18xf32, #tpu.memory_space<smem>>
    %568 = vector.broadcast %567 : f32 to vector<2x16x16xf32>
    %569 = arith.mulf %568, %538 : vector<2x16x16xf32>
    %570 = arith.addf %536, %569 : vector<2x16x16xf32>
    %571 = vector.extract_strided_slice %0 {offsets = [0, 1, 2, 2], sizes = [2, 1, 16, 16], strides = [1, 1, 1, 1]} : vector<2x2x18x18xf32> to vector<2x1x16x16xf32>
    %572 = vector.shape_cast %571 : vector<2x1x16x16xf32> to vector<2x16x16xf32>
    %c0_259 = arith.constant 0 : index
    %c17 = arith.constant 17 : index
    %573 = memref.load %arg2[%c0_259, %c17] : memref<8x18xf32, #tpu.memory_space<smem>>
    %574 = vector.broadcast %573 : f32 to vector<2x16x16xf32>
    %575 = arith.mulf %574, %572 : vector<2x16x16xf32>
    %576 = arith.addf %542, %575 : vector<2x16x16xf32>
    %c1_260 = arith.constant 1 : index
    %c17_261 = arith.constant 17 : index
    %577 = memref.load %arg2[%c1_260, %c17_261] : memref<8x18xf32, #tpu.memory_space<smem>>
    %578 = vector.broadcast %577 : f32 to vector<2x16x16xf32>
    %579 = arith.mulf %578, %572 : vector<2x16x16xf32>
    %580 = arith.addf %546, %579 : vector<2x16x16xf32>
    %c2_262 = arith.constant 2 : index
    %c17_263 = arith.constant 17 : index
    %581 = memref.load %arg2[%c2_262, %c17_263] : memref<8x18xf32, #tpu.memory_space<smem>>
    %582 = vector.broadcast %581 : f32 to vector<2x16x16xf32>
    %583 = arith.mulf %582, %572 : vector<2x16x16xf32>
    %584 = arith.addf %550, %583 : vector<2x16x16xf32>
    %c3_264 = arith.constant 3 : index
    %c17_265 = arith.constant 17 : index
    %585 = memref.load %arg2[%c3_264, %c17_265] : memref<8x18xf32, #tpu.memory_space<smem>>
    %586 = vector.broadcast %585 : f32 to vector<2x16x16xf32>
    %587 = arith.mulf %586, %572 : vector<2x16x16xf32>
    %588 = arith.addf %554, %587 : vector<2x16x16xf32>
    %c4_266 = arith.constant 4 : index
    %c17_267 = arith.constant 17 : index
    %589 = memref.load %arg2[%c4_266, %c17_267] : memref<8x18xf32, #tpu.memory_space<smem>>
    %590 = vector.broadcast %589 : f32 to vector<2x16x16xf32>
    %591 = arith.mulf %590, %572 : vector<2x16x16xf32>
    %592 = arith.addf %558, %591 : vector<2x16x16xf32>
    %c5_268 = arith.constant 5 : index
    %c17_269 = arith.constant 17 : index
    %593 = memref.load %arg2[%c5_268, %c17_269] : memref<8x18xf32, #tpu.memory_space<smem>>
    %594 = vector.broadcast %593 : f32 to vector<2x16x16xf32>
    %595 = arith.mulf %594, %572 : vector<2x16x16xf32>
    %596 = arith.addf %562, %595 : vector<2x16x16xf32>
    %c6_270 = arith.constant 6 : index
    %c17_271 = arith.constant 17 : index
    %597 = memref.load %arg2[%c6_270, %c17_271] : memref<8x18xf32, #tpu.memory_space<smem>>
    %598 = vector.broadcast %597 : f32 to vector<2x16x16xf32>
    %599 = arith.mulf %598, %572 : vector<2x16x16xf32>
    %600 = arith.addf %566, %599 : vector<2x16x16xf32>
    %c7_272 = arith.constant 7 : index
    %c17_273 = arith.constant 17 : index
    %601 = memref.load %arg2[%c7_272, %c17_273] : memref<8x18xf32, #tpu.memory_space<smem>>
    %602 = vector.broadcast %601 : f32 to vector<2x16x16xf32>
    %603 = arith.mulf %602, %572 : vector<2x16x16xf32>
    %604 = arith.addf %570, %603 : vector<2x16x16xf32>
    %c0_274 = arith.constant 0 : index
    %c0_275 = arith.constant 0 : index
    %c0_276 = arith.constant 0 : index
    %c0_277 = arith.constant 0 : index
    %605 = vector.load %arg3[%c0_274, %c0_275, %c0_276, %c0_277] : memref<2x8x16x16xf32, #tpu.memory_space<vmem>>, vector<2x1x16x16xf32>
    %606 = vector.shape_cast %605 : vector<2x1x16x16xf32> to vector<2x16x16xf32>
    %607 = vector.shape_cast %576 : vector<2x16x16xf32> to vector<2x1x16x16xf32>
    tpu.vector_store %arg3[%c0_274, %c0_275, %c0_276, %c0_277], %607 {strides = array<i32>} : memref<2x8x16x16xf32, #tpu.memory_space<vmem>>, vector<2x1x16x16xf32>,
    %c0_278 = arith.constant 0 : index
    %c1_279 = arith.constant 1 : index
    %c0_280 = arith.constant 0 : index
    %c0_281 = arith.constant 0 : index
    %608 = vector.load %arg3[%c0_278, %c1_279, %c0_280, %c0_281] : memref<2x8x16x16xf32, #tpu.memory_space<vmem>>, vector<2x1x16x16xf32>
    %609 = vector.shape_cast %608 : vector<2x1x16x16xf32> to vector<2x16x16xf32>
    %610 = vector.shape_cast %580 : vector<2x16x16xf32> to vector<2x1x16x16xf32>
    tpu.vector_store %arg3[%c0_278, %c1_279, %c0_280, %c0_281], %610 {strides = array<i32>} : memref<2x8x16x16xf32, #tpu.memory_space<vmem>>, vector<2x1x16x16xf32>,
    %c0_282 = arith.constant 0 : index
    %c2_283 = arith.constant 2 : index
    %c0_284 = arith.constant 0 : index
    %c0_285 = arith.constant 0 : index
    %611 = vector.load %arg3[%c0_282, %c2_283, %c0_284, %c0_285] : memref<2x8x16x16xf32, #tpu.memory_space<vmem>>, vector<2x1x16x16xf32>
    %612 = vector.shape_cast %611 : vector<2x1x16x16xf32> to vector<2x16x16xf32>
    %613 = vector.shape_cast %584 : vector<2x16x16xf32> to vector<2x1x16x16xf32>
    tpu.vector_store %arg3[%c0_282, %c2_283, %c0_284, %c0_285], %613 {strides = array<i32>} : memref<2x8x16x16xf32, #tpu.memory_space<vmem>>, vector<2x1x16x16xf32>,
    %c0_286 = arith.constant 0 : index
    %c3_287 = arith.constant 3 : index
    %c0_288 = arith.constant 0 : index
    %c0_289 = arith.constant 0 : index
    %614 = vector.load %arg3[%c0_286, %c3_287, %c0_288, %c0_289] : memref<2x8x16x16xf32, #tpu.memory_space<vmem>>, vector<2x1x16x16xf32>
    %615 = vector.shape_cast %614 : vector<2x1x16x16xf32> to vector<2x16x16xf32>
    %616 = vector.shape_cast %588 : vector<2x16x16xf32> to vector<2x1x16x16xf32>
    tpu.vector_store %arg3[%c0_286, %c3_287, %c0_288, %c0_289], %616 {strides = array<i32>} : memref<2x8x16x16xf32, #tpu.memory_space<vmem>>, vector<2x1x16x16xf32>,
    %c0_290 = arith.constant 0 : index
    %c4_291 = arith.constant 4 : index
    %c0_292 = arith.constant 0 : index
    %c0_293 = arith.constant 0 : index
    %617 = vector.load %arg3[%c0_290, %c4_291, %c0_292, %c0_293] : memref<2x8x16x16xf32, #tpu.memory_space<vmem>>, vector<2x1x16x16xf32>
    %618 = vector.shape_cast %617 : vector<2x1x16x16xf32> to vector<2x16x16xf32>
    %619 = vector.shape_cast %592 : vector<2x16x16xf32> to vector<2x1x16x16xf32>
    tpu.vector_store %arg3[%c0_290, %c4_291, %c0_292, %c0_293], %619 {strides = array<i32>} : memref<2x8x16x16xf32, #tpu.memory_space<vmem>>, vector<2x1x16x16xf32>,
    %c0_294 = arith.constant 0 : index
    %c5_295 = arith.constant 5 : index
    %c0_296 = arith.constant 0 : index
    %c0_297 = arith.constant 0 : index
    %620 = vector.load %arg3[%c0_294, %c5_295, %c0_296, %c0_297] : memref<2x8x16x16xf32, #tpu.memory_space<vmem>>, vector<2x1x16x16xf32>
    %621 = vector.shape_cast %620 : vector<2x1x16x16xf32> to vector<2x16x16xf32>
    %622 = vector.shape_cast %596 : vector<2x16x16xf32> to vector<2x1x16x16xf32>
    tpu.vector_store %arg3[%c0_294, %c5_295, %c0_296, %c0_297], %622 {strides = array<i32>} : memref<2x8x16x16xf32, #tpu.memory_space<vmem>>, vector<2x1x16x16xf32>,
    %c0_298 = arith.constant 0 : index
    %c6_299 = arith.constant 6 : index
    %c0_300 = arith.constant 0 : index
    %c0_301 = arith.constant 0 : index
    %623 = vector.load %arg3[%c0_298, %c6_299, %c0_300, %c0_301] : memref<2x8x16x16xf32, #tpu.memory_space<vmem>>, vector<2x1x16x16xf32>
    %624 = vector.shape_cast %623 : vector<2x1x16x16xf32> to vector<2x16x16xf32>
    %625 = vector.shape_cast %600 : vector<2x16x16xf32> to vector<2x1x16x16xf32>
    tpu.vector_store %arg3[%c0_298, %c6_299, %c0_300, %c0_301], %625 {strides = array<i32>} : memref<2x8x16x16xf32, #tpu.memory_space<vmem>>, vector<2x1x16x16xf32>,
    %c0_302 = arith.constant 0 : index
    %c7_303 = arith.constant 7 : index
    %c0_304 = arith.constant 0 : index
    %c0_305 = arith.constant 0 : index
    %626 = vector.load %arg3[%c0_302, %c7_303, %c0_304, %c0_305] : memref<2x8x16x16xf32, #tpu.memory_space<vmem>>, vector<2x1x16x16xf32>
    %627 = vector.shape_cast %626 : vector<2x1x16x16xf32> to vector<2x16x16xf32>
    %628 = vector.shape_cast %604 : vector<2x16x16xf32> to vector<2x1x16x16xf32>
    tpu.vector_store %arg3[%c0_302, %c7_303, %c0_304, %c0_305], %628 {strides = array<i32>} : memref<2x8x16x16xf32, #tpu.memory_space<vmem>>, vector<2x1x16x16xf32>,
    return
  }
  func.func @transform_0(%arg0: i32) -> (i32, i32, i32, i32) {
    %c0_i32 = arith.constant 0 : i32
    %c0_i32_0 = arith.constant 0 : i32
    %c0_i32_1 = arith.constant 0 : i32
    %c0_i32_2 = arith.constant 0 : i32
    %c0_i32_3 = arith.constant 0 : i32
    return %c0_i32, %c0_i32_0, %c0_i32_1, %c0_i32_2 : i32, i32, i32, i32
  }
  func.func @transform_1(%arg0: i32) -> (i32, i32) {
    %c0_i32 = arith.constant 0 : i32
    %c0_i32_0 = arith.constant 0 : i32
    %c0_i32_1 = arith.constant 0 : i32
    return %c0_i32, %c0_i32_0 : i32, i32
  }
  func.func @transform_2(%arg0: i32) -> (i32, i32, i32, i32) {
    %c0_i32 = arith.constant 0 : i32
    %c0_i32_0 = arith.constant 0 : i32
    %c0_i32_1 = arith.constant 0 : i32
    %c0_i32_2 = arith.constant 0 : i32
    %c0_i32_3 = arith.constant 0 : i32
    return %c0_i32, %c0_i32_0, %c0_i32_1, %c0_i32_2 : i32, i32, i32, i32
  }
}

</mosaic_0001>

<bundles_post_ra>
// kernel: _out_xl_fused.1
= control target key start
LH: loop header
LB: loop body
LE: loop exit
PB: predicated region body
PF: predicated region fallthrough
CT: control target
= control target key end

     0   :  { %7 = vsyncpa [#allocation4], 0  ;;  %s9499_s0 = inlined_call_operand.vmem [shape: f32[2,2,18,18], index: 0, kind: input, shape index: {}]   ;;  %s9500_s1 = inlined_call_operand.vmem [shape: f32[8,18], index: 1, kind: input, shape index: {}]   ;;  %s9501_s2 = inlined_call_operand.hbm [shape: f32[2,8,16,16], index: 2, kind: output, shape index: {}]  }
   0x1   :  { %8 = vsyncpa [#allocation3], 0  ;;  %s17_s11 = sshll.u32 %s9500_s1, 4  ;;  %s18_s11 = int_to_ptr.vmem [resolvable:$true] %s17_s11 }
   0x2   :  { %s4829_s12 = scalar_lea.vmem %s18_s11, 128  ;;  %p4834_p1 = scmp.lt.s32.totalorder %s18_s11, %s18_s11 }
   0x3   :  { %p4830_p0 = scmp.ne.s32.totalorder %s18_s11, %s4829_s12  ;;  %p4835_p2 = scmp.lt.s32.totalorder %s4829_s12, %s4829_s12 }
   0x5   :  { %p4836_p3 = por %p4835_p2, %p4834_p1 }
   0x7   :  { %p4837_p4 = pnand %p4836_p3, %p4830_p0 }
   0x9   :  { %4840 = shalt.err (!%p4837_p4)
}
   0xa   :  { %s4867_s13 = smov [#allocation2]  }
   0xb   :  { %20 = dma.vmem_to_smem %s18_s11, 128, %s4867_s13, [#allocation4]  }
   0xc   :  { %4863 = dma.done.wait [#allocation4], 128  }
   0xd   :  { %4864 = vsyncadd [#allocation4], 4294967168 }
   0xe   :  { %24 = sfence }
   0xf   :  { %s4647_s14 = sld [smem:[#allocation2 + $0x1]]  ;;  %v4894_v0 = vld [vmem:[%s9499_s0 + $0x30] sm:$0xff]  ;;  %v4899_v1 = vld [vmem:[%s9499_s0] sm:$0xff]  ;;  %v4904_v3 = vld [vmem:[%s9499_s0 + $0x38] sm:$0xff]  ;;  %s4868_s23 = smov 127   ;;  %vm515_vm0 = vcmask 1046528  }
  0x10   :  { %s4648_s15 = sld [smem:[#allocation2 + $0x81]]  ;;  %v4909_v4 = vld [vmem:[%s9499_s0 + $0x8] sm:$0xff]  ;;  %s4655_s30 = sld [smem:[#allocation2 + $0x2]]  ;;  %vm1412_vm1 = vcmask 1045504   ;;  %vm4583_vm2 = vcmask 130048  }
  0x11   :  { %s4649_s24 = sld [smem:[#allocation2 + $0x101]]  ;;  %s4656_s3 = sld [smem:[#allocation2 + $0x82]] }
  0x12   :  { %s4650_s25 = sld [smem:[#allocation2 + $0x181]]  ;;  %s4869_s4 = smov 126  }
  0x13   :  { %s4651_s26 = sld [smem:[#allocation2 + $0x201]]  ;;  %s4657_s5 = sld [smem:[#allocation2 + $0x102]] }
  0x14   :  { %s4652_s27 = sld [smem:[#allocation2 + $0x281]]  ;;  %s4658_s6 = sld [smem:[#allocation2 + $0x182]] }
  0x15   :  { %v86_v2 = vstv %s4647_s14  ;;  %s4653_s28 = sld [smem:[#allocation2 + $0x301]]  ;;  %s4659_s7 = sld [smem:[#allocation2 + $0x202]] }
  0x16   :  { %v89_v5 = vmul.f32 %v86_v2, %v4894_v0  ;;  %v87_v6 = vmul.f32 %v86_v2, %v4899_v1  ;;  %v90_v7 = vmul.f32 %v86_v2, %v4904_v3  ;;  %v88_v8 = vmul.f32 %v86_v2, %v4909_v4  ;;  %s4654_s29 = sld [smem:[#allocation2 + $0x381]]  ;;  %s4660_s8 = sld [smem:[#allocation2 + $0x282]] }
  0x17   :  { %v112_v9 = vstv %s4648_s15  ;;  %v138_v14 = vstv %s4649_s24  ;;  %v294_v44 = vstv %s4655_s30  ;;  %v320_v49 = vstv %s4656_s3  ;;  %s4661_s9 = sld [smem:[#allocation2 + $0x302]]  ;;  %s4671_s11 = sld [smem:[#allocation2 + $0x4]] }
  0x18   :  { %99 = vrot.lane.b32.xlu1 %v89_v5, %s4868_s23  ;;  %95 = vrot.lane.b32.xlu0 %v87_v6, %s4868_s23  ;;  %v114_v10 = vmul.f32 %v112_v9, %v4909_v4  ;;  %v113_v11 = vmul.f32 %v112_v9, %v4899_v1  ;;  %v116_v12 = vmul.f32 %v112_v9, %v4904_v3  ;;  %v164_v19 = vstv %s4650_s25  ;;  %s4662_s10 = sld [smem:[#allocation2 + $0x382]]  ;;  %s4672_s12 = sld [smem:[#allocation2 + $0x84]] }
  0x19   :  { %v115_v13 = vmul.f32 %v112_v9, %v4894_v0  ;;  %v140_v15 = vmul.f32 %v138_v14, %v4909_v4  ;;  %v139_v16 = vmul.f32 %v138_v14, %v4899_v1  ;;  %v142_v17 = vmul.f32 %v138_v14, %v4904_v3  ;;  %s4673_s17 = sld [smem:[#allocation2 + $0x104]]  ;;  %s4679_s22 = sld [smem:[#allocation2 + $0x5]] }
  0x1a   :  { %v141_v18 = vmul.f32 %v138_v14, %v4894_v0  ;;  %v166_v20 = vmul.f32 %v164_v19, %v4909_v4  ;;  %v165_v21 = vmul.f32 %v164_v19, %v4899_v1  ;;  %v168_v22 = vmul.f32 %v164_v19, %v4904_v3  ;;  %s4674_s1 = sld [smem:[#allocation2 + $0x184]]  ;;  %s4680_s24 = sld [smem:[#allocation2 + $0x85]] }
  0x1b   :  { %v167_v23 = vmul.f32 %v164_v19, %v4894_v0  ;;  %v190_v24 = vstv %s4651_s26  ;;  %v216_v29 = vstv %s4652_s27  ;;  %v242_v34 = vstv %s4653_s28  ;;  %s4675_s18 = sld [smem:[#allocation2 + $0x204]]  ;;  %s4681_s25 = sld [smem:[#allocation2 + $0x105]] }
  0x1c   :  { %101 = vrot.lane.b32.xlu1 %v90_v7, %s4868_s23  ;;  %97 = vrot.lane.b32.xlu0 %v88_v8, %s4868_s23  ;;  %v192_v25 = vmul.f32 %v190_v24, %v4909_v4  ;;  %v191_v26 = vmul.f32 %v190_v24, %v4899_v1  ;;  %v194_v27 = vmul.f32 %v190_v24, %v4904_v3  ;;  %v268_v39 = vstv %s4654_s29  ;;  %s4676_s19 = sld [smem:[#allocation2 + $0x284]]  ;;  %s4682_s26 = sld [smem:[#allocation2 + $0x185]] }
  0x1d   :  { %v193_v28 = vmul.f32 %v190_v24, %v4894_v0  ;;  %v218_v30 = vmul.f32 %v216_v29, %v4909_v4  ;;  %v217_v31 = vmul.f32 %v216_v29, %v4899_v1  ;;  %v220_v32 = vmul.f32 %v216_v29, %v4904_v3  ;;  %s4677_s20 = sld [smem:[#allocation2 + $0x304]]  ;;  %s4683_s27 = sld [smem:[#allocation2 + $0x205]] }
  0x1e   :  { %v219_v33 = vmul.f32 %v216_v29, %v4894_v0  ;;  %v244_v35 = vmul.f32 %v242_v34, %v4909_v4  ;;  %v243_v36 = vmul.f32 %v242_v34, %v4899_v1  ;;  %v246_v37 = vmul.f32 %v242_v34, %v4904_v3  ;;  %s4678_s21 = sld [smem:[#allocation2 + $0x384]]  ;;  %s4684_s28 = sld [smem:[#allocation2 + $0x285]] }
  0x1f   :  { %v245_v38 = vmul.f32 %v242_v34, %v4894_v0  ;;  %v270_v40 = vmul.f32 %v268_v39, %v4909_v4  ;;  %v269_v41 = vmul.f32 %v268_v39, %v4899_v1  ;;  %v272_v42 = vmul.f32 %v268_v39, %v4904_v3  ;;  %s4685_s29 = sld [smem:[#allocation2 + $0x305]]  ;;  %s4696_s13 = sld [smem:[#allocation2 + $0x87]] }
  0x20   :  { %123 = vrot.lane.b32.xlu1 %v114_v10, %s4868_s23  ;;  %121 = vrot.lane.b32.xlu0 %v113_v11, %s4868_s23  ;;  %v271_v43 = vmul.f32 %v268_v39, %v4894_v0  ;;  %v296_v45 = vmul.f32 %v294_v44, %v4909_v4  ;;  %v295_v46 = vmul.f32 %v294_v44, %v4899_v1  ;;  %v346_v54 = vstv %s4657_s5  ;;  %s4697_s14 = sld [smem:[#allocation2 + $0x107]]  ;;  %s4709_s30 = sld [smem:[#allocation2 + $0x308]] }
  0x21   :  { %v298_v47 = vmul.f32 %v294_v44, %v4904_v3  ;;  %v297_v48 = vmul.f32 %v294_v44, %v4894_v0  ;;  %v322_v50 = vmul.f32 %v320_v49, %v4909_v4  ;;  %v321_v51 = vmul.f32 %v320_v49, %v4899_v1  ;;  %s4698_s15 = sld [smem:[#allocation2 + $0x187]]  ;;  %s4710_s3 = sld [smem:[#allocation2 + $0x388]] }
  0x22   :  { %v324_v52 = vmul.f32 %v320_v49, %v4904_v3  ;;  %v323_v53 = vmul.f32 %v320_v49, %v4894_v0  ;;  %v348_v55 = vmul.f32 %v346_v54, %v4909_v4  ;;  %v347_v56 = vmul.f32 %v346_v54, %v4899_v1  ;;  %s4699_s16 = sld [smem:[#allocation2 + $0x207]]  ;;  %s4719_s5 = sld [smem:[#allocation2 + $0xa]] }
  0x23   :  { %v350_v57 = vmul.f32 %v346_v54, %v4904_v3  ;;  %v349_v58 = vmul.f32 %v346_v54, %v4894_v0  ;;  %v372_v59 = vstv %s4658_s6  ;;  %v398_v2 = vstv %s4659_s7  ;;  %s4686_s7 = sld [smem:[#allocation2 + $0x385]] }
  0x24   :  { %127 = vrot.lane.b32.xlu1 %v116_v12, %s4868_s23  ;;  %125 = vrot.lane.b32.xlu0 %v115_v13, %s4868_s23  ;;  %v374_v60 = vmul.f32 %v372_v59, %v4909_v4  ;;  %v373_v61 = vmul.f32 %v372_v59, %v4899_v1  ;;  %v376_v62 = vmul.f32 %v372_v59, %v4904_v3  ;;  %v424_v9 = vstv %s4660_s8  ;;  %s6555_s6 = sld [smem:[#allocation2 + $0x8d]]  ;;  %s8347_s8 = sld [smem:[#allocation2 + $0x211]] }
  0x25   :  { %v375_v63 = vmul.f32 %v372_v59, %v4894_v0  ;;  %v400_v5 = vmul.f32 %v398_v2, %v4909_v4  ;;  %v399_v6 = vmul.f32 %v398_v2, %v4899_v1  ;;  %v402_v7 = vmul.f32 %v398_v2, %v4904_v3 }
  0x26   :  { %v401_v8 = vmul.f32 %v398_v2, %v4894_v0  ;;  %v426_v10 = vmul.f32 %v424_v9, %v4909_v4  ;;  %v425_v11 = vmul.f32 %v424_v9, %v4899_v1  ;;  %v428_v12 = vmul.f32 %v424_v9, %v4904_v3 }
  0x27   :  { %v427_v13 = vmul.f32 %v424_v9, %v4894_v0  ;;  %v450_v14 = vstv %s4661_s9  ;;  %v476_v19 = vstv %s4662_s10  ;;  %s4720_s10 = sld [smem:[#allocation2 + $0x8a]]  ;;  %s7528_s9 = sld [smem:[#allocation2 + $0x10]] }
  0x28   :  { %149 = vrot.lane.b32.xlu1 %v140_v15, %s4868_s23  ;;  %147 = vrot.lane.b32.xlu0 %v139_v16, %s4868_s23  ;;  %v452_v15 = vmul.f32 %v450_v14, %v4909_v4  ;;  %v451_v16 = vmul.f32 %v450_v14, %v4899_v1  ;;  %v478_v24 = vmul.f32 %v476_v19, %v4909_v4 }
  0x29   :  { %v480_v34 = vmul.f32 %v476_v19, %v4904_v3 }
  0x2c   :  { %153 = vrot.lane.b32.xlu1 %v142_v17, %s4868_s23  ;;  %151 = vrot.lane.b32.xlu0 %v141_v18, %s4868_s23  ;;  %v454_v17 = vmul.f32 %v450_v14, %v4904_v3  ;;  %v453_v18 = vmul.f32 %v450_v14, %v4894_v0 }
  0x30   :  { %175 = vrot.lane.b32.xlu1 %v166_v20, %s4868_s23  ;;  %173 = vrot.lane.b32.xlu0 %v165_v21, %s4868_s23 }
  0x34   :  { %179 = vrot.lane.b32.xlu1 %v168_v22, %s4868_s23  ;;  %177 = vrot.lane.b32.xlu0 %v167_v23, %s4868_s23  ;;  %v5036_v22 = vld [vmem:[%s9499_s0 + $0x10] sm:$0x3]  ;;  %v759_v23 = vstv %s4671_s11  ;;  %s6003_s11 = sld [smem:[#allocation2 + $0x83]] }
  0x35   :  { %v760_v29 = vmul.f32 %v759_v23, %v4899_v1 }
  0x37   :  { %v772_v39 = vrot.slane %v760_v29, 1 }
  0x38   :  { %201 = vrot.lane.b32.xlu1 %v192_v25, %s4868_s23  ;;  %199 = vrot.lane.b32.xlu0 %v191_v26, %s4868_s23  ;;  %v477_v25 = vmul.f32 %v476_v19, %v4899_v1  ;;  %v5045_v26 = vld [vmem:[%s9499_s0 + $0x40] sm:$0x3] }
  0x3c   :  { %205 = vrot.lane.b32.xlu1 %v194_v27, %s4868_s23  ;;  %203 = vrot.lane.b32.xlu0 %v193_v28, %s4868_s23  ;;  %v761_v27 = vmul.f32 %v759_v23, %v4909_v4  ;;  %v762_v28 = vmul.f32 %v759_v23, %v5036_v22 }
  0x40   :  { %227 = vrot.lane.b32.xlu1 %v218_v30, %s4868_s23  ;;  %225 = vrot.lane.b32.xlu0 %v217_v31, %s4868_s23 }
  0x44   :  { %231 = vrot.lane.b32.xlu1 %v220_v32, %s4868_s23  ;;  %229 = vrot.lane.b32.xlu0 %v219_v33, %s4868_s23  ;;  %v764_v32 = vmul.f32 %v759_v23, %v4904_v3  ;;  %v765_v33 = vmul.f32 %v759_v23, %v5045_v26 }
  0x46   :  { %v780_v44 = vrot.slane %v765_v33, 1 }
  0x48   :  { %253 = vrot.lane.b32.xlu1 %v244_v35, %s4868_s23  ;;  %251 = vrot.lane.b32.xlu0 %v243_v36, %s4868_s23  ;;  %v479_v35 = vmul.f32 %v476_v19, %v4894_v0  ;;  %v763_v36 = vmul.f32 %v759_v23, %v4894_v0 }
  0x4c   :  { %257 = vrot.lane.b32.xlu1 %v246_v37, %s4868_s23  ;;  %255 = vrot.lane.b32.xlu0 %v245_v38, %s4868_s23  ;;  %v773_v37 = vrot.slane %v761_v27, 1  ;;  %v775_v38 = vrot.slane %v762_v28, 1  ;;  %v879_v28 = vstv %s4674_s1  ;;  %s4724_s1 = sld [smem:[#allocation2 + $0x28a]] }
  0x4e   :  { %v774_v49 = vsel %vm515_vm0, %v772_v39, %v773_v37 }
  0x50   :  { %279 = vrot.lane.b32.xlu1 %v270_v40, %s4868_s23  ;;  %277 = vrot.lane.b32.xlu0 %v269_v41, %s4868_s23  ;;  %v799_v40 = vstv %s4672_s12  ;;  %s4695_s12 = sld [smem:[#allocation2 + $0x7]] }
  0x51   :  { %v805_v59 = vmul.f32 %v799_v40, %v5045_v26 }
  0x53   :  { %v820_v9 = vrot.slane %v805_v59, 1 }
  0x54   :  { %283 = vrot.lane.b32.xlu1 %v272_v42, %s4868_s23  ;;  %281 = vrot.lane.b32.xlu0 %v271_v43, %s4868_s23  ;;  %v778_v43 = vrot.slane %v764_v32, 1 }
  0x58   :  { %305 = vrot.lane.b32.xlu1 %v296_v45, %s4869_s4  ;;  %303 = vrot.lane.b32.xlu0 %v295_v46, %s4869_s4  ;;  %v777_v45 = vrot.slane %v763_v36, 1  ;;  %v801_v46 = vmul.f32 %v799_v40, %v4909_v4  ;;  %v881_v36 = vmul.f32 %v879_v28, %v4909_v4 }
  0x5a   :  { %v779_v54 = vsel %vm515_vm0, %v777_v45, %v778_v43 }
  0x5c   :  { %309 = vrot.lane.b32.xlu1 %v298_v47, %s4869_s4  ;;  %307 = vrot.lane.b32.xlu0 %v297_v48, %s4869_s4  ;;  %v802_v47 = vmul.f32 %v799_v40, %v5036_v22  ;;  %v776_v48 = vsel %vm515_vm0, %v773_v37, %v775_v38  ;;  %v882_v37 = vmul.f32 %v879_v28, %v5036_v22 }
  0x5d   :  { %v880_v38 = vmul.f32 %v879_v28, %v4899_v1 }
  0x60   :  { %331 = vrot.lane.b32.xlu1 %v322_v50, %s4869_s4  ;;  %329 = vrot.lane.b32.xlu0 %v321_v51, %s4869_s4  ;;  %v800_v50 = vmul.f32 %v799_v40, %v4899_v1 }
  0x64   :  { %335 = vrot.lane.b32.xlu1 %v324_v52, %s4869_s4  ;;  %333 = vrot.lane.b32.xlu0 %v323_v53, %s4869_s4  ;;  %v781_v53 = vsel %vm515_vm0, %v778_v43, %v780_v44  ;;  %v884_v43 = vmul.f32 %v879_v28, %v4904_v3  ;;  %v885_v44 = vmul.f32 %v879_v28, %v5045_v26 }
  0x68   :  { %357 = vrot.lane.b32.xlu1 %v348_v55, %s4869_s4  ;;  %355 = vrot.lane.b32.xlu0 %v347_v56, %s4869_s4  ;;  %v813_v55 = vrot.slane %v801_v46, 1  ;;  %v815_v56 = vrot.slane %v802_v47, 1  ;;  %v883_v47 = vmul.f32 %v879_v28, %v4894_v0 }
  0x6a   :  { %v816_v2 = vsel %vm515_vm0, %v813_v55, %v815_v56  ;;  %v898_v56 = vrot.slane %v884_v43, 1 }
  0x6c   :  { %361 = vrot.lane.b32.xlu1 %v350_v57, %s4869_s4  ;;  %359 = vrot.lane.b32.xlu0 %v349_v58, %s4869_s4  ;;  %v804_v57 = vmul.f32 %v799_v40, %v4904_v3  ;;  %v812_v58 = vrot.slane %v800_v50, 1  ;;  %v892_v50 = vrot.slane %v880_v38, 1 }
  0x70   :  { %383 = vrot.lane.b32.xlu1 %v374_v60, %s4869_s4  ;;  %381 = vrot.lane.b32.xlu0 %v373_v61, %s4869_s4  ;;  %v803_v60 = vmul.f32 %v799_v40, %v4894_v0  ;;  %v839_v61 = vstv %s4673_s17  ;;  %s4700_s17 = sld [smem:[#allocation2 + $0x287]] }
  0x71   :  { %v844_v14 = vmul.f32 %v839_v61, %v4904_v3 }
  0x73   :  { %v858_v32 = vrot.slane %v844_v14, 1 }
  0x74   :  { %387 = vrot.lane.b32.xlu1 %v376_v62, %s4869_s4  ;;  %385 = vrot.lane.b32.xlu0 %v375_v63, %s4869_s4 }
  0x78   :  { %409 = vrot.lane.b32.xlu1 %v400_v5, %s4869_s4  ;;  %407 = vrot.lane.b32.xlu0 %v399_v6, %s4869_s4  ;;  %v818_v5 = vrot.slane %v804_v57, 1  ;;  %v841_v6 = vmul.f32 %v839_v61, %v4909_v4  ;;  %v900_v57 = vrot.slane %v885_v44, 1 }
  0x7a   :  { %v821_v19 = vsel %vm515_vm0, %v818_v5, %v820_v9 }
  0x7c   :  { %413 = vrot.lane.b32.xlu1 %v402_v7, %s4869_s4  ;;  %411 = vrot.lane.b32.xlu0 %v401_v8, %s4869_s4  ;;  %v842_v7 = vmul.f32 %v839_v61, %v5036_v22  ;;  %v814_v8 = vsel %vm515_vm0, %v812_v58, %v813_v55  ;;  %v897_v58 = vrot.slane %v883_v47, 1 }
  0x7e   :  { %v899_v9 = vsel %vm515_vm0, %v897_v58, %v898_v56 }
  0x80   :  { %435 = vrot.lane.b32.xlu1 %v426_v10, %s4869_s4  ;;  %433 = vrot.lane.b32.xlu0 %v425_v11, %s4869_s4  ;;  %v817_v10 = vrot.slane %v803_v60, 1  ;;  %v840_v11 = vmul.f32 %v839_v61, %v4899_v1 }
  0x82   :  { %v819_v23 = vsel %vm515_vm0, %v817_v10, %v818_v5 }
  0x84   :  { %439 = vrot.lane.b32.xlu1 %v428_v12, %s4869_s4  ;;  %437 = vrot.lane.b32.xlu0 %v427_v13, %s4869_s4 }
  0x88   :  { %461 = vrot.lane.b32.xlu1 %v452_v15, %s4869_s4  ;;  %459 = vrot.lane.b32.xlu0 %v451_v16, %s4869_s4  ;;  %v853_v15 = vrot.slane %v841_v6, 1  ;;  %v855_v16 = vrot.slane %v842_v7, 1 }
  0x8a   :  { %v5029_v20 = vpop.permute.xlu1 %99  ;;  %v5031_v21 = vpop.permute.xlu0 %95  ;;  %v856_v29 = vsel %vm515_vm0, %v853_v15, %v855_v16 }
  0x8c   :  { %465 = vrot.lane.b32.xlu1 %v454_v17, %s4869_s4  ;;  %463 = vrot.lane.b32.xlu0 %v453_v18, %s4869_s4  ;;  %v845_v17 = vmul.f32 %v839_v61, %v5045_v26  ;;  %v843_v18 = vmul.f32 %v839_v61, %v4894_v0 }
  0x8e   :  { %v5050_v30 = vpop.permute.xlu1 %101  ;;  %v5052_v31 = vpop.permute.xlu0 %97  ;;  %v860_v33 = vrot.slane %v845_v17, 1 }
  0x90   :  { %487 = vrot.lane.b32.xlu1 %v478_v24, %s4869_s4  ;;  %485 = vrot.lane.b32.xlu0 %v477_v25, %s4869_s4  ;;  %v852_v24 = vrot.slane %v840_v11, 1  ;;  %v861_v45 = vsel %vm515_vm0, %v858_v32, %v860_v33 }
  0x92   :  { %v5061_v41 = vpop.permute.xlu1 %123  ;;  %v5063_v42 = vpop.permute.xlu0 %121 }
  0x94   :  { %491 = vrot.lane.b32.xlu1 %v480_v34, %s4869_s4  ;;  %489 = vrot.lane.b32.xlu0 %v479_v35, %s4869_s4  ;;  %v857_v34 = vrot.slane %v843_v18, 1  ;;  %v854_v35 = vsel %vm515_vm0, %v852_v24, %v853_v15  ;;  %v959_v18 = vstv %s4676_s19  ;;  %s4725_s19 = sld [smem:[#allocation2 + $0x30a]] }
  0x95   :  { %v964_v43 = vmul.f32 %v959_v18, %v4904_v3  ;;  %v963_v47 = vmul.f32 %v959_v18, %v4894_v0 }
  0x96   :  { %v5072_v51 = vpop.permute.xlu1 %127  ;;  %v5074_v52 = vpop.permute.xlu0 %125  ;;  %v859_v46 = vsel %vm515_vm0, %v857_v34, %v858_v32  ;;  %v962_v32 = vmul.f32 %v959_v18, %v5036_v22 }
  0x98   :  { %784 = vrot.lane.b32.xlu1 %v776_v48, %s4868_s23  ;;  %782 = vrot.lane.b32.xlu0 %v774_v49, %s4868_s23  ;;  %v893_v48 = vrot.slane %v881_v36, 1  ;;  %v895_v49 = vrot.slane %v882_v37, 1  ;;  %v960_v36 = vmul.f32 %v959_v18, %v4899_v1 }
  0x9a   :  { %v5083_v62 = vpop.permute.xlu1 %149  ;;  %v5085_v63 = vpop.permute.xlu0 %147  ;;  %v896_v60 = vsel %vm515_vm0, %v893_v48, %v895_v49  ;;  %v894_v61 = vsel %vm515_vm0, %v892_v50, %v893_v48  ;;  %v972_v50 = vrot.slane %v960_v36, 1 }
  0x9c   :  { %788 = vrot.lane.b32.xlu1 %v781_v53, %s4868_s23  ;;  %786 = vrot.lane.b32.xlu0 %v779_v54, %s4868_s23  ;;  %v919_v53 = vstv %s4675_s18  ;;  %s37_s18 = sld [smem:[#allocation2]] }
  0x9d   :  { %v921_v59 = vmul.f32 %v919_v53, %v4909_v4  ;;  %v920_v5 = vmul.f32 %v919_v53, %v4899_v1  ;;  %v924_v11 = vmul.f32 %v919_v53, %v4904_v3  ;;  %v925_v14 = vmul.f32 %v919_v53, %v5045_v26 }
  0x9e   :  { %v5094_v12 = vpop.permute.xlu1 %153  ;;  %v5096_v13 = vpop.permute.xlu0 %151  ;;  %v923_v17 = vmul.f32 %v919_v53, %v4894_v0 }
  0x9f   :  { %9502 = vst [vmem:[#allocation8_spill] sm:$0xff] %v5094_v12  ;;  %9503 = vst [vmem:[#allocation9_spill] sm:$0xff] %v5096_v13  ;;  %v933_v10 = vrot.slane %v921_v59, 1  ;;  %v932_v16 = vrot.slane %v920_v5, 1  ;;  %v938_v24 = vrot.slane %v924_v11, 1  ;;  %v940_v28 = vrot.slane %v925_v14, 1 }
  0xa0   :  { %824 = vrot.lane.b32.xlu1 %v816_v2, %s4868_s23  ;;  %822 = vrot.lane.b32.xlu0 %v814_v8, %s4868_s23  ;;  %v922_v2 = vmul.f32 %v919_v53, %v5036_v22  ;;  %v901_v8 = vsel %vm515_vm0, %v898_v56, %v900_v57  ;;  %v999_v57 = vstv %s4677_s20  ;;  %v978_v59 = vrot.slane %v964_v43, 1  ;;  %s4640_s20 = sld [smem:[#allocation2 + $0x80]] }
  0xa1   :  { %v934_v34 = vsel %vm515_vm0, %v932_v16, %v933_v10  ;;  %v941_v48 = vsel %vm515_vm0, %v938_v24, %v940_v28  ;;  %v1001_v5 = vmul.f32 %v999_v57, %v4909_v4  ;;  %v1004_v14 = vmul.f32 %v999_v57, %v4904_v3 }
  0xa2   :  { %v5105_v25 = vpop.permute.xlu1 %175  ;;  %v5107_v27 = vpop.permute.xlu0 %173  ;;  %v935_v15 = vrot.slane %v922_v2, 1 }
  0xa3   :  { %9504 = vst [vmem:[#allocation10_spill] sm:$0xff] %v5105_v25  ;;  %9505 = vst [vmem:[#allocation11_spill] sm:$0xff] %v5107_v27 }
  0xa4   :  { %828 = vrot.lane.b32.xlu1 %v821_v19, %s4868_s23  ;;  %826 = vrot.lane.b32.xlu0 %v819_v23, %s4868_s23  ;;  %v936_v33 = vsel %vm515_vm0, %v933_v10, %v935_v15  ;;  %v1005_v15 = vmul.f32 %v999_v57, %v5045_v26 }
  0xa6   :  { %v5116_v39 = vpop.permute.xlu1 %179  ;;  %v5118_v40 = vpop.permute.xlu0 %177  ;;  %v1020_v36 = vrot.slane %v1005_v15, 1 }
  0xa7   :  { %9506 = vst [vmem:[#allocation12_spill] sm:$0xff] %v5116_v39  ;;  %9507 = vst [vmem:[#allocation13_spill] sm:$0xff] %v5118_v40 }
  0xa8   :  { %864 = vrot.lane.b32.xlu1 %v856_v29, %s4868_s23  ;;  %862 = vrot.lane.b32.xlu0 %v854_v35, %s4868_s23  ;;  %v961_v29 = vmul.f32 %v959_v18, %v4909_v4  ;;  %v937_v35 = vrot.slane %v923_v17, 1 }
  0xaa   :  { %v5127_v54 = vpop.permute.xlu1 %201  ;;  %v5129_v55 = vpop.permute.xlu0 %199  ;;  %v973_v44 = vrot.slane %v961_v29, 1  ;;  %v939_v49 = vsel %vm515_vm0, %v937_v35, %v938_v24  ;;  %v1013_v24 = vrot.slane %v1001_v5, 1  ;;  %v1018_v35 = vrot.slane %v1004_v14, 1 }
  0xab   :  { %9508 = vst [vmem:[#allocation14_spill] sm:$0xff] %v5127_v54  ;;  %9509 = vst [vmem:[#allocation15_spill] sm:$0xff] %v5129_v55 }
  0xac   :  { %868 = vrot.lane.b32.xlu1 %v861_v45, %s4868_s23  ;;  %866 = vrot.lane.b32.xlu0 %v859_v46, %s4868_s23  ;;  %v975_v45 = vrot.slane %v962_v32, 1  ;;  %v965_v46 = vmul.f32 %v959_v18, %v5045_v26  ;;  %v974_v2 = vsel %vm515_vm0, %v972_v50, %v973_v44  ;;  %v1003_v18 = vmul.f32 %v999_v57, %v4894_v0 }
  0xad   :  { %v1039_v32 = vstv %s4678_s21  ;;  %s4701_s21 = sld [smem:[#allocation2 + $0x307]] }
  0xae   :  { %v5138_v6 = vpop.permute.xlu1 %205  ;;  %v5140_v7 = vpop.permute.xlu0 %203  ;;  %v976_v58 = vsel %vm515_vm0, %v973_v44, %v975_v45  ;;  %v1017_v43 = vrot.slane %v1003_v18, 1  ;;  %v1041_v44 = vmul.f32 %v1039_v32, %v4909_v4  ;;  %v1042_v45 = vmul.f32 %v1039_v32, %v5036_v22 }
  0xaf   :  { %9510 = vst [vmem:[#allocation16_spill] sm:$0xff] %v5138_v6  ;;  %9511 = vst [vmem:[#allocation17_spill] sm:$0xff] %v5140_v7  ;;  %v1045_v5 = vmul.f32 %v1039_v32, %v5045_v26 }
  0xb0   :  { %904 = vrot.lane.b32.xlu1 %v896_v60, %s4868_s23  ;;  %902 = vrot.lane.b32.xlu0 %v894_v61, %s4868_s23  ;;  %v980_v60 = vrot.slane %v965_v46, 1  ;;  %v977_v61 = vrot.slane %v963_v47, 1 }
  0xb2   :  { %v5149_v19 = vpop.permute.xlu1 %227  ;;  %v5151_v23 = vpop.permute.xlu0 %225  ;;  %v981_v16 = vsel %vm515_vm0, %v978_v59, %v980_v60  ;;  %v979_v17 = vsel %vm515_vm0, %v977_v61, %v978_v59  ;;  %v1053_v59 = vrot.slane %v1041_v44, 1  ;;  %v1055_v60 = vrot.slane %v1042_v45, 1 }
  0xb3   :  { %9512 = vst [vmem:[#allocation18_spill] sm:$0xff] %v5149_v19  ;;  %9513 = vst [vmem:[#allocation19_spill] sm:$0xff] %v5151_v23  ;;  %v1044_v61 = vmul.f32 %v1039_v32, %v4904_v3 }
  0xb4   :  { %908 = vrot.lane.b32.xlu1 %v901_v8, %s4868_s23  ;;  %906 = vrot.lane.b32.xlu0 %v899_v9, %s4868_s23  ;;  %v1002_v8 = vmul.f32 %v999_v57, %v5036_v22  ;;  %v1000_v9 = vmul.f32 %v999_v57, %v4899_v1  ;;  %v1021_v57 = vsel %vm515_vm0, %v1018_v35, %v1020_v36 }
  0xb6   :  { %v5160_v37 = vpop.permute.xlu1 %231  ;;  %v5162_v38 = vpop.permute.xlu0 %229  ;;  %v1015_v28 = vrot.slane %v1002_v8, 1  ;;  %v1012_v29 = vrot.slane %v1000_v9, 1  ;;  %v1043_v8 = vmul.f32 %v1039_v32, %v4894_v0  ;;  %v1079_v9 = vstv %s4679_s22  ;;  %s4702_s22 = sld [smem:[#allocation2 + $0x387]] }
  0xb7   :  { %9514 = vst [vmem:[#allocation20_spill] sm:$0xff] %v5160_v37  ;;  %9515 = vst [vmem:[#allocation21_spill] sm:$0xff] %v5162_v38  ;;  %v1082_v18 = vmul.f32 %v1079_v9, %v5036_v22  ;;  %v1084_v44 = vmul.f32 %v1079_v9, %v4904_v3  ;;  %v1085_v45 = vmul.f32 %v1079_v9, %v5045_v26 }
  0xb8   :  { %944 = vrot.lane.b32.xlu1 %v936_v33, %s4868_s23  ;;  %942 = vrot.lane.b32.xlu0 %v934_v34, %s4868_s23  ;;  %v1016_v46 = vsel %vm515_vm0, %v1013_v24, %v1015_v28  ;;  %v1014_v47 = vsel %vm515_vm0, %v1012_v29, %v1013_v24  ;;  %v1080_v24 = vmul.f32 %v1079_v9, %v4899_v1 }
  0xb9   :  { %v1056_v28 = vsel %vm515_vm0, %v1053_v59, %v1055_v60 }
  0xba   :  { %v5171_v53 = vpop.permute.xlu1 %253  ;;  %v5173_v56 = vpop.permute.xlu0 %251 }
  0xbb   :  { %9516 = vst [vmem:[#allocation22_spill] sm:$0xff] %v5171_v53  ;;  %9517 = vst [vmem:[#allocation23_spill] sm:$0xff] %v5173_v56 }
  0xbc   :  { %948 = vrot.lane.b32.xlu1 %v941_v48, %s4868_s23  ;;  %946 = vrot.lane.b32.xlu0 %v939_v49, %s4868_s23  ;;  %v1040_v48 = vmul.f32 %v1039_v32, %v4899_v1  ;;  %v1060_v32 = vrot.slane %v1045_v5, 1  ;;  %v1098_v5 = vrot.slane %v1084_v44, 1 }
  0xbe   :  { %v5182_v10 = vpop.permute.xlu1 %257  ;;  %v5184_v11 = vpop.permute.xlu0 %255 }
  0xbf   :  { %9518 = vst [vmem:[#allocation24_spill] sm:$0xff] %v5182_v10  ;;  %9519 = vst [vmem:[#allocation25_spill] sm:$0xff] %v5184_v11 }
  0xc0   :  { %984 = vrot.lane.b32.xlu1 %v976_v58, %s4868_s23  ;;  %982 = vrot.lane.b32.xlu0 %v974_v2, %s4868_s23  ;;  %v1019_v58 = vsel %vm515_vm0, %v1017_v43, %v1018_v35  ;;  %v1052_v2 = vrot.slane %v1040_v48, 1  ;;  %v1057_v35 = vrot.slane %v1043_v8, 1  ;;  %v1092_v48 = vrot.slane %v1080_v24, 1 }
  0xc1   :  { %v1100_v8 = vrot.slane %v1085_v45, 1 }
  0xc2   :  { %v5193_v33 = vpop.permute.xlu1 %279  ;;  %v5195_v34 = vpop.permute.xlu0 %277  ;;  %v1054_v29 = vsel %vm515_vm0, %v1052_v2, %v1053_v59  ;;  %v1083_v59 = vmul.f32 %v1079_v9, %v4894_v0  ;;  %v1119_v2 = vstv %s4680_s24  ;;  %s4703_s24 = sld [smem:[#allocation2 + $0x8]] }
  0xc3   :  { %9520 = vst [vmem:[#allocation26_spill] sm:$0xff] %v5193_v33  ;;  %9521 = vst [vmem:[#allocation27_spill] sm:$0xff] %v5195_v34  ;;  %v1124_v44 = vmul.f32 %v1119_v2, %v4904_v3  ;;  %v1125_v45 = vmul.f32 %v1119_v2, %v5045_v26 }
  0xc4   :  { %988 = vrot.lane.b32.xlu1 %v981_v16, %s4868_s23  ;;  %986 = vrot.lane.b32.xlu0 %v979_v17, %s4868_s23  ;;  %v1058_v16 = vrot.slane %v1044_v61, 1  ;;  %v1081_v17 = vmul.f32 %v1079_v9, %v4909_v4  ;;  %v1097_v24 = vrot.slane %v1083_v59, 1  ;;  %v1122_v9 = vmul.f32 %v1119_v2, %v5036_v22 }
  0xc6   :  { %v5204_v49 = vpop.permute.xlu1 %283  ;;  %v5206_v50 = vpop.permute.xlu0 %281 }
  0xc7   :  { %9522 = vst [vmem:[#allocation28_spill] sm:$0xff] %v5204_v49  ;;  %9523 = vst [vmem:[#allocation29_spill] sm:$0xff] %v5206_v50 }
  0xc8   :  { %1024 = vrot.lane.b32.xlu1 %v1016_v46, %s4868_s23  ;;  %1022 = vrot.lane.b32.xlu0 %v1014_v47, %s4868_s23  ;;  %v1093_v46 = vrot.slane %v1081_v17, 1  ;;  %v1095_v47 = vrot.slane %v1082_v18, 1 }
  0xca   :  { %v5215_v14 = vpop.permute.xlu1 %305  ;;  %v5217_v15 = vpop.permute.xlu0 %303  ;;  %v1096_v17 = vsel %vm515_vm0, %v1093_v46, %v1095_v47  ;;  %v1094_v18 = vsel %vm515_vm0, %v1092_v48, %v1093_v46  ;;  %v1123_v46 = vmul.f32 %v1119_v2, %v4894_v0  ;;  %v1159_v47 = vstv %s4681_s25  ;;  %s4704_s25 = sld [smem:[#allocation2 + $0x88]] }
  0xcb   :  { %9524 = vst [vmem:[#allocation30_spill] sm:$0xff] %v5215_v14  ;;  %9525 = vst [vmem:[#allocation31_spill] sm:$0xff] %v5217_v15  ;;  %v1099_v48 = vsel %vm515_vm0, %v1097_v24, %v1098_v5 }
  0xcc   :  { %1028 = vrot.lane.b32.xlu1 %v1021_v57, %s4868_s23  ;;  %1026 = vrot.lane.b32.xlu0 %v1019_v58, %s4868_s23  ;;  %v1061_v57 = vsel %vm515_vm0, %v1058_v16, %v1060_v32  ;;  %v1059_v58 = vsel %vm515_vm0, %v1057_v35, %v1058_v16  ;;  %v1121_v16 = vmul.f32 %v1119_v2, %v4909_v4 }
  0xcd   :  { %v1101_v35 = vsel %vm515_vm0, %v1098_v5, %v1100_v8  ;;  %v1160_v5 = vmul.f32 %v1159_v47, %v4899_v1 }
  0xce   :  { %v5226_v36 = vpop.permute.xlu1 %309  ;;  %v5228_v43 = vpop.permute.xlu0 %307 }
  0xcf   :  { %9526 = vst [vmem:[#allocation32_spill] sm:$0xff] %v5226_v36  ;;  %9527 = vst [vmem:[#allocation33_spill] sm:$0xff] %v5228_v43 }
  0xd0   :  { %1064 = vrot.lane.b32.xlu1 %v1056_v28, %s4868_s23  ;;  %1062 = vrot.lane.b32.xlu0 %v1054_v29, %s4868_s23  ;;  %v1120_v28 = vmul.f32 %v1119_v2, %v4899_v1  ;;  %v1138_v2 = vrot.slane %v1124_v44, 1 }
  0xd2   :  { %v5237_v60 = vpop.permute.xlu1 %331  ;;  %v5239_v61 = vpop.permute.xlu0 %329  ;;  %v1132_v59 = vrot.slane %v1120_v28, 1 }
  0xd3   :  { %9528 = vst [vmem:[#allocation34_spill] sm:$0xff] %v5237_v60  ;;  %9529 = vst [vmem:[#allocation35_spill] sm:$0xff] %v5239_v61  ;;  %v1137_v61 = vrot.slane %v1123_v46, 1  ;;  %v1164_v46 = vmul.f32 %v1159_v47, %v4904_v3 }
  0xd4   :  { %1068 = vrot.lane.b32.xlu1 %v1061_v57, %s4868_s23  ;;  %1066 = vrot.lane.b32.xlu0 %v1059_v58, %s4868_s23  ;;  %v1133_v57 = vrot.slane %v1121_v16, 1  ;;  %v1135_v58 = vrot.slane %v1122_v9, 1 }
  0xd5   :  { %v1139_v44 = vsel %vm515_vm0, %v1137_v61, %v1138_v2 }
  0xd6   :  { %v5248_v29 = vpop.permute.xlu1 %335  ;;  %v5250_v32 = vpop.permute.xlu0 %333  ;;  %v1136_v24 = vsel %vm515_vm0, %v1133_v57, %v1135_v58  ;;  %v1134_v16 = vsel %vm515_vm0, %v1132_v59, %v1133_v57  ;;  %v1163_v57 = vmul.f32 %v1159_v47, %v4894_v0  ;;  %v1199_v58 = vstv %s4682_s26  ;;  %s4705_s26 = sld [smem:[#allocation2 + $0x108]] }
  0xd7   :  { %9530 = vst [vmem:[#allocation36_spill] sm:$0xff] %v5248_v29  ;;  %9531 = vst [vmem:[#allocation37_spill] sm:$0xff] %v5250_v32  ;;  %v1140_v29 = vrot.slane %v1125_v45, 1  ;;  %v1172_v45 = vrot.slane %v1160_v5, 1  ;;  %v1201_v61 = vmul.f32 %v1199_v58, %v4909_v4  ;;  %v1178_v5 = vrot.slane %v1164_v46, 1 }
  0xd8   :  { %1104 = vrot.lane.b32.xlu1 %v1096_v17, %s4869_s4  ;;  %1102 = vrot.lane.b32.xlu0 %v1094_v18, %s4869_s4  ;;  %v1161_v17 = vmul.f32 %v1159_v47, %v4909_v4  ;;  %v1162_v18 = vmul.f32 %v1159_v47, %v5036_v22  ;;  %v1203_v46 = vmul.f32 %v1199_v58, %v4894_v0 }
  0xda   :  { %v5259_v32 = vpop.permute.xlu1 %357  ;;  %v5261_v8 = vpop.permute.xlu0 %355 }
  0xdb   :  { %9532 = vst [vmem:[#allocation38_spill] sm:$0xff] %v5259_v32  ;;  %9533 = vst [vmem:[#allocation39_spill] sm:$0xff] %v5261_v8  ;;  %v1173_v8 = vrot.slane %v1161_v17, 1  ;;  %v1175_v32 = vrot.slane %v1162_v18, 1 }
  0xdc   :  { %1108 = vrot.lane.b32.xlu1 %v1101_v35, %s4869_s4  ;;  %1106 = vrot.lane.b32.xlu0 %v1099_v48, %s4869_s4  ;;  %v1141_v35 = vsel %vm515_vm0, %v1138_v2, %v1140_v29  ;;  %v1165_v48 = vmul.f32 %v1159_v47, %v5045_v26  ;;  %v1202_v29 = vmul.f32 %v1199_v58, %v5036_v22 }
  0xdd   :  { %v1176_v18 = vsel %vm515_vm0, %v1173_v8, %v1175_v32  ;;  %v1200_v2 = vmul.f32 %v1199_v58, %v4899_v1  ;;  %v1174_v47 = vsel %vm515_vm0, %v1172_v45, %v1173_v8  ;;  %v1204_v32 = vmul.f32 %v1199_v58, %v4904_v3 }
  0xde   :  { %v5270_v9 = vpop.permute.xlu1 %361  ;;  %v5272_v28 = vpop.permute.xlu0 %359 }
  0xdf   :  { %9534 = vst [vmem:[#allocation40_spill] sm:$0xff] %v5270_v9  ;;  %9535 = vst [vmem:[#allocation41_spill] sm:$0xff] %v5272_v28  ;;  %v1215_v28 = vrot.slane %v1202_v29, 1  ;;  %v1212_v9 = vrot.slane %v1200_v2, 1  ;;  %v1217_v29 = vrot.slane %v1203_v46, 1 }
  0xe0   :  { %1144 = vrot.lane.b32.xlu1 %v1136_v24, %s4869_s4  ;;  %1142 = vrot.lane.b32.xlu0 %v1134_v16, %s4869_s4  ;;  %v1180_v24 = vrot.slane %v1165_v48, 1  ;;  %v1177_v16 = vrot.slane %v1163_v57, 1 }
  0xe2   :  { %v5281_v59 = vpop.permute.xlu1 %383  ;;  %v5283_v17 = vpop.permute.xlu0 %381  ;;  %v1181_v8 = vsel %vm515_vm0, %v1178_v5, %v1180_v24  ;;  %v1179_v45 = vsel %vm515_vm0, %v1177_v16, %v1178_v5 }
  0xe3   :  { %9536 = vst [vmem:[#allocation42_spill] sm:$0xff] %v5281_v59  ;;  %9537 = vst [vmem:[#allocation43_spill] sm:$0xff] %v5283_v17 }
  0xe4   :  { %1148 = vrot.lane.b32.xlu1 %v1141_v35, %s4869_s4  ;;  %1146 = vrot.lane.b32.xlu0 %v1139_v44, %s4869_s4  ;;  %v1205_v35 = vmul.f32 %v1199_v58, %v5045_v26  ;;  %v1213_v44 = vrot.slane %v1201_v61, 1 }
  0xe6   :  { %v5292_v59 = vpop.permute.xlu1 %387  ;;  %v5294_v17 = vpop.permute.xlu0 %385  ;;  %v1220_v60 = vrot.slane %v1205_v35, 1  ;;  %v1214_v61 = vsel %vm515_vm0, %v1212_v9, %v1213_v44  ;;  %v1279_v35 = vstv %s4684_s28  ;;  %s4707_s28 = sld [smem:[#allocation2 + $0x208]] }
  0xe7   :  { %9538 = vst [vmem:[#allocation44_spill] sm:$0xff] %v5292_v59  ;;  %9539 = vst [vmem:[#allocation45_spill] sm:$0xff] %v5294_v17  ;;  %v1239_v17 = vstv %s4683_s27  ;;  %v1218_v59 = vrot.slane %v1204_v32, 1  ;;  %s4706_s27 = sld [smem:[#allocation2 + $0x188]] }
  0xe8   :  { %1184 = vrot.lane.b32.xlu1 %v1176_v18, %s4869_s4  ;;  %1182 = vrot.lane.b32.xlu0 %v1174_v47, %s4869_s4  ;;  %v1216_v18 = vsel %vm515_vm0, %v1213_v44, %v1215_v28  ;;  %v1241_v2 = vmul.f32 %v1239_v17, %v4909_v4  ;;  %v1242_v58 = vmul.f32 %v1239_v17, %v5036_v22 }
  0xe9   :  { %v1240_v47 = vmul.f32 %v1239_v17, %v4899_v1  ;;  %v1221_v16 = vsel %vm515_vm0, %v1218_v59, %v1220_v60  ;;  %v1244_v28 = vmul.f32 %v1239_v17, %v4904_v3  ;;  %v1245_v9 = vmul.f32 %v1239_v17, %v5045_v26 }
  0xea   :  { %v5303_v48 = vpop.permute.xlu1 %409  ;;  %v5305_v57 = vpop.permute.xlu0 %407  ;;  %v1243_v32 = vmul.f32 %v1239_v17, %v4894_v0  ;;  %v1219_v44 = vsel %vm515_vm0, %v1217_v29, %v1218_v59  ;;  %v1280_v59 = vmul.f32 %v1279_v35, %v4899_v1  ;;  %v5347_v1 = vld [vmem:[%s9499_s0 + $0x38] sm:$0xff] }
  0xeb   :  { %9540 = vst [vmem:[#allocation46_spill] sm:$0xff] %v5303_v48  ;;  %9541 = vst [vmem:[#allocation47_spill] sm:$0xff] %v5305_v57  ;;  %v1252_v46 = vrot.slane %v1240_v47, 1  ;;  %v1258_v0 = vrot.slane %v1244_v28, 1  ;;  %v1260_v3 = vrot.slane %v1245_v9, 1 }
  0xec   :  { %1188 = vrot.lane.b32.xlu1 %v1181_v8, %s4869_s4  ;;  %1186 = vrot.lane.b32.xlu0 %v1179_v45, %s4869_s4  ;;  %v1253_v8 = vrot.slane %v1241_v2, 1  ;;  %v1255_v45 = vrot.slane %v1242_v58, 1  ;;  %v1257_v17 = vrot.slane %v1243_v32, 1  ;;  %v1292_v9 = vrot.slane %v1280_v59, 1  ;;  %v5374_v59 = vld [vmem:[%s9499_s0] sm:$0xff] }
  0xed   :  { %v1284_v32 = vmul.f32 %v5347_v1, %v1279_v35 }
  0xee   :  { %v5314_v5 = vpop.permute.xlu1 %413  ;;  %v5316_v24 = vpop.permute.xlu0 %411  ;;  %v1256_v29 = vsel %vm515_vm0, %v1253_v8, %v1255_v45  ;;  %v1254_v2 = vsel %vm515_vm0, %v1252_v46, %v1253_v8  ;;  %v1259_v28 = vsel %vm515_vm0, %v1257_v17, %v1258_v0  ;;  %v5354_v8 = vld [vmem:[%s9499_s0 + $0x30] sm:$0xff]  ;;  %v1319_v46 = vstv %s4685_s29  ;;  %s4708_s29 = sld [smem:[#allocation2 + $0x288]] }
  0xef   :  { %9542 = vst [vmem:[#allocation48_spill] sm:$0xff] %v5314_v5  ;;  %9543 = vst [vmem:[#allocation49_spill] sm:$0xff] %v5316_v24  ;;  %v1283_v45 = vmul.f32 %v5354_v8, %v1279_v35 }
  0xf0   :  { %1224 = vrot.lane.b32.xlu1 %v1216_v18, %s4869_s4  ;;  %1222 = vrot.lane.b32.xlu0 %v1214_v61, %s4869_s4  ;;  %v1281_v18 = vmul.f32 %v1279_v35, %v4909_v4  ;;  %v1282_v61 = vmul.f32 %v1279_v35, %v5036_v22 }
  0xf2   :  { %v5325_v24 = vpop.permute.xlu1 %435  ;;  %v5327_v60 = vpop.permute.xlu0 %433  ;;  %v1293_v4 = vrot.slane %v1281_v18, 1 }
  0xf3   :  { %9544 = vst [vmem:[#allocation50_spill] sm:$0xff] %v5325_v24  ;;  %9545 = vst [vmem:[#allocation51_spill] sm:$0xff] %v5327_v60  ;;  %v1295_v60 = vrot.slane %v1282_v61, 1 }
  0xf4   :  { %1228 = vrot.lane.b32.xlu1 %v1221_v16, %s4869_s4  ;;  %1226 = vrot.lane.b32.xlu0 %v1219_v44, %s4869_s4  ;;  %v1261_v16 = vsel %vm515_vm0, %v1258_v0, %v1260_v3  ;;  %v1285_v44 = vmul.f32 %v1279_v35, %v5045_v26  ;;  %v5367_v3 = vld [vmem:[%s9499_s0 + $0x8] sm:$0xff]  ;;  %v1322_v35 = vmul.f32 %v1319_v46, %v5036_v22 }
  0xf5   :  { %v1296_v0 = vsel %vm515_vm0, %v1293_v4, %v1295_v60  ;;  %v1321_v17 = vmul.f32 %v5367_v3, %v1319_v46  ;;  %v1320_v60 = vmul.f32 %v5374_v59, %v1319_v46 }
  0xf6   :  { %v5336_v58 = vpop.permute.xlu1 %439  ;;  %v5338_v47 = vpop.permute.xlu0 %437  ;;  %v1335_v5 = vrot.slane %v1322_v35, 1 }
  0xf7   :  { %9546 = vst [vmem:[#allocation52_spill] sm:$0xff] %v5336_v58  ;;  %9547 = vst [vmem:[#allocation53_spill] sm:$0xff] %v5338_v47  ;;  %v1324_v47 = vmul.f32 %v5347_v1, %v1319_v46  ;;  %v1325_v58 = vmul.f32 %v1319_v46, %v5045_v26  ;;  %v1333_v24 = vrot.slane %v1321_v17, 1  ;;  %v1332_v57 = vrot.slane %v1320_v60, 1 }
  0xf8   :  { %1264 = vrot.lane.b32.xlu1 %v1256_v29, %s4869_s4  ;;  %1262 = vrot.lane.b32.xlu0 %v1254_v2, %s4869_s4  ;;  %v1294_v29 = vsel %vm515_vm0, %v1292_v9, %v1293_v4  ;;  %v1298_v2 = vrot.slane %v1284_v32, 1  ;;  %v1323_v32 = vmul.f32 %v5354_v8, %v1319_v46 }
  0xf9   :  { %v1340_v48 = vrot.slane %v1325_v58, 1  ;;  %v1334_v17 = vsel %vm515_vm0, %v1332_v57, %v1333_v24 }
  0xfa   :  { %v5357_v18 = vpop.permute.xlu1 %461  ;;  %v5359_v61 = vpop.permute.xlu0 %459  ;;  %v1337_v35 = vrot.slane %v1323_v32, 1 }
  0xfb   :  { %9548 = vst [vmem:[#allocation54_spill] sm:$0xff] %v5357_v18  ;;  %9549 = vst [vmem:[#allocation55_spill] sm:$0xff] %v5359_v61 }
  0xfc   :  { %1268 = vrot.lane.b32.xlu1 %v1261_v16, %s4869_s4  ;;  %1266 = vrot.lane.b32.xlu0 %v1259_v28, %s4869_s4  ;;  %v1300_v16 = vrot.slane %v1285_v44, 1  ;;  %v1297_v28 = vrot.slane %v1283_v45, 1 }
  0xfe   :  { %v5378_v61 = vpop.permute.xlu1 %465  ;;  %v5380_v18 = vpop.permute.xlu0 %463  ;;  %v1301_v4 = vsel %vm515_vm0, %v1298_v2, %v1300_v16  ;;  %v1299_v9 = vsel %vm515_vm0, %v1297_v28, %v1298_v2 }
  0xff   :  { %9550 = vst [vmem:[#allocation56_spill] sm:$0xff] %v5378_v61  ;;  %9551 = vst [vmem:[#allocation57_spill] sm:$0xff] %v5380_v18  ;;  %v1359_v18 = vstv %s4686_s7  ;;  %v1338_v61 = vrot.slane %v1324_v47, 1  ;;  %v1656_v47 = vstv %s4695_s12  ;;  %s6006_s12 = sld [smem:[#allocation2 + $0xb]]  ;;  %s6976_s7 = sld [smem:[#allocation2 + $0x38d]] }
 0x100   :  { %1304 = vrot.lane.b32.xlu1 %v1296_v0, %s4869_s4  ;;  %1302 = vrot.lane.b32.xlu0 %v1294_v29, %s4869_s4  ;;  %v1336_v0 = vsel %vm515_vm0, %v1333_v24, %v1335_v5  ;;  %v1361_v60 = vmul.f32 %v5367_v3, %v1359_v18  ;;  %v1362_v46 = vmul.f32 %v1359_v18, %v5036_v22 }
 0x101   :  { %v1360_v29 = vmul.f32 %v5374_v59, %v1359_v18  ;;  %v1341_v58 = vsel %vm515_vm0, %v1338_v61, %v1340_v48  ;;  %v1364_v5 = vmul.f32 %v5347_v1, %v1359_v18  ;;  %v1365_v57 = vmul.f32 %v1359_v18, %v5045_v26 }
 0x102   :  { %v5389_v44 = vpop.permute.xlu1 %487  ;;  %v5391_v45 = vpop.permute.xlu0 %485  ;;  %v1363_v24 = vmul.f32 %v5354_v8, %v1359_v18  ;;  %v1339_v28 = vsel %vm515_vm0, %v1337_v35, %v1338_v61  ;;  %v1657_v61 = vmul.f32 %v5374_v59, %v1656_v47 }
 0x103   :  { %9552 = vst [vmem:[#allocation58_spill] sm:$0xff] %v5389_v44  ;;  %9553 = vst [vmem:[#allocation59_spill] sm:$0xff] %v5391_v45  ;;  %v1372_v32 = vrot.slane %v1360_v29, 1  ;;  %v1378_v18 = vrot.slane %v1364_v5, 1 }
 0x104   :  { %1308 = vrot.lane.b32.xlu1 %v1301_v4, %s4869_s4  ;;  %1306 = vrot.lane.b32.xlu0 %v1299_v9, %s4869_s4  ;;  %v1373_v4 = vrot.slane %v1361_v60, 1  ;;  %v1375_v9 = vrot.slane %v1362_v46, 1  ;;  %v1377_v45 = vrot.slane %v1363_v24, 1  ;;  %v1661_v24 = vmul.f32 %v5347_v1, %v1656_v47 }
 0x106   :  { %v5400_v2 = vpop.permute.xlu1 %491  ;;  %v5402_v16 = vpop.permute.xlu0 %489  ;;  %v1376_v35 = vsel %vm515_vm0, %v1373_v4, %v1375_v9  ;;  %v1374_v60 = vsel %vm515_vm0, %v1372_v32, %v1373_v4  ;;  %v1379_v5 = vsel %vm515_vm0, %v1377_v45, %v1378_v18  ;;  %v1660_v4 = vmul.f32 %v5354_v8, %v1656_v47 }
 0x107   :  { %9554 = vst [vmem:[#allocation60_spill] sm:$0xff] %v5400_v2  ;;  %9555 = vst [vmem:[#allocation61_spill] sm:$0xff] %v5402_v16  ;;  %v1380_v2 = vrot.slane %v1365_v57, 1  ;;  %v1669_v57 = vrot.slane %v1657_v61, 2  ;;  %v1696_v9 = vstv %s4696_s13  ;;  %v1675_v61 = vrot.slane %v1661_v24, 2  ;;  %s6026_s13 = sld [smem:[#allocation2 + $0x103]] }
 0x108   :  { %1344 = vrot.lane.b32.xlu1 %v1336_v0, %s4869_s4  ;;  %1342 = vrot.lane.b32.xlu0 %v1334_v17, %s4869_s4  ;;  %v1658_v0 = vmul.f32 %v5367_v3, %v1656_v47  ;;  %v1659_v17 = vmul.f32 %v1656_v47, %v5036_v22  ;;  %v1698_v45 = vmul.f32 %v5367_v3, %v1696_v9 }
 0x109   :  { %v1700_v24 = vmul.f32 %v5354_v8, %v1696_v9 }
 0x10a   :  { %v5411_v16 = vpop.permute.xlu1 %784  ;;  %v5413_v48 = vpop.permute.xlu0 %782 }
 0x10b   :  { %9556 = vst [vmem:[#allocation62_spill] sm:$0xff] %v5411_v16  ;;  %9557 = vst [vmem:[#allocation63_spill] sm:$0xff] %v5413_v48  ;;  %v1670_v48 = vrot.slane %v1658_v0, 2  ;;  %v1672_v16 = vrot.slane %v1659_v17, 2 }
 0x10c   :  { %1348 = vrot.lane.b32.xlu1 %v1341_v58, %s4869_s4  ;;  %1346 = vrot.lane.b32.xlu0 %v1339_v28, %s4869_s4  ;;  %v1381_v58 = vsel %vm515_vm0, %v1378_v18, %v1380_v2  ;;  %v1662_v28 = vmul.f32 %v1656_v47, %v5045_v26  ;;  %v1699_v2 = vmul.f32 %v1696_v9, %v5036_v22 }
 0x10d   :  { %v1673_v17 = vsel %vm1412_vm1, %v1670_v48, %v1672_v16  ;;  %v1697_v18 = vmul.f32 %v5374_v59, %v1696_v9  ;;  %v1671_v47 = vsel %vm1412_vm1, %v1669_v57, %v1670_v48  ;;  %v1701_v16 = vmul.f32 %v5347_v1, %v1696_v9 }
 0x10e   :  { %v5422_v46 = vpop.permute.xlu1 %788  ;;  %v5424_v29 = vpop.permute.xlu0 %786  ;;  %v567_v55 = vstv %s6026_s13  ;;  %s7049_s13 = sld [smem:[#allocation2 + $0xe]] }
 0x10f   :  { %9558 = vst [vmem:[#allocation64_spill] sm:$0xff] %v5422_v46  ;;  %9559 = vst [vmem:[#allocation65_spill] sm:$0xff] %v5424_v29  ;;  %v1712_v29 = vrot.slane %v1699_v2, 2  ;;  %v1709_v46 = vrot.slane %v1697_v18, 2  ;;  %v1714_v2 = vrot.slane %v1700_v24, 2 }
 0x110   :  { %1384 = vrot.lane.b32.xlu1 %v1376_v35, %s4869_s4  ;;  %1382 = vrot.lane.b32.xlu0 %v1374_v60, %s4869_s4  ;;  %v1677_v35 = vrot.slane %v1662_v28, 2  ;;  %v1674_v60 = vrot.slane %v1660_v4, 2 }
 0x112   :  { %v5433_v32 = vpop.permute.xlu1 %824  ;;  %v5435_v0 = vpop.permute.xlu0 %822  ;;  %v1678_v48 = vsel %vm1412_vm1, %v1675_v61, %v1677_v35  ;;  %v1676_v57 = vsel %vm1412_vm1, %v1674_v60, %v1675_v61 }
 0x113   :  { %9560 = vst [vmem:[#allocation66_spill] sm:$0xff] %v5433_v32  ;;  %9561 = vst [vmem:[#allocation67_spill] sm:$0xff] %v5435_v0 }
 0x114   :  { %1388 = vrot.lane.b32.xlu1 %v1381_v58, %s4869_s4  ;;  %1386 = vrot.lane.b32.xlu0 %v1379_v5, %s4869_s4  ;;  %v1702_v58 = vmul.f32 %v1696_v9, %v5045_v26  ;;  %v1710_v5 = vrot.slane %v1698_v45, 2 }
 0x116   :  { %v5444_v32 = vpop.permute.xlu1 %828  ;;  %v5446_v0 = vpop.permute.xlu0 %826  ;;  %v1717_v44 = vrot.slane %v1702_v58, 2  ;;  %v1711_v45 = vsel %vm1412_vm1, %v1709_v46, %v1710_v5  ;;  %v1776_v58 = vstv %s4698_s15  ;;  %s4721_s15 = sld [smem:[#allocation2 + $0x10a]] }
 0x117   :  { %9562 = vst [vmem:[#allocation68_spill] sm:$0xff] %v5444_v32  ;;  %9563 = vst [vmem:[#allocation69_spill] sm:$0xff] %v5446_v0  ;;  %v1736_v0 = vstv %s4697_s14  ;;  %v1715_v32 = vrot.slane %v1701_v16, 2  ;;  %s6067_s14 = sld [smem:[#allocation2 + $0x183]] }
 0x118   :  { %1681 = vrot.lane.b32.xlu1 %v1673_v17, %s4868_s23  ;;  %1679 = vrot.lane.b32.xlu0 %v1671_v47, %s4868_s23  ;;  %v1713_v17 = vsel %vm1412_vm1, %v1710_v5, %v1712_v29  ;;  %v1738_v18 = vmul.f32 %v5367_v3, %v1736_v0  ;;  %v1739_v9 = vmul.f32 %v1736_v0, %v5036_v22 }
 0x119   :  { %v1737_v47 = vmul.f32 %v5374_v59, %v1736_v0  ;;  %v1718_v60 = vsel %vm1412_vm1, %v1715_v32, %v1717_v44  ;;  %v1741_v29 = vmul.f32 %v5347_v1, %v1736_v0  ;;  %v1742_v46 = vmul.f32 %v1736_v0, %v5045_v26 }
 0x11a   :  { %v5455_v28 = vpop.permute.xlu1 %864  ;;  %v5457_v4 = vpop.permute.xlu0 %862  ;;  %v1740_v16 = vmul.f32 %v5354_v8, %v1736_v0  ;;  %v1716_v5 = vsel %vm1412_vm1, %v1714_v2, %v1715_v32  ;;  %v1777_v32 = vmul.f32 %v5374_v59, %v1776_v58 }
 0x11b   :  { %9564 = vst [vmem:[#allocation70_spill] sm:$0xff] %v5455_v28  ;;  %9565 = vst [vmem:[#allocation71_spill] sm:$0xff] %v5457_v4  ;;  %v1749_v24 = vrot.slane %v1737_v47, 2  ;;  %v1755_v0 = vrot.slane %v1741_v29, 2 }
 0x11c   :  { %1685 = vrot.lane.b32.xlu1 %v1678_v48, %s4868_s23  ;;  %1683 = vrot.lane.b32.xlu0 %v1676_v57, %s4868_s23  ;;  %v1750_v48 = vrot.slane %v1738_v18, 2  ;;  %v1752_v57 = vrot.slane %v1739_v9, 2  ;;  %v1754_v4 = vrot.slane %v1740_v16, 2  ;;  %v1789_v29 = vrot.slane %v1777_v32, 2 }
 0x11d   :  { %v1782_v16 = vmul.f32 %v1776_v58, %v5045_v26  ;;  %v5510_v26 = vld [vmem:[%s9499_s0 + $0x10] sm:$0x3] }
 0x11e   :  { %v5466_v61 = vpop.permute.xlu1 %868  ;;  %v5468_v35 = vpop.permute.xlu0 %866  ;;  %v1753_v2 = vsel %vm1412_vm1, %v1750_v48, %v1752_v57  ;;  %v1751_v18 = vsel %vm1412_vm1, %v1749_v24, %v1750_v48  ;;  %v1816_v48 = vstv %s4699_s16  ;;  %s4722_s16 = sld [smem:[#allocation2 + $0x18a]] }
 0x11f   :  { %9566 = vst [vmem:[#allocation72_spill] sm:$0xff] %v5466_v61  ;;  %9567 = vst [vmem:[#allocation73_spill] sm:$0xff] %v5468_v35  ;;  %v1757_v61 = vrot.slane %v1742_v46, 2  ;;  %v1781_v46 = vmul.f32 %v5347_v1, %v1776_v58  ;;  %v1797_v32 = vrot.slane %v1782_v16, 2 }
 0x120   :  { %1721 = vrot.lane.b32.xlu1 %v1713_v17, %s4868_s23  ;;  %1719 = vrot.lane.b32.xlu0 %v1711_v45, %s4868_s23  ;;  %v1778_v17 = vmul.f32 %v5367_v3, %v1776_v58  ;;  %v1779_v45 = vmul.f32 %v1776_v58, %v5036_v22 }
 0x121   :  { %v1758_v22 = vsel %vm1412_vm1, %v1755_v0, %v1757_v61  ;;  %v1819_v61 = vmul.f32 %v5510_v26, %v1816_v48 }
 0x122   :  { %v5477_v35 = vpop.permute.xlu1 %904  ;;  %v5479_v44 = vpop.permute.xlu0 %902 }
 0x123   :  { %9568 = vst [vmem:[#allocation74_spill] sm:$0xff] %v5477_v35  ;;  %9569 = vst [vmem:[#allocation75_spill] sm:$0xff] %v5479_v44  ;;  %v1790_v44 = vrot.slane %v1778_v17, 2  ;;  %v1792_v35 = vrot.slane %v1779_v45, 2 }
 0x124   :  { %1725 = vrot.lane.b32.xlu1 %v1718_v60, %s4868_s23  ;;  %1723 = vrot.lane.b32.xlu0 %v1716_v5, %s4868_s23  ;;  %v1756_v60 = vsel %vm1412_vm1, %v1754_v4, %v1755_v0  ;;  %v1780_v5 = vmul.f32 %v5354_v8, %v1776_v58  ;;  %v1818_v4 = vmul.f32 %v5367_v3, %v1816_v48  ;;  %v1795_v0 = vrot.slane %v1781_v46, 2 }
 0x125   :  { %v1793_v17 = vsel %vm1412_vm1, %v1790_v44, %v1792_v35  ;;  %v1817_v58 = vmul.f32 %v5374_v59, %v1816_v48  ;;  %v1791_v45 = vsel %vm1412_vm1, %v1789_v29, %v1790_v44  ;;  %v1832_v29 = vrot.slane %v1819_v61, 2 }
 0x126   :  { %v5488_v9 = vpop.permute.xlu1 %908  ;;  %v5490_v47 = vpop.permute.xlu0 %906  ;;  %v1794_v35 = vrot.slane %v1780_v5, 2  ;;  %v1830_v44 = vrot.slane %v1818_v4, 2  ;;  %v1798_v16 = vsel %vm1412_vm1, %v1795_v0, %v1797_v32 }
 0x127   :  { %9570 = vst [vmem:[#allocation76_spill] sm:$0xff] %v5488_v9  ;;  %9571 = vst [vmem:[#allocation77_spill] sm:$0xff] %v5490_v47  ;;  %v1829_v46 = vrot.slane %v1817_v58, 2  ;;  %v1856_v47 = vstv %s4700_s17  ;;  %s4723_s17 = sld [smem:[#allocation2 + $0x20a]] }
 0x128   :  { %1761 = vrot.lane.b32.xlu1 %v1753_v2, %s4868_s23  ;;  %1759 = vrot.lane.b32.xlu0 %v1751_v18, %s4868_s23  ;;  %v1796_v5 = vsel %vm1412_vm1, %v1794_v35, %v1795_v0  ;;  %v1858_v58 = vmul.f32 %v5367_v3, %v1856_v47  ;;  %v1861_v35 = vmul.f32 %v5347_v1, %v1856_v47 }
 0x129   :  { %v1831_v4 = vsel %vm1412_vm1, %v1829_v46, %v1830_v44 }
 0x12a   :  { %v5499_v57 = vpop.permute.xlu1 %944  ;;  %v5501_v24 = vpop.permute.xlu0 %942  ;;  %v1870_v46 = vrot.slane %v1858_v58, 2 }
 0x12b   :  { %9572 = vst [vmem:[#allocation78_spill] sm:$0xff] %v5499_v57  ;;  %9573 = vst [vmem:[#allocation79_spill] sm:$0xff] %v5501_v24 }
 0x12c   :  { %1765 = vrot.lane.b32.xlu1 %v1758_v22, %s4868_s23  ;;  %1763 = vrot.lane.b32.xlu0 %v1756_v60, %s4868_s23  ;;  %v1821_v22 = vmul.f32 %v5347_v1, %v1816_v48  ;;  %v5523_v60 = vld [vmem:[%s9499_s0 + $0x40] sm:$0x3] }
 0x12d   :  { %v1822_v24 = vmul.f32 %v5523_v60, %v1816_v48 }
 0x12e   :  { %v5515_v2 = vpop.permute.xlu1 %948  ;;  %v5517_v18 = vpop.permute.xlu0 %946  ;;  %v1835_v9 = vrot.slane %v1821_v22, 2  ;;  %v1860_v22 = vmul.f32 %v5354_v8, %v1856_v47 }
 0x12f   :  { %9574 = vst [vmem:[#allocation80_spill] sm:$0xff] %v5515_v2  ;;  %9575 = vst [vmem:[#allocation81_spill] sm:$0xff] %v5517_v18  ;;  %v1820_v18 = vmul.f32 %v5354_v8, %v1816_v48  ;;  %v1837_v28 = vrot.slane %v1822_v24, 2  ;;  %v1859_v48 = vmul.f32 %v5510_v26, %v1856_v47 }
 0x130   :  { %1801 = vrot.lane.b32.xlu1 %v1793_v17, %s4868_s23  ;;  %1799 = vrot.lane.b32.xlu0 %v1791_v45, %s4868_s23  ;;  %v1833_v17 = vsel %vm1412_vm1, %v1830_v44, %v1832_v29  ;;  %v1857_v45 = vmul.f32 %v5374_v59, %v1856_v47  ;;  %v1896_v44 = vstv %s4701_s21  ;;  %s4641_s21 = sld [smem:[#allocation2 + $0x100]] }
 0x131   :  { %v1834_v61 = vrot.slane %v1820_v18, 2  ;;  %v1838_v24 = vsel %vm1412_vm1, %v1835_v9, %v1837_v28  ;;  %v1862_v18 = vmul.f32 %v5523_v60, %v1856_v47  ;;  %v1875_v47 = vrot.slane %v1861_v35, 2 }
 0x132   :  { %v5531_v2 = vpop.permute.xlu1 %984  ;;  %v5533_v57 = vpop.permute.xlu0 %982 }
 0x133   :  { %9576 = vst [vmem:[#allocation82_spill] sm:$0xff] %v5531_v2  ;;  %9577 = vst [vmem:[#allocation83_spill] sm:$0xff] %v5533_v57  ;;  %v1836_v29 = vsel %vm1412_vm1, %v1834_v61, %v1835_v9  ;;  %v1874_v57 = vrot.slane %v1860_v22, 2  ;;  %v1897_v9 = vmul.f32 %v5374_v59, %v1896_v44  ;;  %v1901_v22 = vmul.f32 %v5347_v1, %v1896_v44 }
 0x134   :  { %1805 = vrot.lane.b32.xlu1 %v1798_v16, %s4868_s23  ;;  %1803 = vrot.lane.b32.xlu0 %v1796_v5, %s4868_s23  ;;  %v1872_v16 = vrot.slane %v1859_v48, 2  ;;  %v1869_v5 = vrot.slane %v1857_v45, 2 }
 0x135   :  { %v1876_v35 = vsel %vm1412_vm1, %v1874_v57, %v1875_v47 }
 0x136   :  { %v5542_v0 = vpop.permute.xlu1 %988  ;;  %v5544_v32 = vpop.permute.xlu0 %986  ;;  %v1873_v61 = vsel %vm1412_vm1, %v1870_v46, %v1872_v16  ;;  %v1871_v58 = vsel %vm1412_vm1, %v1869_v5, %v1870_v46  ;;  %v1900_v46 = vmul.f32 %v5354_v8, %v1896_v44  ;;  %v1936_v16 = vstv %s4702_s22  ;;  %s5897_s22 = sld [smem:[#allocation2 + $0x180]] }
 0x137   :  { %9578 = vst [vmem:[#allocation84_spill] sm:$0xff] %v5542_v0  ;;  %9579 = vst [vmem:[#allocation85_spill] sm:$0xff] %v5544_v32  ;;  %v1877_v0 = vrot.slane %v1862_v18, 2  ;;  %v1909_v18 = vrot.slane %v1897_v9, 2  ;;  %v1938_v57 = vmul.f32 %v5367_v3, %v1936_v16  ;;  %v1915_v9 = vrot.slane %v1901_v22, 2 }
 0x138   :  { %1841 = vrot.lane.b32.xlu1 %v1833_v17, %s4868_s23  ;;  %1839 = vrot.lane.b32.xlu0 %v1831_v4, %s4868_s23  ;;  %v1898_v17 = vmul.f32 %v5367_v3, %v1896_v44  ;;  %v1899_v4 = vmul.f32 %v5510_v26, %v1896_v44  ;;  %v1940_v22 = vmul.f32 %v5354_v8, %v1936_v16 }
 0x13a   :  { %v5553_v32 = vpop.permute.xlu1 %1024  ;;  %v5555_v28 = vpop.permute.xlu0 %1022 }
 0x13b   :  { %9580 = vst [vmem:[#allocation86_spill] sm:$0xff] %v5553_v32  ;;  %9581 = vst [vmem:[#allocation87_spill] sm:$0xff] %v5555_v28  ;;  %v1910_v28 = vrot.slane %v1898_v17, 2  ;;  %v1912_v32 = vrot.slane %v1899_v4, 2 }
 0x13c   :  { %1845 = vrot.lane.b32.xlu1 %v1838_v24, %s4868_s23  ;;  %1843 = vrot.lane.b32.xlu0 %v1836_v29, %s4868_s23  ;;  %v1878_v24 = vsel %vm1412_vm1, %v1875_v47, %v1877_v0  ;;  %v1902_v29 = vmul.f32 %v5523_v60, %v1896_v44  ;;  %v1939_v0 = vmul.f32 %v5510_v26, %v1936_v16 }
 0x13d   :  { %v1913_v4 = vsel %vm1412_vm1, %v1910_v28, %v1912_v32  ;;  %v1937_v47 = vmul.f32 %v5374_v59, %v1936_v16  ;;  %v1911_v44 = vsel %vm1412_vm1, %v1909_v18, %v1910_v28  ;;  %v1941_v32 = vmul.f32 %v5347_v1, %v1936_v16 }
 0x13e   :  { %v5564_v48 = vpop.permute.xlu1 %1028  ;;  %v5566_v45 = vpop.permute.xlu0 %1026 }
 0x13f   :  { %9582 = vst [vmem:[#allocation88_spill] sm:$0xff] %v5564_v48  ;;  %9583 = vst [vmem:[#allocation89_spill] sm:$0xff] %v5566_v45  ;;  %v1952_v45 = vrot.slane %v1939_v0, 2  ;;  %v1949_v48 = vrot.slane %v1937_v47, 2  ;;  %v1954_v0 = vrot.slane %v1940_v22, 2 }
 0x140   :  { %1881 = vrot.lane.b32.xlu1 %v1873_v61, %s4868_s23  ;;  %1879 = vrot.lane.b32.xlu0 %v1871_v58, %s4868_s23  ;;  %v1917_v61 = vrot.slane %v1902_v29, 2  ;;  %v1914_v58 = vrot.slane %v1900_v46, 2 }
 0x142   :  { %v5575_v5 = vpop.permute.xlu1 %1064  ;;  %v5577_v17 = vpop.permute.xlu0 %1062  ;;  %v1918_v28 = vsel %vm1412_vm1, %v1915_v9, %v1917_v61  ;;  %v1916_v18 = vsel %vm1412_vm1, %v1914_v58, %v1915_v9 }
 0x143   :  { %9584 = vst [vmem:[#allocation90_spill] sm:$0xff] %v5575_v5  ;;  %9585 = vst [vmem:[#allocation91_spill] sm:$0xff] %v5577_v17 }
 0x144   :  { %1885 = vrot.lane.b32.xlu1 %v1878_v24, %s4868_s23  ;;  %1883 = vrot.lane.b32.xlu0 %v1876_v35, %s4868_s23  ;;  %v1942_v24 = vmul.f32 %v5523_v60, %v1936_v16  ;;  %v1950_v35 = vrot.slane %v1938_v57, 2 }
 0x146   :  { %v5586_v5 = vpop.permute.xlu1 %1068  ;;  %v5588_v17 = vpop.permute.xlu0 %1066  ;;  %v1957_v2 = vrot.slane %v1942_v24, 2  ;;  %v1951_v57 = vsel %vm1412_vm1, %v1949_v48, %v1950_v35  ;;  %v2016_v24 = vstv %s4704_s25  ;;  %s5905_s25 = sld [smem:[#allocation2 + $0x3]] }
 0x147   :  { %9586 = vst [vmem:[#allocation92_spill] sm:$0xff] %v5586_v5  ;;  %9587 = vst [vmem:[#allocation93_spill] sm:$0xff] %v5588_v17  ;;  %v1976_v17 = vstv %s4703_s24  ;;  %v1955_v5 = vrot.slane %v1941_v32, 2  ;;  %s5903_s24 = sld [smem:[#allocation2 + $0x200]] }
 0x148   :  { %1921 = vrot.lane.b32.xlu1 %v1913_v4, %s4868_s23  ;;  %1919 = vrot.lane.b32.xlu0 %v1911_v44, %s4868_s23  ;;  %v1953_v4 = vsel %vm1412_vm1, %v1950_v35, %v1952_v45  ;;  %v1978_v47 = vmul.f32 %v5367_v3, %v1976_v17  ;;  %v1979_v16 = vmul.f32 %v5510_v26, %v1976_v17 }
 0x149   :  { %v1977_v44 = vmul.f32 %v5374_v59, %v1976_v17  ;;  %v1958_v58 = vsel %vm1412_vm1, %v1955_v5, %v1957_v2  ;;  %v1981_v45 = vmul.f32 %v5347_v1, %v1976_v17  ;;  %v1982_v48 = vmul.f32 %v5523_v60, %v1976_v17 }
 0x14a   :  { %v5597_v29 = vpop.permute.xlu1 %1104  ;;  %v5599_v46 = vpop.permute.xlu0 %1102  ;;  %v1980_v32 = vmul.f32 %v5354_v8, %v1976_v17  ;;  %v1956_v35 = vsel %vm1412_vm1, %v1954_v0, %v1955_v5  ;;  %v2017_v5 = vmul.f32 %v5374_v59, %v2016_v24 }
 0x14b   :  { %9588 = vst [vmem:[#allocation94_spill] sm:$0xff] %v5597_v29  ;;  %9589 = vst [vmem:[#allocation95_spill] sm:$0xff] %v5599_v46  ;;  %v1989_v22 = vrot.slane %v1977_v44, 2  ;;  %v1995_v17 = vrot.slane %v1981_v45, 2 }
 0x14c   :  { %1925 = vrot.lane.b32.xlu1 %v1918_v28, %s4868_s23  ;;  %1923 = vrot.lane.b32.xlu0 %v1916_v18, %s4868_s23  ;;  %v1990_v28 = vrot.slane %v1978_v47, 2  ;;  %v1992_v18 = vrot.slane %v1979_v16, 2  ;;  %v1994_v46 = vrot.slane %v1980_v32, 2  ;;  %v2021_v32 = vmul.f32 %v5347_v1, %v2016_v24 }
 0x14d   :  { %v62_v49 = vstv %s5903_s24  ;;  %s6221_s24 = sld [smem:[#allocation2 + $0x303]] }
 0x14e   :  { %v5608_v9 = vpop.permute.xlu1 %1108  ;;  %v5610_v61 = vpop.permute.xlu0 %1106  ;;  %v1993_v0 = vsel %vm1412_vm1, %v1990_v28, %v1992_v18  ;;  %v1991_v47 = vsel %vm1412_vm1, %v1989_v22, %v1990_v28  ;;  %v1996_v45 = vsel %vm1412_vm1, %v1994_v46, %v1995_v17  ;;  %v2020_v28 = vmul.f32 %v5354_v8, %v2016_v24 }
 0x14f   :  { %9590 = vst [vmem:[#allocation96_spill] sm:$0xff] %v5608_v9  ;;  %9591 = vst [vmem:[#allocation97_spill] sm:$0xff] %v5610_v61  ;;  %v1997_v9 = vrot.slane %v1982_v48, 2  ;;  %v2029_v48 = vrot.slane %v2017_v5, 2  ;;  %v2056_v18 = vstv %s4705_s26  ;;  %v2035_v5 = vrot.slane %v2021_v32, 2  ;;  %s5911_s26 = sld [smem:[#allocation2 + $0x38a]] }
 0x150   :  { %1961 = vrot.lane.b32.xlu1 %v1953_v4, %s4868_s23  ;;  %1959 = vrot.lane.b32.xlu0 %v1951_v57, %s4868_s23  ;;  %v2018_v4 = vmul.f32 %v5367_v3, %v2016_v24  ;;  %v2019_v57 = vmul.f32 %v5510_v26, %v2016_v24  ;;  %v2058_v46 = vmul.f32 %v5367_v3, %v2056_v18 }
 0x151   :  { %v2060_v32 = vmul.f32 %v5354_v8, %v2056_v18 }
 0x152   :  { %v5619_v61 = vpop.permute.xlu1 %1144  ;;  %v5621_v2 = vpop.permute.xlu0 %1142 }
 0x153   :  { %9592 = vst [vmem:[#allocation98_spill] sm:$0xff] %v5619_v61  ;;  %9593 = vst [vmem:[#allocation99_spill] sm:$0xff] %v5621_v2  ;;  %v2030_v2 = vrot.slane %v2018_v4, 2  ;;  %v2032_v61 = vrot.slane %v2019_v57, 2 }
 0x154   :  { %1965 = vrot.lane.b32.xlu1 %v1958_v58, %s4868_s23  ;;  %1963 = vrot.lane.b32.xlu0 %v1956_v35, %s4868_s23  ;;  %v1998_v58 = vsel %vm1412_vm1, %v1995_v17, %v1997_v9  ;;  %v2022_v35 = vmul.f32 %v5523_v60, %v2016_v24  ;;  %v2059_v9 = vmul.f32 %v5510_v26, %v2056_v18 }
 0x155   :  { %v2033_v57 = vsel %vm1412_vm1, %v2030_v2, %v2032_v61  ;;  %v2057_v17 = vmul.f32 %v5374_v59, %v2056_v18  ;;  %v2031_v24 = vsel %vm1412_vm1, %v2029_v48, %v2030_v2  ;;  %v2061_v61 = vmul.f32 %v5347_v1, %v2056_v18 }
 0x156   :  { %v5630_v16 = vpop.permute.xlu1 %1148  ;;  %v5632_v44 = vpop.permute.xlu0 %1146 }
 0x157   :  { %9594 = vst [vmem:[#allocation100_spill] sm:$0xff] %v5630_v16  ;;  %9595 = vst [vmem:[#allocation101_spill] sm:$0xff] %v5632_v44  ;;  %v2072_v44 = vrot.slane %v2059_v9, 2  ;;  %v2069_v16 = vrot.slane %v2057_v17, 2  ;;  %v2074_v9 = vrot.slane %v2060_v32, 2 }
 0x158   :  { %2001 = vrot.lane.b32.xlu1 %v1993_v0, %s4869_s4  ;;  %1999 = vrot.lane.b32.xlu0 %v1991_v47, %s4869_s4  ;;  %v2037_v0 = vrot.slane %v2022_v35, 2  ;;  %v2034_v47 = vrot.slane %v2020_v28, 2 }
 0x15a   :  { %v5641_v22 = vpop.permute.xlu1 %1184  ;;  %v5643_v4 = vpop.permute.xlu0 %1182  ;;  %v2038_v2 = vsel %vm1412_vm1, %v2035_v5, %v2037_v0  ;;  %v2036_v48 = vsel %vm1412_vm1, %v2034_v47, %v2035_v5 }
 0x15b   :  { %9596 = vst [vmem:[#allocation102_spill] sm:$0xff] %v5641_v22  ;;  %9597 = vst [vmem:[#allocation103_spill] sm:$0xff] %v5643_v4 }
 0x15c   :  { %2005 = vrot.lane.b32.xlu1 %v1998_v58, %s4869_s4  ;;  %2003 = vrot.lane.b32.xlu0 %v1996_v45, %s4869_s4  ;;  %v2062_v58 = vmul.f32 %v5523_v60, %v2056_v18  ;;  %v2070_v45 = vrot.slane %v2058_v46, 2 }
 0x15e   :  { %v5652_v22 = vpop.permute.xlu1 %1188  ;;  %v5654_v4 = vpop.permute.xlu0 %1186  ;;  %v2077_v29 = vrot.slane %v2062_v58, 2  ;;  %v2071_v46 = vsel %vm1412_vm1, %v2069_v16, %v2070_v45  ;;  %v2136_v58 = vstv %s4707_s28  ;;  %s5919_s28 = sld [smem:[#allocation2 + $0x300]] }
 0x15f   :  { %9598 = vst [vmem:[#allocation104_spill] sm:$0xff] %v5652_v22  ;;  %9599 = vst [vmem:[#allocation105_spill] sm:$0xff] %v5654_v4  ;;  %v2096_v4 = vstv %s4706_s27  ;;  %v2075_v22 = vrot.slane %v2061_v61, 2  ;;  %s5913_s27 = sld [smem:[#allocation2 + $0x280]] }
 0x160   :  { %2041 = vrot.lane.b32.xlu1 %v2033_v57, %s4869_s4  ;;  %2039 = vrot.lane.b32.xlu0 %v2031_v24, %s4869_s4  ;;  %v2073_v57 = vsel %vm1412_vm1, %v2070_v45, %v2072_v44  ;;  %v2098_v17 = vmul.f32 %v5367_v3, %v2096_v4  ;;  %v2099_v18 = vmul.f32 %v5510_v26, %v2096_v4 }
 0x161   :  { %v2097_v24 = vmul.f32 %v5374_v59, %v2096_v4  ;;  %v2078_v47 = vsel %vm1412_vm1, %v2075_v22, %v2077_v29  ;;  %v2101_v44 = vmul.f32 %v5347_v1, %v2096_v4  ;;  %v2102_v16 = vmul.f32 %v5523_v60, %v2096_v4 }
 0x162   :  { %v5663_v35 = vpop.permute.xlu1 %1224  ;;  %v5665_v28 = vpop.permute.xlu0 %1222  ;;  %v2100_v61 = vmul.f32 %v5354_v8, %v2096_v4  ;;  %v2076_v45 = vsel %vm1412_vm1, %v2074_v9, %v2075_v22  ;;  %v2137_v22 = vmul.f32 %v5374_v59, %v2136_v58 }
 0x163   :  { %9600 = vst [vmem:[#allocation106_spill] sm:$0xff] %v5663_v35  ;;  %9601 = vst [vmem:[#allocation107_spill] sm:$0xff] %v5665_v28  ;;  %v2109_v32 = vrot.slane %v2097_v24, 2  ;;  %v2115_v4 = vrot.slane %v2101_v44, 2 }
 0x164   :  { %2045 = vrot.lane.b32.xlu1 %v2038_v2, %s4869_s4  ;;  %2043 = vrot.lane.b32.xlu0 %v2036_v48, %s4869_s4  ;;  %v2110_v2 = vrot.slane %v2098_v17, 2  ;;  %v2112_v48 = vrot.slane %v2099_v18, 2  ;;  %v2114_v28 = vrot.slane %v2100_v61, 2  ;;  %v2141_v61 = vmul.f32 %v5347_v1, %v2136_v58 }
 0x165   :  { %v68_v33 = vstv %s5913_s27  ;;  %v74_v14 = vstv %s5919_s28  ;;  %s6323_s27 = sld [smem:[#allocation2 + $0x28b]]  ;;  %s6365_s28 = sld [smem:[#allocation2 + $0x6]] }
 0x166   :  { %v5674_v5 = vpop.permute.xlu1 %1228  ;;  %v5676_v0 = vpop.permute.xlu0 %1226  ;;  %v2113_v9 = vsel %vm1412_vm1, %v2110_v2, %v2112_v48  ;;  %v2111_v17 = vsel %vm1412_vm1, %v2109_v32, %v2110_v2  ;;  %v2116_v44 = vsel %vm1412_vm1, %v2114_v28, %v2115_v4  ;;  %v2140_v2 = vmul.f32 %v5354_v8, %v2136_v58 }
 0x167   :  { %9602 = vst [vmem:[#allocation108_spill] sm:$0xff] %v5674_v5  ;;  %9603 = vst [vmem:[#allocation109_spill] sm:$0xff] %v5676_v0  ;;  %v2117_v5 = vrot.slane %v2102_v16, 2  ;;  %v2149_v16 = vrot.slane %v2137_v22, 2  ;;  %v2176_v48 = vstv %s4708_s29  ;;  %v2155_v22 = vrot.slane %v2141_v61, 2  ;;  %s6376_s29 = sld [smem:[#allocation2 + $0x30b]] }
 0x168   :  { %2081 = vrot.lane.b32.xlu1 %v2073_v57, %s4869_s4  ;;  %2079 = vrot.lane.b32.xlu0 %v2071_v46, %s4869_s4  ;;  %v2138_v57 = vmul.f32 %v5367_v3, %v2136_v58  ;;  %v2139_v46 = vmul.f32 %v5510_v26, %v2136_v58 }
 0x16a   :  { %v5685_v0 = vpop.permute.xlu1 %1264  ;;  %v5687_v29 = vpop.permute.xlu0 %1262 }
 0x16b   :  { %9604 = vst [vmem:[#allocation110_spill] sm:$0xff] %v5685_v0  ;;  %9605 = vst [vmem:[#allocation111_spill] sm:$0xff] %v5687_v29  ;;  %v2150_v29 = vrot.slane %v2138_v57, 2  ;;  %v2152_v0 = vrot.slane %v2139_v46, 2 }
 0x16c   :  { %2085 = vrot.lane.b32.xlu1 %v2078_v47, %s4869_s4  ;;  %2083 = vrot.lane.b32.xlu0 %v2076_v45, %s4869_s4  ;;  %v2118_v47 = vsel %vm1412_vm1, %v2115_v4, %v2117_v5  ;;  %v2142_v45 = vmul.f32 %v5523_v60, %v2136_v58  ;;  %v2178_v5 = vmul.f32 %v5367_v3, %v2176_v48 }
 0x16d   :  { %v2153_v46 = vsel %vm1412_vm1, %v2150_v29, %v2152_v0  ;;  %v2151_v28 = vsel %vm1412_vm1, %v2149_v16, %v2150_v29  ;;  %v2179_v4 = vmul.f32 %v5510_v26, %v2176_v48  ;;  %v2181_v0 = vmul.f32 %v5347_v1, %v2176_v48 }
 0x16e   :  { %v5696_v18 = vpop.permute.xlu1 %1268  ;;  %v5698_v24 = vpop.permute.xlu0 %1266  ;;  %v2157_v58 = vrot.slane %v2142_v45, 2  ;;  %v2190_v29 = vrot.slane %v2178_v5, 2  ;;  %v2180_v16 = vmul.f32 %v5354_v8, %v2176_v48 }
 0x16f   :  { %9606 = vst [vmem:[#allocation112_spill] sm:$0xff] %v5696_v18  ;;  %9607 = vst [vmem:[#allocation113_spill] sm:$0xff] %v5698_v24  ;;  %v2216_v24 = vstv %s4709_s30  ;;  %v2195_v18 = vrot.slane %v2181_v0, 2  ;;  %s6476_s30 = sld [smem:[#allocation2 + $0x38b]] }
 0x170   :  { %2121 = vrot.lane.b32.xlu1 %v2113_v9, %s4869_s4  ;;  %2119 = vrot.lane.b32.xlu0 %v2111_v17, %s4869_s4  ;;  %v2154_v9 = vrot.slane %v2140_v2, 2  ;;  %v2177_v17 = vmul.f32 %v5374_v59, %v2176_v48  ;;  %v2158_v61 = vsel %vm1412_vm1, %v2155_v22, %v2157_v58  ;;  %v2218_v5 = vmul.f32 %v5367_v3, %v2216_v24 }
 0x171   :  { %v2221_v0 = vmul.f32 %v5347_v1, %v2216_v24 }
 0x172   :  { %v5707_v32 = vpop.permute.xlu1 %1304  ;;  %v5709_v57 = vpop.permute.xlu0 %1302  ;;  %v2156_v45 = vsel %vm1412_vm1, %v2154_v9, %v2155_v22  ;;  %v2189_v2 = vrot.slane %v2177_v17, 2  ;;  %v2217_v22 = vmul.f32 %v5374_v59, %v2216_v24 }
 0x173   :  { %9608 = vst [vmem:[#allocation114_spill] sm:$0xff] %v5707_v32  ;;  %9609 = vst [vmem:[#allocation115_spill] sm:$0xff] %v5709_v57 }
 0x174   :  { %2125 = vrot.lane.b32.xlu1 %v2118_v47, %s4869_s4  ;;  %2123 = vrot.lane.b32.xlu0 %v2116_v44, %s4869_s4  ;;  %v2182_v47 = vmul.f32 %v5523_v60, %v2176_v48  ;;  %v2192_v44 = vrot.slane %v2179_v4, 2  ;;  %v2194_v48 = vrot.slane %v2180_v16, 2  ;;  %v2219_v4 = vmul.f32 %v5510_v26, %v2216_v24 }
 0x175   :  { %v2230_v16 = vrot.slane %v2218_v5, 2 }
 0x176   :  { %v5718_v32 = vpop.permute.xlu1 %1308  ;;  %v5720_v57 = vpop.permute.xlu0 %1306  ;;  %v2197_v35 = vrot.slane %v2182_v47, 2  ;;  %v2196_v47 = vsel %vm1412_vm1, %v2194_v48, %v2195_v18 }
 0x177   :  { %9610 = vst [vmem:[#allocation116_spill] sm:$0xff] %v5718_v32  ;;  %9611 = vst [vmem:[#allocation117_spill] sm:$0xff] %v5720_v57 }
 0x178   :  { %2161 = vrot.lane.b32.xlu1 %v2153_v46, %s4869_s4  ;;  %2159 = vrot.lane.b32.xlu0 %v2151_v28, %s4869_s4  ;;  %v2193_v46 = vsel %vm1412_vm1, %v2190_v29, %v2192_v44  ;;  %v2191_v28 = vsel %vm1412_vm1, %v2189_v2, %v2190_v29  ;;  %v2198_v17 = vsel %vm1412_vm1, %v2195_v18, %v2197_v35  ;;  %v2256_v2 = vstv %s4710_s3  ;;  %s6494_s3 = sld [smem:[#allocation2 + $0xd]] }
 0x179   :  { %v2222_v29 = vmul.f32 %v5523_v60, %v2216_v24  ;;  %v2220_v44 = vmul.f32 %v5354_v8, %v2216_v24  ;;  %v2235_v35 = vrot.slane %v2221_v0, 2  ;;  %v2258_v18 = vmul.f32 %v5367_v3, %v2256_v2 }
 0x17a   :  { %v5729_v32 = vpop.permute.xlu1 %1344  ;;  %v5731_v57 = vpop.permute.xlu0 %1342  ;;  %v2259_v48 = vmul.f32 %v5510_v26, %v2256_v2 }
 0x17b   :  { %9612 = vst [vmem:[#allocation118_spill] sm:$0xff] %v5729_v32  ;;  %9613 = vst [vmem:[#allocation119_spill] sm:$0xff] %v5731_v57  ;;  %v2270_v0 = vrot.slane %v2258_v18, 2 }
 0x17c   :  { %2165 = vrot.lane.b32.xlu1 %v2158_v61, %s4869_s4  ;;  %2163 = vrot.lane.b32.xlu0 %v2156_v45, %s4869_s4  ;;  %v2232_v61 = vrot.slane %v2219_v4, 2  ;;  %v2229_v45 = vrot.slane %v2217_v22, 2  ;;  %v2257_v4 = vmul.f32 %v5374_v59, %v2256_v2  ;;  %v2260_v59 = vmul.f32 %v5354_v8, %v2256_v2 }
 0x17e   :  { %v5740_v58 = vpop.permute.xlu1 %1348  ;;  %v5742_v9 = vpop.permute.xlu0 %1346  ;;  %v2233_v24 = vsel %vm1412_vm1, %v2230_v16, %v2232_v61  ;;  %v2231_v5 = vsel %vm1412_vm1, %v2229_v45, %v2230_v16  ;;  %v2262_v16 = vmul.f32 %v5523_v60, %v2256_v2 }
 0x17f   :  { %9614 = vst [vmem:[#allocation120_spill] sm:$0xff] %v5740_v58  ;;  %9615 = vst [vmem:[#allocation121_spill] sm:$0xff] %v5742_v9 }
 0x180   :  { %2201 = vrot.lane.b32.xlu1 %v2193_v46, %s4869_s4  ;;  %2199 = vrot.lane.b32.xlu0 %v2191_v28, %s4869_s4  ;;  %v2237_v46 = vrot.slane %v2222_v29, 2  ;;  %v2234_v28 = vrot.slane %v2220_v44, 2  ;;  %v2269_v29 = vrot.slane %v2257_v4, 2  ;;  %v2261_v44 = vmul.f32 %v5347_v1, %v2256_v2 }
 0x181   :  { %v2277_v18 = vrot.slane %v2262_v16, 2  ;;  %v2274_v1 = vrot.slane %v2260_v59, 2  ;;  %v2376_v4 = vstv %s4719_s5  ;;  %v5815_v16 = vld [vmem:[%s9499_s0 + $0x48] sm:$0xff]  ;;  %s6508_s5 = sld [smem:[#allocation2 + $0x86]] }
 0x182   :  { %v5751_v58 = vpop.permute.xlu1 %1384  ;;  %v5753_v9 = vpop.permute.xlu0 %1382  ;;  %v2236_v3 = vsel %vm1412_vm1, %v2234_v28, %v2235_v35  ;;  %v2275_v28 = vrot.slane %v2261_v44, 2  ;;  %v5810_v44 = vld [vmem:[%s9499_s0 + $0x50] sm:$0xff] }
 0x183   :  { %9616 = vst [vmem:[#allocation122_spill] sm:$0xff] %v5751_v58  ;;  %9617 = vst [vmem:[#allocation123_spill] sm:$0xff] %v5753_v9 }
 0x184   :  { %2205 = vrot.lane.b32.xlu1 %v2198_v17, %s4869_s4  ;;  %2203 = vrot.lane.b32.xlu0 %v2196_v47, %s4869_s4  ;;  %v2238_v17 = vsel %vm1412_vm1, %v2235_v35, %v2237_v46  ;;  %v2272_v47 = vrot.slane %v2259_v48, 2  ;;  %v2271_v46 = vsel %vm1412_vm1, %v2269_v29, %v2270_v0  ;;  %v2278_v8 = vsel %vm1412_vm1, %v2275_v28, %v2277_v18 }
 0x185   :  { %v2276_v2 = vsel %vm1412_vm1, %v2274_v1, %v2275_v28  ;;  %v2379_v28 = vmul.f32 %v2376_v4, %v5815_v16  ;;  %v2402_v18 = vstv %s4720_s10  ;;  %s5984_s10 = sld [smem:[#allocation2 + $0x380]] }
 0x186   :  { %v5762_v22 = vpop.permute.xlu1 %1388  ;;  %v5764_v9 = vpop.permute.xlu0 %1386  ;;  %v2273_v35 = vsel %vm1412_vm1, %v2270_v0, %v2272_v47 }
 0x187   :  { %9618 = vst [vmem:[#allocation124_spill] sm:$0xff] %v5762_v22  ;;  %9619 = vst [vmem:[#allocation125_spill] sm:$0xff] %v5764_v9  ;;  %v56_v22 = vstv %s5897_s22  ;;  %s6204_s22 = sld [smem:[#allocation2 + $0x18b]] }
 0x188   :  { %2241 = vrot.lane.b32.xlu1 %v2233_v24, %s4869_s4  ;;  %2239 = vrot.lane.b32.xlu0 %v2231_v5, %s4869_s4  ;;  %v5792_v5 = vld [vmem:[%s9499_s0 + $0x20] sm:$0xff] }
 0x189   :  { %v2378_v47 = vmul.f32 %v2376_v4, %v5792_v5 }
 0x18a   :  { %v5773_v61 = vpop.permute.xlu1 %1681  ;;  %v5775_v45 = vpop.permute.xlu0 %1679 }
 0x18b   :  { %9620 = vst [vmem:[#allocation126_spill] sm:$0xff] %v5773_v61  ;;  %9621 = vst [vmem:[#allocation127_spill] sm:$0xff] %v5775_v45 }
 0x18c   :  { %2245 = vrot.lane.b32.xlu1 %v2238_v17, %s4869_s4  ;;  %2243 = vrot.lane.b32.xlu0 %v2236_v3, %s4869_s4  ;;  %v5797_v17 = vld [vmem:[%s9499_s0 + $0x18] sm:$0xff] }
 0x18d   :  { %v2377_v29 = vmul.f32 %v2376_v4, %v5797_v17 }
 0x18e   :  { %v5781_v48 = vpop.permute.xlu1 %1685  ;;  %v5783_v24 = vpop.permute.xlu0 %1683 }
 0x18f   :  { %9622 = vst [vmem:[#allocation128_spill] sm:$0xff] %v5781_v48  ;;  %9623 = vst [vmem:[#allocation129_spill] sm:$0xff] %v5783_v24 }
 0x190   :  { %2281 = vrot.lane.b32.xlu1 %v2273_v35, %s4869_s4  ;;  %2279 = vrot.lane.b32.xlu0 %v2271_v46, %s4869_s4  ;;  %v2380_v46 = vmul.f32 %v2376_v4, %v5810_v44  ;;  %v2406_v4 = vmul.f32 %v2402_v18, %v5810_v44 }
 0x192   :  { %v5799_v3 = vpop.permute.xlu1 %1721  ;;  %v5801_v0 = vpop.permute.xlu0 %1719 }
 0x193   :  { %9624 = vst [vmem:[#allocation130_spill] sm:$0xff] %v5799_v3  ;;  %9625 = vst [vmem:[#allocation131_spill] sm:$0xff] %v5801_v0  ;;  %v5944_v3 = vld [vmem:[%s9499_s0 + $0x38] sm:$0xff] }
 0x194   :  { %2285 = vrot.lane.b32.xlu1 %v2278_v8, %s4869_s4  ;;  %2283 = vrot.lane.b32.xlu0 %v2276_v2, %s4869_s4  ;;  %v2404_v2 = vmul.f32 %v2402_v18, %v5792_v5  ;;  %v6001_v34 = vmul.f32 %v5944_v3, %v56_v22  ;;  %v6045_v19 = vmul.f32 %v5944_v3, %v68_v33 }
 0x195   :  { %v572_v54 = vmul.f32 %v5944_v3, %v567_v55 }
 0x196   :  { %v5817_v59 = vpop.permute.xlu1 %1725  ;;  %v5819_v35 = vpop.permute.xlu0 %1723  ;;  %9655 = vst [vmem:[#allocation161_spill] sm:$0xff] %v6001_v34  ;;  %9665 = vst [vmem:[#allocation171_spill] sm:$0xff] %v6045_v19 }
 0x197   :  { %9626 = vst [vmem:[#allocation132_spill] sm:$0xff] %v5817_v59  ;;  %9627 = vst [vmem:[#allocation133_spill] sm:$0xff] %v5819_v35  ;;  %v5936_v59 = vld [vmem:[%s9499_s0] sm:$0xff] }
 0x198   :  { %2387 = vrot.lane.b32.xlu1 %v2378_v47, %s4868_s23  ;;  %2385 = vrot.lane.b32.xlu0 %v2377_v29, %s4868_s23  ;;  %v2403_v47 = vmul.f32 %v2402_v18, %v5797_v17  ;;  %v5998_v15 = vmul.f32 %v5936_v59, %v56_v22  ;;  %v6042_v23 = vmul.f32 %v5936_v59, %v68_v33 }
 0x199   :  { %v6054_v7 = vmul.f32 %v5936_v59, %v74_v14 }
 0x19a   :  { %v5825_v1 = vpop.permute.xlu1 %1761  ;;  %v5827_v8 = vpop.permute.xlu0 %1759  ;;  %9654 = vst [vmem:[#allocation160_spill] sm:$0xff] %v5998_v15  ;;  %9664 = vst [vmem:[#allocation170_spill] sm:$0xff] %v6042_v23 }
 0x19b   :  { %9628 = vst [vmem:[#allocation134_spill] sm:$0xff] %v5825_v1  ;;  %9629 = vst [vmem:[#allocation135_spill] sm:$0xff] %v5827_v8  ;;  %v2405_v8 = vmul.f32 %v2402_v18, %v5815_v16  ;;  %v2428_v1 = vstv %s4721_s15  ;;  %s6081_s15 = sld [smem:[#allocation2 + $0x8b]] }
 0x19c   :  { %2391 = vrot.lane.b32.xlu1 %v2380_v46, %s4868_s23  ;;  %2389 = vrot.lane.b32.xlu0 %v2379_v28, %s4868_s23  ;;  %v2432_v18 = vmul.f32 %v2428_v1, %v5810_v44  ;;  %9668 = vst [vmem:[#allocation174_spill] sm:$0xff] %v6054_v7 }
 0x19e   :  { %v5833_v35 = vpop.permute.xlu1 %1765  ;;  %v5835_v29 = vpop.permute.xlu0 %1763 }
 0x19f   :  { %9630 = vst [vmem:[#allocation136_spill] sm:$0xff] %v5833_v35  ;;  %9631 = vst [vmem:[#allocation137_spill] sm:$0xff] %v5835_v29  ;;  %v2430_v29 = vmul.f32 %v2428_v1, %v5792_v5 }
 0x1a0   :  { %2413 = vrot.lane.b32.xlu1 %v2404_v2, %s4868_s23  ;;  %2411 = vrot.lane.b32.xlu0 %v2403_v47, %s4868_s23  ;;  %v2429_v2 = vmul.f32 %v2428_v1, %v5797_v17 }
 0x1a1   :  { %v2610_v34 = vstv %s6081_s15  ;;  %s7116_s15 = sld [smem:[#allocation2 + $0x8e]] }
 0x1a2   :  { %v5841_v46 = vpop.permute.xlu1 %1801  ;;  %v5843_v28 = vpop.permute.xlu0 %1799 }
 0x1a3   :  { %9632 = vst [vmem:[#allocation138_spill] sm:$0xff] %v5841_v46  ;;  %9633 = vst [vmem:[#allocation139_spill] sm:$0xff] %v5843_v28  ;;  %v2431_v28 = vmul.f32 %v2428_v1, %v5815_v16  ;;  %v2454_v46 = vstv %s4722_s16  ;;  %s7146_s16 = sld [smem:[#allocation2 + $0x306]] }
 0x1a4   :  { %2417 = vrot.lane.b32.xlu1 %v2406_v4, %s4868_s23  ;;  %2415 = vrot.lane.b32.xlu0 %v2405_v8, %s4868_s23  ;;  %v2458_v1 = vmul.f32 %v2454_v46, %v5810_v44 }
 0x1a6   :  { %v5849_v35 = vpop.permute.xlu1 %1805  ;;  %v5851_v47 = vpop.permute.xlu0 %1803 }
 0x1a7   :  { %9634 = vst [vmem:[#allocation140_spill] sm:$0xff] %v5849_v35  ;;  %9635 = vst [vmem:[#allocation141_spill] sm:$0xff] %v5851_v47  ;;  %v2456_v47 = vmul.f32 %v2454_v46, %v5792_v5 }
 0x1a8   :  { %2439 = vrot.lane.b32.xlu1 %v2430_v29, %s4868_s23  ;;  %2437 = vrot.lane.b32.xlu0 %v2429_v2, %s4868_s23  ;;  %v2455_v29 = vmul.f32 %v2454_v46, %v5797_v17 }
 0x1aa   :  { %v5857_v4 = vpop.permute.xlu1 %1841  ;;  %v5859_v8 = vpop.permute.xlu0 %1839 }
 0x1ab   :  { %9636 = vst [vmem:[#allocation142_spill] sm:$0xff] %v5857_v4  ;;  %9637 = vst [vmem:[#allocation143_spill] sm:$0xff] %v5859_v8  ;;  %v2457_v8 = vmul.f32 %v2454_v46, %v5815_v16  ;;  %v2480_v4 = vstv %s4723_s17  ;;  %s7156_s17 = sld [smem:[#allocation2 + $0x10e]] }
 0x1ac   :  { %2443 = vrot.lane.b32.xlu1 %v2432_v18, %s4868_s23  ;;  %2441 = vrot.lane.b32.xlu0 %v2431_v28, %s4868_s23  ;;  %v2484_v46 = vmul.f32 %v2480_v4, %v5810_v44 }
 0x1ae   :  { %v5865_v35 = vpop.permute.xlu1 %1845  ;;  %v5867_v2 = vpop.permute.xlu0 %1843 }
 0x1af   :  { %9638 = vst [vmem:[#allocation144_spill] sm:$0xff] %v5865_v35  ;;  %9639 = vst [vmem:[#allocation145_spill] sm:$0xff] %v5867_v2  ;;  %v2482_v2 = vmul.f32 %v2480_v4, %v5792_v5 }
 0x1b0   :  { %2465 = vrot.lane.b32.xlu1 %v2456_v47, %s4868_s23  ;;  %2463 = vrot.lane.b32.xlu0 %v2455_v29, %s4868_s23  ;;  %v2481_v47 = vmul.f32 %v2480_v4, %v5797_v17 }
 0x1b2   :  { %v5873_v18 = vpop.permute.xlu1 %1881  ;;  %v5875_v28 = vpop.permute.xlu0 %1879 }
 0x1b3   :  { %9640 = vst [vmem:[#allocation146_spill] sm:$0xff] %v5873_v18  ;;  %9641 = vst [vmem:[#allocation147_spill] sm:$0xff] %v5875_v28  ;;  %v2483_v28 = vmul.f32 %v2480_v4, %v5815_v16 }
 0x1b4   :  { %2469 = vrot.lane.b32.xlu1 %v2458_v1, %s4868_s23  ;;  %2467 = vrot.lane.b32.xlu0 %v2457_v8, %s4868_s23  ;;  %v2506_v1 = vstv %s4724_s1  ;;  %s7195_s1 = sld [smem:[#allocation2 + $0x386]] }
 0x1b6   :  { %v5881_v35 = vpop.permute.xlu1 %1885  ;;  %v5883_v29 = vpop.permute.xlu0 %1883 }
 0x1b7   :  { %9642 = vst [vmem:[#allocation148_spill] sm:$0xff] %v5881_v35  ;;  %9643 = vst [vmem:[#allocation149_spill] sm:$0xff] %v5883_v29  ;;  %v44_v35 = vstv %s4640_s20  ;;  %s6146_s20 = sld [smem:[#allocation2 + $0x10b]] }
 0x1b8   :  { %2491 = vrot.lane.b32.xlu1 %v2482_v2, %s4868_s23  ;;  %2489 = vrot.lane.b32.xlu0 %v2481_v47, %s4868_s23  ;;  %v2508_v2 = vmul.f32 %v2506_v1, %v5792_v5  ;;  %v2507_v47 = vmul.f32 %v2506_v1, %v5797_v17  ;;  %v5961_v45 = vmul.f32 %v5936_v59, %v44_v35 }
 0x1b9   :  { %v5964_v61 = vmul.f32 %v5944_v3, %v44_v35 }
 0x1ba   :  { %v5889_v8 = vpop.permute.xlu1 %1921  ;;  %v5891_v18 = vpop.permute.xlu0 %1919 }
 0x1bb   :  { %9644 = vst [vmem:[#allocation150_spill] sm:$0xff] %v5889_v8  ;;  %9645 = vst [vmem:[#allocation151_spill] sm:$0xff] %v5891_v18  ;;  %v38_v18 = vstv %s37_s18  ;;  %v2532_v8 = vstv %s4725_s19  ;;  %s6138_s19 = sld [smem:[#allocation2 + $0x203]]  ;;  %s7204_s18 = sld [smem:[#allocation2 + $0x18e]] }
 0x1bc   :  { %2495 = vrot.lane.b32.xlu1 %v2484_v46, %s4868_s23  ;;  %2493 = vrot.lane.b32.xlu0 %v2483_v28, %s4868_s23  ;;  %v2510_v28 = vmul.f32 %v2506_v1, %v5810_v44  ;;  %v2509_v46 = vmul.f32 %v2506_v1, %v5815_v16  ;;  %v5939_v0 = vmul.f32 %v5936_v59, %v38_v18 }
 0x1bd   :  { %v2535_v43 = vmul.f32 %v2532_v8, %v5815_v16 }
 0x1be   :  { %v5899_v4 = vpop.permute.xlu1 %1925  ;;  %v5901_v29 = vpop.permute.xlu0 %1923 }
 0x1bf   :  { %9646 = vst [vmem:[#allocation152_spill] sm:$0xff] %v5899_v4  ;;  %9647 = vst [vmem:[#allocation153_spill] sm:$0xff] %v5901_v29 }
 0x1c0   :  { %2517 = vrot.lane.b32.xlu1 %v2508_v2, %s4868_s23  ;;  %2515 = vrot.lane.b32.xlu0 %v2507_v47, %s4868_s23  ;;  %v5924_v2 = vld [vmem:[%s9499_s0 + $0x30] sm:$0xff]  ;;  %v50_v47 = vstv %s4641_s21  ;;  %s6153_s21 = sld [smem:[#allocation2 + $0x283]] }
 0x1c1   :  { %v5927_v1 = vmul.f32 %v5924_v2, %v38_v18  ;;  %v5967_v9 = vmul.f32 %v5924_v2, %v44_v35  ;;  %v5978_v32 = vmul.f32 %v5936_v59, %v50_v47  ;;  %v5981_v50 = vmul.f32 %v5944_v3, %v50_v47 }
 0x1c2   :  { %v5915_v29 = vpop.permute.xlu1 %1961  ;;  %v5917_v4 = vpop.permute.xlu0 %1959  ;;  %v6036_v37 = vmul.f32 %v5924_v2, %v62_v49 }
 0x1c3   :  { %9648 = vst [vmem:[#allocation154_spill] sm:$0xff] %v5915_v29  ;;  %9649 = vst [vmem:[#allocation155_spill] sm:$0xff] %v5917_v4  ;;  %v2534_v29 = vmul.f32 %v2532_v8, %v5792_v5  ;;  %v2533_v4 = vmul.f32 %v2532_v8, %v5797_v17 }
 0x1c4   :  { %2521 = vrot.lane.b32.xlu1 %v2510_v28, %s4868_s23  ;;  %2519 = vrot.lane.b32.xlu0 %v2509_v46, %s4868_s23  ;;  %v5947_v28 = vmul.f32 %v5944_v3, %v38_v18  ;;  %v5952_v46 = vld [vmem:[%s9499_s0 + $0x8] sm:$0xff]  ;;  %9662 = vst [vmem:[#allocation168_spill] sm:$0xff] %v6036_v37  ;;  %v80_v37 = vstv %s5984_s10  ;;  %s7004_s10 = sld [smem:[#allocation2 + $0x206]] }
 0x1c5   :  { %v5955_v24 = vmul.f32 %v5952_v46, %v38_v18  ;;  %v5958_v48 = vmul.f32 %v5952_v46, %v44_v35  ;;  %v5975_v18 = vmul.f32 %v5952_v46, %v50_v47  ;;  %v5987_v35 = vmul.f32 %v5924_v2, %v50_v47 }
 0x1c6   :  { %v5970_v58 = vpop.permute.xlu1 %1965  ;;  %v5972_v57 = vpop.permute.xlu0 %1963  ;;  %v5995_v36 = vmul.f32 %v5952_v46, %v56_v22  ;;  %v2558_v47 = vstv %s5911_s26  ;;  %v6084_v7 = vmul.f32 %v5952_v46, %v80_v37  ;;  %s6250_s26 = sld [smem:[#allocation2 + $0x383]] }
 0x1c7   :  { %9650 = vst [vmem:[#allocation156_spill] sm:$0xff] %v5970_v58  ;;  %9651 = vst [vmem:[#allocation157_spill] sm:$0xff] %v5972_v57  ;;  %v502_v58 = vstv %s5905_s25  ;;  %v2536_v57 = vmul.f32 %v2532_v8, %v5810_v44  ;;  %v6015_v8 = vmul.f32 %v5936_v59, %v62_v49  ;;  %s6245_s25 = sld [smem:[#allocation2 + $0x20b]] }
 0x1c8   :  { %9652 = vst [vmem:[#allocation158_spill] sm:$0xff] %v5987_v35  ;;  %2543 = vrot.lane.b32.xlu1 %v2534_v29, %s4868_s23  ;;  %2541 = vrot.lane.b32.xlu0 %v2533_v4, %s4868_s23  ;;  %9653 = vst [vmem:[#allocation159_spill] sm:$0xff] %v5995_v36  ;;  %v6009_v29 = vmul.f32 %v5924_v2, %v56_v22  ;;  %v6012_v4 = vmul.f32 %v5952_v46, %v62_v49  ;;  %v586_v35 = vrot.slane %v572_v54, 1 }
 0x1c9   :  { %9658 = vst [vmem:[#allocation164_spill] sm:$0xff] %v6015_v8  ;;  %v504_v56 = vmul.f32 %v5952_v46, %v502_v58  ;;  %v505_v53 = vmul.f32 %v5510_v26, %v502_v58  ;;  %v503_v38 = vmul.f32 %v5936_v59, %v502_v58  ;;  %v6029_v22 = vmul.f32 %v5944_v3, %v62_v49 }
 0x1ca   :  { %9656 = vst [vmem:[#allocation162_spill] sm:$0xff] %v6009_v29  ;;  %9657 = vst [vmem:[#allocation163_spill] sm:$0xff] %v6012_v4  ;;  %v6018_v11 = vpop.permute.xlu1 %2001  ;;  %v6020_v10 = vpop.permute.xlu0 %1999  ;;  %v6039_v26 = vmul.f32 %v5952_v46, %v68_v33  ;;  %v6057_v49 = vmul.f32 %v5944_v3, %v74_v14  ;;  %v568_v8 = vmul.f32 %v5936_v59, %v567_v55 }
 0x1cb   :  { %9659 = vst [vmem:[#allocation165_spill] sm:$0xff] %v6018_v11  ;;  %9660 = vst [vmem:[#allocation166_spill] sm:$0xff] %v6020_v10  ;;  %v2560_v11 = vmul.f32 %v2558_v47, %v5792_v5  ;;  %v2559_v10 = vmul.f32 %v2558_v47, %v5797_v17  ;;  %v517_v19 = vrot.slane %v504_v56, 1  ;;  %v519_v6 = vrot.slane %v505_v53, 1 }
 0x1cc   :  { %9661 = vst [vmem:[#allocation167_spill] sm:$0xff] %v6029_v22  ;;  %2547 = vrot.lane.b32.xlu1 %v2536_v57, %s4868_s23  ;;  %2545 = vrot.lane.b32.xlu0 %v2535_v43, %s4868_s23  ;;  %9663 = vst [vmem:[#allocation169_spill] sm:$0xff] %v6039_v26  ;;  %v6048_v57 = vmul.f32 %v5924_v2, %v68_v33  ;;  %v6051_v43 = vmul.f32 %v5952_v46, %v74_v14  ;;  %v516_v33 = vrot.slane %v503_v38, 1 }
 0x1cd   :  { %9669 = vst [vmem:[#allocation175_spill] sm:$0xff] %v6057_v49  ;;  %v2562_v49 = vmul.f32 %v2558_v47, %v5810_v44  ;;  %v6077_v53 = vmul.f32 %v5523_v60, %v502_v58  ;;  %v535_v38 = vstv %s6003_s11  ;;  %v2584_v56 = vstv %s6006_s12  ;;  %9673 = vst [vmem:[#allocation179_spill] sm:$0xff] %v6084_v7  ;;  %s6641_s11 = sld [smem:[#allocation2 + $0x10d]]  ;;  %s7548_s12 = sld [smem:[#allocation2 + $0x109]] }
 0x1ce   :  { %9666 = vst [vmem:[#allocation172_spill] sm:$0xff] %v6048_v57  ;;  %9667 = vst [vmem:[#allocation173_spill] sm:$0xff] %v6051_v43  ;;  %v6059_v26 = vpop.permute.xlu1 %2005  ;;  %v6061_v23 = vpop.permute.xlu0 %2003  ;;  %v6065_v57 = vmul.f32 %v5944_v3, %v502_v58  ;;  %v6098_v43 = vmul.f32 %v5924_v2, %v80_v37  ;;  %v6101_v22 = vsel %vm515_vm0, %v517_v19, %v519_v6  ;;  %v6117_v6 = vld [vmem:[%s9499_s0 + $0x10] sm:$0x3]  ;;  %v580_v13 = vrot.slane %v568_v8, 1 }
 0x1cf   :  { %9670 = vst [vmem:[#allocation176_spill] sm:$0xff] %v6059_v26  ;;  %9671 = vst [vmem:[#allocation177_spill] sm:$0xff] %v6061_v23  ;;  %v2561_v26 = vmul.f32 %v2558_v47, %v5815_v16  ;;  %v6074_v23 = vmul.f32 %v5924_v2, %v74_v14  ;;  %v506_v47 = vmul.f32 %v5924_v2, %v502_v58 }
 0x1d0   :  { %2569 = vrot.lane.b32.xlu1 %v2560_v11, %s4868_s23  ;;  %2567 = vrot.lane.b32.xlu0 %v2559_v10, %s4868_s23  ;;  %v6087_v10 = vmul.f32 %v5936_v59, %v80_v37  ;;  %v6090_v11 = vmul.f32 %v5944_v3, %v80_v37  ;;  %9678 = vst [vmem:[#allocation184_spill] sm:$0xff] %v6098_v43  ;;  %9679 = vst [vmem:[#allocation185_spill] sm:$0xff] %v6101_v22 }
 0x1d1   :  { %9672 = vst [vmem:[#allocation178_spill] sm:$0xff] %v6074_v23  ;;  %v6104_v7 = vsel %vm515_vm0, %v516_v33, %v517_v19  ;;  %v2586_v58 = vmul.f32 %v2584_v56, %v5792_v5  ;;  %v2585_v37 = vmul.f32 %v2584_v56, %v5797_v17  ;;  %v538_v19 = vmul.f32 %v6117_v6, %v535_v38 }
 0x1d2   :  { %9674 = vst [vmem:[#allocation180_spill] sm:$0xff] %v6087_v10  ;;  %9675 = vst [vmem:[#allocation181_spill] sm:$0xff] %v6090_v11  ;;  %v6093_v14 = vpop.permute.xlu1 %2041  ;;  %v6095_v23 = vpop.permute.xlu0 %2039  ;;  %v522_v10 = vrot.slane %v6065_v57, 1  ;;  %v537_v11 = vmul.f32 %v5952_v46, %v535_v38  ;;  %v536_v57 = vmul.f32 %v5936_v59, %v535_v38  ;;  %v521_v33 = vrot.slane %v506_v47, 1  ;;  %v6135_v47 = vld [vmem:[%s9499_s0 + $0x40] sm:$0x3] }
 0x1d3   :  { %9676 = vst [vmem:[#allocation182_spill] sm:$0xff] %v6093_v14  ;;  %9677 = vst [vmem:[#allocation183_spill] sm:$0xff] %v6095_v23  ;;  %v524_v23 = vrot.slane %v6077_v53, 1  ;;  %v539_v14 = vmul.f32 %v5924_v2, %v535_v38  ;;  %v570_v43 = vmul.f32 %v6117_v6, %v567_v55  ;;  %v2587_v4 = vmul.f32 %v2584_v56, %v5815_v16 }
 0x1d4   :  { %9680 = vst [vmem:[#allocation186_spill] sm:$0xff] %v6104_v7  ;;  %2573 = vrot.lane.b32.xlu1 %v2562_v49, %s4868_s23  ;;  %2571 = vrot.lane.b32.xlu0 %v2561_v26, %s4868_s23  ;;  %v540_v49 = vmul.f32 %v5944_v3, %v535_v38  ;;  %v541_v26 = vmul.f32 %v5523_v60, %v535_v38  ;;  %v549_v38 = vrot.slane %v537_v11, 1  ;;  %v551_v40 = vrot.slane %v538_v19, 1 }
 0x1d5   :  { %v569_v7 = vmul.f32 %v5952_v46, %v567_v55  ;;  %v573_v60 = vmul.f32 %v6135_v47, %v567_v55  ;;  %v548_v29 = vrot.slane %v536_v57, 1  ;;  %v553_v15 = vrot.slane %v539_v14, 1 }
 0x1d6   :  { %v6125_v53 = vpop.permute.xlu1 %2045  ;;  %v6127_v22 = vpop.permute.xlu0 %2043  ;;  %v554_v39 = vrot.slane %v540_v49, 1  ;;  %v556_v27 = vrot.slane %v541_v26, 1  ;;  %v571_v11 = vmul.f32 %v5924_v2, %v567_v55  ;;  %v2612_v55 = vmul.f32 %v2610_v34, %v5792_v5 }
 0x1d7   :  { %9681 = vst [vmem:[#allocation187_spill] sm:$0xff] %v6125_v53  ;;  %9682 = vst [vmem:[#allocation188_spill] sm:$0xff] %v6127_v22  ;;  %v599_v53 = vstv %s6067_s14  ;;  %v2588_v22 = vmul.f32 %v2584_v56, %v5810_v44  ;;  %v581_v25 = vrot.slane %v569_v7, 1  ;;  %v588_v12 = vrot.slane %v573_v60, 1  ;;  %s6662_s14 = sld [smem:[#allocation2 + $0x106]] }
 0x1d8   :  { %2595 = vrot.lane.b32.xlu1 %v2586_v58, %s4869_s4  ;;  %2593 = vrot.lane.b32.xlu0 %v2585_v37, %s4869_s4  ;;  %v583_v37 = vrot.slane %v570_v43, 1  ;;  %v6156_v56 = vmul.f32 %v5952_v46, %v599_v53  ;;  %v2611_v7 = vmul.f32 %v2610_v34, %v5797_v17  ;;  %v6163_v14 = vsel %vm515_vm0, %v522_v10, %v524_v23 }
 0x1d9   :  { %v6166_v54 = vsel %vm515_vm0, %v521_v33, %v522_v10  ;;  %v6169_v8 = vsel %vm515_vm0, %v549_v38, %v551_v40  ;;  %v602_v43 = vmul.f32 %v6117_v6, %v599_v53  ;;  %v6179_v19 = vsel %vm515_vm0, %v553_v15, %v554_v39 }
 0x1da   :  { %v6149_v36 = vpop.permute.xlu1 %2081  ;;  %v6151_v58 = vpop.permute.xlu0 %2079  ;;  %9686 = vst [vmem:[#allocation192_spill] sm:$0xff] %v6179_v19  ;;  %v585_v57 = vrot.slane %v571_v11, 1  ;;  %v6186_v40 = vsel %vm515_vm0, %v581_v25, %v583_v37  ;;  %v6189_v49 = vsel %vm515_vm0, %v580_v13, %v581_v25  ;;  %v613_v33 = vrot.slane %v6156_v56, 1 }
 0x1db   :  { %9683 = vst [vmem:[#allocation189_spill] sm:$0xff] %v6149_v36  ;;  %9684 = vst [vmem:[#allocation190_spill] sm:$0xff] %v6151_v58  ;;  %v2614_v15 = vmul.f32 %v2610_v34, %v5810_v44  ;;  %v2613_v26 = vmul.f32 %v2610_v34, %v5815_v16  ;;  %v615_v60 = vrot.slane %v602_v43, 1  ;;  %v604_v13 = vmul.f32 %v5944_v3, %v599_v53 }
 0x1dc   :  { %2599 = vrot.lane.b32.xlu1 %v2588_v22, %s4869_s4  ;;  %2597 = vrot.lane.b32.xlu0 %v2587_v4, %s4869_s4  ;;  %v6173_v22 = vsel %vm515_vm0, %v548_v29, %v549_v38  ;;  %v6176_v4 = vsel %vm515_vm0, %v554_v39, %v556_v27  ;;  %9689 = vst [vmem:[#allocation195_spill] sm:$0xff] %v6186_v40  ;;  %9690 = vst [vmem:[#allocation196_spill] sm:$0xff] %v6189_v49  ;;  %v631_v27 = vstv %s6138_s19  ;;  %s7270_s19 = sld [smem:[#allocation2 + $0x20e]] }
 0x1dd   :  { %9685 = vst [vmem:[#allocation191_spill] sm:$0xff] %v6176_v4  ;;  %v6192_v29 = vsel %vm515_vm0, %v586_v35, %v588_v12  ;;  %v600_v39 = vmul.f32 %v5936_v59, %v599_v53  ;;  %v605_v12 = vmul.f32 %v6135_v47, %v599_v53  ;;  %v2636_v25 = vstv %s6146_s20  ;;  %s6734_s20 = sld [smem:[#allocation2 + $0x18d]] }
 0x1de   :  { %v6181_v23 = vpop.permute.xlu1 %2085  ;;  %v6183_v10 = vpop.permute.xlu0 %2083  ;;  %9691 = vst [vmem:[#allocation197_spill] sm:$0xff] %v6192_v29  ;;  %v6207_v38 = vsel %vm515_vm0, %v585_v57, %v586_v35  ;;  %v603_v11 = vmul.f32 %v5924_v2, %v599_v53  ;;  %v633_v37 = vmul.f32 %v5952_v46, %v631_v27  ;;  %v634_v56 = vmul.f32 %v6117_v6, %v631_v27 }
 0x1df   :  { %9687 = vst [vmem:[#allocation193_spill] sm:$0xff] %v6181_v23  ;;  %9688 = vst [vmem:[#allocation194_spill] sm:$0xff] %v6183_v10  ;;  %v636_v43 = vmul.f32 %v5944_v3, %v631_v27  ;;  %v637_v10 = vmul.f32 %v6135_v47, %v631_v27  ;;  %v663_v23 = vstv %s6153_s21  ;;  %v635_v35 = vmul.f32 %v5924_v2, %v631_v27  ;;  %s6774_s21 = sld [smem:[#allocation2 + $0x20d]] }
 0x1e0   :  { %2621 = vrot.lane.b32.xlu1 %v2612_v55, %s4869_s4  ;;  %2619 = vrot.lane.b32.xlu0 %v2611_v7, %s4869_s4  ;;  %9692 = vst [vmem:[#allocation198_spill] sm:$0xff] %v6207_v38  ;;  %v632_v7 = vmul.f32 %v5936_v59, %v631_v27  ;;  %v2638_v53 = vmul.f32 %v2636_v25, %v5792_v5  ;;  %v618_v58 = vrot.slane %v604_v13, 1  ;;  %v620_v36 = vrot.slane %v605_v12, 1 }
 0x1e1   :  { %v2637_v57 = vmul.f32 %v2636_v25, %v5797_v17  ;;  %v617_v38 = vrot.slane %v603_v11, 1  ;;  %v665_v29 = vmul.f32 %v5952_v46, %v663_v23  ;;  %v666_v27 = vmul.f32 %v6117_v6, %v663_v23 }
 0x1e2   :  { %v6212_v55 = vpop.permute.xlu1 %2121  ;;  %v6214_v34 = vpop.permute.xlu0 %2119  ;;  %v664_v49 = vmul.f32 %v5936_v59, %v663_v23  ;;  %v645_v40 = vrot.slane %v633_v37, 1  ;;  %v647_v19 = vrot.slane %v634_v56, 1  ;;  %v644_v4 = vrot.slane %v632_v7, 1 }
 0x1e3   :  { %9693 = vst [vmem:[#allocation199_spill] sm:$0xff] %v6212_v55  ;;  %9694 = vst [vmem:[#allocation200_spill] sm:$0xff] %v6214_v34  ;;  %v6228_v34 = vsel %vm515_vm0, %v613_v33, %v615_v60  ;;  %v612_v55 = vrot.slane %v600_v39, 1  ;;  %v650_v60 = vrot.slane %v636_v43, 1  ;;  %v649_v39 = vrot.slane %v635_v35, 1 }
 0x1e4   :  { %2625 = vrot.lane.b32.xlu1 %v2614_v15, %s4869_s4  ;;  %2623 = vrot.lane.b32.xlu0 %v2613_v26, %s4869_s4  ;;  %9695 = vst [vmem:[#allocation201_spill] sm:$0xff] %v6228_v34  ;;  %v652_v34 = vrot.slane %v637_v10, 1  ;;  %v2640_v13 = vmul.f32 %v2636_v25, %v5810_v44  ;;  %v2639_v12 = vmul.f32 %v2636_v25, %v5815_v16  ;;  %v2662_v56 = vstv %s6204_s22  ;;  %s6836_s22 = sld [smem:[#allocation2 + $0x28d]] }
 0x1e5   :  { %v668_v11 = vmul.f32 %v5944_v3, %v663_v23  ;;  %v667_v37 = vmul.f32 %v5924_v2, %v663_v23  ;;  %v6248_v10 = vsel %vm515_vm0, %v612_v55, %v613_v33  ;;  %v677_v7 = vrot.slane %v665_v29, 1 }
 0x1e6   :  { %v6233_v15 = vpop.permute.xlu1 %2125  ;;  %v6235_v26 = vpop.permute.xlu0 %2123  ;;  %v679_v43 = vrot.slane %v666_v27, 1  ;;  %v676_v35 = vrot.slane %v664_v49, 1  ;;  %v6266_v33 = vsel %vm515_vm0, %v644_v4, %v645_v40  ;;  %v6269_v49 = vsel %vm515_vm0, %v650_v60, %v652_v34 }
 0x1e7   :  { %9696 = vst [vmem:[#allocation202_spill] sm:$0xff] %v6233_v15  ;;  %9697 = vst [vmem:[#allocation203_spill] sm:$0xff] %v6235_v26  ;;  %v669_v15 = vmul.f32 %v6135_v47, %v663_v23  ;;  %v6260_v23 = vsel %vm515_vm0, %v617_v38, %v618_v58  ;;  %v6263_v26 = vsel %vm515_vm0, %v645_v40, %v647_v19  ;;  %v695_v29 = vstv %s6221_s24  ;;  %s7989_s24 = sld [smem:[#allocation2 + $0x390]] }
 0x1e8   :  { %2647 = vrot.lane.b32.xlu1 %v2638_v53, %s4869_s4  ;;  %2645 = vrot.lane.b32.xlu0 %v2637_v57, %s4869_s4  ;;  %v6257_v57 = vsel %vm515_vm0, %v618_v58, %v620_v36  ;;  %9700 = vst [vmem:[#allocation206_spill] sm:$0xff] %v6269_v49  ;;  %v2664_v36 = vmul.f32 %v2662_v56, %v5792_v5  ;;  %v682_v19 = vrot.slane %v668_v11, 1  ;;  %v681_v27 = vrot.slane %v667_v37, 1  ;;  %v9780_v49 = vld [vmem:[#allocation185_spill] sm:$0xff] }
 0x1e9   :  { %v2663_v55 = vmul.f32 %v2662_v56, %v5797_v17  ;;  %v6277_v58 = vsel %vm515_vm0, %v649_v39, %v650_v60  ;;  %v684_v38 = vrot.slane %v669_v15, 1  ;;  %v6281_v4 = vadd.f32 %v5029_v20, %v5927_v1 }
 0x1ea   :  { %v6252_v53 = vpop.permute.xlu1 %2161  ;;  %v6254_v25 = vpop.permute.xlu0 %2159  ;;  %9701 = vst [vmem:[#allocation207_spill] sm:$0xff] %v6277_v58  ;;  %v6285_v40 = vadd.f32 %v5031_v21, %v5939_v0  ;;  %v6288_v34 = vsel %vm515_vm0, %v677_v7, %v679_v43  ;;  %v6299_v15 = vadd.f32 %v5050_v30, %v5947_v28  ;;  %v697_v20 = vmul.f32 %v5952_v46, %v695_v29 }
 0x1eb   :  { %9698 = vst [vmem:[#allocation204_spill] sm:$0xff] %v6252_v53  ;;  %9699 = vst [vmem:[#allocation205_spill] sm:$0xff] %v6254_v25  ;;  %v698_v21 = vmul.f32 %v6117_v6, %v695_v29  ;;  %v696_v0 = vmul.f32 %v5936_v59, %v695_v29  ;;  %v6306_v1 = vadd.f32 %v5052_v31, %v5955_v24  ;;  %v2688_v31 = vstv %s6245_s25  ;;  %v9722_v25 = vld [vmem:[#allocation10_spill] sm:$0xff]  ;;  %s8021_s25 = sld [smem:[#allocation2 + $0xc]] }
 0x1ec   :  { %2651 = vrot.lane.b32.xlu1 %v2640_v13, %s4869_s4  ;;  %2649 = vrot.lane.b32.xlu0 %v2639_v12, %s4869_s4  ;;  %9702 = vst [vmem:[#allocation208_spill] sm:$0xff] %v6288_v34  ;;  %v6291_v13 = vsel %vm515_vm0, %v676_v35, %v677_v7  ;;  %v2666_v12 = vmul.f32 %v2662_v56, %v5810_v44  ;;  %v727_v43 = vstv %s6250_s26  ;;  %v709_v35 = vrot.slane %v697_v20, 1  ;;  %v9732_v53 = vld [vmem:[#allocation14_spill] sm:$0xff]  ;;  %s8096_s26 = sld [smem:[#allocation2 + $0x11]] }
 0x1ed   :  { %9703 = vst [vmem:[#allocation209_spill] sm:$0xff] %v6291_v13  ;;  %v2665_v30 = vmul.f32 %v2662_v56, %v5815_v16  ;;  %v6314_v28 = vadd.f32 %v5061_v41, %v5958_v48  ;;  %v6317_v11 = vsel %vm515_vm0, %v682_v19, %v684_v38  ;;  %v6320_v37 = vsel %vm515_vm0, %v681_v27, %v682_v19  ;;  %v9774_v13 = vld [vmem:[#allocation32_spill] sm:$0xff] }
 0x1ee   :  { %v6293_v60 = vpop.permute.xlu1 %2165  ;;  %v6295_v39 = vpop.permute.xlu0 %2163  ;;  %9706 = vst [vmem:[#allocation212_spill] sm:$0xff] %v6317_v11  ;;  %9707 = vst [vmem:[#allocation213_spill] sm:$0xff] %v6320_v37  ;;  %v6327_v24 = vadd.f32 %v5063_v42, %v5961_v45  ;;  %v700_v7 = vmul.f32 %v5944_v3, %v695_v29  ;;  %v701_v56 = vmul.f32 %v6135_v47, %v695_v29  ;;  %v9763_v11 = vld [vmem:[#allocation24_spill] sm:$0xff] }
 0x1ef   :  { %9704 = vst [vmem:[#allocation210_spill] sm:$0xff] %v6293_v60  ;;  %9705 = vst [vmem:[#allocation211_spill] sm:$0xff] %v6295_v39  ;;  %v699_v19 = vmul.f32 %v5924_v2, %v695_v29  ;;  %v6339_v38 = vadd.f32 %v5072_v51, %v5964_v61  ;;  %v2690_v42 = vmul.f32 %v2688_v31, %v5792_v5 }
 0x1f0   :  { %2673 = vrot.lane.b32.xlu1 %v2664_v36, %s4869_s4  ;;  %2671 = vrot.lane.b32.xlu0 %v2663_v55, %s4869_s4  ;;  %v711_v36 = vrot.slane %v698_v21, 1  ;;  %v708_v55 = vrot.slane %v696_v0, 1  ;;  %v2689_v45 = vmul.f32 %v2688_v31, %v5797_v17  ;;  %v6347_v27 = vadd.f32 %v5074_v52, %v5967_v9 }
 0x1f1   :  { %v729_v20 = vmul.f32 %v5952_v46, %v727_v43  ;;  %v730_v29 = vmul.f32 %v6117_v6, %v727_v43  ;;  %v728_v21 = vmul.f32 %v5936_v59, %v727_v43  ;;  %v714_v51 = vrot.slane %v700_v7, 1 }
 0x1f2   :  { %v6332_v41 = vpop.permute.xlu1 %2201  ;;  %v6334_v48 = vpop.permute.xlu0 %2199  ;;  %v716_v61 = vrot.slane %v701_v56, 1  ;;  %v732_v0 = vmul.f32 %v5944_v3, %v727_v43  ;;  %v6359_v52 = vsel %vm515_vm0, %v709_v35, %v711_v36  ;;  %v6362_v9 = vsel %vm515_vm0, %v708_v55, %v709_v35 }
 0x1f3   :  { %9708 = vst [vmem:[#allocation214_spill] sm:$0xff] %v6332_v41  ;;  %9709 = vst [vmem:[#allocation215_spill] sm:$0xff] %v6334_v48  ;;  %v713_v41 = vrot.slane %v699_v19, 1  ;;  %v731_v39 = vmul.f32 %v5924_v2, %v727_v43  ;;  %v6369_v7 = vadd.f32 %v5083_v62, %v5975_v18  ;;  %v2692_v56 = vmul.f32 %v2688_v31, %v5810_v44 }
 0x1f4   :  { %2677 = vrot.lane.b32.xlu1 %v2666_v12, %s4869_s4  ;;  %2675 = vrot.lane.b32.xlu0 %v2665_v30, %s4869_s4  ;;  %v733_v12 = vmul.f32 %v6135_v47, %v727_v43  ;;  %9712 = vst [vmem:[#allocation218_spill] sm:$0xff] %v6359_v52  ;;  %9713 = vst [vmem:[#allocation219_spill] sm:$0xff] %v6362_v9  ;;  %v2691_v36 = vmul.f32 %v2688_v31, %v5815_v16  ;;  %v743_v35 = vrot.slane %v730_v29, 1  ;;  %v9717_v31 = vld [vmem:[#allocation8_spill] sm:$0xff]  ;;  %v9718_v29 = vld [vmem:[#allocation158_spill] sm:$0xff] }
 0x1f5   :  { %v740_v55 = vrot.slane %v728_v21, 1  ;;  %v2714_v19 = vstv %s6323_s27  ;;  %v6380_v43 = vadd.f32 %v5085_v63, %v5978_v32  ;;  %v6383_v62 = vsel %vm515_vm0, %v714_v51, %v716_v61  ;;  %v9719_v21 = vld [vmem:[#allocation9_spill] sm:$0xff]  ;;  %v9721_v61 = vld [vmem:[#allocation159_spill] sm:$0xff]  ;;  %s8154_s27 = sld [smem:[#allocation2 + $0x91]] }
 0x1f6   :  { %v6354_v30 = vpop.permute.xlu1 %2205  ;;  %v6356_v48 = vpop.permute.xlu0 %2203  ;;  %9714 = vst [vmem:[#allocation220_spill] sm:$0xff] %v6383_v62  ;;  %v746_v18 = vrot.slane %v732_v0, 1  ;;  %v6395_v60 = vadd.f32 %v9719_v21, %v9718_v29  ;;  %v6398_v63 = vsel %vm515_vm0, %v713_v41, %v714_v51  ;;  %v745_v32 = vrot.slane %v731_v39, 1  ;;  %v9724_v29 = vld [vmem:[#allocation11_spill] sm:$0xff]  ;;  %v9725_v41 = vld [vmem:[#allocation161_spill] sm:$0xff]  ;;  %v9726_v51 = vld [vmem:[#allocation12_spill] sm:$0xff] }
 0x1f7   :  { %9710 = vst [vmem:[#allocation216_spill] sm:$0xff] %v6354_v30  ;;  %9711 = vst [vmem:[#allocation217_spill] sm:$0xff] %v6356_v48  ;;  %v741_v48 = vrot.slane %v729_v20, 1  ;;  %v6391_v20 = vadd.f32 %v9717_v31, %v5981_v50  ;;  %v6402_v0 = vadd.f32 %v9722_v25, %v9721_v61  ;;  %v2716_v50 = vmul.f32 %v2714_v19, %v5792_v5  ;;  %v9723_v31 = vld [vmem:[#allocation160_spill] sm:$0xff]  ;;  %v9730_v61 = vld [vmem:[#allocation13_spill] sm:$0xff] }
 0x1f8   :  { %2699 = vrot.lane.b32.xlu1 %v2690_v42, %s4869_s4  ;;  %2697 = vrot.lane.b32.xlu0 %v2689_v45, %s4869_s4  ;;  %v748_v42 = vrot.slane %v733_v12, 1  ;;  %9720 = vst [vmem:[#allocation8_spill] sm:$0xff] %v6398_v63  ;;  %v2715_v12 = vmul.f32 %v2714_v19, %v5797_v17  ;;  %v6410_v21 = vadd.f32 %v9724_v29, %v9723_v31  ;;  %v9733_v31 = vld [vmem:[#allocation164_spill] sm:$0xff]  ;;  %v9734_v29 = vld [vmem:[#allocation15_spill] sm:$0xff] }
 0x1f9   :  { %v6414_v39 = vadd.f32 %v9726_v51, %v9725_v41  ;;  %v6417_v25 = vsel %vm515_vm0, %v741_v48, %v743_v35  ;;  %v6432_v62 = vadd.f32 %v9734_v29, %v9733_v31  ;;  %v9739_v51 = vld [vmem:[#allocation16_spill] sm:$0xff]  ;;  %v6453_v31 = vstv %s6365_s28  ;;  %v9743_v29 = vld [vmem:[#allocation169_spill] sm:$0xff]  ;;  %v9757_v52 = vld [vmem:[#allocation23_spill] sm:$0xff]  ;;  %s6865_s28 = sld [smem:[#allocation2 + $0x186]] }
 0x1fa   :  { %v6385_v45 = vpop.permute.xlu1 %2241  ;;  %v6387_v30 = vpop.permute.xlu0 %2239  ;;  %9727 = vst [vmem:[#allocation158_spill] sm:$0xff] %v6417_v25  ;;  %v6435_v41 = vsel %vm515_vm0, %v746_v18, %v748_v42  ;;  %v9744_v42 = vld [vmem:[#allocation18_spill] sm:$0xff]  ;;  %v9751_v25 = vld [vmem:[#allocation21_spill] sm:$0xff]  ;;  %v318_v34 = vadd.f32 %v9774_v13, %v6299_v15 }
 0x1fb   :  { %9715 = vst [vmem:[#allocation221_spill] sm:$0xff] %v6385_v45  ;;  %9716 = vst [vmem:[#allocation222_spill] sm:$0xff] %v6387_v30  ;;  %v9731_v45 = vld [vmem:[#allocation163_spill] sm:$0xff]  ;;  %v9783_v13 = vld [vmem:[#allocation34_spill] sm:$0xff] }
 0x1fc   :  { %2703 = vrot.lane.b32.xlu1 %v2692_v56, %s4869_s4  ;;  %2701 = vrot.lane.b32.xlu0 %v2691_v36, %s4869_s4  ;;  %v6420_v56 = vsel %vm515_vm0, %v740_v55, %v741_v48  ;;  %v9729_v36 = vld [vmem:[#allocation162_spill] sm:$0xff]  ;;  %v6428_v63 = vadd.f32 %v9732_v53, %v9731_v45  ;;  %9735 = vst [vmem:[#allocation159_spill] sm:$0xff] %v6435_v41  ;;  %v9738_v55 = vld [vmem:[#allocation167_spill] sm:$0xff] }
 0x1fd   :  { %9728 = vst [vmem:[#allocation9_spill] sm:$0xff] %v6420_v56  ;;  %v6424_v30 = vadd.f32 %v9730_v61, %v9729_v36  ;;  %v6443_v36 = vadd.f32 %v9739_v51, %v9738_v55  ;;  %v9740_v61 = vld [vmem:[#allocation168_spill] sm:$0xff]  ;;  %v9741_v56 = vld [vmem:[#allocation17_spill] sm:$0xff]  ;;  %v6450_v45 = vsel %vm515_vm0, %v745_v32, %v746_v18  ;;  %v6457_v41 = vadd.f32 %v9744_v42, %v9743_v29  ;;  %v9747_v18 = vld [vmem:[#allocation171_spill] sm:$0xff] }
 0x1fe   :  { %v6437_v35 = vpop.permute.xlu1 %2245  ;;  %v6439_v48 = vpop.permute.xlu0 %2243  ;;  %v6447_v53 = vadd.f32 %v9741_v56, %v9740_v61  ;;  %9742 = vst [vmem:[#allocation11_spill] sm:$0xff] %v6450_v45  ;;  %v2718_v55 = vmul.f32 %v2714_v19, %v5810_v44  ;;  %v2717_v51 = vmul.f32 %v2714_v19, %v5815_v16  ;;  %v9746_v56 = vld [vmem:[#allocation19_spill] sm:$0xff]  ;;  %v9748_v32 = vld [vmem:[#allocation20_spill] sm:$0xff]  ;;  %v2740_v42 = vstv %s6376_s29  ;;  %v9756_v19 = vld [vmem:[#allocation174_spill] sm:$0xff]  ;;  %s7474_s29 = sld [smem:[#allocation2 + $0x89]] }
 0x1ff   :  { %9736 = vst [vmem:[#allocation10_spill] sm:$0xff] %v6437_v35  ;;  %9737 = vst [vmem:[#allocation160_spill] sm:$0xff] %v6439_v48  ;;  %v9745_v48 = vld [vmem:[#allocation170_spill] sm:$0xff]  ;;  %v6469_v35 = vadd.f32 %v9748_v32, %v9747_v18  ;;  %v9750_v45 = vld [vmem:[#allocation172_spill] sm:$0xff]  ;;  %v6484_v37 = vadd.f32 %v9757_v52, %v9756_v19  ;;  %v1401_v18 = vmul.f32 %v5952_v46, %v6453_v31 }
 0x200   :  { %2725 = vrot.lane.b32.xlu1 %v2716_v50, %s4869_s4  ;;  %2723 = vrot.lane.b32.xlu0 %v2715_v12, %s4869_s4  ;;  %v6465_v61 = vadd.f32 %v9746_v56, %v9745_v48  ;;  %v6473_v29 = vadd.f32 %v9751_v25, %v9750_v45  ;;  %v9753_v50 = vld [vmem:[#allocation173_spill] sm:$0xff]  ;;  %v9754_v12 = vld [vmem:[#allocation22_spill] sm:$0xff]  ;;  %v9762_v45 = vld [vmem:[#allocation175_spill] sm:$0xff]  ;;  %v1400_v19 = vmul.f32 %v5936_v59, %v6453_v31 }
 0x201   :  { %9749 = vst [vmem:[#allocation161_spill] sm:$0xff] %v6469_v35  ;;  %v6480_v9 = vadd.f32 %v9754_v12, %v9753_v50  ;;  %9758 = vst [vmem:[#allocation13_spill] sm:$0xff] %v6484_v37  ;;  %v9759_v48 = vld [vmem:[#allocation30_spill] sm:$0xff]  ;;  %v6498_v50 = vadd.f32 %v9763_v11, %v9762_v45  ;;  %v2742_v11 = vmul.f32 %v2740_v42, %v5792_v5  ;;  %v9771_v45 = vld [vmem:[#allocation180_spill] sm:$0xff] }
 0x202   :  { %9752 = vst [vmem:[#allocation12_spill] sm:$0xff] %v6473_v29  ;;  %v316_v56 = vadd.f32 %v9759_v48, %v6306_v1  ;;  %v6490_v32 = vpop.permute.xlu1 %2281  ;;  %v6492_v25 = vpop.permute.xlu0 %2279  ;;  %v9765_v12 = vld [vmem:[#allocation178_spill] sm:$0xff]  ;;  %v1402_v1 = vmul.f32 %v6117_v6, %v6453_v31  ;;  %v9768_v48 = vld [vmem:[#allocation179_spill] sm:$0xff]  ;;  %v9778_v29 = vld [vmem:[#allocation184_spill] sm:$0xff] }
 0x203   :  { %9755 = vst [vmem:[#allocation162_spill] sm:$0xff] %v6480_v9  ;;  %9760 = vst [vmem:[#allocation163_spill] sm:$0xff] %v6490_v32  ;;  %v9766_v9 = vld [vmem:[#allocation25_spill] sm:$0xff] }
 0x204   :  { %9761 = vst [vmem:[#allocation14_spill] sm:$0xff] %v6492_v25  ;;  %9764 = vst [vmem:[#allocation164_spill] sm:$0xff] %v6498_v50  ;;  %v6502_v52 = vadd.f32 %v9766_v9, %v9765_v12  ;;  %v9769_v25 = vld [vmem:[#allocation26_spill] sm:$0xff]  ;;  %2729 = vrot.lane.b32.xlu1 %v2718_v55, %s4869_s4  ;;  %2727 = vrot.lane.b32.xlu0 %v2717_v51, %s4869_s4  ;;  %v2741_v9 = vmul.f32 %v2740_v42, %v5797_v17  ;;  %v9772_v12 = vld [vmem:[#allocation27_spill] sm:$0xff]  ;;  %v1416_v15 = vrot.slane %v1402_v1, 2 }
 0x205   :  { %v6512_v32 = vadd.f32 %v9769_v25, %v9768_v48  ;;  %v9773_v50 = vld [vmem:[#allocation31_spill] sm:$0xff]  ;;  %v9775_v25 = vld [vmem:[#allocation33_spill] sm:$0xff]  ;;  %v6561_v1 = vadd.f32 %v6163_v14, %v318_v34 }
 0x206   :  { %9767 = vst [vmem:[#allocation15_spill] sm:$0xff] %v6502_v52  ;;  %v6520_v52 = vadd.f32 %v9772_v12, %v9771_v45  ;;  %v315_v37 = vadd.f32 %v9773_v50, %v6285_v40  ;;  %v317_v48 = vadd.f32 %v9775_v25, %v6281_v4  ;;  %v9776_v55 = vld [vmem:[#allocation181_spill] sm:$0xff]  ;;  %v6537_v45 = vadd.f32 %v9780_v49, %v316_v56  ;;  %v6539_v40 = vpop.permute.xlu1 %2285  ;;  %v6541_v50 = vpop.permute.xlu0 %2283 }
 0x207   :  { %9770 = vst [vmem:[#allocation167_spill] sm:$0xff] %v6512_v32  ;;  %v9777_v32 = vld [vmem:[#allocation28_spill] sm:$0xff]  ;;  %v9779_v35 = vld [vmem:[#allocation29_spill] sm:$0xff]  ;;  %v1414_v12 = vrot.slane %v1401_v18, 2  ;;  %9781 = vst [vmem:[#allocation16_spill] sm:$0xff] %v6539_v40  ;;  %v342_v4 = vadd.f32 %v9783_v13, %v6314_v28  ;;  %v1413_v25 = vrot.slane %v1400_v19, 2  ;;  %v2744_v49 = vmul.f32 %v2740_v42, %v5810_v44 }
 0x208   :  { %v6530_v51 = vadd.f32 %v9777_v32, %v9776_v55  ;;  %v6534_v58 = vadd.f32 %v9779_v35, %v9778_v29  ;;  %9782 = vst [vmem:[#allocation168_spill] sm:$0xff] %v6541_v50  ;;  %v6547_v32 = vmul.f32 %v5944_v3, %v6453_v31  ;;  %v9784_v35 = vld [vmem:[#allocation35_spill] sm:$0xff]  ;;  %2751 = vrot.lane.b32.xlu1 %v2742_v11, %s4869_s4  ;;  %v9785_v28 = vld [vmem:[#allocation186_spill] sm:$0xff]  ;;  %v2766_v19 = vstv %s6476_s30  ;;  %v9786_v11 = vld [vmem:[#allocation36_spill] sm:$0xff]  ;;  %s9177_s30 = sld [smem:[#allocation2 + $0x28f]] }
 0x209   :  { %v341_v29 = vadd.f32 %v9784_v35, %v6327_v24  ;;  %2749 = vrot.lane.b32.xlu0 %v2741_v9, %s4869_s4  ;;  %v2743_v56 = vmul.f32 %v2740_v42, %v5815_v16  ;;  %v6558_v18 = vadd.f32 %v9785_v28, %v315_v37  ;;  %v6564_v24 = vadd.f32 %v6166_v54, %v317_v48  ;;  %v9787_v55 = vld [vmem:[#allocation37_spill] sm:$0xff] }
 0x20a   :  { %v344_v9 = vadd.f32 %v9786_v11, %v6339_v38  ;;  %v343_v13 = vadd.f32 %v9787_v55, %v6347_v27  ;;  %v1405_v42 = vmul.f32 %v6135_v47, %v6453_v31  ;;  %v6573_v35 = vpop.permute.xlu1 %2387  ;;  %v6575_v37 = vpop.permute.xlu0 %2385  ;;  %v6580_v14 = vld [vmem:[%s9499_s0 + $0x28] sm:$0x3]  ;;  %v3048_v54 = vstv %s6494_s3  ;;  %s6923_s3 = sld [smem:[#allocation2 + $0x30d]] }
 0x20b   :  { %9788 = vst [vmem:[#allocation17_spill] sm:$0xff] %v6573_v35  ;;  %9789 = vst [vmem:[#allocation169_spill] sm:$0xff] %v6575_v37  ;;  %v6584_v34 = vadd.f32 %v6169_v8, %v342_v4  ;;  %v6587_v38 = vsel %vm1412_vm1, %v1414_v12, %v1416_v15  ;;  %v6590_v27 = vsel %vm1412_vm1, %v1413_v25, %v1414_v12  ;;  %v6593_v48 = vstv %s6508_s5  ;;  %v9798_v35 = vld [vmem:[#allocation38_spill] sm:$0xff] }
 0x20c   :  { %9790 = vst [vmem:[#allocation18_spill] sm:$0xff] %v6587_v38  ;;  %9791 = vst [vmem:[#allocation170_spill] sm:$0xff] %v6590_v27  ;;  %v6596_v28 = vadd.f32 %v6173_v22, %v341_v29  ;;  %v1419_v11 = vrot.slane %v6547_v32, 2  ;;  %2755 = vrot.lane.b32.xlu1 %v2744_v49, %s4869_s4  ;;  %v2768_v8 = vmul.f32 %v2766_v19, %v5792_v5  ;;  %v6611_v32 = vld [vmem:[%s9499_s0 + $0x58] sm:$0x3]  ;;  %v1421_v37 = vrot.slane %v1405_v42, 2 }
 0x20d   :  { %2753 = vrot.lane.b32.xlu0 %v2743_v56, %s4869_s4  ;;  %v2767_v4 = vmul.f32 %v2766_v19, %v5797_v17  ;;  %v1403_v15 = vmul.f32 %v5924_v2, %v6453_v31  ;;  %v3050_v12 = vmul.f32 %v3048_v54, %v5792_v5  ;;  %v3051_v25 = vmul.f32 %v3048_v54, %v6580_v14  ;;  %v9792_v29 = vld [vmem:[#allocation191_spill] sm:$0xff]  ;;  %v9794_v56 = vld [vmem:[#allocation192_spill] sm:$0xff] }
 0x20e   :  { %v3049_v22 = vmul.f32 %v3048_v54, %v5797_v17  ;;  %v6614_v49 = vadd.f32 %v9792_v29, %v344_v9  ;;  %v6617_v55 = vadd.f32 %v9794_v56, %v343_v13  ;;  %v6621_v5 = vmul.f32 %v5952_v46, %v6593_v48  ;;  %v6623_v31 = vpop.permute.xlu1 %2391  ;;  %v6625_v17 = vpop.permute.xlu0 %2389 }
 0x20f   :  { %9796 = vst [vmem:[#allocation20_spill] sm:$0xff] %v6623_v31  ;;  %9797 = vst [vmem:[#allocation172_spill] sm:$0xff] %v6625_v17  ;;  %v368_v50 = vadd.f32 %v9798_v35, %v6369_v7  ;;  %v1435_v40 = vmul.f32 %v6117_v6, %v6593_v48  ;;  %v2770_v9 = vmul.f32 %v2766_v19, %v5810_v44  ;;  %v3088_v17 = vstv %s6555_s6  ;;  %v9799_v7 = vld [vmem:[#allocation39_spill] sm:$0xff] }
 0x210   :  { %9793 = vst [vmem:[#allocation19_spill] sm:$0xff] %v6614_v49  ;;  %9795 = vst [vmem:[#allocation171_spill] sm:$0xff] %v6617_v55  ;;  %v2769_v13 = vmul.f32 %v2766_v19, %v5815_v16  ;;  %2777 = vrot.lane.b32.xlu1 %v2768_v8, %s4869_s4  ;;  %v3053_v42 = vmul.f32 %v3048_v54, %v5810_v44  ;;  %v3054_v29 = vmul.f32 %v3048_v54, %v6611_v32  ;;  %v9800_v19 = vld [vmem:[#allocation40_spill] sm:$0xff] }
 0x211   :  { %2775 = vrot.lane.b32.xlu0 %v2767_v4, %s4869_s4  ;;  %v3052_v56 = vmul.f32 %v3048_v54, %v5815_v16  ;;  %v367_v35 = vadd.f32 %v9799_v7, %v6380_v43  ;;  %v3062_v31 = vrot.slane %v3050_v12, 1  ;;  %v3064_v27 = vrot.slane %v3051_v25, 1  ;;  %v9804_v43 = vld [vmem:[#allocation41_spill] sm:$0xff]  ;;  %v6658_v25 = vld [vmem:[%s9499_s0 + $0x20] sm:$0xff] }
 0x212   :  { %v3061_v38 = vrot.slane %v3049_v22, 1  ;;  %v370_v8 = vadd.f32 %v9800_v19, %v6391_v20  ;;  %v6646_v4 = vsel %vm1412_vm1, %v1419_v11, %v1421_v37  ;;  %v1418_v44 = vrot.slane %v1403_v15, 2  ;;  %v6649_v49 = vpop.permute.xlu1 %2413  ;;  %v6651_v16 = vpop.permute.xlu0 %2411  ;;  %v9805_v19 = vld [vmem:[#allocation195_spill] sm:$0xff]  ;;  %v9806_v55 = vld [vmem:[#allocation196_spill] sm:$0xff] }
 0x213   :  { %9801 = vst [vmem:[#allocation21_spill] sm:$0xff] %v6646_v4  ;;  %9802 = vst [vmem:[#allocation173_spill] sm:$0xff] %v6649_v49  ;;  %v369_v54 = vadd.f32 %v9804_v43, %v6395_v60  ;;  %v1448_v12 = vrot.slane %v1435_v40, 2  ;;  %v3090_v20 = vmul.f32 %v6658_v25, %v3088_v17  ;;  %v3091_v37 = vmul.f32 %v3088_v17, %v6580_v14  ;;  %v6669_v60 = vld [vmem:[%s9499_s0 + $0x18] sm:$0xff] }
 0x214   :  { %9803 = vst [vmem:[#allocation22_spill] sm:$0xff] %v6651_v16  ;;  %2781 = vrot.lane.b32.xlu1 %v2770_v9, %s4869_s4  ;;  %v3067_v15 = vrot.slane %v3053_v42, 1  ;;  %v3069_v22 = vrot.slane %v3054_v29, 1  ;;  %v3066_v7 = vrot.slane %v3052_v56, 1  ;;  %v3089_v40 = vmul.f32 %v6669_v60, %v3088_v17  ;;  %v9807_v42 = vld [vmem:[#allocation42_spill] sm:$0xff]  ;;  %v9808_v56 = vld [vmem:[#allocation43_spill] sm:$0xff] }
 0x215   :  { %2779 = vrot.lane.b32.xlu0 %v2769_v13, %s4869_s4  ;;  %v6673_v43 = vadd.f32 %v9805_v19, %v368_v50  ;;  %v6676_v16 = vadd.f32 %v9806_v55, %v367_v35  ;;  %v3065_v9 = vsel %vm515_vm0, %v3062_v31, %v3064_v27  ;;  %v3063_v13 = vsel %vm515_vm0, %v3061_v38, %v3062_v31  ;;  %v9812_v35 = vld [vmem:[#allocation197_spill] sm:$0xff]  ;;  %v9813_v38 = vld [vmem:[#allocation198_spill] sm:$0xff] }
 0x216   :  { %v394_v29 = vadd.f32 %v9807_v42, %v6402_v0  ;;  %v393_v49 = vadd.f32 %v9808_v56, %v6410_v21  ;;  %v6685_v4 = vsel %vm1412_vm1, %v1418_v44, %v1419_v11  ;;  %v1433_v50 = vmul.f32 %v5936_v59, %v6593_v48  ;;  %v6689_v19 = vpop.permute.xlu1 %2417  ;;  %v6691_v55 = vpop.permute.xlu0 %2415 }
 0x217   :  { %9809 = vst [vmem:[#allocation174_spill] sm:$0xff] %v6685_v4  ;;  %9810 = vst [vmem:[#allocation23_spill] sm:$0xff] %v6689_v19  ;;  %v6694_v27 = vadd.f32 %v9812_v35, %v370_v8  ;;  %v6697_v31 = vadd.f32 %v9813_v38, %v369_v54  ;;  %v3102_v0 = vrot.slane %v3090_v20, 1  ;;  %v3104_v42 = vrot.slane %v3091_v37, 1  ;;  %v6711_v54 = vld [vmem:[%s9499_s0 + $0x50] sm:$0xff]  ;;  %v6718_v37 = vld [vmem:[%s9499_s0 + $0x48] sm:$0xff] }
 0x218   :  { %9811 = vst [vmem:[#allocation30_spill] sm:$0xff] %v6691_v55  ;;  %v9814_v21 = vrot.slane %v6621_v5, 2  ;;  %3073 = vrot.lane.b32.xlu1 %v3065_v9, %s4868_s23  ;;  %v3070_v59 = vsel %vm515_vm0, %v3067_v15, %v3069_v22  ;;  %v3068_v44 = vsel %vm515_vm0, %v3066_v7, %v3067_v15  ;;  %v3101_v8 = vrot.slane %v3089_v40, 1  ;;  %v9816_v15 = vld [vmem:[#allocation201_spill] sm:$0xff] }
 0x219   :  { %3071 = vrot.lane.b32.xlu0 %v3063_v13, %s4868_s23  ;;  %v3093_v20 = vmul.f32 %v6711_v54, %v3088_v17  ;;  %v3092_v22 = vmul.f32 %v6718_v37, %v3088_v17  ;;  %v3128_v9 = vstv %s6641_s11  ;;  %v6723_v7 = vadd.f32 %v9816_v15, %v394_v29  ;;  %v9821_v55 = vld [vmem:[#allocation45_spill] sm:$0xff] }
 0x21a   :  { %v6702_v11 = vsel %vm1412_vm1, %v9814_v21, %v1448_v12  ;;  %v3094_v12 = vmul.f32 %v3088_v17, %v6611_v32  ;;  %v6726_v40 = vadd.f32 %v6248_v10, %v393_v49  ;;  %v1445_v13 = vrot.slane %v1433_v50, 2  ;;  %v6730_v35 = vpop.permute.xlu1 %2439  ;;  %v6732_v38 = vpop.permute.xlu0 %2437  ;;  %v9820_v21 = vld [vmem:[#allocation44_spill] sm:$0xff] }
 0x21b   :  { %9815 = vst [vmem:[#allocation175_spill] sm:$0xff] %v6702_v11  ;;  %v1437_v56 = vmul.f32 %v5944_v3, %v6593_v48  ;;  %9818 = vst [vmem:[#allocation178_spill] sm:$0xff] %v6730_v35  ;;  %v396_v17 = vadd.f32 %v9820_v21, %v6414_v39  ;;  %v395_v29 = vadd.f32 %v9821_v55, %v6424_v30  ;;  %v6744_v50 = vstv %s6662_s14  ;;  %v9822_v35 = vld [vmem:[#allocation46_spill] sm:$0xff]  ;;  %s7068_s14 = sld [smem:[#allocation2 + $0x286]] }
 0x21c   :  { %9817 = vst [vmem:[#allocation24_spill] sm:$0xff] %v6726_v40  ;;  %9819 = vst [vmem:[#allocation25_spill] sm:$0xff] %v6732_v38  ;;  %v1438_v10 = vmul.f32 %v6135_v47, %v6593_v48  ;;  %v3105_v49 = vsel %vm515_vm0, %v3102_v0, %v3104_v42  ;;  %3077 = vrot.lane.b32.xlu1 %v3070_v59, %s4868_s23  ;;  %v3130_v3 = vmul.f32 %v6658_v25, %v3128_v9 }
 0x21d   :  { %3075 = vrot.lane.b32.xlu0 %v3068_v44, %s4868_s23  ;;  %v3131_v15 = vmul.f32 %v3128_v9, %v6580_v14  ;;  %v3129_v39 = vmul.f32 %v6669_v60, %v3128_v9  ;;  %v3103_v21 = vsel %vm515_vm0, %v3101_v8, %v3102_v0  ;;  %v3107_v30 = vrot.slane %v3093_v20, 1  ;;  %v9827_v0 = vld [vmem:[#allocation47_spill] sm:$0xff] }
 0x21e   :  { %v3109_v55 = vrot.slane %v3094_v12, 1  ;;  %v3106_v38 = vrot.slane %v3092_v22, 1  ;;  %v420_v42 = vadd.f32 %v9822_v35, %v6428_v63  ;;  %v9823_v19 = vrot.slane %v6621_v5, 2  ;;  %v6761_v4 = vpop.permute.xlu1 %2443  ;;  %v6763_v40 = vpop.permute.xlu0 %2441 }
 0x21f   :  { %v1451_v44 = vrot.slane %v1437_v56, 2  ;;  %v1436_v11 = vmul.f32 %v5924_v2, %v6593_v48  ;;  %9825 = vst [vmem:[#allocation26_spill] sm:$0xff] %v6761_v4  ;;  %9826 = vst [vmem:[#allocation180_spill] sm:$0xff] %v6763_v40  ;;  %v419_v8 = vadd.f32 %v9827_v0, %v6432_v62  ;;  %v6768_v20 = vadd.f32 %v6257_v57, %v396_v17  ;;  %v9859_v4 = vld [vmem:[#allocation56_spill] sm:$0xff] }
 0x220   :  { %v6757_v59 = vsel %vm1412_vm1, %v1445_v13, %v9823_v19  ;;  %v3133_v63 = vmul.f32 %v6711_v54, %v3128_v9  ;;  %v3134_v5 = vmul.f32 %v3128_v9, %v6611_v32  ;;  %v1453_v19 = vrot.slane %v1438_v10, 2  ;;  %3113 = vrot.lane.b32.xlu1 %v3105_v49, %s4868_s23 }
 0x221   :  { %9824 = vst [vmem:[#allocation179_spill] sm:$0xff] %v6757_v59  ;;  %3111 = vrot.lane.b32.xlu0 %v3103_v21, %s4868_s23  ;;  %v3142_v2 = vrot.slane %v3130_v3, 1  ;;  %v3144_v48 = vrot.slane %v3131_v15, 1  ;;  %v3141_v12 = vrot.slane %v3129_v39, 1  ;;  %v6777_v62 = vadd.f32 %v6260_v23, %v395_v29  ;;  %v9830_v29 = vld [vmem:[#allocation48_spill] sm:$0xff] }
 0x222   :  { %v3110_v57 = vsel %vm515_vm0, %v3107_v30, %v3109_v55  ;;  %v3108_v22 = vsel %vm515_vm0, %v3106_v38, %v3107_v30  ;;  %v3132_v13 = vmul.f32 %v6718_v37, %v3128_v9  ;;  %v6783_v56 = vadd.f32 %v6263_v26, %v420_v42  ;;  %v6789_v10 = vpop.permute.xlu1 %2465  ;;  %v6791_v49 = vpop.permute.xlu0 %2463  ;;  %v9832_v30 = vld [vmem:[#allocation49_spill] sm:$0xff] }
 0x223   :  { %v1450_v35 = vrot.slane %v1436_v11, 2  ;;  %v6787_v17 = vmul.f32 %v5952_v46, %v6744_v50  ;;  %9828 = vst [vmem:[#allocation27_spill] sm:$0xff] %v6789_v10  ;;  %9829 = vst [vmem:[#allocation31_spill] sm:$0xff] %v6791_v49  ;;  %v3168_v23 = vstv %s6734_s20  ;;  %v422_v3 = vadd.f32 %v9830_v29, %v6443_v36  ;;  %v9846_v49 = vld [vmem:[#allocation208_spill] sm:$0xff]  ;;  %s7305_s20 = sld [smem:[#allocation2 + $0x28e]] }
 0x224   :  { %v6797_v38 = vadd.f32 %v6266_v33, %v419_v8  ;;  %v3147_v9 = vrot.slane %v3133_v63, 1  ;;  %v3149_v15 = vrot.slane %v3134_v5, 1  ;;  %v6800_v26 = vsel %vm1412_vm1, %v1451_v44, %v1453_v19  ;;  %3117 = vrot.lane.b32.xlu1 %v3110_v57, %s4868_s23  ;;  %v9836_v19 = vld [vmem:[#allocation50_spill] sm:$0xff] }
 0x225   :  { %9831 = vst [vmem:[#allocation32_spill] sm:$0xff] %v6800_v26  ;;  %3115 = vrot.lane.b32.xlu0 %v3108_v22, %s4868_s23  ;;  %v3145_v46 = vsel %vm515_vm0, %v3142_v2, %v3144_v48  ;;  %v3143_v11 = vsel %vm515_vm0, %v3141_v12, %v3142_v2  ;;  %v3146_v39 = vrot.slane %v3132_v13, 1  ;;  %v3170_v21 = vmul.f32 %v6658_v25, %v3168_v23  ;;  %v9837_v48 = vld [vmem:[#allocation51_spill] sm:$0xff]  ;;  %v9838_v57 = vld [vmem:[#allocation206_spill] sm:$0xff] }
 0x226   :  { %v3171_v36 = vmul.f32 %v3168_v23, %v6580_v14  ;;  %v3169_v33 = vmul.f32 %v6669_v60, %v3168_v23  ;;  %v421_v55 = vadd.f32 %v9832_v30, %v6447_v53  ;;  %v6812_v42 = vsel %vm1412_vm1, %v1450_v35, %v1451_v44  ;;  %v6817_v63 = vpop.permute.xlu1 %2469  ;;  %v6819_v5 = vpop.permute.xlu0 %2467 }
 0x227   :  { %9833 = vst [vmem:[#allocation33_spill] sm:$0xff] %v6812_v42  ;;  %v1467_v0 = vmul.f32 %v6117_v6, %v6744_v50  ;;  %9834 = vst [vmem:[#allocation181_spill] sm:$0xff] %v6817_v63  ;;  %v446_v2 = vadd.f32 %v9836_v19, %v6457_v41  ;;  %v445_v12 = vadd.f32 %v9837_v48, %v6465_v61  ;;  %v3208_v35 = vstv %s6774_s21  ;;  %v9844_v19 = vld [vmem:[#allocation12_spill] sm:$0xff]  ;;  %v9845_v48 = vld [vmem:[#allocation53_spill] sm:$0xff]  ;;  %s7353_s21 = sld [smem:[#allocation2 + $0x30e]] }
 0x228   :  { %9835 = vst [vmem:[#allocation28_spill] sm:$0xff] %v6819_v5  ;;  %v6826_v53 = vadd.f32 %v9838_v57, %v422_v3  ;;  %v3150_v44 = vsel %vm515_vm0, %v3147_v9, %v3149_v15  ;;  %3153 = vrot.lane.b32.xlu1 %v3145_v46, %s4868_s23  ;;  %v3173_v6 = vmul.f32 %v6711_v54, %v3168_v23  ;;  %v3182_v29 = vrot.slane %v3170_v21, 1  ;;  %v9839_v3 = vld [vmem:[#allocation207_spill] sm:$0xff] }
 0x229   :  { %3151 = vrot.lane.b32.xlu0 %v3143_v11, %s4868_s23  ;;  %v3174_v22 = vmul.f32 %v3168_v23, %v6611_v32  ;;  %v3172_v13 = vmul.f32 %v6718_v37, %v3168_v23  ;;  %v3148_v41 = vsel %vm515_vm0, %v3146_v39, %v3147_v9  ;;  %v3184_v61 = vrot.slane %v3171_v36, 1  ;;  %v6844_v11 = vld [vmem:[%s9499_s0] sm:$0xff]  ;;  %v6851_v9 = vld [vmem:[%s9499_s0 + $0x38] sm:$0xff] }
 0x22a   :  { %v3181_v30 = vrot.slane %v3169_v33, 1  ;;  %v6839_v15 = vadd.f32 %v9839_v3, %v421_v55  ;;  %v1480_v46 = vrot.slane %v1467_v0, 2  ;;  %v1465_v23 = vmul.f32 %v6844_v11, %v6744_v50  ;;  %v6857_v21 = vpop.permute.xlu1 %2491  ;;  %v6859_v36 = vpop.permute.xlu0 %2489  ;;  %v9842_v33 = vld [vmem:[#allocation161_spill] sm:$0xff]  ;;  %v9843_v55 = vld [vmem:[#allocation52_spill] sm:$0xff] }
 0x22b   :  { %v6855_v39 = vmul.f32 %v6851_v9, %v6744_v50  ;;  %9840 = vst [vmem:[#allocation184_spill] sm:$0xff] %v6857_v21  ;;  %9841 = vst [vmem:[#allocation29_spill] sm:$0xff] %v6859_v36  ;;  %v448_v0 = vadd.f32 %v9843_v55, %v9842_v33  ;;  %v447_v57 = vadd.f32 %v9845_v48, %v9844_v19  ;;  %v3187_v5 = vrot.slane %v3173_v6, 1  ;;  %v9847_v55 = vld [vmem:[#allocation209_spill] sm:$0xff] }
 0x22c   :  { %v3210_v3 = vmul.f32 %v6658_v25, %v3208_v35  ;;  %v3211_v8 = vmul.f32 %v3208_v35, %v6580_v14  ;;  %3157 = vrot.lane.b32.xlu1 %v3150_v44, %s4868_s23  ;;  %v3189_v21 = vrot.slane %v3174_v22, 1  ;;  %v3186_v63 = vrot.slane %v3172_v13, 1 }
 0x22d   :  { %3155 = vrot.lane.b32.xlu0 %v3148_v41, %s4868_s23  ;;  %v3209_v36 = vmul.f32 %v6669_v60, %v3208_v35  ;;  %v6873_v33 = vadd.f32 %v9846_v49, %v446_v2  ;;  %v6876_v19 = vadd.f32 %v9847_v55, %v445_v12  ;;  %v3185_v48 = vsel %vm515_vm0, %v3182_v29, %v3184_v61  ;;  %v9852_v12 = vld [vmem:[#allocation212_spill] sm:$0xff] }
 0x22e   :  { %v3183_v10 = vsel %vm515_vm0, %v3181_v30, %v3182_v29  ;;  %v9848_v40 = vrot.slane %v6787_v17, 2  ;;  %v1477_v6 = vrot.slane %v1465_v23, 2  ;;  %v1470_v22 = vmul.f32 %v6135_v47, %v6744_v50  ;;  %v6888_v49 = vpop.permute.xlu1 %2495  ;;  %v6890_v2 = vpop.permute.xlu0 %2493  ;;  %v9853_v29 = vld [vmem:[#allocation213_spill] sm:$0xff] }
 0x22f   :  { %v1483_v13 = vrot.slane %v6855_v39, 2  ;;  %9850 = vst [vmem:[#allocation34_spill] sm:$0xff] %v6888_v49  ;;  %9851 = vst [vmem:[#allocation35_spill] sm:$0xff] %v6890_v2  ;;  %v6893_v41 = vadd.f32 %v9852_v12, %v448_v0  ;;  %v6896_v61 = vadd.f32 %v9853_v29, %v447_v57  ;;  %v3222_v30 = vrot.slane %v3210_v3, 1  ;;  %v9854_v12 = vld [vmem:[#allocation162_spill] sm:$0xff]  ;;  %v9856_v2 = vld [vmem:[#allocation13_spill] sm:$0xff] }
 0x230   :  { %v6883_v44 = vsel %vm1412_vm1, %v9848_v40, %v1480_v46  ;;  %v3224_v40 = vrot.slane %v3211_v8, 1  ;;  %v6901_v46 = vld [vmem:[%s9499_s0 + $0x30] sm:$0xff]  ;;  %3193 = vrot.lane.b32.xlu1 %v3185_v48, %s4868_s23  ;;  %v3190_v23 = vsel %vm515_vm0, %v3187_v5, %v3189_v21  ;;  %v3188_v39 = vsel %vm515_vm0, %v3186_v63, %v3187_v5  ;;  %v9857_v48 = vld [vmem:[#allocation55_spill] sm:$0xff] }
 0x231   :  { %9849 = vst [vmem:[#allocation185_spill] sm:$0xff] %v6883_v44  ;;  %v1468_v47 = vmul.f32 %v6901_v46, %v6744_v50  ;;  %3191 = vrot.lane.b32.xlu0 %v3183_v10, %s4868_s23  ;;  %v3221_v0 = vrot.slane %v3209_v36, 1  ;;  %v3213_v8 = vmul.f32 %v6711_v54, %v3208_v35  ;;  %v3214_v57 = vmul.f32 %v3208_v35, %v6611_v32  ;;  %v9855_v29 = vld [vmem:[#allocation54_spill] sm:$0xff]  ;;  %v9858_v10 = vld [vmem:[#allocation164_spill] sm:$0xff]  ;;  %v9862_v5 = vld [vmem:[#allocation15_spill] sm:$0xff] }
 0x232   :  { %v3212_v3 = vmul.f32 %v6718_v37, %v3208_v35  ;;  %v3248_v55 = vstv %s6836_s22  ;;  %v472_v50 = vadd.f32 %v9855_v29, %v9854_v12  ;;  %v471_v49 = vadd.f32 %v9857_v48, %v9856_v2  ;;  %v6919_v42 = vpop.permute.xlu1 %2517  ;;  %v6921_v63 = vpop.permute.xlu0 %2515  ;;  %v9863_v36 = vld [vmem:[#allocation57_spill] sm:$0xff]  ;;  %s7381_s22 = sld [smem:[#allocation2 + $0x9]] }
 0x233   :  { %v474_v21 = vadd.f32 %v9859_v4, %v9858_v10  ;;  %v1485_v44 = vrot.slane %v1470_v22, 2  ;;  %9860 = vst [vmem:[#allocation186_spill] sm:$0xff] %v6919_v42  ;;  %9861 = vst [vmem:[#allocation36_spill] sm:$0xff] %v6921_v63  ;;  %v473_v35 = vadd.f32 %v9863_v36, %v9862_v5  ;;  %v9864_v26 = vrot.slane %v6787_v17, 2  ;;  %v9866_v36 = vld [vmem:[#allocation218_spill] sm:$0xff] }
 0x234   :  { %v6933_v29 = vstv %s6865_s28  ;;  %v3225_v2 = vsel %vm515_vm0, %v3222_v30, %v3224_v40  ;;  %v1482_v4 = vrot.slane %v1468_v47, 2  ;;  %3197 = vrot.lane.b32.xlu1 %v3190_v23, %s4868_s23  ;;  %v3250_v22 = vmul.f32 %v6658_v25, %v3248_v55  ;;  %v9867_v40 = vld [vmem:[#allocation219_spill] sm:$0xff]  ;;  %v9868_v23 = vld [vmem:[#allocation220_spill] sm:$0xff]  ;;  %s7467_s28 = sld [smem:[#allocation2 + $0x38e]] }
 0x235   :  { %v6930_v12 = vsel %vm1412_vm1, %v1477_v6, %v9864_v26  ;;  %3195 = vrot.lane.b32.xlu0 %v3188_v39, %s4868_s23  ;;  %v3251_v48 = vmul.f32 %v3248_v55, %v6580_v14  ;;  %v3249_v10 = vmul.f32 %v6669_v60, %v3248_v55  ;;  %v3223_v17 = vsel %vm515_vm0, %v3221_v0, %v3222_v30  ;;  %v9872_v30 = vld [vmem:[#allocation8_spill] sm:$0xff] }
 0x236   :  { %9865 = vst [vmem:[#allocation37_spill] sm:$0xff] %v6930_v12  ;;  %v3227_v5 = vrot.slane %v3213_v8, 1  ;;  %v3229_v26 = vrot.slane %v3214_v57, 1  ;;  %v3226_v6 = vrot.slane %v3212_v3, 1  ;;  %v6943_v63 = vadd.f32 %v9866_v36, %v472_v50  ;;  %v6954_v12 = vpop.permute.xlu1 %2521  ;;  %v6956_v59 = vpop.permute.xlu0 %2519  ;;  %v6964_v8 = vld [vmem:[%s9499_s0 + $0x8] sm:$0xff]  ;;  %v9873_v3 = vld [vmem:[#allocation167_spill] sm:$0xff] }
 0x237   :  { %v6946_v47 = vadd.f32 %v9867_v40, %v471_v49  ;;  %v6949_v42 = vadd.f32 %v9868_v23, %v474_v21  ;;  %v6952_v39 = vsel %vm1412_vm1, %v1483_v13, %v1485_v44  ;;  %9870 = vst [vmem:[#allocation192_spill] sm:$0xff] %v6954_v12  ;;  %9871 = vst [vmem:[#allocation38_spill] sm:$0xff] %v6956_v59  ;;  %v9874_v50 = vld [vmem:[#allocation58_spill] sm:$0xff]  ;;  %v3264_v36 = vrot.slane %v3251_v48, 1 }
 0x238   :  { %9869 = vst [vmem:[#allocation191_spill] sm:$0xff] %v6952_v39  ;;  %v6959_v0 = vadd.f32 %v9872_v30, %v473_v35  ;;  %v6968_v49 = vmul.f32 %v6964_v8, %v6933_v29  ;;  %v3253_v57 = vmul.f32 %v6711_v54, %v3248_v55  ;;  %v3254_v44 = vmul.f32 %v3248_v55, %v6611_v32 }
 0x239   :  { %v498_v21 = vadd.f32 %v9874_v50, %v9873_v3  ;;  %3233 = vrot.lane.b32.xlu1 %v3225_v2, %s4868_s23  ;;  %3231 = vrot.lane.b32.xlu0 %v3223_v17, %s4868_s23  ;;  %v3262_v35 = vrot.slane %v3250_v22, 1  ;;  %v3261_v40 = vrot.slane %v3249_v10, 1  ;;  %v6979_v23 = vsel %vm1412_vm1, %v1482_v4, %v1483_v13  ;;  %v9876_v3 = vld [vmem:[#allocation59_spill] sm:$0xff]  ;;  %v9877_v50 = vld [vmem:[#allocation60_spill] sm:$0xff]  ;;  %v6991_v22 = vld [vmem:[%s9499_s0 + $0x10] sm:$0x3] }
 0x23a   :  { %9875 = vst [vmem:[#allocation39_spill] sm:$0xff] %v6979_v23  ;;  %v3230_v30 = vsel %vm515_vm0, %v3227_v5, %v3229_v26  ;;  %v3228_v59 = vsel %vm515_vm0, %v3226_v6, %v3227_v5  ;;  %v3252_v12 = vmul.f32 %v6718_v37, %v3248_v55  ;;  %v497_v2 = vadd.f32 %v9876_v3, %v6520_v52  ;;  %v6995_v4 = vpop.permute.xlu1 %2543  ;;  %v6997_v48 = vpop.permute.xlu0 %2541  ;;  %v9880_v55 = vld [vmem:[#allocation61_spill] sm:$0xff]  ;;  %v9881_v6 = vld [vmem:[#allocation158_spill] sm:$0xff] }
 0x23b   :  { %v500_v17 = vadd.f32 %v9877_v50, %v6530_v51  ;;  %v1499_v13 = vmul.f32 %v6991_v22, %v6933_v29  ;;  %9878 = vst [vmem:[#allocation40_spill] sm:$0xff] %v6995_v4  ;;  %9879 = vst [vmem:[#allocation41_spill] sm:$0xff] %v6997_v48  ;;  %v3288_v10 = vstv %s6923_s3  ;;  %v499_v5 = vadd.f32 %v9880_v55, %v6534_v58  ;;  %s8295_s3 = sld [smem:[#allocation2 + $0x191]] }
 0x23c   :  { %v1497_v52 = vmul.f32 %v6844_v11, %v6933_v29  ;;  %v3267_v51 = vrot.slane %v3253_v57, 1  ;;  %v3269_v26 = vrot.slane %v3254_v44, 1  ;;  %v7007_v3 = vadd.f32 %v9881_v6, %v498_v21  ;;  %v9882_v44 = vld [vmem:[#allocation9_spill] sm:$0xff]  ;;  %v9884_v6 = vld [vmem:[#allocation159_spill] sm:$0xff] }
 0x23d   :  { %v1510_v50 = vrot.slane %v6968_v49, 2  ;;  %3237 = vrot.lane.b32.xlu1 %v3230_v30, %s4868_s23  ;;  %3235 = vrot.lane.b32.xlu0 %v3228_v59, %s4868_s23  ;;  %v3265_v48 = vsel %vm515_vm0, %v3262_v35, %v3264_v36  ;;  %v3263_v58 = vsel %vm515_vm0, %v3261_v40, %v3262_v35  ;;  %v3266_v55 = vrot.slane %v3252_v12, 1  ;;  %v9888_v36 = vld [vmem:[#allocation11_spill] sm:$0xff] }
 0x23e   :  { %v3290_v4 = vmul.f32 %v6658_v25, %v3288_v10  ;;  %v3291_v23 = vmul.f32 %v3288_v10, %v6580_v14  ;;  %v3289_v57 = vmul.f32 %v6669_v60, %v3288_v10  ;;  %v7018_v21 = vadd.f32 %v9882_v44, %v497_v2  ;;  %v7027_v35 = vpop.permute.xlu1 %2547  ;;  %v7029_v12 = vpop.permute.xlu0 %2545  ;;  %v7037_v2 = vld [vmem:[%s9499_s0 + $0x40] sm:$0x3] }
 0x23f   :  { %v7021_v49 = vadd.f32 %v9884_v6, %v500_v17  ;;  %v1512_v30 = vrot.slane %v1499_v13, 2  ;;  %v7025_v59 = vmul.f32 %v6851_v9, %v6933_v29  ;;  %9886 = vst [vmem:[#allocation42_spill] sm:$0xff] %v7027_v35  ;;  %9887 = vst [vmem:[#allocation43_spill] sm:$0xff] %v7029_v12  ;;  %v7032_v40 = vadd.f32 %v9888_v36, %v499_v5 }
 0x240   :  { %9883 = vst [vmem:[#allocation195_spill] sm:$0xff] %v7018_v21  ;;  %v1509_v39 = vrot.slane %v1497_v52, 2  ;;  %v1502_v17 = vmul.f32 %v7037_v2, %v6933_v29  ;;  %v3270_v13 = vsel %vm515_vm0, %v3267_v51, %v3269_v26  ;;  %v3293_v44 = vmul.f32 %v6711_v54, %v3288_v10  ;;  %v9890_v26 = vld [vmem:[#allocation62_spill] sm:$0xff] }
 0x241   :  { %9885 = vst [vmem:[#allocation196_spill] sm:$0xff] %v7021_v49  ;;  %9889 = vst [vmem:[#allocation197_spill] sm:$0xff] %v7032_v40  ;;  %3273 = vrot.lane.b32.xlu1 %v3265_v48, %s4868_s23  ;;  %3271 = vrot.lane.b32.xlu0 %v3263_v58, %s4868_s23  ;;  %v3294_v5 = vmul.f32 %v3288_v10, %v6611_v32  ;;  %v3292_v52 = vmul.f32 %v6718_v37, %v3288_v10  ;;  %v3328_v6 = vstv %s6976_s7  ;;  %s8338_s7 = sld [smem:[#allocation2 + $0x10c]] }
 0x242   :  { %v3268_v36 = vsel %vm515_vm0, %v3266_v55, %v3267_v51  ;;  %v3302_v12 = vrot.slane %v3290_v4, 1  ;;  %v3304_v35 = vrot.slane %v3291_v23, 1  ;;  %v3301_v40 = vrot.slane %v3289_v57, 1  ;;  %v7061_v21 = vpop.permute.xlu1 %2569  ;;  %v7063_v51 = vpop.permute.xlu0 %2567 }
 0x243   :  { %v7053_v48 = vadd.f32 %v9890_v26, %v6537_v45  ;;  %v7056_v58 = vsel %vm1412_vm1, %v1510_v50, %v1512_v30  ;;  %v1515_v49 = vrot.slane %v7025_v59, 2  ;;  %v1500_v10 = vmul.f32 %v6901_v46, %v6933_v29  ;;  %9893 = vst [vmem:[#allocation44_spill] sm:$0xff] %v7061_v21  ;;  %9894 = vst [vmem:[#allocation45_spill] sm:$0xff] %v7063_v51  ;;  %v9895_v26 = vld [vmem:[#allocation63_spill] sm:$0xff] }
 0x244   :  { %9892 = vst [vmem:[#allocation201_spill] sm:$0xff] %v7056_v58  ;;  %v1517_v23 = vrot.slane %v1502_v17, 2  ;;  %v1528_v4 = vstv %s7004_s10  ;;  %v3330_v55 = vmul.f32 %v6658_v25, %v3328_v6  ;;  %v3331_v57 = vmul.f32 %v3328_v6, %v6580_v14 }
 0x245   :  { %9891 = vst [vmem:[#allocation198_spill] sm:$0xff] %v7053_v48  ;;  %3277 = vrot.lane.b32.xlu1 %v3270_v13, %s4868_s23  ;;  %3275 = vrot.lane.b32.xlu0 %v3268_v36, %s4868_s23  ;;  %v3307_v45 = vrot.slane %v3293_v44, 1  ;;  %v3309_v30 = vrot.slane %v3294_v5, 1  ;;  %v3306_v59 = vrot.slane %v3292_v52, 1  ;;  %v3329_v29 = vmul.f32 %v6669_v60, %v3328_v6  ;;  %v9897_v13 = vld [vmem:[#allocation64_spill] sm:$0xff] }
 0x246   :  { %v7075_v51 = vadd.f32 %v9895_v26, %v6558_v18  ;;  %v7078_v17 = vsel %vm1412_vm1, %v1509_v39, %v1510_v50  ;;  %v3305_v21 = vsel %vm515_vm0, %v3302_v12, %v3304_v35  ;;  %v3303_v58 = vsel %vm515_vm0, %v3301_v40, %v3302_v12  ;;  %v7089_v18 = vpop.permute.xlu1 %2573  ;;  %v7091_v36 = vpop.permute.xlu0 %2571  ;;  %v9900_v39 = vld [vmem:[#allocation65_spill] sm:$0xff] }
 0x247   :  { %9896 = vst [vmem:[#allocation46_spill] sm:$0xff] %v7078_v17  ;;  %v7084_v48 = vadd.f32 %v9897_v13, %v6561_v1  ;;  %v1530_v44 = vmul.f32 %v6964_v8, %v1528_v4  ;;  %v1531_v5 = vmul.f32 %v6991_v22, %v1528_v4  ;;  %v1529_v52 = vmul.f32 %v6844_v11, %v1528_v4 }
 0x248   :  { %9898 = vst [vmem:[#allocation47_spill] sm:$0xff] %v7089_v18  ;;  %9899 = vst [vmem:[#allocation48_spill] sm:$0xff] %v7091_v36  ;;  %v7095_v50 = vadd.f32 %v9900_v39, %v6564_v24  ;;  %v1514_v35 = vrot.slane %v1500_v10, 2  ;;  %v3342_v12 = vrot.slane %v3330_v55, 1  ;;  %v3344_v40 = vrot.slane %v3331_v57, 1 }
 0x249   :  { %v7098_v1 = vsel %vm1412_vm1, %v1515_v49, %v1517_v23  ;;  %3313 = vrot.lane.b32.xlu1 %v3305_v21, %s4868_s23  ;;  %3311 = vrot.lane.b32.xlu0 %v3303_v58, %s4868_s23  ;;  %v3310_v26 = vsel %vm515_vm0, %v3307_v45, %v3309_v30  ;;  %v3308_v13 = vsel %vm515_vm0, %v3306_v59, %v3307_v45  ;;  %v3341_v18 = vrot.slane %v3329_v29, 1  ;;  %v9903_v23 = vld [vmem:[#allocation66_spill] sm:$0xff]  ;;  %v9907_v45 = vld [vmem:[#allocation67_spill] sm:$0xff] }
 0x24a   :  { %9901 = vst [vmem:[#allocation49_spill] sm:$0xff] %v7095_v50  ;;  %9902 = vst [vmem:[#allocation50_spill] sm:$0xff] %v7098_v1  ;;  %v3333_v36 = vmul.f32 %v6711_v54, %v3328_v6  ;;  %v3334_v24 = vmul.f32 %v3328_v6, %v6611_v32  ;;  %v3332_v10 = vmul.f32 %v6718_v37, %v3328_v6  ;;  %v3368_v55 = vstv %s7049_s13  ;;  %v7112_v1 = vpop.permute.xlu1 %2595  ;;  %v7114_v30 = vpop.permute.xlu0 %2593  ;;  %s7592_s13 = sld [smem:[#allocation2 + $0x189]] }
 0x24b   :  { %v7110_v57 = vadd.f32 %v9903_v23, %v6584_v34  ;;  %v1542_v21 = vrot.slane %v1530_v44, 2  ;;  %v1544_v39 = vrot.slane %v1531_v5, 2  ;;  %v1541_v58 = vrot.slane %v1529_v52, 2  ;;  %9905 = vst [vmem:[#allocation206_spill] sm:$0xff] %v7112_v1  ;;  %9906 = vst [vmem:[#allocation207_spill] sm:$0xff] %v7114_v30 }
 0x24c   :  { %v7120_v59 = vadd.f32 %v9907_v45, %v6596_v28  ;;  %v1533_v6 = vmul.f32 %v6851_v9, %v1528_v4  ;;  %v1534_v29 = vmul.f32 %v7037_v2, %v1528_v4  ;;  %v3345_v34 = vsel %vm515_vm0, %v3342_v12, %v3344_v40 }
 0x24d   :  { %9904 = vst [vmem:[#allocation51_spill] sm:$0xff] %v7110_v57  ;;  %v1560_v23 = vstv %s7068_s14  ;;  %3317 = vrot.lane.b32.xlu1 %v3310_v26, %s4868_s23  ;;  %3315 = vrot.lane.b32.xlu0 %v3308_v13, %s4868_s23  ;;  %v3370_v44 = vmul.f32 %v6658_v25, %v3368_v55  ;;  %v3371_v5 = vmul.f32 %v3368_v55, %v6580_v14  ;;  %v3347_v45 = vrot.slane %v3333_v36, 1  ;;  %s7601_s14 = sld [smem:[#allocation2 + $0x90]] }
 0x24e   :  { %9908 = vst [vmem:[#allocation161_spill] sm:$0xff] %v7120_v59  ;;  %v3369_v52 = vmul.f32 %v6669_v60, %v3368_v55  ;;  %v3343_v28 = vsel %vm515_vm0, %v3341_v18, %v3342_v12  ;;  %v3349_v30 = vrot.slane %v3334_v24, 1  ;;  %v3346_v1 = vrot.slane %v3332_v10, 1  ;;  %v7142_v59 = vpop.permute.xlu1 %2599  ;;  %v7144_v57 = vpop.permute.xlu0 %2597  ;;  %v9915_v12 = vld [vmem:[#allocation68_spill] sm:$0xff] }
 0x24f   :  { %v7133_v17 = vsel %vm1412_vm1, %v1514_v35, %v1515_v49  ;;  %v7136_v40 = vsel %vm1412_vm1, %v1542_v21, %v1544_v39  ;;  %v7139_v26 = vsel %vm1412_vm1, %v1541_v58, %v1542_v21  ;;  %v1532_v13 = vmul.f32 %v6901_v46, %v1528_v4  ;;  %9912 = vst [vmem:[#allocation208_spill] sm:$0xff] %v7142_v59  ;;  %v9914_v35 = vld [vmem:[#allocation19_spill] sm:$0xff]  ;;  %v9918_v58 = vld [vmem:[#allocation69_spill] sm:$0xff] }
 0x250   :  { %9909 = vst [vmem:[#allocation52_spill] sm:$0xff] %v7133_v17  ;;  %9910 = vst [vmem:[#allocation12_spill] sm:$0xff] %v7136_v40  ;;  %v1547_v50 = vrot.slane %v1533_v6, 2  ;;  %v1549_v18 = vrot.slane %v1534_v29, 2  ;;  %v3373_v36 = vmul.f32 %v6711_v54, %v3368_v55  ;;  %v3374_v49 = vmul.f32 %v3368_v55, %v6611_v32  ;;  %v9917_v39 = vld [vmem:[#allocation171_spill] sm:$0xff] }
 0x251   :  { %9911 = vst [vmem:[#allocation53_spill] sm:$0xff] %v7139_v26  ;;  %9913 = vst [vmem:[#allocation209_spill] sm:$0xff] %v7144_v57  ;;  %v7152_v24 = vadd.f32 %v9915_v12, %v9914_v35  ;;  %3353 = vrot.lane.b32.xlu1 %v3345_v34, %s4868_s23  ;;  %3351 = vrot.lane.b32.xlu0 %v3343_v28, %s4868_s23  ;;  %v3382_v4 = vrot.slane %v3370_v44, 1  ;;  %v3384_v10 = vrot.slane %v3371_v5, 1  ;;  %v3381_v21 = vrot.slane %v3369_v52, 1 }
 0x252   :  { %v7160_v6 = vadd.f32 %v9918_v58, %v9917_v39  ;;  %v3350_v29 = vsel %vm515_vm0, %v3347_v45, %v3349_v30  ;;  %v3348_v57 = vsel %vm515_vm0, %v3346_v1, %v3347_v45  ;;  %v3372_v35 = vmul.f32 %v6718_v37, %v3368_v55  ;;  %v7167_v44 = vpop.permute.xlu1 %2621  ;;  %v7169_v5 = vpop.permute.xlu0 %2619 }
 0x253   :  { %9916 = vst [vmem:[#allocation212_spill] sm:$0xff] %v7152_v24  ;;  %v1546_v12 = vrot.slane %v1532_v13, 2  ;;  %v1562_v34 = vmul.f32 %v6964_v8, %v1560_v23  ;;  %v1563_v28 = vmul.f32 %v6991_v22, %v1560_v23  ;;  %9920 = vst [vmem:[#allocation162_spill] sm:$0xff] %v7167_v44  ;;  %v3408_v52 = vstv %s7116_s15  ;;  %s7654_s15 = sld [smem:[#allocation2 + $0x209]] }
 0x254   :  { %9919 = vst [vmem:[#allocation213_spill] sm:$0xff] %v7160_v6  ;;  %9921 = vst [vmem:[#allocation54_spill] sm:$0xff] %v7169_v5  ;;  %v7173_v59 = vsel %vm1412_vm1, %v1547_v50, %v1549_v18  ;;  %v1561_v39 = vmul.f32 %v6844_v11, %v1560_v23  ;;  %v3387_v30 = vrot.slane %v3373_v36, 1  ;;  %v3389_v58 = vrot.slane %v3374_v49, 1 }
 0x255   :  { %9922 = vst [vmem:[#allocation13_spill] sm:$0xff] %v7173_v59  ;;  %v1565_v1 = vmul.f32 %v6851_v9, %v1560_v23  ;;  %3357 = vrot.lane.b32.xlu1 %v3350_v29, %s4868_s23  ;;  %3355 = vrot.lane.b32.xlu0 %v3348_v57, %s4868_s23  ;;  %v3385_v55 = vsel %vm515_vm0, %v3382_v4, %v3384_v10  ;;  %v3386_v13 = vrot.slane %v3372_v35, 1  ;;  %v1574_v49 = vrot.slane %v1562_v34, 2 }
 0x256   :  { %v3383_v45 = vsel %vm515_vm0, %v3381_v21, %v3382_v4  ;;  %v3410_v5 = vmul.f32 %v6658_v25, %v3408_v52  ;;  %v3411_v18 = vmul.f32 %v3408_v52, %v6580_v14  ;;  %v3409_v44 = vmul.f32 %v6669_v60, %v3408_v52  ;;  %v7189_v59 = vpop.permute.xlu1 %2625  ;;  %v7191_v10 = vpop.permute.xlu0 %2623 }
 0x257   :  { %v7185_v36 = vsel %vm1412_vm1, %v1546_v12, %v1547_v50  ;;  %v1566_v29 = vmul.f32 %v7037_v2, %v1560_v23  ;;  %v1564_v57 = vmul.f32 %v6901_v46, %v1560_v23  ;;  %9924 = vst [vmem:[#allocation164_spill] sm:$0xff] %v7189_v59  ;;  %9925 = vst [vmem:[#allocation56_spill] sm:$0xff] %v7191_v10  ;;  %v1576_v4 = vrot.slane %v1563_v28, 2 }
 0x258   :  { %9923 = vst [vmem:[#allocation55_spill] sm:$0xff] %v7185_v36  ;;  %v1573_v21 = vrot.slane %v1561_v39, 2  ;;  %v1592_v35 = vstv %s7146_s16  ;;  %v3390_v26 = vsel %vm515_vm0, %v3387_v30, %v3389_v58  ;;  %v3413_v50 = vmul.f32 %v6711_v54, %v3408_v52  ;;  %v9926_v58 = vld [vmem:[#allocation70_spill] sm:$0xff]  ;;  %s7679_s16 = sld [smem:[#allocation2 + $0x110]] }
 0x259   :  { %3393 = vrot.lane.b32.xlu1 %v3385_v55, %s4869_s4  ;;  %3391 = vrot.lane.b32.xlu0 %v3383_v45, %s4869_s4  ;;  %v3414_v12 = vmul.f32 %v3408_v52, %v6611_v32  ;;  %v3412_v23 = vmul.f32 %v6718_v37, %v3408_v52  ;;  %v3448_v34 = vstv %s7156_s17  ;;  %v3388_v10 = vsel %vm515_vm0, %v3386_v13, %v3387_v30  ;;  %v9929_v52 = vld [vmem:[#allocation71_spill] sm:$0xff]  ;;  %s7715_s17 = sld [smem:[#allocation2 + $0x289]] }
 0x25a   :  { %v3422_v28 = vrot.slane %v3410_v5, 1  ;;  %v3424_v39 = vrot.slane %v3411_v18, 1  ;;  %v3421_v59 = vrot.slane %v3409_v44, 1  ;;  %v7208_v36 = vadd.f32 %v9926_v58, %v6673_v43  ;;  %v7210_v17 = vpop.permute.xlu1 %2647  ;;  %v7212_v6 = vpop.permute.xlu0 %2645 }
 0x25b   :  { %v1579_v55 = vrot.slane %v1565_v1, 2  ;;  %v1581_v45 = vrot.slane %v1566_v29, 2  ;;  %v1578_v40 = vrot.slane %v1564_v57, 2  ;;  %9927 = vst [vmem:[#allocation15_spill] sm:$0xff] %v7210_v17  ;;  %9928 = vst [vmem:[#allocation57_spill] sm:$0xff] %v7212_v6  ;;  %v7216_v24 = vadd.f32 %v9929_v52, %v6676_v16  ;;  %v9941_v17 = vld [vmem:[#allocation74_spill] sm:$0xff] }
 0x25c   :  { %v7219_v5 = vmul.f32 %v6964_v8, %v1592_v35  ;;  %v3450_v44 = vmul.f32 %v6658_v25, %v3448_v34  ;;  %v3451_v30 = vmul.f32 %v3448_v34, %v6580_v14  ;;  %v3427_v43 = vrot.slane %v3413_v50, 1 }
 0x25d   :  { %3397 = vrot.lane.b32.xlu1 %v3390_v26, %s4869_s4  ;;  %3395 = vrot.lane.b32.xlu0 %v3388_v10, %s4869_s4  ;;  %v3429_v1 = vrot.slane %v3414_v12, 1  ;;  %v3426_v13 = vrot.slane %v3412_v23, 1  ;;  %v3449_v18 = vmul.f32 %v6669_v60, %v3448_v34  ;;  %v7227_v16 = vsel %vm1412_vm1, %v1574_v49, %v1576_v4  ;;  %v9932_v26 = vld [vmem:[#allocation72_spill] sm:$0xff] }
 0x25e   :  { %9930 = vst [vmem:[#allocation218_spill] sm:$0xff] %v7227_v16  ;;  %v7230_v29 = vsel %vm1412_vm1, %v1573_v21, %v1574_v49  ;;  %v3425_v57 = vsel %vm515_vm0, %v3422_v28, %v3424_v39  ;;  %v3423_v58 = vsel %vm515_vm0, %v3421_v59, %v3422_v28  ;;  %v7236_v52 = vadd.f32 %v9932_v26, %v6694_v27  ;;  %v7245_v12 = vpop.permute.xlu1 %2651  ;;  %v7247_v49 = vpop.permute.xlu0 %2649  ;;  %v9937_v21 = vld [vmem:[#allocation73_spill] sm:$0xff] }
 0x25f   :  { %9931 = vst [vmem:[#allocation219_spill] sm:$0xff] %v7230_v29  ;;  %v7239_v10 = vsel %vm1412_vm1, %v1579_v55, %v1581_v45  ;;  %v7242_v50 = vsel %vm1412_vm1, %v1578_v40, %v1579_v55  ;;  %v1595_v4 = vmul.f32 %v6991_v22, %v1592_v35  ;;  %9935 = vst [vmem:[#allocation167_spill] sm:$0xff] %v7245_v12  ;;  %v3462_v23 = vrot.slane %v3450_v44, 1 }
 0x260   :  { %9933 = vst [vmem:[#allocation220_spill] sm:$0xff] %v7239_v10  ;;  %9934 = vst [vmem:[#allocation8_spill] sm:$0xff] %v7242_v50  ;;  %v7251_v59 = vadd.f32 %v9937_v21, %v6697_v31  ;;  %v3464_v28 = vrot.slane %v3451_v30, 1  ;;  %v1624_v39 = vstv %s7195_s1  ;;  %v3430_v40 = vsel %vm515_vm0, %v3427_v43, %v3429_v1  ;;  %v9943_v50 = vld [vmem:[#allocation75_spill] sm:$0xff]  ;;  %s7723_s1 = sld [smem:[#allocation2 + $0x190]] }
 0x261   :  { %9936 = vst [vmem:[#allocation58_spill] sm:$0xff] %v7247_v49  ;;  %3433 = vrot.lane.b32.xlu1 %v3425_v57, %s4869_s4  ;;  %3431 = vrot.lane.b32.xlu0 %v3423_v58, %s4869_s4  ;;  %v3428_v55 = vsel %vm515_vm0, %v3426_v13, %v3427_v43  ;;  %v3461_v45 = vrot.slane %v3449_v18, 1  ;;  %v3453_v26 = vmul.f32 %v6711_v54, %v3448_v34  ;;  %v3488_v21 = vstv %s7204_s18  ;;  %s7770_s18 = sld [smem:[#allocation2 + $0x309]] }
 0x262   :  { %9938 = vst [vmem:[#allocation59_spill] sm:$0xff] %v7251_v59  ;;  %v3454_v49 = vmul.f32 %v3448_v34, %v6611_v32  ;;  %v3452_v31 = vmul.f32 %v6718_v37, %v3448_v34  ;;  %v1608_v27 = vrot.slane %v1595_v4, 2  ;;  %v1593_v44 = vmul.f32 %v6844_v11, %v1592_v35  ;;  %v7266_v58 = vpop.permute.xlu1 %2673  ;;  %v7268_v1 = vpop.permute.xlu0 %2671 }
 0x263   :  { %v1597_v30 = vmul.f32 %v6851_v9, %v1592_v35  ;;  %v1598_v57 = vmul.f32 %v7037_v2, %v1592_v35  ;;  %9939 = vst [vmem:[#allocation60_spill] sm:$0xff] %v7266_v58  ;;  %9940 = vst [vmem:[#allocation61_spill] sm:$0xff] %v7268_v1  ;;  %v1596_v43 = vmul.f32 %v6901_v46, %v1592_v35  ;;  %v3467_v35 = vrot.slane %v3453_v26, 1 }
 0x264   :  { %v7274_v13 = vmul.f32 %v6964_v8, %v1624_v39  ;;  %v1627_v34 = vmul.f32 %v6991_v22, %v1624_v39  ;;  %v3465_v18 = vsel %vm515_vm0, %v3462_v23, %v3464_v28  ;;  %v3490_v4 = vmul.f32 %v6658_v25, %v3488_v21  ;;  %v9942_v28 = vld [vmem:[#allocation24_spill] sm:$0xff] }
 0x265   :  { %3437 = vrot.lane.b32.xlu1 %v3430_v40, %s4869_s4  ;;  %3435 = vrot.lane.b32.xlu0 %v3428_v55, %s4869_s4  ;;  %v3491_v58 = vmul.f32 %v3488_v21, %v6580_v14  ;;  %v3489_v1 = vmul.f32 %v6669_v60, %v3488_v21  ;;  %v3463_v12 = vsel %vm515_vm0, %v3461_v45, %v3462_v23  ;;  %v3469_v6 = vrot.slane %v3454_v49, 1 }
 0x266   :  { %v3466_v8 = vrot.slane %v3452_v31, 1  ;;  %v7286_v22 = vadd.f32 %v9941_v17, %v6723_v7  ;;  %v7290_v40 = vadd.f32 %v9943_v50, %v9942_v28  ;;  %v1605_v55 = vrot.slane %v1593_v44, 2  ;;  %v7292_v29 = vpop.permute.xlu1 %2677  ;;  %v7294_v16 = vpop.permute.xlu0 %2675 }
 0x267   :  { %v1611_v10 = vrot.slane %v1597_v30, 2  ;;  %9944 = vst [vmem:[#allocation158_spill] sm:$0xff] %v7292_v29  ;;  %9945 = vst [vmem:[#allocation9_spill] sm:$0xff] %v7294_v16  ;;  %v9946_v59 = vrot.slane %v7219_v5, 2  ;;  %v1613_v49 = vrot.slane %v1598_v57, 2  ;;  %v3493_v45 = vmul.f32 %v6711_v54, %v3488_v21 }
 0x268   :  { %v3494_v7 = vmul.f32 %v3488_v21, %v6611_v32  ;;  %v1610_v17 = vrot.slane %v1596_v43, 2  ;;  %v3502_v50 = vrot.slane %v3490_v4, 1  ;;  %v3504_v26 = vrot.slane %v3491_v58, 1 }
 0x269   :  { %v7299_v23 = vsel %vm1412_vm1, %v9946_v59, %v1608_v27  ;;  %3473 = vrot.lane.b32.xlu1 %v3465_v18, %s4869_s4  ;;  %3471 = vrot.lane.b32.xlu0 %v3463_v12, %s4869_s4  ;;  %v3501_v31 = vrot.slane %v3489_v1, 1  ;;  %v1638_v44 = vrot.slane %v7274_v13, 2  ;;  %v3470_v59 = vsel %vm515_vm0, %v3467_v35, %v3469_v6 }
 0x26a   :  { %v3468_v27 = vsel %vm515_vm0, %v3466_v8, %v3467_v35  ;;  %v3492_v30 = vmul.f32 %v6718_v37, %v3488_v21  ;;  %v1640_v57 = vrot.slane %v1627_v34, 2  ;;  %v1625_v43 = vmul.f32 %v6844_v11, %v1624_v39  ;;  %v7313_v28 = vpop.permute.xlu1 %2699  ;;  %v7315_v12 = vpop.permute.xlu0 %2697 }
 0x26b   :  { %v1629_v18 = vmul.f32 %v6851_v9, %v1624_v39  ;;  %9947 = vst [vmem:[#allocation159_spill] sm:$0xff] %v7313_v28  ;;  %9948 = vst [vmem:[#allocation11_spill] sm:$0xff] %v7315_v12  ;;  %v3528_v58 = vstv %s7270_s19  ;;  %v1630_v1 = vmul.f32 %v7037_v2, %v1624_v39  ;;  %v1628_v13 = vmul.f32 %v6901_v46, %v1624_v39  ;;  %s7789_s19 = sld [smem:[#allocation2 + $0x210]] }
 0x26c   :  { %v3507_v4 = vrot.slane %v3493_v45, 1  ;;  %v3509_v6 = vrot.slane %v3494_v7, 1  ;;  %v9949_v35 = vrot.slane %v7219_v5, 2  ;;  %v3505_v11 = vsel %vm515_vm0, %v3502_v50, %v3504_v26 }
 0x26d   :  { %3477 = vrot.lane.b32.xlu1 %v3470_v59, %s4869_s4  ;;  %3475 = vrot.lane.b32.xlu0 %v3468_v27, %s4869_s4  ;;  %v3503_v9 = vsel %vm515_vm0, %v3501_v31, %v3502_v50  ;;  %v3506_v34 = vrot.slane %v3492_v30, 1  ;;  %v3530_v2 = vmul.f32 %v6658_v25, %v3528_v58  ;;  %v3531_v46 = vmul.f32 %v3528_v58, %v6580_v14 }
 0x26e   :  { %v7323_v21 = vsel %vm1412_vm1, %v1605_v55, %v9949_v35  ;;  %v3529_v39 = vmul.f32 %v6669_v60, %v3528_v58  ;;  %v7333_v5 = vsel %vm1412_vm1, %v1611_v10, %v1613_v49  ;;  %v7336_v8 = vsel %vm1412_vm1, %v1610_v17, %v1611_v10  ;;  %v7341_v7 = vpop.permute.xlu1 %2703  ;;  %v7343_v50 = vpop.permute.xlu0 %2701 }
 0x26f   :  { %v7339_v55 = vsel %vm1412_vm1, %v1638_v44, %v1640_v57  ;;  %v1637_v45 = vrot.slane %v1625_v43, 2  ;;  %9950 = vst [vmem:[#allocation62_spill] sm:$0xff] %v7341_v7  ;;  %9951 = vst [vmem:[#allocation63_spill] sm:$0xff] %v7343_v50  ;;  %v1643_v26 = vrot.slane %v1629_v18, 2  ;;  %v1645_v31 = vrot.slane %v1630_v1, 2  ;;  %v9952_v1 = vld [vmem:[#allocation76_spill] sm:$0xff] }
 0x270   :  { %v1642_v14 = vrot.slane %v1628_v13, 2  ;;  %v3510_v59 = vsel %vm515_vm0, %v3507_v4, %v3509_v6  ;;  %v3533_v10 = vmul.f32 %v6711_v54, %v3528_v58  ;;  %v3534_v49 = vmul.f32 %v3528_v58, %v6611_v32  ;;  %v9953_v6 = vld [vmem:[#allocation77_spill] sm:$0xff]  ;;  %v9954_v32 = vld [vmem:[#allocation78_spill] sm:$0xff] }
 0x271   :  { %3513 = vrot.lane.b32.xlu1 %v3505_v11, %s4869_s4  ;;  %3511 = vrot.lane.b32.xlu0 %v3503_v9, %s4869_s4  ;;  %v3532_v17 = vmul.f32 %v6718_v37, %v3528_v58  ;;  %v3568_v27 = vstv %s7305_s20  ;;  %v3508_v30 = vsel %vm515_vm0, %v3506_v34, %v3507_v4  ;;  %v3542_v57 = vrot.slane %v3530_v2, 1  ;;  %v9957_v34 = vld [vmem:[#allocation79_spill] sm:$0xff]  ;;  %s7814_s20 = sld [smem:[#allocation2 + $0x389]] }
 0x272   :  { %v3544_v43 = vrot.slane %v3531_v46, 1  ;;  %v3541_v18 = vrot.slane %v3529_v39, 1  ;;  %v7357_v13 = vadd.f32 %v9952_v1, %v6768_v20  ;;  %v7361_v35 = vadd.f32 %v9953_v6, %v6777_v62  ;;  %v7370_v4 = vpop.permute.xlu1 %2725  ;;  %v7372_v9 = vpop.permute.xlu0 %2723 }
 0x273   :  { %v7365_v11 = vadd.f32 %v9954_v32, %v6783_v56  ;;  %v7368_v58 = vsel %vm1412_vm1, %v1637_v45, %v1638_v44  ;;  %9955 = vst [vmem:[#allocation64_spill] sm:$0xff] %v7370_v4  ;;  %9956 = vst [vmem:[#allocation65_spill] sm:$0xff] %v7372_v9  ;;  %v7376_v2 = vadd.f32 %v9957_v34, %v6797_v38  ;;  %v7387_v56 = vld [vmem:[%s9499_s0 + $0x28] sm:$0x3]  ;;  %v3547_v38 = vrot.slane %v3533_v10, 1  ;;  %v9961_v10 = vld [vmem:[#allocation82_spill] sm:$0xff] }
 0x274   :  { %v7379_v20 = vsel %vm1412_vm1, %v1643_v26, %v1645_v31  ;;  %v3570_v62 = vmul.f32 %v6658_v25, %v3568_v27  ;;  %v3571_v44 = vmul.f32 %v7387_v56, %v3568_v27  ;;  %v3549_v46 = vrot.slane %v3534_v49, 1  ;;  %v9958_v31 = vld [vmem:[#allocation80_spill] sm:$0xff] }
 0x275   :  { %3517 = vrot.lane.b32.xlu1 %v3510_v59, %s4869_s4  ;;  %3515 = vrot.lane.b32.xlu0 %v3508_v30, %s4869_s4  ;;  %v3546_v39 = vrot.slane %v3532_v17, 1  ;;  %v3569_v45 = vmul.f32 %v6669_v60, %v3568_v27  ;;  %v7395_v1 = vadd.f32 %v9958_v31, %v6826_v53  ;;  %v7398_v25 = vsel %vm1412_vm1, %v1642_v14, %v1643_v26  ;;  %v9960_v59 = vld [vmem:[#allocation81_spill] sm:$0xff]  ;;  %v9962_v60 = vld [vmem:[#allocation83_spill] sm:$0xff]  ;;  %v9963_v53 = vld [vmem:[#allocation84_spill] sm:$0xff] }
 0x276   :  { %9959 = vst [vmem:[#allocation66_spill] sm:$0xff] %v7398_v25  ;;  %v3545_v6 = vsel %vm515_vm0, %v3542_v57, %v3544_v43  ;;  %v3543_v32 = vsel %vm515_vm0, %v3541_v18, %v3542_v57  ;;  %v7404_v34 = vadd.f32 %v9960_v59, %v6839_v15  ;;  %v7408_v49 = vadd.f32 %v9961_v10, %v6873_v33  ;;  %v7418_v14 = vpop.permute.xlu1 %2729  ;;  %v7420_v30 = vpop.permute.xlu0 %2727  ;;  %v9966_v15 = vld [vmem:[#allocation85_spill] sm:$0xff]  ;;  %v9967_v33 = vld [vmem:[#allocation86_spill] sm:$0xff]  ;;  %v9968_v31 = vld [vmem:[#allocation87_spill] sm:$0xff] }
 0x277   :  { %v7412_v17 = vadd.f32 %v9962_v60, %v6876_v19  ;;  %v7416_v26 = vadd.f32 %v9963_v53, %v6893_v41  ;;  %9964 = vst [vmem:[#allocation67_spill] sm:$0xff] %v7418_v14  ;;  %9965 = vst [vmem:[#allocation19_spill] sm:$0xff] %v7420_v30  ;;  %v7424_v57 = vadd.f32 %v9966_v15, %v6896_v61  ;;  %v3582_v18 = vrot.slane %v3570_v62, 1  ;;  %v9973_v53 = vld [vmem:[#allocation91_spill] sm:$0xff]  ;;  %v9981_v30 = vld [vmem:[#allocation197_spill] sm:$0xff] }
 0x278   :  { %v7428_v43 = vadd.f32 %v9967_v33, %v6943_v63  ;;  %v3584_v19 = vrot.slane %v3571_v44, 1  ;;  %v7432_v59 = vadd.f32 %v9968_v31, %v6946_v47  ;;  %v3550_v41 = vsel %vm515_vm0, %v3547_v38, %v3549_v46  ;;  %v7442_v63 = vld [vmem:[%s9499_s0 + $0x58] sm:$0x3]  ;;  %v9982_v14 = vld [vmem:[#allocation93_spill] sm:$0xff] }
 0x279   :  { %3553 = vrot.lane.b32.xlu1 %v3545_v6, %s4869_s4  ;;  %3551 = vrot.lane.b32.xlu0 %v3543_v32, %s4869_s4  ;;  %v3548_v10 = vsel %vm515_vm0, %v3546_v39, %v3547_v38  ;;  %v3581_v61 = vrot.slane %v3569_v45, 1  ;;  %v3573_v60 = vmul.f32 %v6711_v54, %v3568_v27  ;;  %v3574_v47 = vmul.f32 %v7442_v63, %v3568_v27  ;;  %v9969_v6 = vld [vmem:[#allocation88_spill] sm:$0xff]  ;;  %v9970_v38 = vld [vmem:[#allocation89_spill] sm:$0xff]  ;;  %v9971_v54 = vld [vmem:[#allocation90_spill] sm:$0xff] }
 0x27a   :  { %v3572_v62 = vmul.f32 %v6718_v37, %v3568_v27  ;;  %v3608_v44 = vstv %s7353_s21  ;;  %v7449_v32 = vadd.f32 %v9969_v6, %v6949_v42  ;;  %v7453_v46 = vadd.f32 %v9970_v38, %v6959_v0  ;;  %v9972_v45 = vld [vmem:[#allocation195_spill] sm:$0xff]  ;;  %v7463_v33 = vpop.permute.xlu1 %2751  ;;  %v9976_v42 = vld [vmem:[#allocation198_spill] sm:$0xff]  ;;  %s7870_s21 = sld [smem:[#allocation2 + $0x290]] }
 0x27b   :  { %v7457_v39 = vadd.f32 %v9971_v54, %v7007_v3  ;;  %v7461_v15 = vadd.f32 %v9973_v53, %v9972_v45  ;;  %9974 = vst [vmem:[#allocation68_spill] sm:$0xff] %v7463_v33  ;;  %v7465_v37 = vpop.permute.xlu0 %2749  ;;  %v9977_v27 = vld [vmem:[#allocation94_spill] sm:$0xff]  ;;  %v9978_v0 = vld [vmem:[#allocation95_spill] sm:$0xff]  ;;  %v2296_v38 = vstv %s7381_s22  ;;  %v3585_v3 = vsel %vm515_vm0, %v3582_v18, %v3584_v19  ;;  %v7482_v54 = vld [vmem:[%s9499_s0 + $0x20] sm:$0xff]  ;;  %s7915_s22 = sld [smem:[#allocation2 + $0x310]] }
 0x27c   :  { %9975 = vst [vmem:[#allocation171_spill] sm:$0xff] %v7465_v37  ;;  %v1115_v31 = vadd.f32 %v9977_v27, %v9976_v42  ;;  %v1114_v6 = vadd.f32 %v9978_v0, %v7075_v51  ;;  %v3610_v45 = vmul.f32 %v7482_v54, %v3608_v44  ;;  %v3611_v53 = vmul.f32 %v7387_v56, %v3608_v44  ;;  %v7489_v51 = vld [vmem:[%s9499_s0 + $0x18] sm:$0xff]  ;;  %v9979_v0 = vld [vmem:[#allocation196_spill] sm:$0xff] }
 0x27d   :  { %3557 = vrot.lane.b32.xlu1 %v3550_v41, %s4869_s4  ;;  %3555 = vrot.lane.b32.xlu0 %v3548_v10, %s4869_s4  ;;  %v3609_v19 = vmul.f32 %v7489_v51, %v3608_v44  ;;  %v3583_v41 = vsel %vm515_vm0, %v3581_v61, %v3582_v18  ;;  %v3587_v42 = vrot.slane %v3573_v60, 1  ;;  %v3589_v10 = vrot.slane %v3574_v47, 1  ;;  %v9980_v37 = vld [vmem:[#allocation92_spill] sm:$0xff]  ;;  %v9987_v61 = vld [vmem:[#allocation18_spill] sm:$0xff] }
 0x27e   :  { %v3586_v27 = vrot.slane %v3572_v62, 1  ;;  %v7495_v33 = vadd.f32 %v9980_v37, %v9979_v0  ;;  %v7499_v9 = vadd.f32 %v9982_v14, %v9981_v30  ;;  %v7502_v4 = vmul.f32 %v7482_v54, %v2296_v38  ;;  %v7507_v7 = vpop.permute.xlu1 %2755  ;;  %v9988_v47 = vld [vmem:[#allocation170_spill] sm:$0xff]  ;;  %v9989_v0 = vld [vmem:[#allocation96_spill] sm:$0xff] }
 0x27f   :  { %v7505_v50 = vmul.f32 %v7489_v51, %v2296_v38  ;;  %9985 = vst [vmem:[#allocation71_spill] sm:$0xff] %v7507_v7  ;;  %v7509_v18 = vpop.permute.xlu0 %2753  ;;  %v7512_v60 = vadd.f32 %v9987_v61, %v1115_v31  ;;  %v7515_v62 = vadd.f32 %v9988_v47, %v1114_v6  ;;  %v7520_v14 = vld [vmem:[%s9499_s0 + $0x50] sm:$0xff]  ;;  %v3614_v37 = vmul.f32 %v7442_v63, %v3608_v44  ;;  %v9990_v47 = vld [vmem:[#allocation49_spill] sm:$0xff] }
 0x280   :  { %9983 = vst [vmem:[#allocation69_spill] sm:$0xff] %v7502_v4  ;;  %9986 = vst [vmem:[#allocation72_spill] sm:$0xff] %v7509_v18  ;;  %v3613_v30 = vmul.f32 %v7520_v14, %v3608_v44  ;;  %v1117_v7 = vadd.f32 %v9989_v0, %v7084_v48  ;;  %v3622_v31 = vrot.slane %v3610_v45, 1  ;;  %v3624_v6 = vrot.slane %v3611_v53, 1  ;;  %v9991_v18 = vld [vmem:[#allocation97_spill] sm:$0xff]  ;;  %v9992_v45 = vld [vmem:[#allocation51_spill] sm:$0xff] }
 0x281   :  { %9984 = vst [vmem:[#allocation70_spill] sm:$0xff] %v7505_v50  ;;  %3593 = vrot.lane.b32.xlu1 %v3585_v3, %s4869_s4  ;;  %3591 = vrot.lane.b32.xlu0 %v3583_v41, %s4869_s4  ;;  %v3621_v61 = vrot.slane %v3609_v19, 1  ;;  %v1116_v12 = vadd.f32 %v9991_v18, %v9990_v47  ;;  %v3590_v28 = vsel %vm515_vm0, %v3587_v42, %v3589_v10  ;;  %v7537_v48 = vld [vmem:[%s9499_s0 + $0x48] sm:$0xff]  ;;  %v9993_v53 = vld [vmem:[#allocation98_spill] sm:$0xff]  ;;  %v9999_v47 = vld [vmem:[#allocation99_spill] sm:$0xff]  ;;  %v3629_v4 = vrot.slane %v3614_v37, 1 }
 0x282   :  { %v3588_v16 = vsel %vm515_vm0, %v3586_v27, %v3587_v42  ;;  %v3612_v3 = vmul.f32 %v7537_v48, %v3608_v44  ;;  %v1155_v41 = vadd.f32 %v9993_v53, %v9992_v45  ;;  %v7543_v19 = vmul.f32 %v7520_v14, %v2296_v38  ;;  %v7550_v10 = vpop.permute.xlu1 %2777  ;;  %v9998_v18 = vld [vmem:[#allocation161_spill] sm:$0xff] }
 0x283   :  { %v7546_v0 = vmul.f32 %v7537_v48, %v2296_v38  ;;  %9996 = vst [vmem:[#allocation24_spill] sm:$0xff] %v7550_v10  ;;  %v7552_v42 = vpop.permute.xlu0 %2775  ;;  %v3648_v27 = vstv %s7467_s28  ;;  %v1154_v29 = vadd.f32 %v9999_v47, %v9998_v18  ;;  %v2306_v44 = vstv %s7474_s29  ;;  %v10000_v45 = vld [vmem:[#allocation21_spill] sm:$0xff]  ;;  %s8169_s28 = sld [smem:[#allocation2 + $0x8c]]  ;;  %s8215_s29 = sld [smem:[#allocation2 + $0x111]] }
 0x284   :  { %9994 = vst [vmem:[#allocation73_spill] sm:$0xff] %v7543_v19  ;;  %9997 = vst [vmem:[#allocation75_spill] sm:$0xff] %v7552_v42  ;;  %v3627_v50 = vrot.slane %v3613_v30, 1  ;;  %v7559_v53 = vadd.f32 %v10000_v45, %v1117_v7  ;;  %v3625_v38 = vsel %vm515_vm0, %v3622_v31, %v3624_v6  ;;  %v3623_v10 = vsel %vm515_vm0, %v3621_v61, %v3622_v31  ;;  %v10002_v30 = vld [vmem:[#allocation174_spill] sm:$0xff]  ;;  %v10004_v7 = vld [vmem:[#allocation175_spill] sm:$0xff] }
 0x285   :  { %9995 = vst [vmem:[#allocation74_spill] sm:$0xff] %v7546_v0  ;;  %3597 = vrot.lane.b32.xlu1 %v3590_v28, %s4869_s4  ;;  %3595 = vrot.lane.b32.xlu0 %v3588_v16, %s4869_s4  ;;  %v3626_v0 = vrot.slane %v3612_v3, 1  ;;  %v3650_v42 = vmul.f32 %v7482_v54, %v3648_v27  ;;  %v3651_v19 = vmul.f32 %v7387_v56, %v3648_v27  ;;  %v10009_v61 = vld [vmem:[#allocation212_spill] sm:$0xff] }
 0x286   :  { %10001 = vst [vmem:[#allocation76_spill] sm:$0xff] %v7559_v53  ;;  %v3649_v18 = vmul.f32 %v7489_v51, %v3648_v27  ;;  %v7569_v37 = vadd.f32 %v10002_v30, %v1116_v12  ;;  %v7572_v47 = vadd.f32 %v10004_v7, %v1155_v41  ;;  %v7575_v16 = vmul.f32 %v7482_v54, %v2306_v44  ;;  %v7580_v31 = vpop.permute.xlu1 %2781  ;;  %v10010_v3 = vld [vmem:[#allocation100_spill] sm:$0xff]  ;;  %v10011_v53 = vld [vmem:[#allocation213_spill] sm:$0xff] }
 0x287   :  { %v7578_v28 = vmul.f32 %v7489_v51, %v2306_v44  ;;  %10007 = vst [vmem:[#allocation80_spill] sm:$0xff] %v7580_v31  ;;  %v7582_v6 = vpop.permute.xlu0 %2779  ;;  %v1157_v45 = vadd.f32 %v10010_v3, %v10009_v61  ;;  %v10012_v12 = vld [vmem:[#allocation101_spill] sm:$0xff]  ;;  %v3630_v41 = vsel %vm515_vm0, %v3627_v50, %v3629_v4  ;;  %v3653_v7 = vmul.f32 %v7520_v14, %v3648_v27  ;;  %v10015_v4 = vld [vmem:[#allocation102_spill] sm:$0xff] }
 0x288   :  { %10003 = vst [vmem:[#allocation77_spill] sm:$0xff] %v7569_v37  ;;  %10005 = vst [vmem:[#allocation78_spill] sm:$0xff] %v7575_v16  ;;  %v1156_v30 = vadd.f32 %v10012_v12, %v10011_v53  ;;  %v10013_v37 = vld [vmem:[#allocation179_spill] sm:$0xff]  ;;  %v3652_v61 = vmul.f32 %v7537_v48, %v3648_v27  ;;  %v3944_v3 = vstv %s7528_s9  ;;  %v3628_v53 = vsel %vm515_vm0, %v3626_v0, %v3627_v50  ;;  %v10020_v50 = vld [vmem:[#allocation32_spill] sm:$0xff] }
 0x289   :  { %10006 = vst [vmem:[#allocation79_spill] sm:$0xff] %v7578_v28  ;;  %10008 = vst [vmem:[#allocation81_spill] sm:$0xff] %v7582_v6  ;;  %v7589_v25 = vadd.f32 %v10013_v37, %v1154_v29  ;;  %3633 = vrot.lane.b32.xlu1 %v3625_v38, %s4869_s4  ;;  %3631 = vrot.lane.b32.xlu0 %v3623_v10, %s4869_s4  ;;  %v3654_v6 = vmul.f32 %v7442_v63, %v3648_v27  ;;  %v3662_v29 = vrot.slane %v3650_v42, 1  ;;  %v10016_v38 = vld [vmem:[#allocation103_spill] sm:$0xff] }
 0x28a   :  { %v3664_v37 = vrot.slane %v3651_v19, 1  ;;  %v3661_v12 = vrot.slane %v3649_v18, 1  ;;  %v1195_v31 = vadd.f32 %v10015_v4, %v7208_v36  ;;  %v1194_v10 = vadd.f32 %v10016_v38, %v7216_v24 }
 0x28b   :  { %10014 = vst [vmem:[#allocation82_spill] sm:$0xff] %v7589_v25  ;;  %v7608_v28 = vmul.f32 %v7520_v14, %v2306_v44  ;;  %v2316_v16 = vstv %s7548_s12  ;;  %v7611_v25 = vpop.permute.xlu1 %3073  ;;  %v7613_v27 = vpop.permute.xlu0 %3071  ;;  %v7616_v0 = vadd.f32 %v10020_v50, %v1157_v45  ;;  %v7619_v19 = vmul.f32 %v7537_v48, %v2306_v44 }
 0x28c   :  { %10018 = vst [vmem:[#allocation84_spill] sm:$0xff] %v7611_v25  ;;  %10019 = vst [vmem:[#allocation85_spill] sm:$0xff] %v7613_v27  ;;  %v3946_v42 = vmul.f32 %v7482_v54, %v3944_v3  ;;  %v3947_v36 = vmul.f32 %v7387_v56, %v3944_v3  ;;  %v3667_v24 = vrot.slane %v3653_v7, 1  ;;  %v3669_v18 = vrot.slane %v3654_v6, 1  ;;  %v10022_v27 = vld [vmem:[#allocation33_spill] sm:$0xff] }
 0x28d   :  { %10017 = vst [vmem:[#allocation83_spill] sm:$0xff] %v7608_v28  ;;  %10021 = vst [vmem:[#allocation86_spill] sm:$0xff] %v7619_v19  ;;  %3637 = vrot.lane.b32.xlu1 %v3630_v41, %s4869_s4  ;;  %3635 = vrot.lane.b32.xlu0 %v3628_v53, %s4869_s4  ;;  %v3666_v4 = vrot.slane %v3652_v61, 1  ;;  %v3945_v38 = vmul.f32 %v7489_v51, %v3944_v3  ;;  %v7627_v45 = vadd.f32 %v10022_v27, %v1156_v30  ;;  %v10024_v41 = vld [vmem:[#allocation104_spill] sm:$0xff]  ;;  %v10025_v53 = vld [vmem:[#allocation185_spill] sm:$0xff] }
 0x28e   :  { %v7630_v44 = vmul.f32 %v7482_v54, %v2316_v16  ;;  %v3665_v50 = vsel %vm515_vm0, %v3662_v29, %v3664_v37  ;;  %v3663_v25 = vsel %vm515_vm0, %v3661_v12, %v3662_v29  ;;  %v1197_v19 = vadd.f32 %v10024_v41, %v7236_v52  ;;  %v10026_v6 = vld [vmem:[#allocation37_spill] sm:$0xff]  ;;  %v10031_v37 = vld [vmem:[#allocation59_spill] sm:$0xff] }
 0x28f   :  { %v7637_v7 = vadd.f32 %v10025_v53, %v1195_v31  ;;  %v7640_v61 = vadd.f32 %v10026_v6, %v1194_v10  ;;  %v7643_v28 = vmul.f32 %v7489_v51, %v2316_v16  ;;  %v7645_v30 = vpop.permute.xlu1 %3077  ;;  %v7647_v27 = vpop.permute.xlu0 %3075  ;;  %v7652_v12 = vmul.f32 %v7520_v14, %v2316_v16 }
 0x290   :  { %10023 = vst [vmem:[#allocation87_spill] sm:$0xff] %v7630_v44  ;;  %10029 = vst [vmem:[#allocation90_spill] sm:$0xff] %v7645_v30  ;;  %v10032_v44 = vld [vmem:[#allocation105_spill] sm:$0xff]  ;;  %v3958_v52 = vrot.slane %v3946_v42, 2  ;;  %v3960_v31 = vrot.slane %v3947_v36, 2  ;;  %v2326_v10 = vstv %s7592_s13  ;;  %v3670_v41 = vsel %vm515_vm0, %v3667_v24, %v3669_v18  ;;  %v10034_v42 = vld [vmem:[#allocation106_spill] sm:$0xff] }
 0x291   :  { %10027 = vst [vmem:[#allocation88_spill] sm:$0xff] %v7640_v61  ;;  %10028 = vst [vmem:[#allocation89_spill] sm:$0xff] %v7643_v28  ;;  %v1196_v29 = vadd.f32 %v10032_v44, %v10031_v37  ;;  %3673 = vrot.lane.b32.xlu1 %v3665_v50, %s4869_s4  ;;  %3671 = vrot.lane.b32.xlu0 %v3663_v25, %s4869_s4  ;;  %v3668_v53 = vsel %vm515_vm0, %v3666_v4, %v3667_v24  ;;  %v3957_v6 = vrot.slane %v3945_v38, 2  ;;  %v10036_v28 = vld [vmem:[#allocation191_spill] sm:$0xff] }
 0x292   :  { %10030 = vst [vmem:[#allocation195_spill] sm:$0xff] %v7647_v27  ;;  %10033 = vst [vmem:[#allocation91_spill] sm:$0xff] %v7652_v12  ;;  %v3949_v27 = vmul.f32 %v7520_v14, %v3944_v3  ;;  %v3950_v44 = vmul.f32 %v7442_v63, %v3944_v3  ;;  %v3948_v37 = vmul.f32 %v7537_v48, %v3944_v3  ;;  %v3984_v30 = vstv %s7601_s14  ;;  %v10035_v12 = vld [vmem:[#allocation107_spill] sm:$0xff]  ;;  %s9392_s14 = sld [smem:[#allocation2 + $0x38f]] }
 0x293   :  { %v1235_v36 = vadd.f32 %v10034_v42, %v7286_v22  ;;  %v1234_v50 = vadd.f32 %v10035_v12, %v7290_v40  ;;  %v7670_v25 = vadd.f32 %v10036_v28, %v1197_v19  ;;  %v7673_v18 = vmul.f32 %v7537_v48, %v2316_v16  ;;  %v7675_v24 = vpop.permute.xlu1 %3113  ;;  %v7677_v4 = vpop.permute.xlu0 %3111  ;;  %v10041_v3 = vld [vmem:[#allocation39_spill] sm:$0xff] }
 0x294   :  { %10039 = vst [vmem:[#allocation95_spill] sm:$0xff] %v7675_v24  ;;  %10040 = vst [vmem:[#allocation196_spill] sm:$0xff] %v7677_v4  ;;  %v7682_v38 = vadd.f32 %v10041_v3, %v1196_v29  ;;  %v7685_v22 = vmul.f32 %v7482_v54, %v2326_v10  ;;  %v7688_v40 = vmul.f32 %v7489_v51, %v2326_v10  ;;  %v3963_v42 = vrot.slane %v3949_v27, 2  ;;  %v10045_v24 = vld [vmem:[#allocation108_spill] sm:$0xff] }
 0x295   :  { %10037 = vst [vmem:[#allocation198_spill] sm:$0xff] %v7670_v25  ;;  %10038 = vst [vmem:[#allocation94_spill] sm:$0xff] %v7673_v18  ;;  %v3961_v28 = vsel %vm1412_vm1, %v3958_v52, %v3960_v31  ;;  %3677 = vrot.lane.b32.xlu1 %v3670_v41, %s4869_s4  ;;  %3675 = vrot.lane.b32.xlu0 %v3668_v53, %s4869_s4  ;;  %v3986_v16 = vmul.f32 %v7482_v54, %v3984_v30  ;;  %v3965_v3 = vrot.slane %v3950_v44, 2  ;;  %v10046_v31 = vld [vmem:[#allocation109_spill] sm:$0xff]  ;;  %v10048_v53 = vld [vmem:[#allocation46_spill] sm:$0xff] }
 0x296   :  { %10042 = vst [vmem:[#allocation92_spill] sm:$0xff] %v7682_v38  ;;  %10043 = vst [vmem:[#allocation197_spill] sm:$0xff] %v7685_v22  ;;  %v3987_v19 = vmul.f32 %v7387_v56, %v3984_v30  ;;  %v3985_v29 = vmul.f32 %v7489_v51, %v3984_v30  ;;  %v3959_v12 = vsel %vm1412_vm1, %v3957_v6, %v3958_v52  ;;  %v3962_v4 = vrot.slane %v3948_v37, 2  ;;  %v10047_v22 = vld [vmem:[#allocation201_spill] sm:$0xff]  ;;  %v10051_v6 = vld [vmem:[#allocation110_spill] sm:$0xff] }
 0x297   :  { %10044 = vst [vmem:[#allocation93_spill] sm:$0xff] %v7688_v40  ;;  %v1237_v40 = vadd.f32 %v10045_v24, %v7357_v13  ;;  %v1236_v41 = vadd.f32 %v10046_v31, %v7361_v35  ;;  %v7702_v18 = vadd.f32 %v10047_v22, %v1235_v36  ;;  %v7705_v38 = vadd.f32 %v10048_v53, %v1234_v50  ;;  %v7707_v25 = vpop.permute.xlu1 %3117  ;;  %v7709_v61 = vpop.permute.xlu0 %3115 }
 0x298   :  { %10049 = vst [vmem:[#allocation18_spill] sm:$0xff] %v7707_v25  ;;  %10050 = vst [vmem:[#allocation170_spill] sm:$0xff] %v7709_v61  ;;  %v7712_v27 = vmul.f32 %v7520_v14, %v2326_v10  ;;  %v2336_v52 = vstv %s7654_s15  ;;  %v3989_v13 = vmul.f32 %v7520_v14, %v3984_v30  ;;  %v3990_v35 = vmul.f32 %v7442_v63, %v3984_v30  ;;  %s4870_s15 = smov [#allocation5]  }
 0x299   :  { %v1275_v44 = vadd.f32 %v10051_v6, %v7365_v11  ;;  %3969 = vrot.lane.b32.xlu1 %v3961_v28, %s4868_s23  ;;  %3967 = vrot.lane.b32.xlu0 %v3959_v12, %s4868_s23  ;;  %v3998_v37 = vrot.slane %v3986_v16, 2  ;;  %v4000_v36 = vrot.slane %v3987_v19, 2  ;;  %v3997_v50 = vrot.slane %v3985_v29, 2  ;;  %v10052_v11 = vld [vmem:[#allocation111_spill] sm:$0xff]  ;;  %v10053_v28 = vld [vmem:[#allocation50_spill] sm:$0xff]  ;;  %v10054_v16 = vld [vmem:[#allocation52_spill] sm:$0xff] }
 0x29a   :  { %v7726_v24 = vmul.f32 %v7537_v48, %v2326_v10  ;;  %v3966_v22 = vsel %vm1412_vm1, %v3963_v42, %v3965_v3  ;;  %v3964_v31 = vsel %vm1412_vm1, %v3962_v4, %v3963_v42  ;;  %v3988_v53 = vmul.f32 %v7537_v48, %v3984_v30 }
 0x29b   :  { %v1274_v6 = vadd.f32 %v10052_v11, %v7376_v2  ;;  %v7734_v61 = vadd.f32 %v10053_v28, %v1237_v40  ;;  %v7737_v19 = vadd.f32 %v10054_v16, %v1236_v41  ;;  %v7739_v29 = vpop.permute.xlu1 %3153  ;;  %v7741_v12 = vpop.permute.xlu0 %3151  ;;  %v4024_v10 = vstv %s7679_s16  ;;  %v10059_v2 = vld [vmem:[#allocation12_spill] sm:$0xff]  ;;  %s4628_s16 = sshll.u32 %s4870_s15, 4  ;;  %s4629_s16 = int_to_ptr.vmem [resolvable:$true] %s4628_s16 }
 0x29c   :  { %10055 = vst [vmem:[#allocation96_spill] sm:$0xff] %v7739_v29  ;;  %10056 = vst [vmem:[#allocation49_spill] sm:$0xff] %v7741_v12  ;;  %v7745_v3 = vmul.f32 %v7482_v54, %v2336_v52  ;;  %v7748_v4 = vmul.f32 %v7489_v51, %v2336_v52  ;;  %v4003_v30 = vrot.slane %v3989_v13, 2  ;;  %v4005_v42 = vrot.slane %v3990_v35, 2  ;;  %v10060_v35 = vld [vmem:[#allocation112_spill] sm:$0xff]  ;;  %p4846_p6 = scmp.lt.s32.totalorder %s4629_s16, %s4629_s16 }
 0x29d   :  { %v7751_v11 = vadd.f32 %v10059_v2, %v1275_v44  ;;  %3973 = vrot.lane.b32.xlu1 %v3966_v22, %s4868_s23  ;;  %3971 = vrot.lane.b32.xlu0 %v3964_v31, %s4868_s23  ;;  %v4001_v40 = vsel %vm1412_vm1, %v3998_v37, %v4000_v36  ;;  %v3999_v41 = vsel %vm1412_vm1, %v3997_v50, %v3998_v37  ;;  %v4002_v28 = vrot.slane %v3988_v53, 2  ;;  %v10061_v2 = vld [vmem:[#allocation113_spill] sm:$0xff]  ;;  %v10066_v53 = vld [vmem:[#allocation114_spill] sm:$0xff] }
 0x29e   :  { %10057 = vst [vmem:[#allocation97_spill] sm:$0xff] %v7745_v3  ;;  %10058 = vst [vmem:[#allocation51_spill] sm:$0xff] %v7748_v4  ;;  %v4026_v16 = vmul.f32 %v7482_v54, %v4024_v10  ;;  %v4027_v12 = vmul.f32 %v7387_v56, %v4024_v10  ;;  %v4025_v13 = vmul.f32 %v7489_v51, %v4024_v10  ;;  %v10062_v31 = vld [vmem:[#allocation53_spill] sm:$0xff]  ;;  %v2346_v4 = vstv %s7715_s17  ;;  %s8425_s17 = sld [smem:[#allocation2 + $0x291]] }
 0x29f   :  { %v1277_v44 = vadd.f32 %v10060_v35, %v7395_v1  ;;  %v1276_v22 = vadd.f32 %v10061_v2, %v7404_v34  ;;  %v7765_v29 = vadd.f32 %v10062_v31, %v1274_v6  ;;  %v7768_v36 = vmul.f32 %v7520_v14, %v2336_v52  ;;  %v7772_v37 = vpop.permute.xlu1 %3157  ;;  %v7774_v50 = vpop.permute.xlu0 %3155  ;;  %v10067_v1 = vld [vmem:[#allocation115_spill] sm:$0xff] }
 0x2a0   :  { %10064 = vst [vmem:[#allocation161_spill] sm:$0xff] %v7772_v37  ;;  %10065 = vst [vmem:[#allocation99_spill] sm:$0xff] %v7774_v50  ;;  %v1315_v25 = vadd.f32 %v10066_v53, %v7408_v49  ;;  %v1314_v35 = vadd.f32 %v10067_v1, %v7412_v17  ;;  %v4006_v34 = vsel %vm1412_vm1, %v4003_v30, %v4005_v42  ;;  %v4064_v50 = vstv %s7723_s1  ;;  %v10068_v17 = vld [vmem:[#allocation13_spill] sm:$0xff]  ;;  %s8450_s1 = sld [smem:[#allocation2 + $0x38c]] }
 0x2a1   :  { %10063 = vst [vmem:[#allocation98_spill] sm:$0xff] %v7768_v36  ;;  %4009 = vrot.lane.b32.xlu1 %v4001_v40, %s4868_s23  ;;  %4007 = vrot.lane.b32.xlu0 %v3999_v41, %s4868_s23  ;;  %v4029_v6 = vmul.f32 %v7520_v14, %v4024_v10  ;;  %v4030_v2 = vmul.f32 %v7442_v63, %v4024_v10  ;;  %v4038_v49 = vrot.slane %v4026_v16, 2  ;;  %v4040_v53 = vrot.slane %v4027_v12, 2  ;;  %v10069_v40 = vld [vmem:[#allocation55_spill] sm:$0xff]  ;;  %v10074_v12 = vld [vmem:[#allocation116_spill] sm:$0xff] }
 0x2a2   :  { %v4028_v31 = vmul.f32 %v7537_v48, %v4024_v10  ;;  %v4004_v37 = vsel %vm1412_vm1, %v4002_v28, %v4003_v30  ;;  %v4037_v36 = vrot.slane %v4025_v13, 2  ;;  %v7792_v42 = vadd.f32 %v10068_v17, %v1277_v44 }
 0x2a3   :  { %v7795_v1 = vadd.f32 %v10069_v40, %v1276_v22  ;;  %v7798_v41 = vmul.f32 %v7537_v48, %v2336_v52  ;;  %v7801_v3 = vmul.f32 %v7482_v54, %v2346_v4  ;;  %v7803_v10 = vpop.permute.xlu1 %3193  ;;  %v7805_v30 = vpop.permute.xlu0 %3191  ;;  %v1317_v28 = vadd.f32 %v10074_v12, %v7416_v26  ;;  %v10076_v26 = vld [vmem:[#allocation218_spill] sm:$0xff] }
 0x2a4   :  { %10072 = vst [vmem:[#allocation175_spill] sm:$0xff] %v7803_v10  ;;  %10073 = vst [vmem:[#allocation212_spill] sm:$0xff] %v7805_v30  ;;  %v7810_v16 = vmul.f32 %v7489_v51, %v2346_v4  ;;  %v4066_v13 = vmul.f32 %v7482_v54, %v4064_v50  ;;  %v4067_v44 = vmul.f32 %v7387_v56, %v4064_v50  ;;  %v4043_v52 = vrot.slane %v4029_v6, 2  ;;  %v10077_v30 = vld [vmem:[#allocation219_spill] sm:$0xff] }
 0x2a5   :  { %10070 = vst [vmem:[#allocation21_spill] sm:$0xff] %v7798_v41  ;;  %10071 = vst [vmem:[#allocation174_spill] sm:$0xff] %v7801_v3  ;;  %4013 = vrot.lane.b32.xlu1 %v4006_v34, %s4868_s23  ;;  %4011 = vrot.lane.b32.xlu0 %v4004_v37, %s4868_s23  ;;  %v4045_v22 = vrot.slane %v4030_v2, 2  ;;  %v4042_v17 = vrot.slane %v4028_v31, 2  ;;  %v4065_v40 = vmul.f32 %v7489_v51, %v4064_v50  ;;  %v10078_v41 = vld [vmem:[#allocation117_spill] sm:$0xff]  ;;  %v2356_v2 = vstv %s7770_s18  ;;  %s8476_s18 = sld [smem:[#allocation2 + $0x311]] }
 0x2a6   :  { %10075 = vst [vmem:[#allocation100_spill] sm:$0xff] %v7810_v16  ;;  %v7820_v12 = vadd.f32 %v10076_v26, %v1315_v25  ;;  %v7823_v10 = vadd.f32 %v10077_v30, %v1314_v35  ;;  %v4041_v16 = vsel %vm1412_vm1, %v4038_v49, %v4040_v53  ;;  %v4039_v3 = vsel %vm1412_vm1, %v4037_v36, %v4038_v49  ;;  %v10082_v35 = vld [vmem:[#allocation118_spill] sm:$0xff]  ;;  %v10083_v36 = vld [vmem:[#allocation119_spill] sm:$0xff] }
 0x2a7   :  { %v1316_v34 = vadd.f32 %v10078_v41, %v7424_v57  ;;  %v7830_v37 = vmul.f32 %v7520_v14, %v2346_v4  ;;  %v7833_v6 = vmul.f32 %v7537_v48, %v2346_v4  ;;  %v7836_v25 = vpop.permute.xlu1 %3197  ;;  %v7838_v31 = vpop.permute.xlu0 %3195  ;;  %v1355_v53 = vadd.f32 %v10082_v35, %v7428_v43  ;;  %v10084_v41 = vld [vmem:[#allocation220_spill] sm:$0xff] }
 0x2a8   :  { %10080 = vst [vmem:[#allocation101_spill] sm:$0xff] %v7836_v25  ;;  %10081 = vst [vmem:[#allocation179_spill] sm:$0xff] %v7838_v31  ;;  %v1354_v49 = vadd.f32 %v10083_v36, %v7432_v59  ;;  %v4078_v30 = vrot.slane %v4066_v13, 2  ;;  %v4080_v57 = vrot.slane %v4067_v44, 2  ;;  %v7845_v26 = vadd.f32 %v10084_v41, %v1317_v28  ;;  %v10085_v28 = vld [vmem:[#allocation120_spill] sm:$0xff] }
 0x2a9   :  { %10079 = vst [vmem:[#allocation213_spill] sm:$0xff] %v7833_v6  ;;  %4049 = vrot.lane.b32.xlu1 %v4041_v16, %s4868_s23  ;;  %4047 = vrot.lane.b32.xlu0 %v4039_v3, %s4868_s23  ;;  %v4046_v4 = vsel %vm1412_vm1, %v4043_v52, %v4045_v22  ;;  %v4044_v25 = vsel %vm1412_vm1, %v4042_v17, %v4043_v52  ;;  %v4077_v31 = vrot.slane %v4065_v40, 2  ;;  %v4104_v13 = vstv %s7789_s19  ;;  %v10086_v36 = vld [vmem:[#allocation8_spill] sm:$0xff]  ;;  %s8545_s19 = sld [smem:[#allocation2 + $0x391]] }
 0x2aa   :  { %v4069_v43 = vmul.f32 %v7520_v14, %v4064_v50  ;;  %v4070_v35 = vmul.f32 %v7442_v63, %v4064_v50  ;;  %v4068_v59 = vmul.f32 %v7537_v48, %v4064_v50  ;;  %v1357_v44 = vadd.f32 %v10085_v28, %v7449_v32  ;;  %v10091_v50 = vld [vmem:[#allocation121_spill] sm:$0xff] }
 0x2ab   :  { %v7858_v16 = vadd.f32 %v10086_v36, %v1316_v34  ;;  %v7861_v3 = vmul.f32 %v7482_v54, %v2356_v2  ;;  %v7864_v52 = vmul.f32 %v7489_v51, %v2356_v2  ;;  %v7866_v22 = vpop.permute.xlu1 %3233  ;;  %v7868_v17 = vpop.permute.xlu0 %3231  ;;  %v1356_v40 = vadd.f32 %v10091_v50, %v7453_v46 }
 0x2ac   :  { %10089 = vst [vmem:[#allocation32_spill] sm:$0xff] %v7866_v22  ;;  %10090 = vst [vmem:[#allocation33_spill] sm:$0xff] %v7868_v17  ;;  %v7875_v32 = vadd.f32 %v7299_v23, %v1355_v53  ;;  %v7878_v34 = vadd.f32 %v7323_v21, %v1354_v49  ;;  %v4081_v41 = vsel %vm1412_vm1, %v4078_v30, %v4080_v57  ;;  %v2366_v28 = vstv %s7814_s20  ;;  %v10092_v21 = vld [vmem:[#allocation122_spill] sm:$0xff]  ;;  %s8577_s20 = sld [smem:[#allocation2 + $0x18c]] }
 0x2ad   :  { %10087 = vst [vmem:[#allocation102_spill] sm:$0xff] %v7861_v3  ;;  %10088 = vst [vmem:[#allocation103_spill] sm:$0xff] %v7864_v52  ;;  %4053 = vrot.lane.b32.xlu1 %v4046_v4, %s4868_s23  ;;  %4051 = vrot.lane.b32.xlu0 %v4044_v25, %s4868_s23  ;;  %v4106_v36 = vmul.f32 %v7482_v54, %v4104_v13  ;;  %v4107_v17 = vmul.f32 %v7387_v56, %v4104_v13  ;;  %v4083_v23 = vrot.slane %v4069_v43, 2 }
 0x2ae   :  { %v4105_v22 = vmul.f32 %v7489_v51, %v4104_v13  ;;  %v4079_v46 = vsel %vm1412_vm1, %v4077_v31, %v4078_v30  ;;  %v4085_v53 = vrot.slane %v4070_v35, 2  ;;  %v4082_v50 = vrot.slane %v4068_v59, 2  ;;  %v10097_v31 = vld [vmem:[#allocation123_spill] sm:$0xff] }
 0x2af   :  { %v1395_v49 = vadd.f32 %v10092_v21, %v7457_v39  ;;  %v7891_v57 = vadd.f32 %v7333_v5, %v1357_v44  ;;  %v7894_v4 = vmul.f32 %v7520_v14, %v2356_v2  ;;  %v7897_v25 = vmul.f32 %v7537_v48, %v2356_v2  ;;  %v7899_v52 = vpop.permute.xlu1 %3237  ;;  %v7901_v3 = vpop.permute.xlu0 %3235 }
 0x2b0   :  { %10095 = vst [vmem:[#allocation37_spill] sm:$0xff] %v7899_v52  ;;  %10096 = vst [vmem:[#allocation59_spill] sm:$0xff] %v7901_v3  ;;  %v1394_v30 = vadd.f32 %v10097_v31, %v7461_v15  ;;  %v7906_v43 = vadd.f32 %v7336_v8, %v1356_v40  ;;  %v4109_v39 = vmul.f32 %v7520_v14, %v4104_v13  ;;  %v4118_v2 = vrot.slane %v4106_v36, 2  ;;  %v10100_v31 = vld [vmem:[#allocation124_spill] sm:$0xff] }
 0x2b1   :  { %10093 = vst [vmem:[#allocation104_spill] sm:$0xff] %v7894_v4  ;;  %10094 = vst [vmem:[#allocation185_spill] sm:$0xff] %v7897_v25  ;;  %v4110_v5 = vmul.f32 %v7442_v63, %v4104_v13  ;;  %v7911_v35 = vmul.f32 %v7482_v54, %v2366_v28  ;;  %4089 = vrot.lane.b32.xlu1 %v4081_v41, %s4868_s23  ;;  %4087 = vrot.lane.b32.xlu0 %v4079_v46, %s4868_s23  ;;  %v4120_v59 = vrot.slane %v4107_v17, 2  ;;  %v10101_v41 = vld [vmem:[#allocation125_spill] sm:$0xff]  ;;  %v10124_v25 = vld [vmem:[#allocation136_spill] sm:$0xff] }
 0x2b2   :  { %v4117_v44 = vrot.slane %v4105_v22, 2  ;;  %v7918_v8 = vmul.f32 %v7489_v51, %v2366_v28  ;;  %v4086_v15 = vsel %vm1412_vm1, %v4083_v23, %v4085_v53  ;;  %v4084_v40 = vsel %vm1412_vm1, %v4082_v50, %v4083_v23 }
 0x2b3   :  { %10098 = vst [vmem:[#allocation105_spill] sm:$0xff] %v7911_v35  ;;  %v4108_v21 = vmul.f32 %v7537_v48, %v4104_v13  ;;  %v1397_v3 = vadd.f32 %v10100_v31, %v7495_v33  ;;  %v1396_v46 = vadd.f32 %v10101_v41, %v7499_v9  ;;  %v7928_v17 = vadd.f32 %v7339_v55, %v1395_v49  ;;  %v7930_v22 = vpop.permute.xlu1 %3273  ;;  %v7932_v36 = vpop.permute.xlu0 %3271  ;;  %v10109_v41 = vld [vmem:[#allocation76_spill] sm:$0xff] }
 0x2b4   :  { %10099 = vst [vmem:[#allocation106_spill] sm:$0xff] %v7918_v8  ;;  %10102 = vst [vmem:[#allocation107_spill] sm:$0xff] %v7930_v22  ;;  %v4144_v52 = vstv %s7870_s21  ;;  %v7936_v53 = vadd.f32 %v7368_v58, %v1394_v30  ;;  %v7939_v23 = vmul.f32 %v7520_v14, %v2366_v28  ;;  %v4123_v13 = vrot.slane %v4109_v39, 2  ;;  %v10104_v39 = vld [vmem:[#allocation126_spill] sm:$0xff]  ;;  %s8604_s21 = sld [smem:[#allocation2 + $0x20c]] }
 0x2b5   :  { %10103 = vst [vmem:[#allocation191_spill] sm:$0xff] %v7932_v36  ;;  %v4125_v50 = vrot.slane %v4110_v5, 2  ;;  %v7942_v33 = vmul.f32 %v7537_v48, %v2366_v28  ;;  %4093 = vrot.lane.b32.xlu1 %v4086_v15, %s4868_s23  ;;  %4091 = vrot.lane.b32.xlu0 %v4084_v40, %s4868_s23  ;;  %v4121_v55 = vsel %vm1412_vm1, %v4118_v2, %v4120_v59  ;;  %v4122_v49 = vrot.slane %v4108_v21, 2  ;;  %v10105_v5 = vld [vmem:[#allocation127_spill] sm:$0xff]  ;;  %v10110_v36 = vld [vmem:[#allocation128_spill] sm:$0xff] }
 0x2b6   :  { %v4119_v9 = vsel %vm1412_vm1, %v4117_v44, %v4118_v2  ;;  %v4146_v58 = vmul.f32 %v7482_v54, %v4144_v52  ;;  %v4147_v30 = vmul.f32 %v7387_v56, %v4144_v52  ;;  %v4145_v31 = vmul.f32 %v7489_v51, %v4144_v52  ;;  %v10106_v2 = vld [vmem:[#allocation66_spill] sm:$0xff] }
 0x2b7   :  { %v7953_v28 = vadd.f32 %v10104_v39, %v7512_v60  ;;  %v7957_v15 = vadd.f32 %v10105_v5, %v7515_v62  ;;  %v7960_v59 = vadd.f32 %v7379_v20, %v1397_v3  ;;  %v7963_v44 = vadd.f32 %v10106_v2, %v1396_v46  ;;  %v7965_v40 = vpop.permute.xlu1 %3277  ;;  %v7967_v21 = vpop.permute.xlu0 %3275  ;;  %v10111_v60 = vld [vmem:[#allocation77_spill] sm:$0xff]  ;;  %v10113_v62 = vld [vmem:[#allocation130_spill] sm:$0xff] }
 0x2b8   :  { %10107 = vst [vmem:[#allocation39_spill] sm:$0xff] %v7965_v40  ;;  %10108 = vst [vmem:[#allocation108_spill] sm:$0xff] %v7967_v21  ;;  %v7971_v22 = vadd.f32 %v10110_v36, %v10109_v41  ;;  %v10112_v39 = vld [vmem:[#allocation129_spill] sm:$0xff]  ;;  %v7979_v5 = vadd.f32 %v10113_v62, %v7572_v47  ;;  %v4126_v20 = vsel %vm1412_vm1, %v4123_v13, %v4125_v50  ;;  %v4184_v2 = vstv %s7915_s22  ;;  %v10114_v47 = vld [vmem:[#allocation82_spill] sm:$0xff]  ;;  %s8658_s22 = sld [smem:[#allocation2 + $0x28c]] }
 0x2b9   :  { %v7975_v8 = vadd.f32 %v10112_v39, %v10111_v60  ;;  %4129 = vrot.lane.b32.xlu1 %v4121_v55, %s4868_s23  ;;  %4127 = vrot.lane.b32.xlu0 %v4119_v9, %s4868_s23  ;;  %v4149_v3 = vmul.f32 %v7520_v14, %v4144_v52  ;;  %v4150_v46 = vmul.f32 %v7442_v63, %v4144_v52  ;;  %v4158_v60 = vrot.slane %v4146_v58, 2  ;;  %v10115_v50 = vld [vmem:[#allocation131_spill] sm:$0xff]  ;;  %v10116_v55 = vld [vmem:[#allocation132_spill] sm:$0xff]  ;;  %v10117_v40 = vld [vmem:[#allocation133_spill] sm:$0xff] }
 0x2ba   :  { %v4148_v36 = vmul.f32 %v7537_v48, %v4144_v52  ;;  %v4124_v41 = vsel %vm1412_vm1, %v4122_v49, %v4123_v13  ;;  %v4160_v39 = vrot.slane %v4147_v30, 2  ;;  %v4157_v21 = vrot.slane %v4145_v31, 2  ;;  %v10118_v52 = vld [vmem:[#allocation134_spill] sm:$0xff]  ;;  %v10121_v30 = vld [vmem:[#allocation88_spill] sm:$0xff]  ;;  %v10122_v31 = vld [vmem:[#allocation135_spill] sm:$0xff] }
 0x2bb   :  { %v7993_v62 = vadd.f32 %v10115_v50, %v10114_v47  ;;  %v7997_v9 = vadd.f32 %v10116_v55, %v7616_v0  ;;  %v8001_v35 = vadd.f32 %v10117_v40, %v7627_v45  ;;  %v8005_v13 = vadd.f32 %v10118_v52, %v7637_v7  ;;  %v8007_v49 = vpop.permute.xlu1 %3313  ;;  %v8009_v58 = vpop.permute.xlu0 %3311  ;;  %v10123_v50 = vld [vmem:[#allocation198_spill] sm:$0xff] }
 0x2bc   :  { %10119 = vst [vmem:[#allocation109_spill] sm:$0xff] %v8007_v49  ;;  %10120 = vst [vmem:[#allocation201_spill] sm:$0xff] %v8009_v58  ;;  %v8013_v47 = vadd.f32 %v10122_v31, %v10121_v30  ;;  %v8017_v0 = vadd.f32 %v10124_v25, %v10123_v50  ;;  %v4186_v55 = vmul.f32 %v7482_v54, %v4184_v2  ;;  %v4163_v7 = vrot.slane %v4149_v3, 2  ;;  %v10125_v31 = vld [vmem:[#allocation92_spill] sm:$0xff]  ;;  %v10126_v58 = vld [vmem:[#allocation137_spill] sm:$0xff] }
 0x2bd   :  { %v4187_v45 = vmul.f32 %v7387_v56, %v4184_v2  ;;  %4133 = vrot.lane.b32.xlu1 %v4126_v20, %s4868_s23  ;;  %4131 = vrot.lane.b32.xlu0 %v4124_v41, %s4868_s23  ;;  %v4165_v40 = vrot.slane %v4150_v46, 2  ;;  %v4162_v52 = vrot.slane %v4148_v36, 2  ;;  %v4185_v30 = vmul.f32 %v7489_v51, %v4184_v2  ;;  %v10127_v25 = vld [vmem:[#allocation138_spill] sm:$0xff]  ;;  %v10128_v20 = vld [vmem:[#allocation139_spill] sm:$0xff]  ;;  %v10129_v3 = vld [vmem:[#allocation140_spill] sm:$0xff] }
 0x2be   :  { %v8028_v49 = vadd.f32 %v10126_v58, %v10125_v31  ;;  %v8032_v50 = vadd.f32 %v10127_v25, %v7702_v18  ;;  %v4161_v4 = vsel %vm1412_vm1, %v4158_v60, %v4160_v39  ;;  %v4159_v6 = vsel %vm1412_vm1, %v4157_v21, %v4158_v60  ;;  %v10130_v36 = vld [vmem:[#allocation141_spill] sm:$0xff]  ;;  %v10131_v31 = vld [vmem:[#allocation142_spill] sm:$0xff] }
 0x2bf   :  { %v8038_v41 = vadd.f32 %v10128_v20, %v7705_v38  ;;  %v8042_v46 = vadd.f32 %v10129_v3, %v7734_v61  ;;  %v8046_v58 = vadd.f32 %v10130_v36, %v7737_v19  ;;  %v8050_v18 = vadd.f32 %v10131_v31, %v7751_v11  ;;  %v8052_v39 = vpop.permute.xlu1 %3317  ;;  %v8054_v21 = vpop.permute.xlu0 %3315  ;;  %v10134_v38 = vld [vmem:[#allocation143_spill] sm:$0xff]  ;;  %v10135_v61 = vld [vmem:[#allocation144_spill] sm:$0xff]  ;;  %v10136_v3 = vld [vmem:[#allocation145_spill] sm:$0xff] }
 0x2c0   :  { %10132 = vst [vmem:[#allocation46_spill] sm:$0xff] %v8052_v39  ;;  %10133 = vst [vmem:[#allocation110_spill] sm:$0xff] %v8054_v21  ;;  %v8058_v60 = vadd.f32 %v10134_v38, %v7765_v29  ;;  %v8062_v25 = vadd.f32 %v10135_v61, %v7792_v42  ;;  %v4198_v20 = vrot.slane %v4186_v55, 2  ;;  %v4200_v19 = vrot.slane %v4187_v45, 2  ;;  %v10150_v21 = vld [vmem:[#allocation154_spill] sm:$0xff] }
 0x2c1   :  { %v8066_v36 = vadd.f32 %v10136_v3, %v7795_v1  ;;  %4169 = vrot.lane.b32.xlu1 %v4161_v4, %s4868_s23  ;;  %4167 = vrot.lane.b32.xlu0 %v4159_v6, %s4868_s23  ;;  %v4166_v11 = vsel %vm1412_vm1, %v4163_v7, %v4165_v40  ;;  %v4164_v31 = vsel %vm1412_vm1, %v4162_v52, %v4163_v7  ;;  %v4197_v29 = vrot.slane %v4185_v30, 2  ;;  %v10137_v1 = vld [vmem:[#allocation146_spill] sm:$0xff]  ;;  %v10138_v4 = vld [vmem:[#allocation147_spill] sm:$0xff]  ;;  %v10139_v40 = vld [vmem:[#allocation148_spill] sm:$0xff] }
 0x2c2   :  { %v4189_v38 = vmul.f32 %v7520_v14, %v4184_v2  ;;  %v4190_v42 = vmul.f32 %v7442_v63, %v4184_v2  ;;  %v4188_v55 = vmul.f32 %v7537_v48, %v4184_v2  ;;  %v4224_v45 = vstv %s7989_s24  ;;  %v10140_v52 = vld [vmem:[#allocation149_spill] sm:$0xff]  ;;  %s8706_s24 = sld [smem:[#allocation2 + $0x30c]] }
 0x2c3   :  { %v8078_v61 = vadd.f32 %v10137_v1, %v7820_v12  ;;  %v8082_v6 = vadd.f32 %v10138_v4, %v7823_v10  ;;  %v8086_v7 = vadd.f32 %v10139_v40, %v7845_v26  ;;  %v8090_v30 = vadd.f32 %v10140_v52, %v7858_v16  ;;  %v8092_v3 = vpop.permute.xlu1 %3353  ;;  %v8094_v2 = vpop.permute.xlu0 %3351  ;;  %v10143_v12 = vld [vmem:[#allocation150_spill] sm:$0xff]  ;;  %v10144_v10 = vld [vmem:[#allocation151_spill] sm:$0xff]  ;;  %v10146_v26 = vld [vmem:[#allocation152_spill] sm:$0xff] }
 0x2c4   :  { %10141 = vst [vmem:[#allocation111_spill] sm:$0xff] %v8092_v3  ;;  %10142 = vst [vmem:[#allocation50_spill] sm:$0xff] %v8094_v2  ;;  %v8100_v1 = vadd.f32 %v10143_v12, %v7875_v32  ;;  %v8104_v4 = vadd.f32 %v10144_v10, %v7878_v34  ;;  %v8108_v40 = vadd.f32 %v10146_v26, %v7891_v57  ;;  %v8112_v52 = vstv %s8021_s25  ;;  %v10148_v26 = vld [vmem:[#allocation153_spill] sm:$0xff]  ;;  %s8865_s25 = sld [smem:[#allocation2 + $0x8f]] }
 0x2c5   :  { %v4201_v16 = vsel %vm1412_vm1, %v4198_v20, %v4200_v19  ;;  %4173 = vrot.lane.b32.xlu1 %v4166_v11, %s4868_s23  ;;  %4171 = vrot.lane.b32.xlu0 %v4164_v31, %s4868_s23  ;;  %v4226_v2 = vmul.f32 %v7482_v54, %v4224_v45  ;;  %v4227_v32 = vmul.f32 %v7387_v56, %v4224_v45  ;;  %v4203_v10 = vrot.slane %v4189_v38, 2  ;;  %v10152_v31 = vld [vmem:[#allocation155_spill] sm:$0xff]  ;;  %v10157_v38 = vld [vmem:[#allocation157_spill] sm:$0xff] }
 0x2c6   :  { %10145 = vst [vmem:[#allocation52_spill] sm:$0xff] %v8104_v4  ;;  %10147 = vst [vmem:[#allocation12_spill] sm:$0xff] %v8108_v40  ;;  %v4225_v12 = vmul.f32 %v7489_v51, %v4224_v45  ;;  %v4199_v34 = vsel %vm1412_vm1, %v4197_v29, %v4198_v20  ;;  %v4205_v3 = vrot.slane %v4190_v42, 2  ;;  %v4202_v57 = vrot.slane %v4188_v55, 2  ;;  %v10154_v40 = vld [vmem:[#allocation156_spill] sm:$0xff]  ;;  %v10158_v42 = vld [vmem:[#allocation165_spill] sm:$0xff] }
 0x2c7   :  { %v8122_v19 = vadd.f32 %v10148_v26, %v7906_v43  ;;  %v8126_v11 = vadd.f32 %v10150_v21, %v7928_v17  ;;  %v8130_v39 = vadd.f32 %v10152_v31, %v7936_v53  ;;  %v8134_v4 = vadd.f32 %v10154_v40, %v7960_v59  ;;  %v8136_v20 = vpop.permute.xlu1 %3357  ;;  %v8138_v29 = vpop.permute.xlu0 %3355 }
 0x2c8   :  { %10155 = vst [vmem:[#allocation114_spill] sm:$0xff] %v8136_v20  ;;  %10156 = vst [vmem:[#allocation115_spill] sm:$0xff] %v8138_v29  ;;  %v8142_v43 = vadd.f32 %v10157_v38, %v7963_v44  ;;  %v8146_v17 = vmul.f32 %v7482_v54, %v8112_v52  ;;  %v4229_v21 = vmul.f32 %v7520_v14, %v4224_v45  ;;  %v4238_v55 = vrot.slane %v4226_v2, 2 }
 0x2c9   :  { %10149 = vst [vmem:[#allocation112_spill] sm:$0xff] %v8122_v19  ;;  %10151 = vst [vmem:[#allocation113_spill] sm:$0xff] %v8126_v11  ;;  %v4230_v53 = vmul.f32 %v7442_v63, %v4224_v45  ;;  %v2012_v59 = vadd.f32 %v10158_v42, %v7953_v28  ;;  %4209 = vrot.lane.b32.xlu1 %v4201_v16, %s4868_s23  ;;  %4207 = vrot.lane.b32.xlu0 %v4199_v34, %s4868_s23  ;;  %v4240_v40 = vrot.slane %v4227_v32, 2  ;;  %v10159_v28 = vld [vmem:[#allocation166_spill] sm:$0xff]  ;;  %v10164_v11 = vld [vmem:[#allocation69_spill] sm:$0xff] }
 0x2ca   :  { %10153 = vst [vmem:[#allocation53_spill] sm:$0xff] %v8130_v39  ;;  %v4237_v44 = vrot.slane %v4225_v12, 2  ;;  %v2795_v26 = vmul.f32 %v7387_v56, %v8112_v52  ;;  %v4206_v31 = vsel %vm1412_vm1, %v4203_v10, %v4205_v3  ;;  %v4204_v38 = vsel %vm1412_vm1, %v4202_v57, %v4203_v10  ;;  %v10162_v10 = vld [vmem:[#allocation176_spill] sm:$0xff]  ;;  %v10163_v57 = vld [vmem:[#allocation177_spill] sm:$0xff] }
 0x2cb   :  { %v4228_v39 = vmul.f32 %v7537_v48, %v4224_v45  ;;  %v2011_v16 = vadd.f32 %v10159_v28, %v7957_v15  ;;  %v2793_v34 = vmul.f32 %v7489_v51, %v8112_v52  ;;  %v8167_v2 = vmul.f32 %v7520_v14, %v8112_v52  ;;  %v8171_v32 = vpop.permute.xlu1 %3393  ;;  %v8173_v12 = vpop.permute.xlu0 %3391 }
 0x2cc   :  { %10160 = vst [vmem:[#allocation13_spill] sm:$0xff] %v8171_v32  ;;  %10161 = vst [vmem:[#allocation55_spill] sm:$0xff] %v8173_v12  ;;  %v4264_v3 = vstv %s8096_s26  ;;  %v2014_v45 = vadd.f32 %v10162_v10, %v7971_v22  ;;  %v2013_v15 = vadd.f32 %v10163_v57, %v7975_v8  ;;  %v4243_v42 = vrot.slane %v4229_v21, 2  ;;  %v10171_v57 = vld [vmem:[#allocation74_spill] sm:$0xff]  ;;  %s8932_s26 = sld [smem:[#allocation2 + $0x10f]] }
 0x2cd   :  { %v4245_v28 = vrot.slane %v4230_v53, 2  ;;  %v8181_v19 = vadd.f32 %v10164_v11, %v2012_v59  ;;  %v2806_v29 = vrot.slane %v8146_v17, 1  ;;  %4213 = vrot.lane.b32.xlu1 %v4206_v31, %s4868_s23  ;;  %4211 = vrot.lane.b32.xlu0 %v4204_v38, %s4868_s23  ;;  %v4241_v12 = vsel %vm1412_vm1, %v4238_v55, %v4240_v40  ;;  %v10166_v53 = vld [vmem:[#allocation70_spill] sm:$0xff] }
 0x2ce   :  { %v4239_v32 = vsel %vm1412_vm1, %v4237_v44, %v4238_v55  ;;  %v4242_v20 = vrot.slane %v4228_v39, 2  ;;  %v4266_v22 = vmul.f32 %v7482_v54, %v4264_v3  ;;  %v4267_v8 = vmul.f32 %v7387_v56, %v4264_v3  ;;  %v10169_v39 = vld [vmem:[#allocation182_spill] sm:$0xff]  ;;  %v10170_v44 = vld [vmem:[#allocation73_spill] sm:$0xff] }
 0x2cf   :  { %10165 = vst [vmem:[#allocation116_spill] sm:$0xff] %v8181_v19  ;;  %v4265_v21 = vmul.f32 %v7489_v51, %v4264_v3  ;;  %v8192_v11 = vadd.f32 %v10166_v53, %v2011_v16  ;;  %v2808_v17 = vrot.slane %v2795_v26, 1  ;;  %v2805_v59 = vrot.slane %v2793_v34, 1  ;;  %v8195_v38 = vpop.permute.xlu1 %3397  ;;  %v8197_v40 = vpop.permute.xlu0 %3395 }
 0x2d0   :  { %10167 = vst [vmem:[#allocation218_spill] sm:$0xff] %v8195_v38  ;;  %10168 = vst [vmem:[#allocation219_spill] sm:$0xff] %v8197_v40  ;;  %v2052_v55 = vadd.f32 %v10169_v39, %v7979_v5  ;;  %v8202_v10 = vadd.f32 %v10170_v44, %v2014_v45  ;;  %v8205_v19 = vadd.f32 %v10171_v57, %v2013_v15  ;;  %v4304_v5 = vstv %s8154_s27  ;;  %s9056_s27 = sld [smem:[#allocation2 + $0x18f]] }
 0x2d1   :  { %v4246_v16 = vsel %vm1412_vm1, %v4243_v42, %v4245_v28  ;;  %4249 = vrot.lane.b32.xlu1 %v4241_v12, %s4868_s23  ;;  %4247 = vrot.lane.b32.xlu0 %v4239_v32, %s4868_s23  ;;  %v4269_v26 = vmul.f32 %v7520_v14, %v4264_v3  ;;  %v4270_v34 = vmul.f32 %v7442_v63, %v4264_v3  ;;  %v4278_v39 = vrot.slane %v4266_v22, 2  ;;  %v10172_v28 = vld [vmem:[#allocation183_spill] sm:$0xff]  ;;  %v10177_v22 = vld [vmem:[#allocation188_spill] sm:$0xff] }
 0x2d2   :  { %v4268_v53 = vmul.f32 %v7537_v48, %v4264_v3  ;;  %v4244_v45 = vsel %vm1412_vm1, %v4242_v20, %v4243_v42  ;;  %v4280_v44 = vrot.slane %v4267_v8, 2  ;;  %v4277_v15 = vrot.slane %v4265_v21, 2  ;;  %v10176_v20 = vld [vmem:[#allocation187_spill] sm:$0xff] }
 0x2d3   :  { %v2051_v57 = vadd.f32 %v10172_v28, %v7993_v62  ;;  %v8220_v12 = vsel %vm515_vm0, %v2806_v29, %v2808_v17  ;;  %v2798_v32 = vmul.f32 %v7442_v63, %v8112_v52  ;;  %v8225_v31 = vstv %s8169_s28  ;;  %v8227_v3 = vpop.permute.xlu1 %3433  ;;  %v8229_v40 = vpop.permute.xlu0 %3431  ;;  %s9121_s28 = sld [smem:[#allocation2 + $0x20f]] }
 0x2d4   :  { %10173 = vst [vmem:[#allocation117_spill] sm:$0xff] %v8220_v12  ;;  %10174 = vst [vmem:[#allocation118_spill] sm:$0xff] %v8227_v3  ;;  %v2054_v42 = vadd.f32 %v10176_v20, %v7997_v9  ;;  %v2053_v8 = vadd.f32 %v10177_v22, %v8001_v35  ;;  %v4306_v62 = vmul.f32 %v7482_v54, %v4304_v5  ;;  %v4283_v17 = vrot.slane %v4269_v26, 2 }
 0x2d5   :  { %10175 = vst [vmem:[#allocation119_spill] sm:$0xff] %v8229_v40  ;;  %v4307_v21 = vmul.f32 %v7387_v56, %v4304_v5  ;;  %4253 = vrot.lane.b32.xlu1 %v4246_v16, %s4868_s23  ;;  %4251 = vrot.lane.b32.xlu0 %v4244_v45, %s4868_s23  ;;  %v4285_v28 = vrot.slane %v4270_v34, 2  ;;  %v4282_v38 = vrot.slane %v4268_v53, 2  ;;  %v4305_v3 = vmul.f32 %v7489_v51, %v4304_v5  ;;  %v10178_v40 = vld [vmem:[#allocation78_spill] sm:$0xff]  ;;  %v10180_v56 = vld [vmem:[#allocation79_spill] sm:$0xff] }
 0x2d6   :  { %v8241_v12 = vadd.f32 %v10178_v40, %v2052_v55  ;;  %v8244_v9 = vsel %vm515_vm0, %v2805_v59, %v2806_v29  ;;  %v4281_v35 = vsel %vm1412_vm1, %v4278_v39, %v4280_v44  ;;  %v4279_v20 = vsel %vm1412_vm1, %v4277_v15, %v4278_v39  ;;  %v10183_v59 = vld [vmem:[#allocation189_spill] sm:$0xff]  ;;  %v10184_v53 = vld [vmem:[#allocation83_spill] sm:$0xff]  ;;  %v10185_v15 = vld [vmem:[#allocation86_spill] sm:$0xff] }
 0x2d7   :  { %10179 = vst [vmem:[#allocation220_spill] sm:$0xff] %v8244_v9  ;;  %v8249_v22 = vadd.f32 %v10180_v56, %v2051_v57  ;;  %v2813_v16 = vrot.slane %v2798_v32, 1  ;;  %v2796_v26 = vmul.f32 %v7537_v48, %v8112_v52  ;;  %v8255_v34 = vmul.f32 %v7482_v54, %v8225_v31  ;;  %v8257_v40 = vpop.permute.xlu1 %3437  ;;  %v8259_v29 = vpop.permute.xlu0 %3435  ;;  %v10244_v9 = vld [vmem:[#allocation217_spill] sm:$0xff] }
 0x2d8   :  { %10181 = vst [vmem:[#allocation120_spill] sm:$0xff] %v8257_v40  ;;  %10182 = vst [vmem:[#allocation8_spill] sm:$0xff] %v8259_v29  ;;  %v2092_v55 = vadd.f32 %v10183_v59, %v8005_v13  ;;  %v8264_v45 = vadd.f32 %v10184_v53, %v2054_v42  ;;  %v4318_v39 = vrot.slane %v4306_v62, 2  ;;  %v4320_v44 = vrot.slane %v4307_v21, 2  ;;  %v10186_v21 = vld [vmem:[#allocation190_spill] sm:$0xff] }
 0x2d9   :  { %v8267_v57 = vadd.f32 %v10185_v15, %v2053_v8  ;;  %4289 = vrot.lane.b32.xlu1 %v4281_v35, %s4869_s4  ;;  %4287 = vrot.lane.b32.xlu0 %v4279_v20, %s4869_s4  ;;  %v4286_v52 = vsel %vm1412_vm1, %v4283_v17, %v4285_v28  ;;  %v4284_v32 = vsel %vm1412_vm1, %v4282_v38, %v4283_v17  ;;  %v4317_v56 = vrot.slane %v4305_v3, 2  ;;  %v8287_v38 = vld [vmem:[%s9499_s0 + $0x28] sm:$0x3]  ;;  %v10192_v28 = vld [vmem:[#allocation87_spill] sm:$0xff] }
 0x2da   :  { %v4309_v29 = vmul.f32 %v7520_v14, %v4304_v5  ;;  %v4310_v13 = vmul.f32 %v7442_v63, %v4304_v5  ;;  %v4308_v42 = vmul.f32 %v7537_v48, %v4304_v5  ;;  %v4344_v62 = vstv %s8215_s29 }
 0x2db   :  { %v2091_v8 = vadd.f32 %v10186_v21, %v8013_v47  ;;  %v10187_v59 = vrot.slane %v8167_v2, 1  ;;  %v2810_v20 = vrot.slane %v2796_v26, 1  ;;  %v2827_v63 = vmul.f32 %v8287_v38, %v8225_v31  ;;  %v8291_v3 = vpop.permute.xlu1 %3473  ;;  %v8293_v5 = vpop.permute.xlu0 %3471  ;;  %v10191_v47 = vld [vmem:[#allocation193_spill] sm:$0xff] }
 0x2dc   :  { %10189 = vst [vmem:[#allocation122_spill] sm:$0xff] %v8291_v3  ;;  %10190 = vst [vmem:[#allocation123_spill] sm:$0xff] %v8293_v5  ;;  %v2094_v17 = vadd.f32 %v10191_v47, %v8017_v0  ;;  %v2825_v26 = vmul.f32 %v7489_v51, %v8225_v31  ;;  %v4321_v53 = vsel %vm1412_vm1, %v4318_v39, %v4320_v44  ;;  %v2838_v15 = vrot.slane %v8255_v34, 1  ;;  %v10193_v3 = vld [vmem:[#allocation194_spill] sm:$0xff]  ;;  %v10194_v34 = vld [vmem:[#allocation199_spill] sm:$0xff] }
 0x2dd   :  { %v8282_v35 = vsel %vm515_vm0, %v10187_v59, %v2813_v16  ;;  %v8300_v16 = vadd.f32 %v10192_v28, %v2092_v55  ;;  %4293 = vrot.lane.b32.xlu1 %v4286_v52, %s4869_s4  ;;  %4291 = vrot.lane.b32.xlu0 %v4284_v32, %s4869_s4  ;;  %v4319_v21 = vsel %vm1412_vm1, %v4317_v56, %v4318_v39  ;;  %v4323_v47 = vrot.slane %v4309_v29, 2  ;;  %v10195_v52 = vld [vmem:[#allocation89_spill] sm:$0xff]  ;;  %v10198_v29 = vld [vmem:[#allocation200_spill] sm:$0xff] }
 0x2de   :  { %10188 = vst [vmem:[#allocation121_spill] sm:$0xff] %v8282_v35  ;;  %v4346_v59 = vmul.f32 %v7482_v54, %v4344_v62  ;;  %v4347_v0 = vmul.f32 %v8287_v38, %v4344_v62  ;;  %v4325_v55 = vrot.slane %v4310_v13, 2  ;;  %v4322_v28 = vrot.slane %v4308_v42, 2 }
 0x2df   :  { %v4345_v5 = vmul.f32 %v7489_v51, %v4344_v62  ;;  %v2093_v44 = vadd.f32 %v10193_v3, %v8028_v49  ;;  %v2132_v40 = vadd.f32 %v10194_v34, %v8032_v50  ;;  %v8317_v35 = vadd.f32 %v10195_v52, %v2091_v8  ;;  %v8319_v39 = vpop.permute.xlu1 %3477  ;;  %v8321_v54 = vpop.permute.xlu0 %3475  ;;  %v8329_v51 = vld [vmem:[%s9499_s0 + $0x58] sm:$0x3]  ;;  %v10203_v52 = vld [vmem:[#allocation197_spill] sm:$0xff] }
 0x2e0   :  { %v2840_v32 = vrot.slane %v2827_v63, 1  ;;  %10196 = vst [vmem:[#allocation124_spill] sm:$0xff] %v8319_v39  ;;  %10197 = vst [vmem:[#allocation125_spill] sm:$0xff] %v8321_v54  ;;  %v2131_v56 = vadd.f32 %v10198_v29, %v8038_v41  ;;  %v4349_v13 = vmul.f32 %v7520_v14, %v4344_v62  ;;  %v4350_v49 = vmul.f32 %v8329_v51, %v4344_v62  ;;  %v10201_v3 = vld [vmem:[#allocation91_spill] sm:$0xff] }
 0x2e1   :  { %v4348_v50 = vmul.f32 %v7537_v48, %v4344_v62  ;;  %v10199_v42 = vrot.slane %v8167_v2, 1  ;;  %v2837_v63 = vrot.slane %v2825_v26, 1  ;;  %4329 = vrot.lane.b32.xlu1 %v4321_v53, %s4869_s4  ;;  %4327 = vrot.lane.b32.xlu0 %v4319_v21, %s4869_s4  ;;  %v4358_v14 = vrot.slane %v4346_v59, 2 }
 0x2e2   :  { %v4360_v41 = vrot.slane %v4347_v0, 2  ;;  %v8343_v34 = vadd.f32 %v10201_v3, %v2094_v17  ;;  %v4326_v48 = vsel %vm1412_vm1, %v4323_v47, %v4325_v55  ;;  %v4324_v2 = vsel %vm1412_vm1, %v4322_v28, %v4323_v47  ;;  %v10207_v0 = vld [vmem:[#allocation93_spill] sm:$0xff]  ;;  %v10210_v3 = vld [vmem:[#allocation203_spill] sm:$0xff] }
 0x2e3   :  { %v8336_v8 = vsel %vm515_vm0, %v2810_v20, %v10199_v42  ;;  %v4357_v62 = vrot.slane %v4345_v5, 2  ;;  %v10202_v20 = vld [vmem:[#allocation94_spill] sm:$0xff]  ;;  %v8353_v29 = vadd.f32 %v10203_v52, %v2132_v40  ;;  %v8356_v53 = vsel %vm515_vm0, %v2838_v15, %v2840_v32  ;;  %v8358_v21 = vpop.permute.xlu1 %3513  ;;  %v8360_v17 = vpop.permute.xlu0 %3511  ;;  %v8390_v42 = vld [vmem:[%s9499_s0 + $0x18] sm:$0xff] }
 0x2e4   :  { %10200 = vst [vmem:[#allocation126_spill] sm:$0xff] %v8336_v8  ;;  %v8350_v26 = vadd.f32 %v10202_v20, %v2093_v44  ;;  %10204 = vst [vmem:[#allocation127_spill] sm:$0xff] %v8356_v53  ;;  %v4384_v59 = vstv %s8295_s3  ;;  %v8364_v55 = vadd.f32 %v10207_v0, %v2131_v56  ;;  %v4363_v5 = vrot.slane %v4349_v13, 2  ;;  %v8372_v40 = vld [vmem:[%s9499_s0 + $0x50] sm:$0xff]  ;;  %v10242_v53 = vld [vmem:[#allocation48_spill] sm:$0xff] }
 0x2e5   :  { %10205 = vst [vmem:[#allocation66_spill] sm:$0xff] %v8358_v21  ;;  %10206 = vst [vmem:[#allocation76_spill] sm:$0xff] %v8360_v17  ;;  %v4365_v47 = vrot.slane %v4350_v49, 2  ;;  %v4362_v28 = vrot.slane %v4348_v50, 2  ;;  %v8367_v44 = vsel %vm515_vm0, %v2837_v63, %v2838_v15  ;;  %v2829_v32 = vmul.f32 %v8372_v40, %v8225_v31  ;;  %4333 = vrot.lane.b32.xlu1 %v4326_v48, %s4869_s4  ;;  %v8383_v15 = vld [vmem:[%s9499_s0 + $0x20] sm:$0xff] }
 0x2e6   :  { %10208 = vst [vmem:[#allocation128_spill] sm:$0xff] %v8367_v44  ;;  %4331 = vrot.lane.b32.xlu0 %v4324_v2, %s4869_s4  ;;  %v4361_v56 = vsel %vm1412_vm1, %v4358_v14, %v4360_v41  ;;  %v4359_v13 = vsel %vm1412_vm1, %v4357_v62, %v4358_v14  ;;  %v4386_v49 = vmul.f32 %v8383_v15, %v4384_v59  ;;  %v10209_v41 = vld [vmem:[#allocation202_spill] sm:$0xff]  ;;  %v8402_v62 = vld [vmem:[%s9499_s0 + $0x48] sm:$0xff]  ;;  %v8417_v54 = vstv %s8338_s7 }
 0x2e7   :  { %v4387_v50 = vmul.f32 %v8287_v38, %v4384_v59  ;;  %v4385_v63 = vmul.f32 %v8390_v42, %v4384_v59  ;;  %v2134_v14 = vadd.f32 %v10209_v41, %v8042_v46  ;;  %v2133_v48 = vadd.f32 %v10210_v3, %v8046_v58  ;;  %v8406_v52 = vpop.permute.xlu1 %3517  ;;  %v8408_v0 = vpop.permute.xlu0 %3515  ;;  %v10213_v46 = vld [vmem:[#allocation204_spill] sm:$0xff]  ;;  %v10214_v58 = vld [vmem:[#allocation205_spill] sm:$0xff] }
 0x2e8   :  { %v2830_v2 = vmul.f32 %v8329_v51, %v8225_v31  ;;  %v2828_v20 = vmul.f32 %v8402_v62, %v8225_v31  ;;  %10211 = vst [vmem:[#allocation77_spill] sm:$0xff] %v8406_v52  ;;  %10212 = vst [vmem:[#allocation129_spill] sm:$0xff] %v8408_v0  ;;  %v2172_v41 = vadd.f32 %v10213_v46, %v8050_v18  ;;  %v4398_v18 = vrot.slane %v4386_v49, 2 }
 0x2e9   :  { %v2171_v3 = vadd.f32 %v10214_v58, %v8058_v60  ;;  %v4366_v17 = vsel %vm1412_vm1, %v4363_v5, %v4365_v47  ;;  %v4364_v21 = vsel %vm1412_vm1, %v4362_v28, %v4363_v5  ;;  %4369 = vrot.lane.b32.xlu1 %v4361_v56, %s4869_s4  ;;  %v4389_v31 = vmul.f32 %v8372_v40, %v4384_v59 }
 0x2ea   :  { %4367 = vrot.lane.b32.xlu0 %v4359_v13, %s4869_s4  ;;  %v4390_v0 = vmul.f32 %v8329_v51, %v4384_v59  ;;  %v4388_v52 = vmul.f32 %v8402_v62, %v4384_v59  ;;  %v4400_v46 = vrot.slane %v4387_v50, 2  ;;  %v4397_v39 = vrot.slane %v4385_v63, 2  ;;  %v10217_v59 = vld [vmem:[#allocation97_spill] sm:$0xff]  ;;  %v10218_v50 = vld [vmem:[#allocation51_spill] sm:$0xff] }
 0x2eb   :  { %v4424_v60 = vstv %s8347_s8  ;;  %v8428_v5 = vadd.f32 %v7712_v27, %v2134_v14  ;;  %v2843_v47 = vrot.slane %v2829_v32, 1  ;;  %v2845_v28 = vrot.slane %v2830_v2, 1  ;;  %v8430_v58 = vpop.permute.xlu1 %3553  ;;  %v8432_v13 = vpop.permute.xlu0 %3551 }
 0x2ec   :  { %v2842_v56 = vrot.slane %v2828_v20, 1  ;;  %10215 = vst [vmem:[#allocation130_spill] sm:$0xff] %v8430_v58  ;;  %10216 = vst [vmem:[#allocation82_spill] sm:$0xff] %v8432_v13  ;;  %v8435_v44 = vadd.f32 %v7726_v24, %v2133_v48  ;;  %v8438_v49 = vadd.f32 %v10217_v59, %v2172_v41  ;;  %v8441_v63 = vadd.f32 %v10218_v50, %v2171_v3  ;;  %v10219_v59 = vld [vmem:[#allocation210_spill] sm:$0xff] }
 0x2ed   :  { %v8445_v27 = vmul.f32 %v8383_v15, %v8417_v54  ;;  %4373 = vrot.lane.b32.xlu1 %v4366_v17, %s4869_s4  ;;  %v4403_v32 = vrot.slane %v4389_v31, 2  ;;  %v4405_v14 = vrot.slane %v4390_v0, 2  ;;  %v4402_v2 = vrot.slane %v4388_v52, 2  ;;  %v10227_v58 = vld [vmem:[#allocation98_spill] sm:$0xff] }
 0x2ee   :  { %4371 = vrot.lane.b32.xlu0 %v4364_v21, %s4869_s4  ;;  %v4426_v24 = vmul.f32 %v8383_v15, %v4424_v60  ;;  %v4401_v48 = vsel %vm1412_vm1, %v4398_v18, %v4400_v46  ;;  %v4399_v20 = vsel %vm1412_vm1, %v4397_v39, %v4398_v18  ;;  %v4427_v41 = vmul.f32 %v8287_v38, %v4424_v60  ;;  %v10220_v21 = vld [vmem:[#allocation211_spill] sm:$0xff]  ;;  %v10225_v18 = vld [vmem:[#allocation214_spill] sm:$0xff] }
 0x2ef   :  { %v4425_v3 = vmul.f32 %v8390_v42, %v4424_v60  ;;  %v2174_v17 = vadd.f32 %v10219_v59, %v8062_v25  ;;  %v2173_v31 = vadd.f32 %v10220_v21, %v8066_v36  ;;  %v8461_v52 = vsel %vm515_vm0, %v2843_v47, %v2845_v28  ;;  %v8466_v50 = vpop.permute.xlu1 %3557  ;;  %v8468_v39 = vpop.permute.xlu0 %3555 }
 0x2f0   :  { %10221 = vst [vmem:[#allocation131_spill] sm:$0xff] %v8461_v52  ;;  %v8464_v0 = vsel %vm515_vm0, %v2842_v56, %v2843_v47  ;;  %10223 = vst [vmem:[#allocation133_spill] sm:$0xff] %v8466_v50  ;;  %v2212_v46 = vadd.f32 %v10225_v18, %v8078_v61  ;;  %v2859_v25 = vmul.f32 %v8287_v38, %v8417_v54  ;;  %v4438_v56 = vrot.slane %v4426_v24, 2  ;;  %v10226_v50 = vld [vmem:[#allocation215_spill] sm:$0xff] }
 0x2f1   :  { %10222 = vst [vmem:[#allocation132_spill] sm:$0xff] %v8464_v0  ;;  %10224 = vst [vmem:[#allocation134_spill] sm:$0xff] %v8468_v39  ;;  %v4429_v36 = vmul.f32 %v8372_v40, %v4424_v60  ;;  %4409 = vrot.lane.b32.xlu1 %v4401_v48, %s4869_s4  ;;  %v4406_v47 = vsel %vm1412_vm1, %v4403_v32, %v4405_v14  ;;  %v4404_v28 = vsel %vm1412_vm1, %v4402_v2, %v4403_v32 }
 0x2f2   :  { %4407 = vrot.lane.b32.xlu0 %v4399_v20, %s4869_s4  ;;  %v4430_v61 = vmul.f32 %v8329_v51, %v4424_v60  ;;  %v4440_v21 = vrot.slane %v4427_v41, 2  ;;  %v4437_v18 = vrot.slane %v4425_v3, 2  ;;  %v4428_v39 = vmul.f32 %v8402_v62, %v4424_v60  ;;  %v10228_v20 = vld [vmem:[#allocation21_spill] sm:$0xff]  ;;  %v10231_v60 = vld [vmem:[#allocation16_spill] sm:$0xff]  ;;  %v10232_v41 = vld [vmem:[#allocation174_spill] sm:$0xff] }
 0x2f3   :  { %v4464_v59 = vstv %s8425_s17  ;;  %v2211_v13 = vadd.f32 %v10226_v50, %v8082_v6  ;;  %v8488_v48 = vadd.f32 %v10227_v58, %v2174_v17  ;;  %v8491_v0 = vadd.f32 %v10228_v20, %v2173_v31  ;;  %v8497_v14 = vpop.permute.xlu1 %3593  ;;  %v8499_v2 = vpop.permute.xlu0 %3591  ;;  %s4841_s17 = scalar_lea.vmem %s4629_s16, 4096 }
 0x2f4   :  { %v8495_v32 = vmul.f32 %v8390_v42, %v8417_v54  ;;  %10229 = vst [vmem:[#allocation88_spill] sm:$0xff] %v8497_v14  ;;  %10230 = vst [vmem:[#allocation135_spill] sm:$0xff] %v8499_v2  ;;  %v2294_v24 = vadd.f32 %v10231_v60, %v8134_v4  ;;  %v8504_v6 = vadd.f32 %v10232_v41, %v2212_v46  ;;  %v2872_v3 = vrot.slane %v2859_v25, 1  ;;  %v10234_v60 = vld [vmem:[#allocation100_spill] sm:$0xff]  ;;  %p4842_p5 = scmp.ne.s32.totalorder %s4629_s16, %s4841_s17  ;;  %p4847_p7 = scmp.lt.s32.totalorder %s4841_s17, %s4841_s17 }
 0x2f5   :  { %v4443_v58 = vrot.slane %v4429_v36, 2  ;;  %4413 = vrot.lane.b32.xlu1 %v4406_v47, %s4869_s4  ;;  %v4445_v17 = vrot.slane %v4430_v61, 2  ;;  %v4466_v31 = vmul.f32 %v8383_v15, %v4464_v59  ;;  %v4467_v50 = vmul.f32 %v8287_v38, %v4464_v59  ;;  %v10233_v36 = vld [vmem:[#allocation168_spill] sm:$0xff] }
 0x2f6   :  { %4411 = vrot.lane.b32.xlu0 %v4404_v28, %s4869_s4  ;;  %v4465_v20 = vmul.f32 %v8390_v42, %v4464_v59  ;;  %v8512_v2 = vstv %s8450_s1  ;;  %v4441_v4 = vsel %vm1412_vm1, %v4438_v56, %v4440_v21  ;;  %v4439_v46 = vsel %vm1412_vm1, %v4437_v18, %v4438_v56  ;;  %p4848_p8 = por %p4847_p7, %p4846_p6 }
 0x2f7   :  { %v4442_v25 = vrot.slane %v4428_v39, 2  ;;  %v2293_v47 = vadd.f32 %v10233_v36, %v8142_v43  ;;  %v8519_v28 = vadd.f32 %v10234_v60, %v2211_v13  ;;  %v3021_v61 = vmul.f32 %v8372_v40, %v8512_v2  ;;  %v8525_v14 = vpop.permute.xlu1 %3597  ;;  %v8527_v52 = vpop.permute.xlu0 %3595 }
 0x2f8   :  { %v3022_v41 = vmul.f32 %v8329_v51, %v8512_v2  ;;  %10235 = vst [vmem:[#allocation198_spill] sm:$0xff] %v8525_v14  ;;  %10236 = vst [vmem:[#allocation136_spill] sm:$0xff] %v8527_v52  ;;  %v2374_v21 = vadd.f32 %v7939_v23, %v2294_v24  ;;  %v10237_v39 = vrot.slane %v8445_v27, 1  ;;  %v3020_v43 = vmul.f32 %v8402_v62, %v8512_v2  ;;  %p4849_p9 = pnand %p4848_p8, %p4842_p5 }
 0x2f9   :  { %v4504_v13 = vstv %s8476_s18  ;;  %4449 = vrot.lane.b32.xlu1 %v4441_v4, %s4869_s4  ;;  %v4446_v18 = vsel %vm1412_vm1, %v4443_v58, %v4445_v17  ;;  %v4478_v36 = vrot.slane %v4466_v31, 2  ;;  %v4480_v60 = vrot.slane %v4467_v50, 2  ;;  %v10241_v50 = vld [vmem:[#allocation47_spill] sm:$0xff] }
 0x2fa   :  { %v8533_v56 = vsel %vm515_vm0, %v10237_v39, %v2872_v3  ;;  %4447 = vrot.lane.b32.xlu0 %v4439_v46, %s4869_s4  ;;  %v4477_v52 = vrot.slane %v4465_v20, 2  ;;  %v4444_v23 = vsel %vm1412_vm1, %v4442_v25, %v4443_v58  ;;  %v4469_v24 = vmul.f32 %v8372_v40, %v4464_v59 }
 0x2fb   :  { %10238 = vst [vmem:[#allocation92_spill] sm:$0xff] %v8533_v56  ;;  %v4470_v3 = vmul.f32 %v8329_v51, %v4464_v59  ;;  %v4468_v39 = vmul.f32 %v8402_v62, %v4464_v59  ;;  %v2373_v14 = vadd.f32 %v7942_v33, %v2293_v47  ;;  %v3035_v4 = vrot.slane %v3021_v61, 1  ;;  %v8548_v46 = vpop.permute.xlu1 %3633  ;;  %v8550_v17 = vpop.permute.xlu0 %3631 }
 0x2fc   :  { %v3037_v56 = vrot.slane %v3022_v41, 1  ;;  %10239 = vst [vmem:[#allocation137_spill] sm:$0xff] %v8548_v46  ;;  %10240 = vst [vmem:[#allocation138_spill] sm:$0xff] %v8550_v17  ;;  %v4506_v31 = vmul.f32 %v8383_v15, %v4504_v13  ;;  %v2582_v58 = vadd.f32 %v10241_v50, %v2374_v21  ;;  %v2869_v20 = vrot.slane %v8495_v32, 1  ;;  %v10243_v46 = vld [vmem:[#allocation216_spill] sm:$0xff] }
 0x2fd   :  { %v8557_v25 = vmul.f32 %v8372_v40, %v8417_v54  ;;  %v4507_v59 = vmul.f32 %v8287_v38, %v4504_v13  ;;  %v2581_v33 = vadd.f32 %v10242_v53, %v2373_v14  ;;  %v3034_v47 = vrot.slane %v3020_v43, 1  ;;  %4453 = vrot.lane.b32.xlu1 %v4446_v18, %s4869_s4 }
 0x2fe   :  { %4451 = vrot.lane.b32.xlu0 %v4444_v23, %s4869_s4  ;;  %v4481_v61 = vsel %vm1412_vm1, %v4478_v36, %v4480_v60  ;;  %v4479_v41 = vsel %vm1412_vm1, %v4477_v52, %v4478_v36  ;;  %v4483_v21 = vrot.slane %v4469_v24, 2  ;;  %v4485_v50 = vrot.slane %v4470_v3, 2  ;;  %v10247_v52 = vld [vmem:[#allocation80_spill] sm:$0xff]  ;;  %v10248_v23 = vld [vmem:[#allocation81_spill] sm:$0xff] }
 0x2ff   :  { %v4482_v32 = vrot.slane %v4468_v39, 2  ;;  %v4505_v17 = vmul.f32 %v8390_v42, %v4504_v13  ;;  %v2214_v8 = vadd.f32 %v10243_v46, %v8086_v7  ;;  %v2213_v53 = vadd.f32 %v10244_v9, %v8090_v30  ;;  %v8571_v43 = vpop.permute.xlu1 %3637  ;;  %v8573_v18 = vpop.permute.xlu0 %3635  ;;  %v10257_v39 = vld [vmem:[#allocation102_spill] sm:$0xff] }
 0x300   :  { %v3038_v14 = vsel %vm515_vm0, %v3035_v4, %v3037_v56  ;;  %10245 = vst [vmem:[#allocation139_spill] sm:$0xff] %v8571_v43  ;;  %10246 = vst [vmem:[#allocation140_spill] sm:$0xff] %v8573_v18  ;;  %v4518_v60 = vrot.slane %v4506_v31, 2  ;;  %v2790_v36 = vadd.f32 %v10247_v52, %v2582_v58  ;;  %v2789_v24 = vadd.f32 %v10248_v23, %v2581_v33  ;;  %v10249_v33 = vld [vmem:[#allocation221_spill] sm:$0xff] }
 0x301   :  { %v4520_v3 = vrot.slane %v4507_v59, 2  ;;  %v4509_v7 = vmul.f32 %v8372_v40, %v4504_v13  ;;  %v3036_v30 = vsel %vm515_vm0, %v3034_v47, %v3035_v4  ;;  %4489 = vrot.lane.b32.xlu1 %v4481_v61, %s4869_s4  ;;  %v4510_v9 = vmul.f32 %v8329_v51, %v4504_v13  ;;  %v10250_v4 = vld [vmem:[#allocation213_spill] sm:$0xff] }
 0x302   :  { %4487 = vrot.lane.b32.xlu0 %v4479_v41, %s4869_s4  ;;  %v4508_v56 = vmul.f32 %v8402_v62, %v4504_v13  ;;  %v4486_v46 = vsel %vm1412_vm1, %v4483_v21, %v4485_v50  ;;  %v4484_v31 = vsel %vm1412_vm1, %v4482_v32, %v4483_v21  ;;  %v4517_v58 = vrot.slane %v4505_v17, 2 }
 0x303   :  { %v4544_v59 = vstv %s8545_s19  ;;  %v2252_v52 = vadd.f32 %v10249_v33, %v8100_v1  ;;  %v8592_v23 = vadd.f32 %v7830_v37, %v2214_v8  ;;  %v8595_v47 = vadd.f32 %v10250_v4, %v2213_v53  ;;  %v8599_v41 = vpop.permute.xlu1 %3673  ;;  %v8601_v13 = vpop.permute.xlu0 %3671  ;;  %v10253_v33 = vld [vmem:[#allocation114_spill] sm:$0xff] }
 0x304   :  { %v2862_v61 = vmul.f32 %v8329_v51, %v8417_v54  ;;  %10251 = vst [vmem:[#allocation141_spill] sm:$0xff] %v8599_v41  ;;  %10252 = vst [vmem:[#allocation142_spill] sm:$0xff] %v8601_v13  ;;  %v3046_v50 = vadd.f32 %v3038_v14, %v2790_v36  ;;  %v3045_v21 = vadd.f32 %v3036_v30, %v2789_v24  ;;  %v4523_v32 = vrot.slane %v4509_v7, 2  ;;  %v10254_v14 = vld [vmem:[#allocation115_spill] sm:$0xff]  ;;  %v10255_v7 = vld [vmem:[#allocation52_spill] sm:$0xff] }
 0x305   :  { %v4521_v17 = vsel %vm1412_vm1, %v4518_v60, %v4520_v3  ;;  %4493 = vrot.lane.b32.xlu1 %v4486_v46, %s4869_s4  ;;  %v4525_v37 = vrot.slane %v4510_v9, 2  ;;  %v4522_v1 = vrot.slane %v4508_v56, 2  ;;  %v4546_v8 = vmul.f32 %v8383_v15, %v4544_v59  ;;  %v10256_v30 = vld [vmem:[#allocation222_spill] sm:$0xff] }
 0x306   :  { %4491 = vrot.lane.b32.xlu0 %v4484_v31, %s4869_s4  ;;  %v4547_v53 = vmul.f32 %v8287_v38, %v4544_v59  ;;  %v3366_v4 = vadd.f32 %v10253_v33, %v3046_v50  ;;  %v3365_v36 = vadd.f32 %v10254_v14, %v3045_v21  ;;  %v4519_v24 = vsel %vm1412_vm1, %v4517_v58, %v4518_v60 }
 0x307   :  { %v4545_v3 = vmul.f32 %v8390_v42, %v4544_v59  ;;  %v2251_v46 = vadd.f32 %v10256_v30, %v10255_v7  ;;  %v8617_v31 = vadd.f32 %v10257_v39, %v2252_v52  ;;  %v10258_v9 = vrot.slane %v8445_v27, 1  ;;  %v3678_v41 = vpop.permute.xlu1 %3677  ;;  %v3676_v50 = vpop.permute.xlu0 %3675  ;;  %v10269_v30 = vld [vmem:[#allocation160_spill] sm:$0xff] }
 0x308   :  { %v2877_v13 = vrot.slane %v2862_v61, 1  ;;  %v2860_v21 = vmul.f32 %v8402_v62, %v8417_v54  ;;  %v2888_v60 = vstv %s8577_s20  ;;  %v8627_v58 = vadd.f32 %v3678_v41, %v3366_v4  ;;  %v10261_v4 = vld [vmem:[#allocation103_spill] sm:$0xff] }
 0x309   :  { %v8622_v56 = vsel %vm515_vm0, %v2869_v20, %v10258_v9  ;;  %v8629_v33 = vadd.f32 %v3676_v50, %v3365_v36  ;;  %4529 = vrot.lane.b32.xlu1 %v4521_v17, %s4869_s4  ;;  %v4526_v27 = vsel %vm1412_vm1, %v4523_v32, %v4525_v37  ;;  %v4524_v20 = vsel %vm1412_vm1, %v4522_v1, %v4523_v32  ;;  %v10270_v9 = vld [vmem:[#allocation113_spill] sm:$0xff]  ;;  %v10271_v50 = vld [vmem:[#allocation163_spill] sm:$0xff] }
 0x30a   :  { %10259 = vst [vmem:[#allocation143_spill] sm:$0xff] %v8627_v58  ;;  %4527 = vrot.lane.b32.xlu0 %v4519_v24, %s4869_s4  ;;  %v4558_v39 = vrot.slane %v4546_v8, 2  ;;  %v4560_v52 = vrot.slane %v4547_v53, 2  ;;  %v4557_v61 = vrot.slane %v4545_v3, 2  ;;  %v4549_v14 = vmul.f32 %v8372_v40, %v4544_v59  ;;  %v10266_v53 = vld [vmem:[#allocation12_spill] sm:$0xff]  ;;  %v10267_v3 = vld [vmem:[#allocation10_spill] sm:$0xff] }
 0x30b   :  { %10260 = vst [vmem:[#allocation144_spill] sm:$0xff] %v8629_v33  ;;  %v4550_v54 = vmul.f32 %v8329_v51, %v4544_v59  ;;  %v4548_v41 = vmul.f32 %v8402_v62, %v4544_v59  ;;  %v8639_v36 = vadd.f32 %v10261_v4, %v2251_v46  ;;  %v10262_v17 = vrot.slane %v8557_v25, 1  ;;  %v8648_v1 = vpop.permute.xlu1 %3969  ;;  %v8650_v8 = vpop.permute.xlu0 %3967  ;;  %v10268_v59 = vld [vmem:[#allocation112_spill] sm:$0xff] }
 0x30c   :  { %v2890_v32 = vmul.f32 %v8383_v15, %v2888_v60  ;;  %v2891_v37 = vmul.f32 %v8287_v38, %v2888_v60  ;;  %10264 = vst [vmem:[#allocation146_spill] sm:$0xff] %v8648_v1  ;;  %10265 = vst [vmem:[#allocation147_spill] sm:$0xff] %v8650_v8  ;;  %v2254_v7 = vadd.f32 %v10267_v3, %v10266_v53  ;;  %v2874_v33 = vrot.slane %v2860_v21, 1 }
 0x30d   :  { %v8644_v24 = vsel %vm515_vm0, %v10262_v17, %v2877_v13  ;;  %v2253_v46 = vadd.f32 %v10269_v30, %v10268_v59  ;;  %v2292_v4 = vadd.f32 %v10271_v50, %v10270_v9  ;;  %v10272_v13 = vld [vmem:[#allocation53_spill] sm:$0xff]  ;;  %v10273_v17 = vld [vmem:[#allocation14_spill] sm:$0xff]  ;;  %v2889_v18 = vmul.f32 %v8390_v42, %v2888_v60  ;;  %4533 = vrot.lane.b32.xlu1 %v4526_v27, %s4869_s4  ;;  %v10276_v27 = vld [vmem:[#allocation104_spill] sm:$0xff] }
 0x30e   :  { %10263 = vst [vmem:[#allocation145_spill] sm:$0xff] %v8644_v24  ;;  %v2291_v58 = vadd.f32 %v10273_v17, %v10272_v13  ;;  %v2920_v43 = vstv %s8604_s21  ;;  %4531 = vrot.lane.b32.xlu0 %v4524_v20, %s4869_s4  ;;  %v4561_v53 = vsel %vm1412_vm1, %v4558_v39, %v4560_v52  ;;  %v4559_v3 = vsel %vm1412_vm1, %v4557_v61, %v4558_v39  ;;  %v10277_v20 = vld [vmem:[#allocation185_spill] sm:$0xff] }
 0x30f   :  { %v4563_v59 = vrot.slane %v4549_v14, 2  ;;  %v4565_v30 = vrot.slane %v4550_v54, 2  ;;  %v4562_v9 = vrot.slane %v4548_v41, 2  ;;  %v2902_v21 = vrot.slane %v2890_v32, 1  ;;  %v8670_v17 = vpop.permute.xlu1 %3973  ;;  %v8672_v1 = vpop.permute.xlu0 %3971  ;;  %v10278_v39 = vld [vmem:[#allocation105_spill] sm:$0xff]  ;;  %v10280_v41 = vld [vmem:[#allocation106_spill] sm:$0xff] }
 0x310   :  { %v2904_v50 = vrot.slane %v2891_v37, 1  ;;  %v2893_v8 = vmul.f32 %v8372_v40, %v2888_v60  ;;  %v2894_v13 = vmul.f32 %v8329_v51, %v2888_v60  ;;  %10274 = vst [vmem:[#allocation148_spill] sm:$0xff] %v8670_v17  ;;  %10275 = vst [vmem:[#allocation149_spill] sm:$0xff] %v8672_v1  ;;  %v8675_v24 = vadd.f32 %v10276_v27, %v2254_v7  ;;  %v10282_v27 = vld [vmem:[#allocation17_spill] sm:$0xff] }
 0x311   :  { %v8678_v52 = vadd.f32 %v10277_v20, %v2253_v46  ;;  %v8681_v61 = vadd.f32 %v10278_v39, %v2292_v4  ;;  %v10279_v14 = vrot.slane %v8557_v25, 1  ;;  %v8689_v32 = vadd.f32 %v10280_v41, %v2291_v58  ;;  %4569 = vrot.lane.b32.xlu1 %v4561_v53, %s4869_s4  ;;  %v10281_v58 = vld [vmem:[#allocation116_spill] sm:$0xff] }
 0x312   :  { %v2901_v37 = vrot.slane %v2889_v18, 1  ;;  %v2892_v1 = vmul.f32 %v8402_v62, %v2888_v60  ;;  %v2922_v7 = vmul.f32 %v8383_v15, %v2920_v43  ;;  %4567 = vrot.lane.b32.xlu0 %v4559_v3, %s4869_s4  ;;  %v2923_v46 = vmul.f32 %v8287_v38, %v2920_v43 }
 0x313   :  { %v8686_v54 = vsel %vm515_vm0, %v2874_v33, %v10279_v14  ;;  %v2921_v25 = vmul.f32 %v8390_v42, %v2920_v43  ;;  %v4566_v33 = vsel %vm1412_vm1, %v4563_v59, %v4565_v30  ;;  %v4564_v4 = vsel %vm1412_vm1, %v4562_v9, %v4563_v59  ;;  %v8708_v3 = vpop.permute.xlu1 %4009  ;;  %v8710_v39 = vpop.permute.xlu0 %4007  ;;  %v10285_v14 = vld [vmem:[#allocation169_spill] sm:$0xff] }
 0x314   :  { %v8701_v18 = vadd.f32 %v10282_v27, %v10281_v58  ;;  %v8704_v60 = vsel %vm515_vm0, %v2902_v21, %v2904_v50  ;;  %v2907_v20 = vrot.slane %v2893_v8, 1  ;;  %v2909_v53 = vrot.slane %v2894_v13, 1  ;;  %10283 = vst [vmem:[#allocation150_spill] sm:$0xff] %v8708_v3  ;;  %10284 = vst [vmem:[#allocation151_spill] sm:$0xff] %v8710_v39  ;;  %v10286_v50 = vld [vmem:[#allocation20_spill] sm:$0xff] }
 0x315   :  { %v8714_v30 = vadd.f32 %v10285_v14, %v8192_v11  ;;  %v2925_v59 = vmul.f32 %v8372_v40, %v2920_v43  ;;  %v2926_v9 = vmul.f32 %v8329_v51, %v2920_v43  ;;  %v2952_v41 = vstv %s8658_s22  ;;  %4573 = vrot.lane.b32.xlu1 %v4566_v33, %s4869_s4  ;;  %v10288_v11 = vld [vmem:[#allocation172_spill] sm:$0xff] }
 0x316   :  { %v8721_v58 = vadd.f32 %v10286_v50, %v8202_v10  ;;  %v8724_v8 = vsel %vm515_vm0, %v2901_v37, %v2902_v21  ;;  %v2906_v13 = vrot.slane %v2892_v1, 1  ;;  %v2924_v27 = vmul.f32 %v8402_v62, %v2920_v43  ;;  %4571 = vrot.lane.b32.xlu0 %v4564_v4, %s4869_s4  ;;  %v10292_v4 = vld [vmem:[#allocation173_spill] sm:$0xff]  ;;  %v10294_v50 = vld [vmem:[#allocation23_spill] sm:$0xff]  ;;  %s8787_s4 = sld [smem:[#allocation2 + $0xf]] }
 0x317   :  { %10287 = vst [vmem:[#allocation152_spill] sm:$0xff] %v8724_v8  ;;  %v8731_v14 = vadd.f32 %v10288_v11, %v8205_v19  ;;  %v2934_v39 = vrot.slane %v2922_v7, 1  ;;  %v2936_v3 = vrot.slane %v2923_v46, 1  ;;  %v2933_v17 = vrot.slane %v2921_v25, 1  ;;  %v8739_v37 = vpop.permute.xlu1 %4013  ;;  %v8741_v33 = vpop.permute.xlu0 %4011  ;;  %v10293_v7 = vld [vmem:[#allocation22_spill] sm:$0xff] }
 0x318   :  { %v8734_v10 = vsel %vm515_vm0, %v2907_v20, %v2909_v53  ;;  %v2954_v21 = vmul.f32 %v8383_v15, %v2952_v41  ;;  %v2955_v1 = vmul.f32 %v8287_v38, %v2952_v41  ;;  %v2953_v43 = vmul.f32 %v8390_v42, %v2952_v41  ;;  %10290 = vst [vmem:[#allocation154_spill] sm:$0xff] %v8739_v37 }
 0x319   :  { %10289 = vst [vmem:[#allocation153_spill] sm:$0xff] %v8734_v10  ;;  %10291 = vst [vmem:[#allocation155_spill] sm:$0xff] %v8741_v33  ;;  %v8745_v19 = vadd.f32 %v10292_v4, %v8241_v12  ;;  %v8749_v46 = vadd.f32 %v10293_v7, %v8249_v22  ;;  %v2939_v25 = vrot.slane %v2925_v59, 1  ;;  %v2941_v53 = vrot.slane %v2926_v9, 1  ;;  %v10295_v10 = vld [vmem:[#allocation30_spill] sm:$0xff]  ;;  %v10297_v22 = vld [vmem:[#allocation25_spill] sm:$0xff] }
 0x31a   :  { %v8753_v11 = vadd.f32 %v10294_v50, %v8264_v45  ;;  %v8757_v37 = vadd.f32 %v10295_v10, %v8267_v57  ;;  %v8760_v33 = vsel %vm515_vm0, %v2906_v13, %v2907_v20  ;;  %v2938_v8 = vrot.slane %v2924_v27, 1  ;;  %v10296_v12 = vld [vmem:[#allocation178_spill] sm:$0xff] }
 0x31b   :  { %v8764_v4 = vadd.f32 %v10296_v12, %v8300_v16  ;;  %v8768_v59 = vadd.f32 %v10297_v22, %v8317_v35  ;;  %v8771_v9 = vsel %vm515_vm0, %v2934_v39, %v2936_v3  ;;  %v8774_v45 = vsel %vm515_vm0, %v2933_v17, %v2934_v39  ;;  %v8777_v13 = vpop.permute.xlu1 %4049  ;;  %v8779_v27 = vpop.permute.xlu0 %4047  ;;  %v10303_v17 = vld [vmem:[#allocation26_spill] sm:$0xff]  ;;  %v10307_v22 = vld [vmem:[#allocation31_spill] sm:$0xff] }
 0x31c   :  { %10298 = vst [vmem:[#allocation156_spill] sm:$0xff] %v8771_v9  ;;  %10299 = vst [vmem:[#allocation157_spill] sm:$0xff] %v8774_v45  ;;  %v2966_v57 = vrot.slane %v2954_v21, 1  ;;  %v2968_v10 = vrot.slane %v2955_v1, 1  ;;  %v2965_v7 = vrot.slane %v2953_v43, 1  ;;  %v2984_v20 = vstv %s8706_s24  ;;  %v10304_v21 = vld [vmem:[#allocation180_spill] sm:$0xff] }
 0x31d   :  { %10300 = vst [vmem:[#allocation165_spill] sm:$0xff] %v8777_v13  ;;  %10301 = vst [vmem:[#allocation166_spill] sm:$0xff] %v8779_v27  ;;  %v8782_v16 = vsel %vm515_vm0, %v2939_v25, %v2941_v53  ;;  %v2957_v35 = vmul.f32 %v8372_v40, %v2952_v41  ;;  %v2958_v50 = vmul.f32 %v8329_v51, %v2952_v41  ;;  %v10305_v43 = vld [vmem:[#allocation27_spill] sm:$0xff] }
 0x31e   :  { %10302 = vst [vmem:[#allocation176_spill] sm:$0xff] %v8782_v16  ;;  %v2956_v3 = vmul.f32 %v8402_v62, %v2952_v41  ;;  %v8791_v39 = vadd.f32 %v10303_v17, %v8343_v34  ;;  %v8795_v1 = vadd.f32 %v10304_v21, %v8350_v26  ;;  %v8799_v53 = vadd.f32 %v10305_v43, %v8353_v29  ;;  %v10312_v16 = vld [vmem:[#allocation181_spill] sm:$0xff] }
 0x31f   :  { %v8802_v12 = vsel %vm515_vm0, %v2938_v8, %v2939_v25  ;;  %v8806_v41 = vadd.f32 %v10307_v22, %v8364_v55  ;;  %v2986_v27 = vmul.f32 %v8383_v15, %v2984_v20  ;;  %v2987_v34 = vmul.f32 %v8287_v38, %v2984_v20  ;;  %v8819_v25 = vpop.permute.xlu1 %4053  ;;  %v8821_v55 = vpop.permute.xlu0 %4051 }
 0x320   :  { %10306 = vst [vmem:[#allocation177_spill] sm:$0xff] %v8802_v12  ;;  %v2985_v17 = vmul.f32 %v8390_v42, %v2984_v20  ;;  %v8812_v26 = vsel %vm515_vm0, %v2966_v57, %v2968_v10  ;;  %v8815_v21 = vsel %vm515_vm0, %v2965_v7, %v2966_v57  ;;  %v2989_v29 = vmul.f32 %v8372_v40, %v2984_v20  ;;  %v10313_v57 = vld [vmem:[#allocation28_spill] sm:$0xff] }
 0x321   :  { %10308 = vst [vmem:[#allocation69_spill] sm:$0xff] %v8812_v26  ;;  %10309 = vst [vmem:[#allocation70_spill] sm:$0xff] %v8815_v21  ;;  %v2990_v8 = vmul.f32 %v8329_v51, %v2984_v20  ;;  %v2971_v43 = vrot.slane %v2957_v35, 1  ;;  %v2973_v22 = vrot.slane %v2958_v50, 1  ;;  %v2970_v13 = vrot.slane %v2956_v3, 1 }
 0x322   :  { %10310 = vst [vmem:[#allocation182_spill] sm:$0xff] %v8819_v25  ;;  %10311 = vst [vmem:[#allocation73_spill] sm:$0xff] %v8821_v55  ;;  %v2988_v12 = vmul.f32 %v8402_v62, %v2984_v20  ;;  %v8826_v10 = vadd.f32 %v10312_v16, %v8428_v5  ;;  %v8830_v7 = vadd.f32 %v10313_v57, %v8435_v44  ;;  %v2998_v35 = vrot.slane %v2986_v27, 1  ;;  %v10314_v5 = vld [vmem:[#allocation184_spill] sm:$0xff]  ;;  %v10315_v44 = vld [vmem:[#allocation29_spill] sm:$0xff] }
 0x323   :  { %v3018_v21 = vmul.f32 %v8383_v15, %v8512_v2  ;;  %v3019_v55 = vmul.f32 %v8287_v38, %v8512_v2  ;;  %v3000_v50 = vrot.slane %v2987_v34, 1  ;;  %v2997_v3 = vrot.slane %v2985_v17, 1  ;;  %v8846_v45 = vpop.permute.xlu1 %4089  ;;  %v8848_v9 = vpop.permute.xlu0 %4087 }
 0x324   :  { %v3017_v20 = vmul.f32 %v8390_v42, %v8512_v2  ;;  %v8840_v16 = vadd.f32 %v10314_v5, %v8438_v49  ;;  %v8844_v57 = vadd.f32 %v10315_v44, %v8441_v63  ;;  %v3003_v25 = vrot.slane %v2989_v29, 1  ;;  %10316 = vst [vmem:[#allocation74_spill] sm:$0xff] %v8846_v45  ;;  %10317 = vst [vmem:[#allocation183_spill] sm:$0xff] %v8848_v9  ;;  %v10318_v49 = vld [vmem:[#allocation34_spill] sm:$0xff]  ;;  %v10319_v63 = vld [vmem:[#allocation35_spill] sm:$0xff] }
 0x325   :  { %v3005_v26 = vrot.slane %v2990_v8, 1  ;;  %v8851_v27 = vsel %vm515_vm0, %v2971_v43, %v2973_v22  ;;  %v8854_v34 = vsel %vm515_vm0, %v2970_v13, %v2971_v43  ;;  %v3002_v2 = vrot.slane %v2988_v12, 1  ;;  %v10320_v22 = vld [vmem:[#allocation186_spill] sm:$0xff]  ;;  %v10323_v43 = vld [vmem:[#allocation36_spill] sm:$0xff] }
 0x326   :  { %v3688_v17 = vstv %s8787_s4  ;;  %v8859_v5 = vadd.f32 %v10318_v49, %v8488_v48  ;;  %v8863_v29 = vadd.f32 %v10319_v63, %v8491_v0  ;;  %v3030_v8 = vrot.slane %v3018_v21, 1 }
 0x327   :  { %v3032_v44 = vrot.slane %v3019_v55, 1  ;;  %v8869_v9 = vadd.f32 %v10320_v22, %v8504_v6  ;;  %v8872_v13 = vsel %vm515_vm0, %v2998_v35, %v3000_v50  ;;  %v8875_v12 = vsel %vm515_vm0, %v2997_v3, %v2998_v35  ;;  %v8886_v6 = vpop.permute.xlu1 %4093  ;;  %v8888_v63 = vpop.permute.xlu0 %4091  ;;  %v10327_v50 = vld [vmem:[#allocation192_spill] sm:$0xff]  ;;  %v10328_v3 = vld [vmem:[#allocation38_spill] sm:$0xff] }
 0x328   :  { %10321 = vst [vmem:[#allocation187_spill] sm:$0xff] %v8872_v13  ;;  %10322 = vst [vmem:[#allocation188_spill] sm:$0xff] %v8875_v12  ;;  %v3029_v48 = vrot.slane %v3017_v20, 1  ;;  %v8879_v49 = vadd.f32 %v10323_v43, %v8519_v28  ;;  %v8882_v0 = vsel %vm515_vm0, %v3003_v25, %v3005_v26  ;;  %v3690_v21 = vmul.f32 %v8383_v15, %v3688_v17  ;;  %v10330_v22 = vld [vmem:[#allocation40_spill] sm:$0xff] }
 0x329   :  { %10324 = vst [vmem:[#allocation78_spill] sm:$0xff] %v8882_v0  ;;  %v3691_v55 = vmul.f32 %v8287_v38, %v3688_v17  ;;  %10325 = vst [vmem:[#allocation79_spill] sm:$0xff] %v8886_v6  ;;  %v8892_v35 = vadd.f32 %v10327_v50, %v8592_v23  ;;  %v8896_v20 = vadd.f32 %v10328_v3, %v8595_v47  ;;  %v10331_v6 = vld [vmem:[#allocation41_spill] sm:$0xff]  ;;  %v10332_v23 = vld [vmem:[#allocation206_spill] sm:$0xff] }
 0x32a   :  { %10326 = vst [vmem:[#allocation189_spill] sm:$0xff] %v8888_v63  ;;  %v8899_v28 = vsel %vm515_vm0, %v3002_v2, %v3003_v25  ;;  %v3689_v26 = vmul.f32 %v8390_v42, %v3688_v17  ;;  %v8904_v43 = vadd.f32 %v10330_v22, %v8617_v31  ;;  %v8908_v63 = vadd.f32 %v10331_v6, %v8639_v36  ;;  %v10334_v47 = vld [vmem:[#allocation42_spill] sm:$0xff]  ;;  %v10335_v2 = vld [vmem:[#allocation43_spill] sm:$0xff] }
 0x32b   :  { %10329 = vst [vmem:[#allocation83_spill] sm:$0xff] %v8899_v28  ;;  %v2606_v50 = vadd.f32 %v10332_v23, %v8701_v18  ;;  %v8913_v45 = vsel %vm515_vm0, %v3030_v8, %v3032_v44  ;;  %v8917_v25 = vadd.f32 %v10334_v47, %v8675_v24  ;;  %v8921_v3 = vadd.f32 %v10335_v2, %v8678_v52  ;;  %v10336_v31 = vld [vmem:[#allocation207_spill] sm:$0xff]  ;;  %v10338_v18 = vld [vmem:[#allocation208_spill] sm:$0xff]  ;;  %v10339_v44 = vld [vmem:[#allocation209_spill] sm:$0xff]  ;;  %v8934_v47 = vpop.permute.xlu1 %4129  ;;  %v8936_v52 = vpop.permute.xlu0 %4127 }
 0x32c   :  { %10333 = vst [vmem:[#allocation86_spill] sm:$0xff] %v8913_v45  ;;  %v2605_v22 = vadd.f32 %v10336_v31, %v8714_v30  ;;  %v8926_v36 = vsel %vm515_vm0, %v3029_v48, %v3030_v8  ;;  %v2608_v6 = vadd.f32 %v10338_v18, %v8721_v58  ;;  %v2607_v23 = vadd.f32 %v10339_v44, %v8731_v14  ;;  %v10342_v30 = vld [vmem:[#allocation44_spill] sm:$0xff]  ;;  %v10343_v8 = vld [vmem:[#allocation45_spill] sm:$0xff]  ;;  %v10344_v14 = vld [vmem:[#allocation162_spill] sm:$0xff] }
 0x32d   :  { %10337 = vst [vmem:[#allocation190_spill] sm:$0xff] %v8926_v36  ;;  %v3702_v45 = vrot.slane %v3690_v21, 2  ;;  %v3704_v24 = vrot.slane %v3691_v55, 2  ;;  %10340 = vst [vmem:[#allocation193_spill] sm:$0xff] %v8934_v47  ;;  %v8940_v2 = vadd.f32 %v10342_v30, %v8681_v61  ;;  %v8944_v48 = vadd.f32 %v10343_v8, %v8689_v32  ;;  %v10345_v55 = vld [vmem:[#allocation117_spill] sm:$0xff]  ;;  %v10346_v47 = vld [vmem:[#allocation54_spill] sm:$0xff] }
 0x32e   :  { %10341 = vst [vmem:[#allocation87_spill] sm:$0xff] %v8936_v52  ;;  %v3701_v58 = vrot.slane %v3689_v26, 2  ;;  %v3693_v31 = vmul.f32 %v8372_v40, %v3688_v17  ;;  %v2632_v21 = vadd.f32 %v10344_v14, %v8745_v19  ;;  %v8950_v18 = vadd.f32 %v10345_v55, %v2606_v50  ;;  %v10347_v30 = vld [vmem:[#allocation164_spill] sm:$0xff]  ;;  %v10350_v14 = vld [vmem:[#allocation121_spill] sm:$0xff]  ;;  %v10351_v55 = vld [vmem:[#allocation126_spill] sm:$0xff] }
 0x32f   :  { %v3694_v44 = vmul.f32 %v8329_v51, %v3688_v17  ;;  %v3720_v52 = vstv %s8865_s25  ;;  %v2631_v61 = vadd.f32 %v10346_v47, %v8749_v46  ;;  %v2634_v36 = vadd.f32 %v10347_v30, %v8753_v11  ;;  %v10348_v32 = vld [vmem:[#allocation220_spill] sm:$0xff]  ;;  %v8973_v46 = vpop.permute.xlu1 %4133  ;;  %v8975_v11 = vpop.permute.xlu0 %4131  ;;  %v10357_v47 = vld [vmem:[#allocation57_spill] sm:$0xff]  ;;  %v10358_v30 = vld [vmem:[#allocation127_spill] sm:$0xff] }
 0x330   :  { %v8959_v8 = vadd.f32 %v10348_v32, %v2605_v22  ;;  %v3692_v26 = vmul.f32 %v8402_v62, %v3688_v17  ;;  %v10349_v28 = vld [vmem:[#allocation56_spill] sm:$0xff]  ;;  %v8965_v50 = vadd.f32 %v10350_v14, %v2608_v6  ;;  %v8968_v0 = vadd.f32 %v10351_v55, %v2607_v23  ;;  %10353 = vst [vmem:[#allocation199_spill] sm:$0xff] %v8973_v46  ;;  %v10356_v6 = vld [vmem:[#allocation15_spill] sm:$0xff] }
 0x331   :  { %v2633_v19 = vadd.f32 %v10349_v28, %v8757_v37  ;;  %v8971_v12 = vsel %vm1412_vm1, %v3702_v45, %v3704_v24  ;;  %10354 = vst [vmem:[#allocation89_spill] sm:$0xff] %v8975_v11  ;;  %v8978_v22 = vsel %vm1412_vm1, %v3701_v58, %v3702_v45  ;;  %v3707_v17 = vrot.slane %v3693_v31, 2  ;;  %v10359_v55 = vld [vmem:[#allocation167_spill] sm:$0xff]  ;;  %v10360_v45 = vld [vmem:[#allocation128_spill] sm:$0xff] }
 0x332   :  { %10352 = vst [vmem:[#allocation194_spill] sm:$0xff] %v8971_v12  ;;  %10355 = vst [vmem:[#allocation200_spill] sm:$0xff] %v8978_v22  ;;  %v3722_v37 = vmul.f32 %v8383_v15, %v3720_v52  ;;  %v3723_v28 = vmul.f32 %v8287_v38, %v3720_v52  ;;  %v2658_v23 = vadd.f32 %v10356_v6, %v8764_v4  ;;  %v3709_v14 = vrot.slane %v3694_v44, 2  ;;  %v10361_v31 = vld [vmem:[#allocation131_spill] sm:$0xff]  ;;  %v10362_v12 = vld [vmem:[#allocation58_spill] sm:$0xff] }
 0x333   :  { %v2657_v24 = vadd.f32 %v10357_v47, %v8768_v59  ;;  %v8987_v32 = vadd.f32 %v10358_v30, %v2632_v21  ;;  %v2660_v11 = vadd.f32 %v10359_v55, %v8791_v39  ;;  %v8992_v58 = vadd.f32 %v10360_v45, %v2631_v61  ;;  %v10363_v6 = vld [vmem:[#allocation132_spill] sm:$0xff]  ;;  %v9004_v44 = vpop.permute.xlu1 %4169  ;;  %v9006_v47 = vpop.permute.xlu0 %4167 }
 0x334   :  { %v8995_v46 = vadd.f32 %v10361_v31, %v2634_v36  ;;  %v3706_v22 = vrot.slane %v3692_v26, 2  ;;  %v2659_v4 = vadd.f32 %v10362_v12, %v8795_v1  ;;  %v9000_v13 = vadd.f32 %v10363_v6, %v2633_v19  ;;  %10364 = vst [vmem:[#allocation91_spill] sm:$0xff] %v9004_v44  ;;  %10365 = vst [vmem:[#allocation94_spill] sm:$0xff] %v9006_v47  ;;  %v10366_v39 = vld [vmem:[#allocation60_spill] sm:$0xff]  ;;  %v10367_v36 = vld [vmem:[#allocation61_spill] sm:$0xff] }
 0x335   :  { %v3721_v59 = vmul.f32 %v8390_v42, %v3720_v52  ;;  %v3752_v21 = vstv %s8932_s26  ;;  %v2684_v61 = vadd.f32 %v10366_v39, %v8799_v53  ;;  %v2683_v30 = vadd.f32 %v10367_v36, %v8806_v41  ;;  %v10368_v45 = vld [vmem:[#allocation92_spill] sm:$0xff]  ;;  %v10369_v6 = vld [vmem:[#allocation145_spill] sm:$0xff] }
 0x336   :  { %v3734_v26 = vrot.slane %v3722_v37, 2  ;;  %v3736_v55 = vrot.slane %v3723_v28, 2  ;;  %v9013_v1 = vadd.f32 %v10368_v45, %v2658_v23  ;;  %v9016_v12 = vadd.f32 %v8622_v56, %v2657_v24  ;;  %v10370_v28 = vld [vmem:[#allocation158_spill] sm:$0xff] }
 0x337   :  { %v9019_v19 = vsel %vm1412_vm1, %v3707_v17, %v3709_v14  ;;  %v3725_v31 = vmul.f32 %v8372_v40, %v3720_v52  ;;  %v9023_v47 = vadd.f32 %v10369_v6, %v2660_v11  ;;  %v9026_v53 = vsel %vm1412_vm1, %v3706_v22, %v3707_v17  ;;  %v9036_v39 = vpop.permute.xlu1 %4173  ;;  %v9038_v11 = vpop.permute.xlu0 %4171  ;;  %v10373_v17 = vld [vmem:[#allocation152_spill] sm:$0xff]  ;;  %v10376_v6 = vld [vmem:[#allocation11_spill] sm:$0xff] }
 0x338   :  { %v3726_v41 = vmul.f32 %v8329_v51, %v3720_v52  ;;  %v3724_v37 = vmul.f32 %v8402_v62, %v3720_v52  ;;  %v2686_v23 = vadd.f32 %v10370_v28, %v8826_v10  ;;  %v9033_v56 = vadd.f32 %v8686_v54, %v2659_v4  ;;  %10371 = vst [vmem:[#allocation197_spill] sm:$0xff] %v9036_v39  ;;  %v10374_v54 = vld [vmem:[#allocation9_spill] sm:$0xff] }
 0x339   :  { %v3733_v24 = vrot.slane %v3721_v59, 2  ;;  %v3754_v14 = vmul.f32 %v8383_v15, %v3752_v21  ;;  %10372 = vst [vmem:[#allocation93_spill] sm:$0xff] %v9038_v11  ;;  %v9041_v22 = vadd.f32 %v8704_v60, %v2684_v61  ;;  %v9044_v36 = vadd.f32 %v10373_v17, %v2683_v30  ;;  %v10375_v59 = vld [vmem:[#allocation159_spill] sm:$0xff]  ;;  %v10377_v60 = vld [vmem:[#allocation62_spill] sm:$0xff]  ;;  %v10379_v39 = vld [vmem:[#allocation153_spill] sm:$0xff] }
 0x33a   :  { %v9047_v52 = vsel %vm1412_vm1, %v3734_v26, %v3736_v55  ;;  %v3755_v10 = vmul.f32 %v8287_v38, %v3752_v21  ;;  %v2685_v4 = vadd.f32 %v10374_v54, %v8830_v7  ;;  %v2710_v45 = vadd.f32 %v10375_v59, %v8840_v16  ;;  %v10378_v30 = vld [vmem:[#allocation63_spill] sm:$0xff] }
 0x33b   :  { %v2709_v28 = vadd.f32 %v10376_v6, %v8844_v57  ;;  %v3739_v11 = vrot.slane %v3725_v31, 2  ;;  %v2712_v61 = vadd.f32 %v10377_v60, %v8859_v5  ;;  %v2711_v55 = vadd.f32 %v10378_v30, %v8863_v29  ;;  %v9069_v31 = vpop.permute.xlu1 %4209  ;;  %v9071_v54 = vpop.permute.xlu0 %4207  ;;  %v10382_v5 = vld [vmem:[#allocation64_spill] sm:$0xff]  ;;  %v10383_v29 = vld [vmem:[#allocation65_spill] sm:$0xff] }
 0x33c   :  { %v3741_v17 = vrot.slane %v3726_v41, 2  ;;  %v3738_v38 = vrot.slane %v3724_v37, 2  ;;  %v9063_v44 = vadd.f32 %v10379_v39, %v2686_v23  ;;  %v9066_v7 = vsel %vm1412_vm1, %v3733_v24, %v3734_v26  ;;  %10380 = vst [vmem:[#allocation202_spill] sm:$0xff] %v9069_v31  ;;  %10381 = vst [vmem:[#allocation203_spill] sm:$0xff] %v9071_v54  ;;  %v10384_v37 = vld [vmem:[#allocation67_spill] sm:$0xff]  ;;  %v10386_v6 = vld [vmem:[#allocation156_spill] sm:$0xff] }
 0x33d   :  { %v3766_v16 = vrot.slane %v3754_v14, 2  ;;  %v3753_v57 = vmul.f32 %v8390_v42, %v3752_v21  ;;  %v2736_v59 = vadd.f32 %v10382_v5, %v8869_v9  ;;  %v2735_v41 = vadd.f32 %v10383_v29, %v8879_v49  ;;  %v10385_v26 = vld [vmem:[#allocation19_spill] sm:$0xff]  ;;  %v10387_v30 = vld [vmem:[#allocation157_spill] sm:$0xff]  ;;  %v10388_v9 = vld [vmem:[#allocation176_spill] sm:$0xff] }
 0x33e   :  { %v2738_v23 = vadd.f32 %v10384_v37, %v8892_v35  ;;  %v3768_v39 = vrot.slane %v3755_v10, 2  ;;  %v2737_v24 = vadd.f32 %v10385_v26, %v8896_v20  ;;  %v9082_v14 = vadd.f32 %v8760_v33, %v2685_v4  ;;  %v10389_v49 = vld [vmem:[#allocation177_spill] sm:$0xff] }
 0x33f   :  { %v9085_v60 = vadd.f32 %v10386_v6, %v2710_v45  ;;  %v9088_v54 = vadd.f32 %v10387_v30, %v2709_v28  ;;  %v9091_v5 = vadd.f32 %v10388_v9, %v2712_v61  ;;  %v9094_v29 = vadd.f32 %v10389_v49, %v2711_v55  ;;  %v9105_v28 = vpop.permute.xlu1 %4213  ;;  %v9107_v61 = vpop.permute.xlu0 %4211  ;;  %v10392_v55 = vld [vmem:[#allocation69_spill] sm:$0xff] }
 0x340   :  { %v9097_v35 = vsel %vm1412_vm1, %v3739_v11, %v3741_v17  ;;  %v9100_v20 = vsel %vm1412_vm1, %v3738_v38, %v3739_v11  ;;  %v3765_v33 = vrot.slane %v3753_v57, 2  ;;  %v3757_v10 = vmul.f32 %v8372_v40, %v3752_v21  ;;  %10390 = vst [vmem:[#allocation204_spill] sm:$0xff] %v9105_v28  ;;  %10391 = vst [vmem:[#allocation205_spill] sm:$0xff] %v9107_v61  ;;  %v10393_v17 = vld [vmem:[#allocation70_spill] sm:$0xff]  ;;  %v10395_v57 = vld [vmem:[#allocation171_spill] sm:$0xff] }
 0x341   :  { %v3758_v4 = vmul.f32 %v8329_v51, %v3752_v21  ;;  %v3756_v45 = vmul.f32 %v8402_v62, %v3752_v21  ;;  %v9110_v37 = vadd.f32 %v10392_v55, %v2736_v59  ;;  %v9113_v26 = vadd.f32 %v10393_v17, %v2735_v41  ;;  %v10394_v51 = vld [vmem:[#allocation68_spill] sm:$0xff]  ;;  %v10396_v41 = vld [vmem:[#allocation71_spill] sm:$0xff]  ;;  %v10399_v55 = vld [vmem:[#allocation85_spill] sm:$0xff] }
 0x342   :  { %v9116_v11 = vadd.f32 %v8851_v27, %v2738_v23  ;;  %v9119_v38 = vsel %vm1412_vm1, %v3766_v16, %v3768_v39  ;;  %v2762_v21 = vadd.f32 %v10394_v51, %v8904_v43  ;;  %v2761_v6 = vadd.f32 %v10395_v57, %v8908_v63  ;;  %v10397_v27 = vld [vmem:[#allocation72_spill] sm:$0xff]  ;;  %v10405_v61 = vld [vmem:[#allocation55_spill] sm:$0xff] }
 0x343   :  { %v9128_v59 = vadd.f32 %v8854_v34, %v2737_v24  ;;  %v3784_v30 = vstv %s9056_s27  ;;  %v2764_v9 = vadd.f32 %v10396_v41, %v8917_v25  ;;  %v2763_v23 = vadd.f32 %v10397_v27, %v8921_v3  ;;  %v10398_v39 = vld [vmem:[#allocation84_spill] sm:$0xff]  ;;  %v9142_v24 = vpop.permute.xlu1 %4249  ;;  %v9144_v57 = vpop.permute.xlu0 %4247  ;;  %v10403_v3 = vld [vmem:[#allocation75_spill] sm:$0xff] }
 0x344   :  { %v3084_v49 = vadd.f32 %v10398_v39, %v8950_v18  ;;  %v3083_v17 = vadd.f32 %v10399_v55, %v8959_v8  ;;  %v9140_v43 = vsel %vm1412_vm1, %v3765_v33, %v3766_v16  ;;  %v3771_v63 = vrot.slane %v3757_v10, 2  ;;  %10400 = vst [vmem:[#allocation97_spill] sm:$0xff] %v9142_v24  ;;  %10401 = vst [vmem:[#allocation51_spill] sm:$0xff] %v9144_v57  ;;  %v10402_v25 = vld [vmem:[#allocation24_spill] sm:$0xff]  ;;  %v10404_v18 = vld [vmem:[#allocation13_spill] sm:$0xff] }
 0x345   :  { %v3773_v51 = vrot.slane %v3758_v4, 2  ;;  %v3770_v34 = vrot.slane %v3756_v45, 2  ;;  %v2788_v41 = vadd.f32 %v10402_v25, %v8940_v2  ;;  %v2787_v27 = vadd.f32 %v10403_v3, %v8944_v48  ;;  %v10406_v16 = vld [vmem:[#allocation90_spill] sm:$0xff]  ;;  %v10407_v10 = vld [vmem:[#allocation195_spill] sm:$0xff]  ;;  %v9162_v2 = vld [vmem:[%s9499_s0 + $0x28] sm:$0x3] }
 0x346   :  { %v3404_v39 = vadd.f32 %v10404_v18, %v3084_v49  ;;  %v3403_v8 = vadd.f32 %v10405_v61, %v3083_v17  ;;  %v3086_v33 = vadd.f32 %v10406_v16, %v8965_v50  ;;  %v3085_v4 = vadd.f32 %v10407_v10, %v8968_v0  ;;  %v10408_v49 = vld [vmem:[#allocation187_spill] sm:$0xff]  ;;  %v10409_v61 = vld [vmem:[#allocation188_spill] sm:$0xff]  ;;  %v10410_v50 = vld [vmem:[#allocation78_spill] sm:$0xff] }
 0x347   :  { %v9157_v45 = vmul.f32 %v8383_v15, %v3784_v30  ;;  %v3787_v48 = vmul.f32 %v9162_v2, %v3784_v30  ;;  %v9166_v55 = vadd.f32 %v10408_v49, %v2762_v21  ;;  %v9169_v17 = vadd.f32 %v10409_v61, %v2761_v6  ;;  %v10411_v0 = vld [vmem:[#allocation83_spill] sm:$0xff]  ;;  %v10412_v3 = vld [vmem:[#allocation218_spill] sm:$0xff]  ;;  %v9187_v6 = vpop.permute.xlu1 %4253  ;;  %v9189_v49 = vpop.permute.xlu0 %4251 }
 0x348   :  { %v9172_v25 = vadd.f32 %v10410_v50, %v2764_v9  ;;  %v9175_v15 = vadd.f32 %v10411_v0, %v2763_v23  ;;  %v3406_v18 = vadd.f32 %v10412_v3, %v3086_v33  ;;  %v10413_v16 = vld [vmem:[#allocation219_spill] sm:$0xff]  ;;  %v9182_v57 = vsel %vm1412_vm1, %v3771_v63, %v3773_v51  ;;  %10414 = vst [vmem:[#allocation210_spill] sm:$0xff] %v9187_v6  ;;  %v10416_v9 = vld [vmem:[#allocation86_spill] sm:$0xff]  ;;  %v10418_v0 = vld [vmem:[#allocation200_spill] sm:$0xff] }
 0x349   :  { %v3405_v10 = vadd.f32 %v10413_v16, %v3085_v4  ;;  %v9185_v21 = vsel %vm1412_vm1, %v3770_v34, %v3771_v63  ;;  %10415 = vst [vmem:[#allocation211_spill] sm:$0xff] %v9189_v49  ;;  %v9192_v61 = vadd.f32 %v10416_v9, %v2788_v41  ;;  %v10417_v23 = vld [vmem:[#allocation194_spill] sm:$0xff]  ;;  %v3715_v24 = vadd.f32 %v10418_v0, %v3403_v8  ;;  %v10420_v16 = vld [vmem:[#allocation95_spill] sm:$0xff]  ;;  %v10421_v41 = vld [vmem:[#allocation196_spill] sm:$0xff] }
 0x34a   :  { %v3716_v50 = vadd.f32 %v10417_v23, %v3404_v39  ;;  %v9197_v33 = vstv %s9121_s28  ;;  %v10419_v4 = vld [vmem:[#allocation190_spill] sm:$0xff]  ;;  %v3798_v51 = vrot.slane %v9157_v45, 2  ;;  %v3800_v63 = vrot.slane %v3787_v48, 2  ;;  %v10423_v23 = vld [vmem:[#allocation147_spill] sm:$0xff] }
 0x34b   :  { %v9200_v3 = vadd.f32 %v10419_v4, %v2787_v27  ;;  %v3785_v34 = vmul.f32 %v8390_v42, %v3784_v30  ;;  %v3124_v49 = vadd.f32 %v10420_v16, %v8987_v32  ;;  %v3123_v9 = vadd.f32 %v10421_v41, %v8992_v58  ;;  %v10422_v6 = vld [vmem:[#allocation146_spill] sm:$0xff]  ;;  %v4290_v45 = vpop.permute.xlu1 %4289  ;;  %v4288_v42 = vpop.permute.xlu0 %4287  ;;  %v10425_v32 = vld [vmem:[#allocation119_spill] sm:$0xff]  ;;  %v10429_v41 = vld [vmem:[#allocation149_spill] sm:$0xff] }
 0x34c   :  { %v3980_v39 = vadd.f32 %v10422_v6, %v3716_v50  ;;  %v3979_v8 = vadd.f32 %v10423_v23, %v3715_v24  ;;  %v3718_v0 = vadd.f32 %v9019_v19, %v3406_v18  ;;  %v3717_v27 = vadd.f32 %v9026_v53, %v3405_v10  ;;  %v10424_v48 = vld [vmem:[#allocation118_spill] sm:$0xff]  ;;  %v10428_v10 = vld [vmem:[#allocation148_spill] sm:$0xff] }
 0x34d   :  { %v3789_v4 = vmul.f32 %v8372_v40, %v3784_v30  ;;  %v3444_v28 = vadd.f32 %v10424_v48, %v3124_v49  ;;  %v3443_v16 = vadd.f32 %v10425_v32, %v3123_v9  ;;  %v10426_v6 = vld [vmem:[#allocation18_spill] sm:$0xff]  ;;  %v9222_v40 = vld [vmem:[%s9499_s0 + $0x58] sm:$0x3]  ;;  %v3788_v18 = vmul.f32 %v8402_v62, %v3784_v30 }
 0x34e   :  { %v4300_v31 = vadd.f32 %v4290_v45, %v3980_v39  ;;  %v4299_v58 = vadd.f32 %v4288_v42, %v3979_v8  ;;  %v3126_v50 = vadd.f32 %v10426_v6, %v8995_v46  ;;  %v10427_v24 = vld [vmem:[#allocation170_spill] sm:$0xff]  ;;  %v3790_v53 = vmul.f32 %v9222_v40, %v3784_v30  ;;  %v10431_v8 = vld [vmem:[#allocation8_spill] sm:$0xff] }
 0x34f   :  { %v3125_v19 = vadd.f32 %v10427_v24, %v9000_v13  ;;  %v3982_v49 = vadd.f32 %v10428_v10, %v3718_v0  ;;  %v3981_v9 = vadd.f32 %v10429_v41, %v3717_v27  ;;  %v3797_v39 = vrot.slane %v3785_v34, 2  ;;  %v10430_v13 = vld [vmem:[#allocation120_spill] sm:$0xff]  ;;  %v4294_v62 = vpop.permute.xlu1 %4293  ;;  %v4292_v30 = vpop.permute.xlu0 %4291 }
 0x350   :  { %v9229_v23 = vstv %s9177_s30  ;;  %4585 = vst.msk [vmem:[#allocation5 + $0x8] sm:$0xff] %vm4583_vm2, %v4300_v31  ;;  %4584 = vst.msk [vmem:[#allocation5] sm:$0xff] %vm4583_vm2, %v4299_v58  ;;  %v3446_v46 = vadd.f32 %v10430_v13, %v3126_v50  ;;  %v9236_v42 = vsel %vm1412_vm1, %v3798_v51, %v3800_v63  ;;  %v3803_v48 = vrot.slane %v3789_v4, 2  ;;  %v9243_v58 = vld [vmem:[%s9499_s0 + $0x20] sm:$0xff]  ;;  %v10434_v50 = vld [vmem:[#allocation150_spill] sm:$0xff] }
 0x351   :  { %v3445_v45 = vadd.f32 %v10431_v8, %v3125_v19  ;;  %v3748_v0 = vadd.f32 %v9047_v52, %v3444_v28  ;;  %v3747_v34 = vadd.f32 %v9066_v7, %v3443_v16  ;;  %v4302_v27 = vadd.f32 %v4294_v62, %v3982_v49  ;;  %v10432_v52 = vld [vmem:[#allocation96_spill] sm:$0xff]  ;;  %v10433_v7 = vld [vmem:[#allocation49_spill] sm:$0xff]  ;;  %v10435_v19 = vld [vmem:[#allocation151_spill] sm:$0xff] }
 0x352   :  { %v4301_v32 = vadd.f32 %v4292_v30, %v3981_v9  ;;  %v3805_v6 = vrot.slane %v3790_v53, 2  ;;  %v3802_v31 = vrot.slane %v3788_v18, 2  ;;  %v9247_v63 = vmul.f32 %v9243_v58, %v9197_v33  ;;  %v10436_v13 = vld [vmem:[#allocation122_spill] sm:$0xff]  ;;  %v10437_v62 = vld [vmem:[#allocation123_spill] sm:$0xff] }
 0x353   :  { %v3819_v4 = vmul.f32 %v9162_v2, %v9197_v33  ;;  %v3164_v28 = vadd.f32 %v10432_v52, %v9013_v1  ;;  %v3163_v16 = vadd.f32 %v10433_v7, %v9016_v12  ;;  %v4020_v24 = vadd.f32 %v10434_v50, %v3748_v0  ;;  %4587 = vst.msk [vmem:[#allocation5 + $0x88] sm:$0xff] %vm4583_vm2, %v4302_v27  ;;  %v9267_v1 = vld [vmem:[%s9499_s0 + $0x18] sm:$0xff]  ;;  %v4330_v41 = vpop.permute.xlu1 %4329  ;;  %v4328_v9 = vpop.permute.xlu0 %4327  ;;  %v10440_v27 = vld [vmem:[#allocation154_spill] sm:$0xff] }
 0x354   :  { %v4019_v53 = vadd.f32 %v10435_v19, %v3747_v34  ;;  %4586 = vst.msk [vmem:[#allocation5 + $0x80] sm:$0xff] %vm4583_vm2, %v4301_v32  ;;  %v3750_v18 = vadd.f32 %v9097_v35, %v3446_v46  ;;  %v3749_v10 = vadd.f32 %v9100_v20, %v3445_v45  ;;  %v9262_v49 = vsel %vm1412_vm1, %v3797_v39, %v3798_v51  ;;  %v10438_v20 = vld [vmem:[#allocation161_spill] sm:$0xff]  ;;  %v10439_v39 = vld [vmem:[#allocation99_spill] sm:$0xff] }
 0x355   :  { %v3817_v12 = vmul.f32 %v9267_v1, %v9197_v33  ;;  %v3484_v8 = vadd.f32 %v10436_v13, %v3164_v28  ;;  %v3483_v30 = vadd.f32 %v10437_v62, %v3163_v16  ;;  %v4340_v35 = vadd.f32 %v4330_v41, %v4020_v24  ;;  %v10441_v52 = vld [vmem:[#allocation155_spill] sm:$0xff]  ;;  %v10445_v62 = vld [vmem:[#allocation212_spill] sm:$0xff] }
 0x356   :  { %v4339_v46 = vadd.f32 %v4328_v9, %v4019_v53  ;;  %v3166_v51 = vadd.f32 %v10438_v20, %v9023_v47  ;;  %v3165_v45 = vadd.f32 %v10439_v39, %v9033_v56  ;;  %v3830_v0 = vrot.slane %v9247_v63, 2  ;;  %v10442_v47 = vld [vmem:[#allocation124_spill] sm:$0xff]  ;;  %v10443_v56 = vld [vmem:[#allocation125_spill] sm:$0xff]  ;;  %v10447_v20 = vld [vmem:[#allocation166_spill] sm:$0xff] }
 0x357   :  { %v3832_v34 = vrot.slane %v3819_v4, 2  ;;  %v4022_v32 = vadd.f32 %v10440_v27, %v3750_v18  ;;  %v4021_v7 = vadd.f32 %v10441_v52, %v3749_v10  ;;  %v9281_v50 = vsel %vm1412_vm1, %v3803_v48, %v3805_v6  ;;  %4590 = vst.msk [vmem:[#allocation5 + $0x18] sm:$0xff] %vm4583_vm2, %v4340_v35  ;;  %v9293_v4 = vld [vmem:[%s9499_s0 + $0x50] sm:$0xff]  ;;  %v9309_v9 = vld [vmem:[%s9499_s0 + $0x48] sm:$0xff]  ;;  %v10449_v52 = vld [vmem:[#allocation76_spill] sm:$0xff]  ;;  %s9339_s0 = sld [smem:[#allocation2 + $0x30f]] }
 0x358   :  { %v9284_v28 = vsel %vm1412_vm1, %v3802_v31, %v3803_v48  ;;  %4589 = vst.msk [vmem:[#allocation5 + $0x10] sm:$0xff] %vm4583_vm2, %v4339_v46  ;;  %v3486_v16 = vadd.f32 %v10442_v47, %v3166_v51  ;;  %v3485_v24 = vadd.f32 %v10443_v56, %v3165_v45  ;;  %v3829_v63 = vrot.slane %v3817_v12, 2  ;;  %v4334_v48 = vpop.permute.xlu1 %4333  ;;  %v4332_v31 = vpop.permute.xlu0 %4331  ;;  %v10446_v35 = vld [vmem:[#allocation165_spill] sm:$0xff]  ;;  %v10448_v27 = vld [vmem:[#allocation66_spill] sm:$0xff] }
 0x359   :  { %v9297_v6 = vmul.f32 %v9293_v4, %v9197_v33  ;;  %v3780_v19 = vadd.f32 %v9119_v38, %v3484_v8  ;;  %v3779_v53 = vadd.f32 %v9140_v43, %v3483_v30  ;;  %v4342_v18 = vadd.f32 %v4334_v48, %v4022_v32  ;;  %v10444_v43 = vld [vmem:[#allocation175_spill] sm:$0xff]  ;;  %v10450_v48 = vld [vmem:[#allocation101_spill] sm:$0xff] }
 0x35a   :  { %v4341_v10 = vadd.f32 %v4332_v31, %v4021_v7  ;;  %v9302_v41 = vsel %vm1412_vm1, %v3830_v0, %v3832_v34  ;;  %v3822_v12 = vmul.f32 %v9222_v40, %v9197_v33  ;;  %v3820_v13 = vmul.f32 %v9309_v9, %v9197_v33 }
 0x35b   :  { %v9315_v38 = vmul.f32 %v9243_v58, %v9229_v23  ;;  %v3204_v8 = vadd.f32 %v10444_v43, %v9041_v22  ;;  %v3203_v30 = vadd.f32 %v10445_v62, %v9044_v36  ;;  %v4060_v46 = vadd.f32 %v10446_v35, %v3780_v19  ;;  %4592 = vst.msk [vmem:[#allocation5 + $0x98] sm:$0xff] %vm4583_vm2, %v4342_v18  ;;  %v10452_v19 = vld [vmem:[#allocation182_spill] sm:$0xff]  ;;  %v10453_v18 = vld [vmem:[#allocation73_spill] sm:$0xff] }
 0x35c   :  { %v4059_v51 = vadd.f32 %v10447_v20, %v3779_v53  ;;  %4591 = vst.msk [vmem:[#allocation5 + $0x90] sm:$0xff] %vm4583_vm2, %v4341_v10  ;;  %v3782_v33 = vadd.f32 %v9182_v57, %v3486_v16  ;;  %v3781_v39 = vadd.f32 %v9185_v21, %v3485_v24  ;;  %v3851_v45 = vmul.f32 %v9162_v2, %v9229_v23  ;;  %v4370_v34 = vpop.permute.xlu1 %4369  ;;  %v4368_v36 = vpop.permute.xlu0 %4367  ;;  %v10451_v57 = vld [vmem:[#allocation179_spill] sm:$0xff] }
 0x35d   :  { %v3849_v22 = vmul.f32 %v9267_v1, %v9229_v23  ;;  %v3524_v32 = vadd.f32 %v10448_v27, %v3204_v8  ;;  %v3523_v7 = vadd.f32 %v10449_v52, %v3203_v30  ;;  %v4380_v47 = vadd.f32 %v4370_v34, %v4060_v46  ;;  %v10455_v30 = vld [vmem:[#allocation129_spill] sm:$0xff]  ;;  %v10459_v27 = vld [vmem:[#allocation183_spill] sm:$0xff] }
 0x35e   :  { %v4379_v56 = vadd.f32 %v4368_v36, %v4059_v51  ;;  %v3206_v31 = vadd.f32 %v10450_v48, %v9063_v44  ;;  %v3205_v21 = vadd.f32 %v10451_v57, %v9082_v14  ;;  %v3831_v16 = vsel %vm1412_vm1, %v3829_v63, %v3830_v0  ;;  %v10454_v44 = vld [vmem:[#allocation77_spill] sm:$0xff]  ;;  %v10458_v36 = vld [vmem:[#allocation74_spill] sm:$0xff] }
 0x35f   :  { %v3835_v24 = vrot.slane %v9297_v6, 2  ;;  %v4062_v53 = vadd.f32 %v10452_v19, %v3782_v33  ;;  %v4061_v10 = vadd.f32 %v10453_v18, %v3781_v39  ;;  %v3837_v43 = vrot.slane %v3822_v12, 2  ;;  %4595 = vst.msk [vmem:[#allocation5 + $0x28] sm:$0xff] %vm4583_vm2, %v4380_v47 }
 0x360   :  { %v3834_v8 = vrot.slane %v3820_v13, 2  ;;  %4594 = vst.msk [vmem:[#allocation5 + $0x20] sm:$0xff] %vm4583_vm2, %v4379_v56  ;;  %v3526_v62 = vadd.f32 %v10454_v44, %v3206_v31  ;;  %v3525_v14 = vadd.f32 %v10455_v30, %v3205_v21  ;;  %v3862_v0 = vrot.slane %v9315_v38, 2  ;;  %v4374_v6 = vpop.permute.xlu1 %4373  ;;  %v4372_v35 = vpop.permute.xlu0 %4371  ;;  %v10461_v31 = vld [vmem:[#allocation82_spill] sm:$0xff] }
 0x361   :  { %v3864_v63 = vrot.slane %v3851_v45, 2  ;;  %v3812_v46 = vadd.f32 %v9236_v42, %v3524_v32  ;;  %v3811_v20 = vadd.f32 %v9262_v49, %v3523_v7  ;;  %v4382_v51 = vadd.f32 %v4374_v6, %v4062_v53  ;;  %v10456_v45 = vld [vmem:[#allocation32_spill] sm:$0xff]  ;;  %v10457_v49 = vld [vmem:[#allocation33_spill] sm:$0xff] }
 0x362   :  { %v4381_v12 = vadd.f32 %v4372_v35, %v4061_v10  ;;  %v3861_v13 = vrot.slane %v3849_v22, 2  ;;  %v9352_v33 = vmul.f32 %v9293_v4, %v9229_v23  ;;  %v9356_v39 = vmul.f32 %v9222_v40, %v9229_v23  ;;  %v10462_v53 = vld [vmem:[#allocation37_spill] sm:$0xff]  ;;  %v10463_v10 = vld [vmem:[#allocation59_spill] sm:$0xff]  ;;  %v10467_v35 = vld [vmem:[#allocation134_spill] sm:$0xff] }
 0x363   :  { %v9360_v38 = vmul.f32 %v9309_v9, %v9229_v23  ;;  %v3244_v42 = vadd.f32 %v10456_v45, %v9085_v60  ;;  %v3243_v34 = vadd.f32 %v10457_v49, %v9088_v54  ;;  %v4100_v22 = vadd.f32 %v10458_v36, %v3812_v46  ;;  %4597 = vst.msk [vmem:[#allocation5 + $0xa8] sm:$0xff] %vm4583_vm2, %v4382_v51  ;;  %v10460_v54 = vld [vmem:[#allocation130_spill] sm:$0xff]  ;;  %v10466_v6 = vld [vmem:[#allocation133_spill] sm:$0xff]  ;;  %v10469_v36 = vld [vmem:[#allocation191_spill] sm:$0xff] }
 0x364   :  { %v4099_v32 = vadd.f32 %v10459_v27, %v3811_v20  ;;  %4596 = vst.msk [vmem:[#allocation5 + $0xa0] sm:$0xff] %vm4583_vm2, %v4381_v12  ;;  %v3814_v52 = vadd.f32 %v9281_v50, %v3526_v62  ;;  %v3813_v23 = vadd.f32 %v9284_v28, %v3525_v14  ;;  %v3838_v7 = vsel %vm1412_vm1, %v3835_v24, %v3837_v43  ;;  %v4410_v47 = vpop.permute.xlu1 %4409  ;;  %v4408_v56 = vpop.permute.xlu0 %4407  ;;  %v10464_v43 = vld [vmem:[#allocation79_spill] sm:$0xff]  ;;  %v10470_v27 = vld [vmem:[#allocation193_spill] sm:$0xff] }
 0x365   :  { %v3836_v60 = vsel %vm1412_vm1, %v3834_v8, %v3835_v24  ;;  %v3564_v48 = vadd.f32 %v10460_v54, %v3244_v42  ;;  %v3563_v57 = vadd.f32 %v10461_v31, %v3243_v34  ;;  %v4420_v21 = vadd.f32 %v4410_v47, %v4100_v22  ;;  %v10465_v24 = vld [vmem:[#allocation189_spill] sm:$0xff] }
 0x366   :  { %v4419_v19 = vadd.f32 %v4408_v56, %v4099_v32  ;;  %v3246_v18 = vadd.f32 %v10462_v53, %v9091_v5  ;;  %v3245_v50 = vadd.f32 %v10463_v10, %v9094_v29  ;;  %v3865_v28 = vsel %vm1412_vm1, %v3862_v0, %v3864_v63  ;;  %v10474_v53 = vld [vmem:[#allocation39_spill] sm:$0xff]  ;;  %v10475_v10 = vld [vmem:[#allocation108_spill] sm:$0xff] }
 0x367   :  { %v3880_v44 = vstv %s9339_s0  ;;  %v4102_v62 = vadd.f32 %v10464_v43, %v3814_v52  ;;  %v4101_v8 = vadd.f32 %v10465_v24, %v3813_v23  ;;  %v3863_v30 = vsel %vm1412_vm1, %v3861_v13, %v3862_v0  ;;  %4600 = vst.msk [vmem:[#allocation5 + $0x38] sm:$0xff] %vm4583_vm2, %v4420_v21  ;;  %v10476_v43 = vld [vmem:[#allocation199_spill] sm:$0xff] }
 0x368   :  { %v3867_v14 = vrot.slane %v9352_v33, 2  ;;  %4599 = vst.msk [vmem:[#allocation5 + $0x30] sm:$0xff] %vm4583_vm2, %v4419_v19  ;;  %v3566_v5 = vadd.f32 %v10466_v6, %v3246_v18  ;;  %v3565_v46 = vadd.f32 %v10467_v35, %v3245_v50  ;;  %v3869_v29 = vrot.slane %v9356_v39, 2  ;;  %v4414_v20 = vpop.permute.xlu1 %4413  ;;  %v4412_v51 = vpop.permute.xlu0 %4411  ;;  %v10468_v39 = vld [vmem:[#allocation107_spill] sm:$0xff] }
 0x369   :  { %v3866_v63 = vrot.slane %v9360_v38, 2  ;;  %v3844_v0 = vadd.f32 %v9302_v41, %v3564_v48  ;;  %v3843_v12 = vadd.f32 %v3831_v16, %v3563_v57  ;;  %v4422_v13 = vadd.f32 %v4414_v20, %v4102_v62  ;;  %v10471_v16 = vld [vmem:[#allocation87_spill] sm:$0xff] }
 0x36a   :  { %v4421_v33 = vadd.f32 %v4412_v51, %v4101_v8  ;;  %v3882_v45 = vmul.f32 %v9243_v58, %v3880_v44  ;;  %v3883_v42 = vmul.f32 %v9162_v2, %v3880_v44  ;;  %v3881_v49 = vmul.f32 %v9267_v1, %v3880_v44  ;;  %v10473_v57 = vld [vmem:[#allocation135_spill] sm:$0xff] }
 0x36b   :  { %v9399_v34 = vmul.f32 %v9293_v4, %v3880_v44  ;;  %v3284_v38 = vadd.f32 %v10468_v39, %v9110_v37  ;;  %v3283_v22 = vadd.f32 %v10469_v36, %v9113_v26  ;;  %v4140_v41 = vadd.f32 %v10470_v27, %v3844_v0  ;;  %4602 = vst.msk [vmem:[#allocation5 + $0xb8] sm:$0xff] %vm4583_vm2, %v4422_v13  ;;  %v10472_v37 = vld [vmem:[#allocation88_spill] sm:$0xff]  ;;  %v10480_v39 = vld [vmem:[#allocation109_spill] sm:$0xff] }
 0x36c   :  { %v4139_v32 = vadd.f32 %v10471_v16, %v3843_v12  ;;  %4601 = vst.msk [vmem:[#allocation5 + $0xb0] sm:$0xff] %vm4583_vm2, %v4421_v33  ;;  %v3846_v52 = vadd.f32 %v3838_v7, %v3566_v5  ;;  %v3845_v23 = vadd.f32 %v3836_v60, %v3565_v46  ;;  %v3886_v47 = vmul.f32 %v9222_v40, %v3880_v44  ;;  %v4450_v54 = vpop.permute.xlu1 %4449  ;;  %v4448_v48 = vpop.permute.xlu0 %4447  ;;  %v10478_v5 = vld [vmem:[#allocation198_spill] sm:$0xff]  ;;  %v10481_v36 = vld [vmem:[#allocation201_spill] sm:$0xff] }
 0x36d   :  { %v3884_v56 = vmul.f32 %v9309_v9, %v3880_v44  ;;  %v3604_v31 = vadd.f32 %v10472_v37, %v3284_v38  ;;  %v3603_v26 = vadd.f32 %v10473_v57, %v3283_v22  ;;  %v4460_v21 = vadd.f32 %v4450_v54, %v4140_v41  ;;  %v10477_v44 = vld [vmem:[#allocation89_spill] sm:$0xff]  ;;  %v10483_v41 = vld [vmem:[#allocation94_spill] sm:$0xff] }
 0x36e   :  { %v4459_v19 = vadd.f32 %v4448_v48, %v4139_v32  ;;  %v3286_v18 = vadd.f32 %v10474_v53, %v9116_v11  ;;  %v3285_v7 = vadd.f32 %v10475_v10, %v9128_v59  ;;  %v3894_v60 = vrot.slane %v3882_v45, 2  ;;  %v10479_v11 = vld [vmem:[#allocation136_spill] sm:$0xff]  ;;  %v10486_v37 = vld [vmem:[#allocation46_spill] sm:$0xff]  ;;  %v10488_v53 = vld [vmem:[#allocation197_spill] sm:$0xff] }
 0x36f   :  { %v3896_v50 = vrot.slane %v3883_v42, 2  ;;  %v4142_v62 = vadd.f32 %v10476_v43, %v3846_v52  ;;  %v4141_v24 = vadd.f32 %v10477_v44, %v3845_v23  ;;  %v3870_v8 = vsel %vm1412_vm1, %v3867_v14, %v3869_v29  ;;  %4605 = vst.msk [vmem:[#allocation5 + $0x48] sm:$0xff] %vm4583_vm2, %v4460_v21  ;;  %v10487_v57 = vld [vmem:[#allocation110_spill] sm:$0xff]  ;;  %v10491_v43 = vld [vmem:[#allocation140_spill] sm:$0xff] }
 0x370   :  { %v3868_v6 = vsel %vm1412_vm1, %v3866_v63, %v3867_v14  ;;  %4604 = vst.msk [vmem:[#allocation5 + $0x40] sm:$0xff] %vm4583_vm2, %v4459_v19  ;;  %v3606_v35 = vadd.f32 %v10478_v5, %v3286_v18  ;;  %v3605_v46 = vadd.f32 %v10479_v11, %v3285_v7  ;;  %v3893_v20 = vrot.slane %v3881_v49, 2  ;;  %v4454_v51 = vpop.permute.xlu1 %4453  ;;  %v4452_v0 = vpop.permute.xlu0 %4451  ;;  %v10482_v49 = vld [vmem:[#allocation91_spill] sm:$0xff]  ;;  %v10489_v18 = vld [vmem:[#allocation93_spill] sm:$0xff] }
 0x371   :  { %v3912_v59 = vstv %s9392_s14  ;;  %v3876_v12 = vadd.f32 %v3865_v28, %v3604_v31  ;;  %v3875_v13 = vadd.f32 %v3863_v30, %v3603_v26  ;;  %v4462_v33 = vadd.f32 %v4454_v51, %v4142_v62  ;;  %v10492_v51 = vld [vmem:[#allocation111_spill] sm:$0xff] }
 0x372   :  { %v4461_v45 = vadd.f32 %v4452_v0, %v4141_v24  ;;  %v3897_v29 = vsel %vm1412_vm1, %v3894_v60, %v3896_v50  ;;  %v3899_v14 = vrot.slane %v9399_v34, 2  ;;  %v3901_v63 = vrot.slane %v3886_v47, 2 }
 0x373   :  { %v3898_v42 = vrot.slane %v3884_v56, 2  ;;  %v3324_v38 = vadd.f32 %v10480_v39, %v9166_v55  ;;  %v3323_v22 = vadd.f32 %v10481_v36, %v9169_v17  ;;  %v4180_v27 = vadd.f32 %v10482_v49, %v3876_v12  ;;  %4607 = vst.msk [vmem:[#allocation5 + $0xc8] sm:$0xff] %vm4583_vm2, %v4462_v33  ;;  %v10484_v55 = vld [vmem:[#allocation137_spill] sm:$0xff]  ;;  %v10485_v56 = vld [vmem:[#allocation138_spill] sm:$0xff] }
 0x374   :  { %v4179_v16 = vadd.f32 %v10483_v41, %v3875_v13  ;;  %4606 = vst.msk [vmem:[#allocation5 + $0xc0] sm:$0xff] %vm4583_vm2, %v4461_v45  ;;  %v3878_v28 = vadd.f32 %v3870_v8, %v3606_v35  ;;  %v3877_v30 = vadd.f32 %v3868_v6, %v3605_v46  ;;  %v3895_v34 = vsel %vm1412_vm1, %v3893_v20, %v3894_v60  ;;  %v4490_v52 = vpop.permute.xlu1 %4489  ;;  %v4488_v23 = vpop.permute.xlu0 %4487  ;;  %v10493_v12 = vld [vmem:[#allocation50_spill] sm:$0xff] }
 0x375   :  { %v3914_v32 = vmul.f32 %v9243_v58, %v3912_v59  ;;  %v3644_v47 = vadd.f32 %v10484_v55, %v3324_v38  ;;  %v3643_v17 = vadd.f32 %v10485_v56, %v3323_v22  ;;  %v4500_v54 = vadd.f32 %v4490_v52, %v4180_v27  ;;  %v10497_v38 = vld [vmem:[#allocation142_spill] sm:$0xff] }
 0x376   :  { %v4499_v48 = vadd.f32 %v4488_v23, %v4179_v16  ;;  %v3326_v31 = vadd.f32 %v10486_v37, %v9172_v25  ;;  %v3325_v26 = vadd.f32 %v10487_v57, %v9175_v15  ;;  %v3915_v21 = vmul.f32 %v9162_v2, %v3912_v59  ;;  %v10490_v25 = vld [vmem:[#allocation139_spill] sm:$0xff]  ;;  %v10498_v16 = vld [vmem:[#allocation204_spill] sm:$0xff] }
 0x377   :  { %v3913_v19 = vmul.f32 %v9267_v1, %v3912_v59  ;;  %v4182_v58 = vadd.f32 %v10488_v53, %v3878_v28  ;;  %v4181_v10 = vadd.f32 %v10489_v18, %v3877_v30  ;;  %v3902_v7 = vsel %vm1412_vm1, %v3899_v14, %v3901_v63  ;;  %4610 = vst.msk [vmem:[#allocation5 + $0x58] sm:$0xff] %vm4583_vm2, %v4500_v54  ;;  %v10499_v30 = vld [vmem:[#allocation205_spill] sm:$0xff] }
 0x378   :  { %v3900_v60 = vsel %vm1412_vm1, %v3898_v42, %v3899_v14  ;;  %4609 = vst.msk [vmem:[#allocation5 + $0x50] sm:$0xff] %vm4583_vm2, %v4499_v48  ;;  %v3646_v50 = vadd.f32 %v10490_v25, %v3326_v31  ;;  %v3645_v15 = vadd.f32 %v10491_v43, %v3325_v26  ;;  %v3917_v2 = vmul.f32 %v9293_v4, %v3912_v59  ;;  %v4494_v62 = vpop.permute.xlu1 %4493  ;;  %v4492_v44 = vpop.permute.xlu0 %4491  ;;  %v10494_v4 = vld [vmem:[#allocation202_spill] sm:$0xff]  ;;  %v10500_v48 = vld [vmem:[#allocation97_spill] sm:$0xff]  ;;  %v10501_v31 = vld [vmem:[#allocation51_spill] sm:$0xff] }
 0x379   :  { %v3918_v1 = vmul.f32 %v9222_v40, %v3912_v59  ;;  %v3908_v24 = vadd.f32 %v3897_v29, %v3644_v47  ;;  %v3907_v8 = vadd.f32 %v3895_v34, %v3643_v17  ;;  %v4502_v6 = vadd.f32 %v4494_v62, %v4182_v58  ;;  %v10495_v40 = vld [vmem:[#allocation203_spill] sm:$0xff]  ;;  %v10503_v58 = vld [vmem:[#allocation144_spill] sm:$0xff] }
 0x37a   :  { %v4501_v5 = vadd.f32 %v4492_v44, %v4181_v10  ;;  %v3926_v35 = vrot.slane %v3914_v32, 2  ;;  %v3928_v11 = vrot.slane %v3915_v21, 2  ;;  %v3925_v46 = vrot.slane %v3913_v19, 2  ;;  %v10502_v19 = vld [vmem:[#allocation143_spill] sm:$0xff] }
 0x37b   :  { %v3916_v20 = vmul.f32 %v9309_v9, %v3912_v59  ;;  %v3364_v0 = vadd.f32 %v10492_v51, %v9192_v61  ;;  %v3363_v13 = vadd.f32 %v10493_v12, %v9200_v3  ;;  %v4220_v33 = vadd.f32 %v10494_v4, %v3908_v24  ;;  %4612 = vst.msk [vmem:[#allocation5 + $0xd8] sm:$0xff] %vm4583_vm2, %v4502_v6  ;;  %v10496_v9 = vld [vmem:[#allocation141_spill] sm:$0xff] }
 0x37c   :  { %v4219_v45 = vadd.f32 %v10495_v40, %v3907_v8  ;;  %4611 = vst.msk [vmem:[#allocation5 + $0xd0] sm:$0xff] %vm4583_vm2, %v4501_v5  ;;  %v3910_v29 = vadd.f32 %v3902_v7, %v3646_v50  ;;  %v3909_v14 = vadd.f32 %v3900_v60, %v3645_v15  ;;  %v3931_v63 = vrot.slane %v3917_v2, 2  ;;  %v4530_v42 = vpop.permute.xlu1 %4529  ;;  %v4528_v39 = vpop.permute.xlu0 %4527  ;;  %v10504_v60 = vld [vmem:[#allocation210_spill] sm:$0xff]  ;;  %v10505_v50 = vld [vmem:[#allocation211_spill] sm:$0xff] }
 0x37d   :  { %v3684_v59 = vadd.f32 %v10496_v9, %v3364_v0  ;;  %v3683_v61 = vadd.f32 %v10497_v38, %v3363_v13  ;;  %v4540_v36 = vadd.f32 %v4530_v42, %v4220_v33  ;;  %v3929_v3 = vsel %vm1412_vm1, %v3926_v35, %v3928_v11 }
 0x37e   :  { %v4539_v22 = vadd.f32 %v4528_v39, %v4219_v45  ;;  %v3927_v49 = vsel %vm1412_vm1, %v3925_v46, %v3926_v35  ;;  %v3933_v27 = vrot.slane %v3918_v1, 2  ;;  %v3930_v41 = vrot.slane %v3916_v20, 2 }
 0x37f   :  { %v4222_v28 = vadd.f32 %v10498_v16, %v3910_v29  ;;  %v4221_v34 = vadd.f32 %v10499_v30, %v3909_v14  ;;  %4615 = vst.msk [vmem:[#allocation5 + $0x68] sm:$0xff] %vm4583_vm2, %v4540_v36  ;;  %v3940_v23 = vadd.f32 %v3929_v3, %v3684_v59  ;;  %v3939_v55 = vadd.f32 %v3927_v49, %v3683_v61 }
 0x380   :  { %4614 = vst.msk [vmem:[#allocation5 + $0x60] sm:$0xff] %vm4583_vm2, %v4539_v22  ;;  %v4534_v32 = vpop.permute.xlu1 %4533  ;;  %v4532_v52 = vpop.permute.xlu0 %4531  ;;  %v3934_v17 = vsel %vm1412_vm1, %v3931_v63, %v3933_v27  ;;  %v3932_v54 = vsel %vm1412_vm1, %v3930_v41, %v3931_v63 }
 0x381   :  { %v4542_v47 = vadd.f32 %v4534_v32, %v4222_v28  ;;  %v4541_v56 = vadd.f32 %v4532_v52, %v4221_v34  ;;  %v4260_v37 = vadd.f32 %v10500_v48, %v3940_v23  ;;  %v4259_v57 = vadd.f32 %v10501_v31, %v3939_v55 }
 0x382   :  { %v3942_v53 = vadd.f32 %v3934_v17, %v10502_v19  ;;  %v3941_v18 = vadd.f32 %v3932_v54, %v10503_v58 }
 0x383   :  { %4617 = vst.msk [vmem:[#allocation5 + $0xe8] sm:$0xff] %vm4583_vm2, %v4542_v47  ;;  %4616 = vst.msk [vmem:[#allocation5 + $0xe0] sm:$0xff] %vm4583_vm2, %v4541_v56 }
 0x384   :  { %v4570_v26 = vpop.permute.xlu1 %4569  ;;  %v4568_v21 = vpop.permute.xlu0 %4567  ;;  %v4262_v25 = vadd.f32 %v10504_v60, %v3942_v53  ;;  %v4261_v43 = vadd.f32 %v10505_v50, %v3941_v18 }
 0x385   :  { %v4580_v10 = vadd.f32 %v4570_v26, %v4260_v37  ;;  %v4579_v7 = vadd.f32 %v4568_v21, %v4259_v57 }
 0x387   :  { %4620 = vst.msk [vmem:[#allocation5 + $0x78] sm:$0xff] %vm4583_vm2, %v4580_v10  ;;  %4619 = vst.msk [vmem:[#allocation5 + $0x70] sm:$0xff] %vm4583_vm2, %v4579_v7 }
 0x388   :  { %v4574_v15 = vpop.permute.xlu1 %4573  ;;  %v4572_v2 = vpop.permute.xlu0 %4571 }
 0x389   :  { %v4582_v1 = vadd.f32 %v4574_v15, %v4262_v25  ;;  %v4581_v62 = vadd.f32 %v4572_v2, %v4261_v43 }
 0x38b   :  { %4622 = vst.msk [vmem:[#allocation5 + $0xf8] sm:$0xff] %vm4583_vm2, %v4582_v1  ;;  %4621 = vst.msk [vmem:[#allocation5 + $0xf0] sm:$0xff] %vm4583_vm2, %v4581_v62 }
 0x38c   :  { %4852 = shalt.err (!%p4849_p9)
}
 0x38d   :  { %s4853_s19 = scalar_lea.hbm %s9501_s2, 4096 }
 0x38e   :  { %p4854_p10 = scmp.ne.s32.totalorder %s9501_s2, %s4853_s19  ;;  %p4857_p11 = scmp.lt.u32.totalorder %s4853_s19, %s9501_s2 }
 0x390   :  { %p4859_p12 = pnand %p4857_p11, %p4854_p10 }
 0x392   :  { %4862 = shalt.err (!%p4859_p12)
}
 0x393   :  { %s4871_s4 = smov 128   ;;  %s4872_s25 = smov 8  }
 0x394   :  { %4634 = dma.vmem_to_hbm [thread:$0]  %s4629_s16, 4096, %s9501_s2, [#allocation3], %s4871_s4, %s4871_s4, %s4872_s25  }
 0x395   :  { %4865 = dma.done.wait [#allocation3], 4096  }
 0x396   :  { %4866 = vsyncadd [#allocation3], 4294963200 }
 0x397   :  { %4638 = vsyncpa [#allocation3], 1 }
 0x398   :  { %4639 = vsyncpa [#allocation4], 1 }

</bundles_post_ra>
